<compile_context>
chip_gen: v7x
topology: tpu7x:2x2x1
jax: 0.10.0
libtpu: 0.0.40
codegen_flags: <defaults>
</compile_context>

<pallas_src>
import functools

import numpy as np
import jax
import jax.numpy as jnp
from jax.experimental import pallas as pl
from jax.experimental.pallas import tpu as pltpu

KSIZE = 5
PAD = 2
BN_EPS = 1e-5
LEAKY_SLOPE = 0.2
LANE = 128


def _full_spec(shape):
    nd = len(shape)
    return pl.BlockSpec(shape, lambda *_: (0,) * nd)


def _row_pad(wo):
    # Rows of padding above/below a space-to-depth activation so every shifted
    # row window (|shift| <= wo + 1) stays in bounds.  Rounded to 8 sublanes.
    return ((wo + 1 + 7) // 8) * 8


def _phase_tap_table():
    """T[k9, a*2+b, ph*2+pw, ky, kx] = 1 iff conv tap (ky, kx), evaluated at pool
    phase (ph, pw), reads the input pixel of parity (a, b) at pooled-grid offset
    (dy, dx), with k9 = (dy+1)*3 + (dx+1)."""
    t = np.zeros((9, 4, 4, KSIZE, KSIZE), np.float32)
    for ph in range(2):
        for pw in range(2):
            for ky in range(KSIZE):
                for kx in range(KSIZE):
                    dy, a = divmod(ph + ky - PAD, 2)
                    dx, b = divmod(pw + kx - PAD, 2)
                    t[(dy + 1) * 3 + (dx + 1), a * 2 + b, ph * 2 + pw, ky, kx] = 1.0
    return t


_PHASE_TAP_TABLE = _phase_tap_table()


# --------------------------- in-kernel building blocks ----------------------

def _conv_block(src_ref, row_pad, n, ho, wo, cin, cout, wbig_ref, aff_ref):
    """Fused Conv5x5(pad=2, stride=1) -> MaxPool2d(2) -> BatchNorm2d(train) -> LeakyReLU(0.2).

    src_ref : (2*row_pad + n*ho*wo, 4*cin) bf16.  Space-to-depth input: rows are
              (n, ho, wo) of THIS block's pooled grid (real data at rows
              [row_pad, row_pad + M)), columns are (h%2, w%2, cin).
    wbig_ref: (9, 4*cin, 4*cout) bf16.  Per (dy, dx) conv weights with the 4 pool
              phases stacked along the output columns.
    aff_ref : (3, 1, cout) f32 -- conv bias, BN gamma, BN beta.
    Returns the block output, (n*ho*wo, cout) float32, rows ordered (n, ho, wo).
    """
    m = n * ho * wo
    assert wo & (wo - 1) == 0 and ho & (ho - 1) == 0
    lw = wo.bit_length() - 1
    idx = jax.lax.broadcasted_iota(jnp.int32, (m, 1), 0)
    wo_idx = idx & (wo - 1)
    ho_idx = (idx >> lw) & (ho - 1)

    acc = jnp.zeros((m, 4 * cout), jnp.float32)
    for dy in (-1, 0, 1):
        ok_h = jnp.logical_and(ho_idx + dy >= 0, ho_idx + dy < ho)
        for dx in (-1, 0, 1):
            start = row_pad + dy * wo + dx
            src = src_ref[start:start + m, :]
            if not (dy == 0 and dx == 0):
                ok = jnp.logical_and(
                    ok_h, jnp.logical_and(wo_idx + dx >= 0, wo_idx + dx < wo))
                src = jnp.where(ok, src, jnp.zeros_like(src))
            w9 = wbig_ref[(dy + 1) * 3 + (dx + 1)]
            acc = acc + jnp.dot(src, w9, preferred_element_type=jnp.float32)

    # 2x2 max-pool == max over the 4 stacked phase blocks.  Conv bias is added
    # after the max (equivalent: per-channel constant).
    pooled = jnp.maximum(
        jnp.maximum(acc[:, 0 * cout:1 * cout], acc[:, 1 * cout:2 * cout]),
        jnp.maximum(acc[:, 2 * cout:3 * cout], acc[:, 3 * cout:4 * cout]))
    pooled = pooled + aff_ref[0]

    # Training-mode BatchNorm2d: one-pass batch stats over (N, Ho, Wo),
    # biased variance, eps=1e-5.
    inv_m = 1.0 / m
    mean = jnp.sum(pooled, axis=0, keepdims=True) * inv_m
    mean_sq = jnp.sum(pooled * pooled, axis=0, keepdims=True) * inv_m
    var = mean_sq - mean * mean
    y = (pooled - mean) * jax.lax.rsqrt(var + BN_EPS)
    y = y * aff_ref[1] + aff_ref[2]
    # LeakyReLU(0.2): slope < 1, so max(y, 0.2*y) == where(y >= 0, y, 0.2*y).
    return jnp.maximum(y, LEAKY_SLOPE * y)


def _space_to_depth(y, n, ho, wo, cout, dst_ref, dst_row_pad):
    """Write y (rows (n, ho, wo), cols cout, f32) as the NEXT block's
    space-to-depth input: rows (n, ho//2, wo//2) at dst rows
    [dst_row_pad, dst_row_pad + M//4), cols ((ho%2)*2 + (wo%2), cout)."""
    ho2, wo2 = ho // 2, wo // 2
    rows_i = jax.lax.broadcasted_iota(jnp.int32, (wo2, 2 * wo), 0)
    cols_i = jax.lax.broadcasted_iota(jnp.int32, (wo2, 2 * wo), 1)
    sel = [(cols_i == a * wo + 2 * rows_i + b).astype(jnp.float32)
           for a in range(2) for b in range(2)]
    for g in range(n * ho2):                     # g = n_idx * ho2 + ho2_idx
        span = y[g * 2 * wo:(g + 1) * 2 * wo, :]  # (2*wo, cout): two ho rows
        base = dst_row_pad + g * wo2
        for a in range(2):
            for b in range(2):
                piece = jnp.dot(sel[a * 2 + b], span,
                                preferred_element_type=jnp.float32)
                col = (a * 2 + b) * cout
                dst_ref[base:base + wo2, col:col + cout] = piece.astype(dst_ref.dtype)


def _hqr_kernel(x1_ref, wb1_ref, wb2_ref, wb3_ref,
                aff1_ref, aff2_ref, aff3_ref,
                w1_ref, b1_ref, w2_ref, b2_ref,
                out_ref,
                x2_scr, x3_scr, flat_scr,
                *, n, grids, chans, pads):
    c0, c1, c2, c3 = chans
    (h1, w1), (h2, w2), (h3, w3) = grids
    p1, p2, p3 = pads

    y1 = _conv_block(x1_ref, p1, n, h1, w1, c0, c1, wb1_ref, aff1_ref)
    _space_to_depth(y1, n, h1, w1, c1, x2_scr, p2)

    y2 = _conv_block(x2_scr, p2, n, h2, w2, c1, c2, wb2_ref, aff2_ref)
    _space_to_depth(y2, n, h2, w2, c2, x3_scr, p3)

    y3 = _conv_block(x3_scr, p3, n, h3, w3, c2, c3, wb3_ref, aff3_ref)

    # Flatten.  Kernel order is (p, c) with p = ho*W3 + wo; the NCHW flatten
    # order of nn.Flatten is matched by permuting Linear-1's rows in the wrapper.
    hw3 = h3 * w3
    for ni in range(n):
        for p in range(hw3):
            flat_scr[ni:ni + 1, p * c3:(p + 1) * c3] = (
                y3[ni * hw3 + p:ni * hw3 + p + 1, :])
    flat = flat_scr[...]

    hid = jnp.dot(flat, w1_ref[...], preferred_element_type=jnp.float32) + b1_ref[...]
    out_ref[...] = (jnp.dot(hid, w2_ref[...], preferred_element_type=jnp.float32)
                    + b2_ref[...])


# ------------------------------ JAX wrapper ---------------------------------

def hqr_cifar10_forward(x_nchw, params):
    """Forward pass of HQR_CIFAR10 (dim=2).  Input is NCHW like PyTorch."""
    x = jnp.transpose(x_nchw, (0, 2, 3, 1)).astype(jnp.float32)   # NHWC
    n, h, w, c0 = x.shape
    assert h == w and h >= 8 and (h & (h - 1)) == 0

    (wk1, b1c, g1, be1), (wk2, b2c, g2, be2), (wk3, b3c, g3, be3) = params["blocks"]
    c1, c2, c3 = wk1.shape[-1], wk2.shape[-1], wk3.shape[-1]
    h1, w1 = h // 2, w // 2
    h2, w2 = h1 // 2, w1 // 2
    h3, w3 = h2 // 2, w2 // 2
    p1, p2, p3 = _row_pad(w1), _row_pad(w2), _row_pad(w3)
    hw3 = h3 * w3
    m1, m2, m3 = n * h1 * w1, n * h2 * w2, n * h3 * w3

    # Block-1 input in space-to-depth layout (same byte count as the activation),
    # bf16, with zero rows above/below for the in-kernel shifted tap windows.
    xs = x.reshape(n, h1, 2, w1, 2, c0).transpose(0, 1, 3, 2, 4, 5)
    xs = xs.reshape(m1, 4 * c0)
    xs = jnp.pad(xs, ((p1, p1), (0, 0))).astype(jnp.bfloat16)

    # Per-(dy, dx) conv weights with the 4 pool phases stacked on the output dim.
    tbl = jnp.asarray(_PHASE_TAP_TABLE)

    def build_wbig(wk):
        cin, cout = wk.shape[2], wk.shape[3]
        wb = jnp.einsum("zapkl,klio->zaipo", tbl, wk)
        return wb.reshape(9, 4 * cin, 4 * cout).astype(jnp.bfloat16)

    wb1, wb2, wb3 = build_wbig(wk1), build_wbig(wk2), build_wbig(wk3)
    aff1 = jnp.stack([b1c, g1, be1], axis=0)   # (3, 1, cout): bias, gamma, beta
    aff2 = jnp.stack([b2c, g2, be2], axis=0)
    aff3 = jnp.stack([b3c, g3, be3], axis=0)

    # Head: permute Linear-1 rows from the NCHW flatten order (c, ho, wo) to the
    # kernel's (ho*wo, c) order; pad Linear-2 columns to a full 128-lane row so
    # the only HBM store is lane-dense (sliced back below).
    l5 = params["w1"].shape[1]
    l6 = params["w2"].shape[1]
    w1k = params["w1"].reshape(c3, hw3, l5).transpose(1, 0, 2).reshape(hw3 * c3, l5)
    w2p = jnp.pad(params["w2"], ((0, 0), (0, LANE - l6)))
    b2p = jnp.pad(params["b2"], ((0, 0), (0, LANE - l6)))

    kernel = functools.partial(
        _hqr_kernel, n=n,
        grids=((h1, w1), (h2, w2), (h3, w3)),
        chans=(c0, c1, c2, c3), pads=(p1, p2, p3))

    inputs = (xs, wb1, wb2, wb3, aff1, aff2, aff3,
              w1k, params["b1"], w2p, b2p)

    flops = 2 * 9 * (m1 * 4 * c0 * 4 * c1 + m2 * 4 * c1 * 4 * c2
                     + m3 * 4 * c2 * 4 * c3)
    flops += 2 * n * (hw3 * c3 * l5 + l5 * LANE)
    bytes_accessed = sum(int(np.prod(a.shape)) * a.dtype.itemsize for a in inputs)
    bytes_accessed += n * LANE * 4

    out = pl.pallas_call(
        kernel,
        grid=(1,),
        in_specs=[_full_spec(a.shape) for a in inputs],
        out_specs=_full_spec((n, LANE)),
        out_shape=jax.ShapeDtypeStruct((n, LANE), jnp.float32),
        scratch_shapes=[
            pltpu.VMEM((2 * p2 + m2, 4 * c1), jnp.bfloat16),   # block-2 s2d input
            pltpu.VMEM((2 * p3 + m3, 4 * c2), jnp.bfloat16),   # block-3 s2d input
            pltpu.VMEM((n, hw3 * c3), jnp.float32),            # flatten buffer
        ],
        compiler_params=pltpu.CompilerParams(
            dimension_semantics=("arbitrary",)),
        cost_estimate=pl.CostEstimate(
            flops=int(flops), transcendentals=int(c1 + c2 + c3),
            bytes_accessed=int(bytes_accessed)),
    )(*inputs)
    return out[:, :l6]


def init_params(key, layer):
    """Deterministic synthetic parameters (shapes match the nn.Module __init__)."""
    ks = jax.random.split(key, 8)
    chans = [layer[0], layer[1], layer[2], layer[3]]
    blocks = []
    for i in range(3):
        cin, cout = chans[i], chans[i + 1]
        # conv weight kept as (kH, kW, Cin, Cout); equivalent to PyTorch
        # (Cout, Cin, kH, kW) permuted to the (ky, kx, cin) tap order.
        wk = 0.1 * jax.random.normal(ks[i], (KSIZE, KSIZE, cin, cout), jnp.float32)
        b = 0.05 * jax.random.normal(ks[i + 3], (1, cout), jnp.float32)
        gamma = jnp.ones((1, cout), jnp.float32)    # BatchNorm default weight
        beta = jnp.zeros((1, cout), jnp.float32)    # BatchNorm default bias
        blocks.append((wk, b, gamma, beta))
    # Linear weights stored already transposed: (in, out), y = x @ W + b,
    # with the input index in NCHW flatten order (c, h, w).
    w1 = 0.1 * jax.random.normal(ks[6], (layer[4], layer[5]), jnp.float32)
    b1 = jnp.zeros((1, layer[5]), jnp.float32)
    w2 = 0.1 * jax.random.normal(ks[7], (layer[5], layer[6]), jnp.float32)
    b2 = jnp.zeros((1, layer[6]), jnp.float32)
    return {"blocks": blocks, "w1": w1, "b1": b1, "w2": w2, "b2": b2}


if __name__ == "__main__":
    key = jax.random.PRNGKey(0)
    pkey, xkey = jax.random.split(key)
    # dim=2, 16x16 input, 3 pools -> 2x2 spatial, so layer[4] = layer[3] * 2 * 2.
    layer = [4, 8, 16, 32, 32 * 2 * 2, 32, 10]
    params = init_params(pkey, layer)
    x = jax.random.normal(xkey, (2, layer[0], 16, 16), jnp.float32)   # NCHW input
    fwd = jax.jit(hqr_cifar10_forward)
    out = fwd(x, params)
    jax.block_until_ready(out)
    assert out.shape == (2, layer[6]) and out.dtype == jnp.float32
    print("KERNEL_OK")
</pallas_src>

<mosaic_0001>
module attributes {stable_mosaic.version = 11 : i64} {
  func.func @_hqr_kernel(%arg0: i32, %arg1: memref<160x16xbf16, #tpu.memory_space<vmem>>, %arg2: memref<9x16x32xbf16, #tpu.memory_space<vmem>>, %arg3: memref<9x32x64xbf16, #tpu.memory_space<vmem>>, %arg4: memref<9x64x128xbf16, #tpu.memory_space<vmem>>, %arg5: memref<3x1x8xf32, #tpu.memory_space<vmem>>, %arg6: memref<3x1x16xf32, #tpu.memory_space<vmem>>, %arg7: memref<3x1x32xf32, #tpu.memory_space<vmem>>, %arg8: memref<128x32xf32, #tpu.memory_space<vmem>>, %arg9: memref<1x32xf32, #tpu.memory_space<vmem>>, %arg10: memref<32x128xf32, #tpu.memory_space<vmem>>, %arg11: memref<1x128xf32, #tpu.memory_space<vmem>>, %arg12: memref<2x128xf32, #tpu.memory_space<vmem>>, %arg13: memref<48x32xbf16, #tpu.memory_space<vmem>>, %arg14: memref<24x64xbf16, #tpu.memory_space<vmem>>, %arg15: memref<2x128xf32, #tpu.memory_space<vmem>>) attributes {dimension_semantics = [#tpu.dimension_semantics<arbitrary>], iteration_bounds = array<i64: 1>, scalar_prefetch = 0 : i64, scratch_operands = 3 : i64, tpu.core_type = #tpu.core_type<tc>, window_params = [{pipeline_mode = #tpu.pipeline_mode<synchronous>, transform_indices = @transform_0, window_bounds = array<i64: 160, 16>}, {pipeline_mode = #tpu.pipeline_mode<synchronous>, transform_indices = @transform_1, window_bounds = array<i64: 9, 16, 32>}, {pipeline_mode = #tpu.pipeline_mode<synchronous>, transform_indices = @transform_2, window_bounds = array<i64: 9, 32, 64>}, {pipeline_mode = #tpu.pipeline_mode<synchronous>, transform_indices = @transform_3, window_bounds = array<i64: 9, 64, 128>}, {pipeline_mode = #tpu.pipeline_mode<synchronous>, transform_indices = @transform_4, window_bounds = array<i64: 3, 1, 8>}, {pipeline_mode = #tpu.pipeline_mode<synchronous>, transform_indices = @transform_5, window_bounds = array<i64: 3, 1, 16>}, {pipeline_mode = #tpu.pipeline_mode<synchronous>, transform_indices = @transform_6, window_bounds = array<i64: 3, 1, 32>}, {pipeline_mode = #tpu.pipeline_mode<synchronous>, transform_indices = @transform_7, window_bounds = array<i64: 128, 32>}, {pipeline_mode = #tpu.pipeline_mode<synchronous>, transform_indices = @transform_8, window_bounds = array<i64: 1, 32>}, {pipeline_mode = #tpu.pipeline_mode<synchronous>, transform_indices = @transform_9, window_bounds = array<i64: 32, 128>}, {pipeline_mode = #tpu.pipeline_mode<synchronous>, transform_indices = @transform_10, window_bounds = array<i64: 1, 128>}, {pipeline_mode = #tpu.pipeline_mode<synchronous>, transform_indices = @transform_11, window_bounds = array<i64: 2, 128>}]} {
    %0 = tpu.iota {dimensions = array<i32: 0>} : vector<128x1xi32>
    %c7_i32 = arith.constant 7 : i32
    %1 = vector.broadcast %c7_i32 : i32 to vector<128x1xi32>
    %2 = arith.andi %0, %1 : vector<128x1xi32>
    %c3_i32 = arith.constant 3 : i32
    %3 = vector.broadcast %c3_i32 : i32 to vector<128x1xi32>
    %4 = arith.shrsi %0, %3 : vector<128x1xi32>
    %c7_i32_0 = arith.constant 7 : i32
    %5 = vector.broadcast %c7_i32_0 : i32 to vector<128x1xi32>
    %6 = arith.andi %4, %5 : vector<128x1xi32>
    %cst = arith.constant 0.000000e+00 : f32
    %7 = vector.broadcast %cst : f32 to vector<128x32xf32>
    %c-1_i32 = arith.constant -1 : i32
    %8 = vector.broadcast %c-1_i32 : i32 to vector<128x1xi32>
    %9 = arith.addi %6, %8 : vector<128x1xi32>
    %c0_i32 = arith.constant 0 : i32
    %10 = vector.broadcast %c0_i32 : i32 to vector<128x1xi32>
    %11 = arith.cmpi sge, %9, %10 : vector<128x1xi32>
    %c-1_i32_1 = arith.constant -1 : i32
    %12 = vector.broadcast %c-1_i32_1 : i32 to vector<128x1xi32>
    %13 = arith.addi %6, %12 : vector<128x1xi32>
    %c8_i32 = arith.constant 8 : i32
    %14 = vector.broadcast %c8_i32 : i32 to vector<128x1xi32>
    %15 = arith.cmpi slt, %13, %14 : vector<128x1xi32>
    %16 = arith.andi %11, %15 : vector<128x1xi1>
    %c7 = arith.constant 7 : index
    %c0 = arith.constant 0 : index
    %17 = vector.load %arg1[%c7, %c0] : memref<160x16xbf16, #tpu.memory_space<vmem>>, vector<128x16xbf16>
    %c-1_i32_2 = arith.constant -1 : i32
    %18 = vector.broadcast %c-1_i32_2 : i32 to vector<128x1xi32>
    %19 = arith.addi %2, %18 : vector<128x1xi32>
    %c0_i32_3 = arith.constant 0 : i32
    %20 = vector.broadcast %c0_i32_3 : i32 to vector<128x1xi32>
    %21 = arith.cmpi sge, %19, %20 : vector<128x1xi32>
    %c-1_i32_4 = arith.constant -1 : i32
    %22 = vector.broadcast %c-1_i32_4 : i32 to vector<128x1xi32>
    %23 = arith.addi %2, %22 : vector<128x1xi32>
    %c8_i32_5 = arith.constant 8 : i32
    %24 = vector.broadcast %c8_i32_5 : i32 to vector<128x1xi32>
    %25 = arith.cmpi slt, %23, %24 : vector<128x1xi32>
    %26 = arith.andi %21, %25 : vector<128x1xi1>
    %27 = arith.andi %16, %26 : vector<128x1xi1>
    %cst_6 = arith.constant 0.000000e+00 : bf16
    %28 = vector.broadcast %cst_6 : bf16 to vector<128x16xbf16>
    %29 = vector.shape_cast %27 : vector<128x1xi1> to vector<128x1xi1>
    %30 = vector.broadcast %29 : vector<128x1xi1> to vector<128x16xi1>
    %31 = arith.select %30, %17, %28 : vector<128x16xi1>, vector<128x16xbf16>
    %c0_7 = arith.constant 0 : index
    %c0_8 = arith.constant 0 : index
    %c0_9 = arith.constant 0 : index
    %32 = vector.load %arg2[%c0_7, %c0_8, %c0_9] : memref<9x16x32xbf16, #tpu.memory_space<vmem>>, vector<1x16x32xbf16>
    %33 = vector.shape_cast %32 : vector<1x16x32xbf16> to vector<16x32xbf16>
    %cst_10 = arith.constant dense<0.000000e+00> : vector<128x32xf32>
    %34 = tpu.matmul %31, %33, %cst_10 {dimension_numbers = #tpu.dot_dimension_numbers<[1], [0], [0], [1], [0, 0, 1, 1], [], []>} : vector<128x16xbf16>, vector<16x32xbf16>, vector<128x32xf32> -> vector<128x32xf32>
    %35 = arith.addf %7, %34 : vector<128x32xf32>
    %c8 = arith.constant 8 : index
    %c0_11 = arith.constant 0 : index
    %36 = vector.load %arg1[%c8, %c0_11] : memref<160x16xbf16, #tpu.memory_space<vmem>>, vector<128x16xbf16>
    %c0_i32_12 = arith.constant 0 : i32
    %37 = vector.broadcast %c0_i32_12 : i32 to vector<128x1xi32>
    %38 = arith.addi %2, %37 : vector<128x1xi32>
    %c0_i32_13 = arith.constant 0 : i32
    %39 = vector.broadcast %c0_i32_13 : i32 to vector<128x1xi32>
    %40 = arith.cmpi sge, %38, %39 : vector<128x1xi32>
    %c0_i32_14 = arith.constant 0 : i32
    %41 = vector.broadcast %c0_i32_14 : i32 to vector<128x1xi32>
    %42 = arith.addi %2, %41 : vector<128x1xi32>
    %c8_i32_15 = arith.constant 8 : i32
    %43 = vector.broadcast %c8_i32_15 : i32 to vector<128x1xi32>
    %44 = arith.cmpi slt, %42, %43 : vector<128x1xi32>
    %45 = arith.andi %40, %44 : vector<128x1xi1>
    %46 = arith.andi %16, %45 : vector<128x1xi1>
    %cst_16 = arith.constant 0.000000e+00 : bf16
    %47 = vector.broadcast %cst_16 : bf16 to vector<128x16xbf16>
    %48 = vector.shape_cast %46 : vector<128x1xi1> to vector<128x1xi1>
    %49 = vector.broadcast %48 : vector<128x1xi1> to vector<128x16xi1>
    %50 = arith.select %49, %36, %47 : vector<128x16xi1>, vector<128x16xbf16>
    %c1 = arith.constant 1 : index
    %c0_17 = arith.constant 0 : index
    %c0_18 = arith.constant 0 : index
    %51 = vector.load %arg2[%c1, %c0_17, %c0_18] : memref<9x16x32xbf16, #tpu.memory_space<vmem>>, vector<1x16x32xbf16>
    %52 = vector.shape_cast %51 : vector<1x16x32xbf16> to vector<16x32xbf16>
    %cst_19 = arith.constant dense<0.000000e+00> : vector<128x32xf32>
    %53 = tpu.matmul %50, %52, %cst_19 {dimension_numbers = #tpu.dot_dimension_numbers<[1], [0], [0], [1], [0, 0, 1, 1], [], []>} : vector<128x16xbf16>, vector<16x32xbf16>, vector<128x32xf32> -> vector<128x32xf32>
    %54 = arith.addf %35, %53 : vector<128x32xf32>
    %c9 = arith.constant 9 : index
    %c0_20 = arith.constant 0 : index
    %55 = vector.load %arg1[%c9, %c0_20] : memref<160x16xbf16, #tpu.memory_space<vmem>>, vector<128x16xbf16>
    %c1_i32 = arith.constant 1 : i32
    %56 = vector.broadcast %c1_i32 : i32 to vector<128x1xi32>
    %57 = arith.addi %2, %56 : vector<128x1xi32>
    %c0_i32_21 = arith.constant 0 : i32
    %58 = vector.broadcast %c0_i32_21 : i32 to vector<128x1xi32>
    %59 = arith.cmpi sge, %57, %58 : vector<128x1xi32>
    %c1_i32_22 = arith.constant 1 : i32
    %60 = vector.broadcast %c1_i32_22 : i32 to vector<128x1xi32>
    %61 = arith.addi %2, %60 : vector<128x1xi32>
    %c8_i32_23 = arith.constant 8 : i32
    %62 = vector.broadcast %c8_i32_23 : i32 to vector<128x1xi32>
    %63 = arith.cmpi slt, %61, %62 : vector<128x1xi32>
    %64 = arith.andi %59, %63 : vector<128x1xi1>
    %65 = arith.andi %16, %64 : vector<128x1xi1>
    %cst_24 = arith.constant 0.000000e+00 : bf16
    %66 = vector.broadcast %cst_24 : bf16 to vector<128x16xbf16>
    %67 = vector.shape_cast %65 : vector<128x1xi1> to vector<128x1xi1>
    %68 = vector.broadcast %67 : vector<128x1xi1> to vector<128x16xi1>
    %69 = arith.select %68, %55, %66 : vector<128x16xi1>, vector<128x16xbf16>
    %c2 = arith.constant 2 : index
    %c0_25 = arith.constant 0 : index
    %c0_26 = arith.constant 0 : index
    %70 = vector.load %arg2[%c2, %c0_25, %c0_26] : memref<9x16x32xbf16, #tpu.memory_space<vmem>>, vector<1x16x32xbf16>
    %71 = vector.shape_cast %70 : vector<1x16x32xbf16> to vector<16x32xbf16>
    %cst_27 = arith.constant dense<0.000000e+00> : vector<128x32xf32>
    %72 = tpu.matmul %69, %71, %cst_27 {dimension_numbers = #tpu.dot_dimension_numbers<[1], [0], [0], [1], [0, 0, 1, 1], [], []>} : vector<128x16xbf16>, vector<16x32xbf16>, vector<128x32xf32> -> vector<128x32xf32>
    %73 = arith.addf %54, %72 : vector<128x32xf32>
    %c0_i32_28 = arith.constant 0 : i32
    %74 = vector.broadcast %c0_i32_28 : i32 to vector<128x1xi32>
    %75 = arith.addi %6, %74 : vector<128x1xi32>
    %c0_i32_29 = arith.constant 0 : i32
    %76 = vector.broadcast %c0_i32_29 : i32 to vector<128x1xi32>
    %77 = arith.cmpi sge, %75, %76 : vector<128x1xi32>
    %c0_i32_30 = arith.constant 0 : i32
    %78 = vector.broadcast %c0_i32_30 : i32 to vector<128x1xi32>
    %79 = arith.addi %6, %78 : vector<128x1xi32>
    %c8_i32_31 = arith.constant 8 : i32
    %80 = vector.broadcast %c8_i32_31 : i32 to vector<128x1xi32>
    %81 = arith.cmpi slt, %79, %80 : vector<128x1xi32>
    %82 = arith.andi %77, %81 : vector<128x1xi1>
    %c15 = arith.constant 15 : index
    %c0_32 = arith.constant 0 : index
    %83 = vector.load %arg1[%c15, %c0_32] : memref<160x16xbf16, #tpu.memory_space<vmem>>, vector<128x16xbf16>
    %c-1_i32_33 = arith.constant -1 : i32
    %84 = vector.broadcast %c-1_i32_33 : i32 to vector<128x1xi32>
    %85 = arith.addi %2, %84 : vector<128x1xi32>
    %c0_i32_34 = arith.constant 0 : i32
    %86 = vector.broadcast %c0_i32_34 : i32 to vector<128x1xi32>
    %87 = arith.cmpi sge, %85, %86 : vector<128x1xi32>
    %c-1_i32_35 = arith.constant -1 : i32
    %88 = vector.broadcast %c-1_i32_35 : i32 to vector<128x1xi32>
    %89 = arith.addi %2, %88 : vector<128x1xi32>
    %c8_i32_36 = arith.constant 8 : i32
    %90 = vector.broadcast %c8_i32_36 : i32 to vector<128x1xi32>
    %91 = arith.cmpi slt, %89, %90 : vector<128x1xi32>
    %92 = arith.andi %87, %91 : vector<128x1xi1>
    %93 = arith.andi %82, %92 : vector<128x1xi1>
    %cst_37 = arith.constant 0.000000e+00 : bf16
    %94 = vector.broadcast %cst_37 : bf16 to vector<128x16xbf16>
    %95 = vector.shape_cast %93 : vector<128x1xi1> to vector<128x1xi1>
    %96 = vector.broadcast %95 : vector<128x1xi1> to vector<128x16xi1>
    %97 = arith.select %96, %83, %94 : vector<128x16xi1>, vector<128x16xbf16>
    %c3 = arith.constant 3 : index
    %c0_38 = arith.constant 0 : index
    %c0_39 = arith.constant 0 : index
    %98 = vector.load %arg2[%c3, %c0_38, %c0_39] : memref<9x16x32xbf16, #tpu.memory_space<vmem>>, vector<1x16x32xbf16>
    %99 = vector.shape_cast %98 : vector<1x16x32xbf16> to vector<16x32xbf16>
    %cst_40 = arith.constant dense<0.000000e+00> : vector<128x32xf32>
    %100 = tpu.matmul %97, %99, %cst_40 {dimension_numbers = #tpu.dot_dimension_numbers<[1], [0], [0], [1], [0, 0, 1, 1], [], []>} : vector<128x16xbf16>, vector<16x32xbf16>, vector<128x32xf32> -> vector<128x32xf32>
    %101 = arith.addf %73, %100 : vector<128x32xf32>
    %c16 = arith.constant 16 : index
    %c0_41 = arith.constant 0 : index
    %102 = vector.load %arg1[%c16, %c0_41] : memref<160x16xbf16, #tpu.memory_space<vmem>>, vector<128x16xbf16>
    %c4 = arith.constant 4 : index
    %c0_42 = arith.constant 0 : index
    %c0_43 = arith.constant 0 : index
    %103 = vector.load %arg2[%c4, %c0_42, %c0_43] : memref<9x16x32xbf16, #tpu.memory_space<vmem>>, vector<1x16x32xbf16>
    %104 = vector.shape_cast %103 : vector<1x16x32xbf16> to vector<16x32xbf16>
    %cst_44 = arith.constant dense<0.000000e+00> : vector<128x32xf32>
    %105 = tpu.matmul %102, %104, %cst_44 {dimension_numbers = #tpu.dot_dimension_numbers<[1], [0], [0], [1], [0, 0, 1, 1], [], []>} : vector<128x16xbf16>, vector<16x32xbf16>, vector<128x32xf32> -> vector<128x32xf32>
    %106 = arith.addf %101, %105 : vector<128x32xf32>
    %c17 = arith.constant 17 : index
    %c0_45 = arith.constant 0 : index
    %107 = vector.load %arg1[%c17, %c0_45] : memref<160x16xbf16, #tpu.memory_space<vmem>>, vector<128x16xbf16>
    %c1_i32_46 = arith.constant 1 : i32
    %108 = vector.broadcast %c1_i32_46 : i32 to vector<128x1xi32>
    %109 = arith.addi %2, %108 : vector<128x1xi32>
    %c0_i32_47 = arith.constant 0 : i32
    %110 = vector.broadcast %c0_i32_47 : i32 to vector<128x1xi32>
    %111 = arith.cmpi sge, %109, %110 : vector<128x1xi32>
    %c1_i32_48 = arith.constant 1 : i32
    %112 = vector.broadcast %c1_i32_48 : i32 to vector<128x1xi32>
    %113 = arith.addi %2, %112 : vector<128x1xi32>
    %c8_i32_49 = arith.constant 8 : i32
    %114 = vector.broadcast %c8_i32_49 : i32 to vector<128x1xi32>
    %115 = arith.cmpi slt, %113, %114 : vector<128x1xi32>
    %116 = arith.andi %111, %115 : vector<128x1xi1>
    %117 = arith.andi %82, %116 : vector<128x1xi1>
    %cst_50 = arith.constant 0.000000e+00 : bf16
    %118 = vector.broadcast %cst_50 : bf16 to vector<128x16xbf16>
    %119 = vector.shape_cast %117 : vector<128x1xi1> to vector<128x1xi1>
    %120 = vector.broadcast %119 : vector<128x1xi1> to vector<128x16xi1>
    %121 = arith.select %120, %107, %118 : vector<128x16xi1>, vector<128x16xbf16>
    %c5 = arith.constant 5 : index
    %c0_51 = arith.constant 0 : index
    %c0_52 = arith.constant 0 : index
    %122 = vector.load %arg2[%c5, %c0_51, %c0_52] : memref<9x16x32xbf16, #tpu.memory_space<vmem>>, vector<1x16x32xbf16>
    %123 = vector.shape_cast %122 : vector<1x16x32xbf16> to vector<16x32xbf16>
    %cst_53 = arith.constant dense<0.000000e+00> : vector<128x32xf32>
    %124 = tpu.matmul %121, %123, %cst_53 {dimension_numbers = #tpu.dot_dimension_numbers<[1], [0], [0], [1], [0, 0, 1, 1], [], []>} : vector<128x16xbf16>, vector<16x32xbf16>, vector<128x32xf32> -> vector<128x32xf32>
    %125 = arith.addf %106, %124 : vector<128x32xf32>
    %c1_i32_54 = arith.constant 1 : i32
    %126 = vector.broadcast %c1_i32_54 : i32 to vector<128x1xi32>
    %127 = arith.addi %6, %126 : vector<128x1xi32>
    %c0_i32_55 = arith.constant 0 : i32
    %128 = vector.broadcast %c0_i32_55 : i32 to vector<128x1xi32>
    %129 = arith.cmpi sge, %127, %128 : vector<128x1xi32>
    %c1_i32_56 = arith.constant 1 : i32
    %130 = vector.broadcast %c1_i32_56 : i32 to vector<128x1xi32>
    %131 = arith.addi %6, %130 : vector<128x1xi32>
    %c8_i32_57 = arith.constant 8 : i32
    %132 = vector.broadcast %c8_i32_57 : i32 to vector<128x1xi32>
    %133 = arith.cmpi slt, %131, %132 : vector<128x1xi32>
    %134 = arith.andi %129, %133 : vector<128x1xi1>
    %c23 = arith.constant 23 : index
    %c0_58 = arith.constant 0 : index
    %135 = vector.load %arg1[%c23, %c0_58] : memref<160x16xbf16, #tpu.memory_space<vmem>>, vector<128x16xbf16>
    %c-1_i32_59 = arith.constant -1 : i32
    %136 = vector.broadcast %c-1_i32_59 : i32 to vector<128x1xi32>
    %137 = arith.addi %2, %136 : vector<128x1xi32>
    %c0_i32_60 = arith.constant 0 : i32
    %138 = vector.broadcast %c0_i32_60 : i32 to vector<128x1xi32>
    %139 = arith.cmpi sge, %137, %138 : vector<128x1xi32>
    %c-1_i32_61 = arith.constant -1 : i32
    %140 = vector.broadcast %c-1_i32_61 : i32 to vector<128x1xi32>
    %141 = arith.addi %2, %140 : vector<128x1xi32>
    %c8_i32_62 = arith.constant 8 : i32
    %142 = vector.broadcast %c8_i32_62 : i32 to vector<128x1xi32>
    %143 = arith.cmpi slt, %141, %142 : vector<128x1xi32>
    %144 = arith.andi %139, %143 : vector<128x1xi1>
    %145 = arith.andi %134, %144 : vector<128x1xi1>
    %cst_63 = arith.constant 0.000000e+00 : bf16
    %146 = vector.broadcast %cst_63 : bf16 to vector<128x16xbf16>
    %147 = vector.shape_cast %145 : vector<128x1xi1> to vector<128x1xi1>
    %148 = vector.broadcast %147 : vector<128x1xi1> to vector<128x16xi1>
    %149 = arith.select %148, %135, %146 : vector<128x16xi1>, vector<128x16xbf16>
    %c6 = arith.constant 6 : index
    %c0_64 = arith.constant 0 : index
    %c0_65 = arith.constant 0 : index
    %150 = vector.load %arg2[%c6, %c0_64, %c0_65] : memref<9x16x32xbf16, #tpu.memory_space<vmem>>, vector<1x16x32xbf16>
    %151 = vector.shape_cast %150 : vector<1x16x32xbf16> to vector<16x32xbf16>
    %cst_66 = arith.constant dense<0.000000e+00> : vector<128x32xf32>
    %152 = tpu.matmul %149, %151, %cst_66 {dimension_numbers = #tpu.dot_dimension_numbers<[1], [0], [0], [1], [0, 0, 1, 1], [], []>} : vector<128x16xbf16>, vector<16x32xbf16>, vector<128x32xf32> -> vector<128x32xf32>
    %153 = arith.addf %125, %152 : vector<128x32xf32>
    %c24 = arith.constant 24 : index
    %c0_67 = arith.constant 0 : index
    %154 = vector.load %arg1[%c24, %c0_67] : memref<160x16xbf16, #tpu.memory_space<vmem>>, vector<128x16xbf16>
    %c0_i32_68 = arith.constant 0 : i32
    %155 = vector.broadcast %c0_i32_68 : i32 to vector<128x1xi32>
    %156 = arith.addi %2, %155 : vector<128x1xi32>
    %c0_i32_69 = arith.constant 0 : i32
    %157 = vector.broadcast %c0_i32_69 : i32 to vector<128x1xi32>
    %158 = arith.cmpi sge, %156, %157 : vector<128x1xi32>
    %c0_i32_70 = arith.constant 0 : i32
    %159 = vector.broadcast %c0_i32_70 : i32 to vector<128x1xi32>
    %160 = arith.addi %2, %159 : vector<128x1xi32>
    %c8_i32_71 = arith.constant 8 : i32
    %161 = vector.broadcast %c8_i32_71 : i32 to vector<128x1xi32>
    %162 = arith.cmpi slt, %160, %161 : vector<128x1xi32>
    %163 = arith.andi %158, %162 : vector<128x1xi1>
    %164 = arith.andi %134, %163 : vector<128x1xi1>
    %cst_72 = arith.constant 0.000000e+00 : bf16
    %165 = vector.broadcast %cst_72 : bf16 to vector<128x16xbf16>
    %166 = vector.shape_cast %164 : vector<128x1xi1> to vector<128x1xi1>
    %167 = vector.broadcast %166 : vector<128x1xi1> to vector<128x16xi1>
    %168 = arith.select %167, %154, %165 : vector<128x16xi1>, vector<128x16xbf16>
    %c7_73 = arith.constant 7 : index
    %c0_74 = arith.constant 0 : index
    %c0_75 = arith.constant 0 : index
    %169 = vector.load %arg2[%c7_73, %c0_74, %c0_75] : memref<9x16x32xbf16, #tpu.memory_space<vmem>>, vector<1x16x32xbf16>
    %170 = vector.shape_cast %169 : vector<1x16x32xbf16> to vector<16x32xbf16>
    %cst_76 = arith.constant dense<0.000000e+00> : vector<128x32xf32>
    %171 = tpu.matmul %168, %170, %cst_76 {dimension_numbers = #tpu.dot_dimension_numbers<[1], [0], [0], [1], [0, 0, 1, 1], [], []>} : vector<128x16xbf16>, vector<16x32xbf16>, vector<128x32xf32> -> vector<128x32xf32>
    %172 = arith.addf %153, %171 : vector<128x32xf32>
    %c25 = arith.constant 25 : index
    %c0_77 = arith.constant 0 : index
    %173 = vector.load %arg1[%c25, %c0_77] : memref<160x16xbf16, #tpu.memory_space<vmem>>, vector<128x16xbf16>
    %c1_i32_78 = arith.constant 1 : i32
    %174 = vector.broadcast %c1_i32_78 : i32 to vector<128x1xi32>
    %175 = arith.addi %2, %174 : vector<128x1xi32>
    %c0_i32_79 = arith.constant 0 : i32
    %176 = vector.broadcast %c0_i32_79 : i32 to vector<128x1xi32>
    %177 = arith.cmpi sge, %175, %176 : vector<128x1xi32>
    %c1_i32_80 = arith.constant 1 : i32
    %178 = vector.broadcast %c1_i32_80 : i32 to vector<128x1xi32>
    %179 = arith.addi %2, %178 : vector<128x1xi32>
    %c8_i32_81 = arith.constant 8 : i32
    %180 = vector.broadcast %c8_i32_81 : i32 to vector<128x1xi32>
    %181 = arith.cmpi slt, %179, %180 : vector<128x1xi32>
    %182 = arith.andi %177, %181 : vector<128x1xi1>
    %183 = arith.andi %134, %182 : vector<128x1xi1>
    %cst_82 = arith.constant 0.000000e+00 : bf16
    %184 = vector.broadcast %cst_82 : bf16 to vector<128x16xbf16>
    %185 = vector.shape_cast %183 : vector<128x1xi1> to vector<128x1xi1>
    %186 = vector.broadcast %185 : vector<128x1xi1> to vector<128x16xi1>
    %187 = arith.select %186, %173, %184 : vector<128x16xi1>, vector<128x16xbf16>
    %c8_83 = arith.constant 8 : index
    %c0_84 = arith.constant 0 : index
    %c0_85 = arith.constant 0 : index
    %188 = vector.load %arg2[%c8_83, %c0_84, %c0_85] : memref<9x16x32xbf16, #tpu.memory_space<vmem>>, vector<1x16x32xbf16>
    %189 = vector.shape_cast %188 : vector<1x16x32xbf16> to vector<16x32xbf16>
    %cst_86 = arith.constant dense<0.000000e+00> : vector<128x32xf32>
    %190 = tpu.matmul %187, %189, %cst_86 {dimension_numbers = #tpu.dot_dimension_numbers<[1], [0], [0], [1], [0, 0, 1, 1], [], []>} : vector<128x16xbf16>, vector<16x32xbf16>, vector<128x32xf32> -> vector<128x32xf32>
    %191 = arith.addf %172, %190 : vector<128x32xf32>
    %192 = vector.extract_strided_slice %191 {offsets = [0, 0], sizes = [128, 8], strides = [1, 1]} : vector<128x32xf32> to vector<128x8xf32>
    %193 = vector.extract_strided_slice %191 {offsets = [0, 8], sizes = [128, 8], strides = [1, 1]} : vector<128x32xf32> to vector<128x8xf32>
    %194 = arith.maximumf %192, %193 : vector<128x8xf32>
    %195 = vector.extract_strided_slice %191 {offsets = [0, 16], sizes = [128, 8], strides = [1, 1]} : vector<128x32xf32> to vector<128x8xf32>
    %196 = vector.extract_strided_slice %191 {offsets = [0, 24], sizes = [128, 8], strides = [1, 1]} : vector<128x32xf32> to vector<128x8xf32>
    %197 = arith.maximumf %195, %196 : vector<128x8xf32>
    %198 = arith.maximumf %194, %197 : vector<128x8xf32>
    %c0_87 = arith.constant 0 : index
    %c0_88 = arith.constant 0 : index
    %c0_89 = arith.constant 0 : index
    %199 = vector.load %arg5[%c0_87, %c0_88, %c0_89] : memref<3x1x8xf32, #tpu.memory_space<vmem>>, vector<1x1x8xf32>
    %200 = vector.shape_cast %199 : vector<1x1x8xf32> to vector<1x8xf32>
    %201 = vector.broadcast %200 : vector<1x8xf32> to vector<128x8xf32>
    %202 = arith.addf %198, %201 : vector<128x8xf32>
    %cst_90 = arith.constant dense<0.000000e+00> : vector<8xf32>
    %203 = vector.multi_reduction <add>, %202, %cst_90 [0] : vector<128x8xf32> to vector<8xf32>
    %204 = vector.shape_cast %203 : vector<8xf32> to vector<1x8xf32>
    %cst_91 = arith.constant 7.812500e-03 : f32
    %205 = vector.broadcast %cst_91 : f32 to vector<1x8xf32>
    %206 = arith.mulf %204, %205 : vector<1x8xf32>
    %207 = arith.mulf %202, %202 : vector<128x8xf32>
    %cst_92 = arith.constant dense<0.000000e+00> : vector<8xf32>
    %208 = vector.multi_reduction <add>, %207, %cst_92 [0] : vector<128x8xf32> to vector<8xf32>
    %209 = vector.shape_cast %208 : vector<8xf32> to vector<1x8xf32>
    %cst_93 = arith.constant 7.812500e-03 : f32
    %210 = vector.broadcast %cst_93 : f32 to vector<1x8xf32>
    %211 = arith.mulf %209, %210 : vector<1x8xf32>
    %212 = arith.mulf %206, %206 : vector<1x8xf32>
    %213 = arith.subf %211, %212 : vector<1x8xf32>
    %214 = vector.broadcast %206 : vector<1x8xf32> to vector<128x8xf32>
    %215 = arith.subf %202, %214 : vector<128x8xf32>
    %cst_94 = arith.constant 9.99999974E-6 : f32
    %216 = vector.broadcast %cst_94 : f32 to vector<1x8xf32>
    %217 = arith.addf %213, %216 : vector<1x8xf32>
    %218 = math.rsqrt %217 : vector<1x8xf32>
    %219 = vector.broadcast %218 : vector<1x8xf32> to vector<128x8xf32>
    %220 = arith.mulf %215, %219 : vector<128x8xf32>
    %c1_95 = arith.constant 1 : index
    %c0_96 = arith.constant 0 : index
    %c0_97 = arith.constant 0 : index
    %221 = vector.load %arg5[%c1_95, %c0_96, %c0_97] : memref<3x1x8xf32, #tpu.memory_space<vmem>>, vector<1x1x8xf32>
    %222 = vector.shape_cast %221 : vector<1x1x8xf32> to vector<1x8xf32>
    %223 = vector.broadcast %222 : vector<1x8xf32> to vector<128x8xf32>
    %224 = arith.mulf %220, %223 : vector<128x8xf32>
    %c2_98 = arith.constant 2 : index
    %c0_99 = arith.constant 0 : index
    %c0_100 = arith.constant 0 : index
    %225 = vector.load %arg5[%c2_98, %c0_99, %c0_100] : memref<3x1x8xf32, #tpu.memory_space<vmem>>, vector<1x1x8xf32>
    %226 = vector.shape_cast %225 : vector<1x1x8xf32> to vector<1x8xf32>
    %227 = vector.broadcast %226 : vector<1x8xf32> to vector<128x8xf32>
    %228 = arith.addf %224, %227 : vector<128x8xf32>
    %cst_101 = arith.constant 2.000000e-01 : f32
    %229 = vector.broadcast %cst_101 : f32 to vector<128x8xf32>
    %230 = arith.mulf %229, %228 : vector<128x8xf32>
    %231 = arith.maximumf %228, %230 : vector<128x8xf32>
    %232 = tpu.iota {dimensions = array<i32: 0>} : vector<4x16xi32>
    %233 = tpu.iota {dimensions = array<i32: 1>} : vector<4x16xi32>
    %c2_i32 = arith.constant 2 : i32
    %234 = vector.broadcast %c2_i32 : i32 to vector<4x16xi32>
    %235 = arith.muli %234, %232 : vector<4x16xi32>
    %c0_i32_102 = arith.constant 0 : i32
    %236 = vector.broadcast %c0_i32_102 : i32 to vector<4x16xi32>
    %237 = arith.addi %236, %235 : vector<4x16xi32>
    %c0_i32_103 = arith.constant 0 : i32
    %238 = vector.broadcast %c0_i32_103 : i32 to vector<4x16xi32>
    %239 = arith.addi %237, %238 : vector<4x16xi32>
    %240 = arith.cmpi eq, %233, %239 : vector<4x16xi32>
    %241 = arith.extui %240 : vector<4x16xi1> to vector<4x16xi32>
    %242 = arith.sitofp %241 : vector<4x16xi32> to vector<4x16xf32>
    %c2_i32_104 = arith.constant 2 : i32
    %243 = vector.broadcast %c2_i32_104 : i32 to vector<4x16xi32>
    %244 = arith.muli %243, %232 : vector<4x16xi32>
    %c0_i32_105 = arith.constant 0 : i32
    %245 = vector.broadcast %c0_i32_105 : i32 to vector<4x16xi32>
    %246 = arith.addi %245, %244 : vector<4x16xi32>
    %c1_i32_106 = arith.constant 1 : i32
    %247 = vector.broadcast %c1_i32_106 : i32 to vector<4x16xi32>
    %248 = arith.addi %246, %247 : vector<4x16xi32>
    %249 = arith.cmpi eq, %233, %248 : vector<4x16xi32>
    %250 = arith.extui %249 : vector<4x16xi1> to vector<4x16xi32>
    %251 = arith.sitofp %250 : vector<4x16xi32> to vector<4x16xf32>
    %c2_i32_107 = arith.constant 2 : i32
    %252 = vector.broadcast %c2_i32_107 : i32 to vector<4x16xi32>
    %253 = arith.muli %252, %232 : vector<4x16xi32>
    %c8_i32_108 = arith.constant 8 : i32
    %254 = vector.broadcast %c8_i32_108 : i32 to vector<4x16xi32>
    %255 = arith.addi %254, %253 : vector<4x16xi32>
    %c0_i32_109 = arith.constant 0 : i32
    %256 = vector.broadcast %c0_i32_109 : i32 to vector<4x16xi32>
    %257 = arith.addi %255, %256 : vector<4x16xi32>
    %258 = arith.cmpi eq, %233, %257 : vector<4x16xi32>
    %259 = arith.extui %258 : vector<4x16xi1> to vector<4x16xi32>
    %260 = arith.sitofp %259 : vector<4x16xi32> to vector<4x16xf32>
    %c2_i32_110 = arith.constant 2 : i32
    %261 = vector.broadcast %c2_i32_110 : i32 to vector<4x16xi32>
    %262 = arith.muli %261, %232 : vector<4x16xi32>
    %c8_i32_111 = arith.constant 8 : i32
    %263 = vector.broadcast %c8_i32_111 : i32 to vector<4x16xi32>
    %264 = arith.addi %263, %262 : vector<4x16xi32>
    %c1_i32_112 = arith.constant 1 : i32
    %265 = vector.broadcast %c1_i32_112 : i32 to vector<4x16xi32>
    %266 = arith.addi %264, %265 : vector<4x16xi32>
    %267 = arith.cmpi eq, %233, %266 : vector<4x16xi32>
    %268 = arith.extui %267 : vector<4x16xi1> to vector<4x16xi32>
    %269 = arith.sitofp %268 : vector<4x16xi32> to vector<4x16xf32>
    %270 = vector.extract_strided_slice %231 {offsets = [0, 0], sizes = [16, 8], strides = [1, 1]} : vector<128x8xf32> to vector<16x8xf32>
    %cst_113 = arith.constant dense<0.000000e+00> : vector<4x8xf32>
    %271 = tpu.matmul %242, %270, %cst_113 {dimension_numbers = #tpu.dot_dimension_numbers<[1], [0], [0], [1], [0, 0, 1, 1], [], []>} : vector<4x16xf32>, vector<16x8xf32>, vector<4x8xf32> -> vector<4x8xf32>
    %272 = arith.truncf %271 : vector<4x8xf32> to vector<4x8xbf16>
    %c8_114 = arith.constant 8 : index
    %c0_115 = arith.constant 0 : index
    %273 = vector.load %arg13[%c8_114, %c0_115] : memref<48x32xbf16, #tpu.memory_space<vmem>>, vector<4x8xbf16>
    tpu.vector_store %arg13[%c8_114, %c0_115], %272 {strides = array<i32>} : memref<48x32xbf16, #tpu.memory_space<vmem>>, vector<4x8xbf16>,
    %cst_116 = arith.constant dense<0.000000e+00> : vector<4x8xf32>
    %274 = tpu.matmul %251, %270, %cst_116 {dimension_numbers = #tpu.dot_dimension_numbers<[1], [0], [0], [1], [0, 0, 1, 1], [], []>} : vector<4x16xf32>, vector<16x8xf32>, vector<4x8xf32> -> vector<4x8xf32>
    %275 = arith.truncf %274 : vector<4x8xf32> to vector<4x8xbf16>
    %c8_117 = arith.constant 8 : index
    %c8_118 = arith.constant 8 : index
    %276 = vector.load %arg13[%c8_117, %c8_118] : memref<48x32xbf16, #tpu.memory_space<vmem>>, vector<4x8xbf16>
    tpu.vector_store %arg13[%c8_117, %c8_118], %275 {strides = array<i32>} : memref<48x32xbf16, #tpu.memory_space<vmem>>, vector<4x8xbf16>,
    %cst_119 = arith.constant dense<0.000000e+00> : vector<4x8xf32>
    %277 = tpu.matmul %260, %270, %cst_119 {dimension_numbers = #tpu.dot_dimension_numbers<[1], [0], [0], [1], [0, 0, 1, 1], [], []>} : vector<4x16xf32>, vector<16x8xf32>, vector<4x8xf32> -> vector<4x8xf32>
    %278 = arith.truncf %277 : vector<4x8xf32> to vector<4x8xbf16>
    %c8_120 = arith.constant 8 : index
    %c16_121 = arith.constant 16 : index
    %279 = vector.load %arg13[%c8_120, %c16_121] : memref<48x32xbf16, #tpu.memory_space<vmem>>, vector<4x8xbf16>
    tpu.vector_store %arg13[%c8_120, %c16_121], %278 {strides = array<i32>} : memref<48x32xbf16, #tpu.memory_space<vmem>>, vector<4x8xbf16>,
    %cst_122 = arith.constant dense<0.000000e+00> : vector<4x8xf32>
    %280 = tpu.matmul %269, %270, %cst_122 {dimension_numbers = #tpu.dot_dimension_numbers<[1], [0], [0], [1], [0, 0, 1, 1], [], []>} : vector<4x16xf32>, vector<16x8xf32>, vector<4x8xf32> -> vector<4x8xf32>
    %281 = arith.truncf %280 : vector<4x8xf32> to vector<4x8xbf16>
    %c8_123 = arith.constant 8 : index
    %c24_124 = arith.constant 24 : index
    %282 = vector.load %arg13[%c8_123, %c24_124] : memref<48x32xbf16, #tpu.memory_space<vmem>>, vector<4x8xbf16>
    tpu.vector_store %arg13[%c8_123, %c24_124], %281 {strides = array<i32>} : memref<48x32xbf16, #tpu.memory_space<vmem>>, vector<4x8xbf16>,
    %283 = vector.extract_strided_slice %231 {offsets = [16, 0], sizes = [16, 8], strides = [1, 1]} : vector<128x8xf32> to vector<16x8xf32>
    %cst_125 = arith.constant dense<0.000000e+00> : vector<4x8xf32>
    %284 = tpu.matmul %242, %283, %cst_125 {dimension_numbers = #tpu.dot_dimension_numbers<[1], [0], [0], [1], [0, 0, 1, 1], [], []>} : vector<4x16xf32>, vector<16x8xf32>, vector<4x8xf32> -> vector<4x8xf32>
    %285 = arith.truncf %284 : vector<4x8xf32> to vector<4x8xbf16>
    %c12 = arith.constant 12 : index
    %c0_126 = arith.constant 0 : index
    %286 = vector.load %arg13[%c12, %c0_126] : memref<48x32xbf16, #tpu.memory_space<vmem>>, vector<4x8xbf16>
    tpu.vector_store %arg13[%c12, %c0_126], %285 {strides = array<i32>} : memref<48x32xbf16, #tpu.memory_space<vmem>>, vector<4x8xbf16>,
    %cst_127 = arith.constant dense<0.000000e+00> : vector<4x8xf32>
    %287 = tpu.matmul %251, %283, %cst_127 {dimension_numbers = #tpu.dot_dimension_numbers<[1], [0], [0], [1], [0, 0, 1, 1], [], []>} : vector<4x16xf32>, vector<16x8xf32>, vector<4x8xf32> -> vector<4x8xf32>
    %288 = arith.truncf %287 : vector<4x8xf32> to vector<4x8xbf16>
    %c12_128 = arith.constant 12 : index
    %c8_129 = arith.constant 8 : index
    %289 = vector.load %arg13[%c12_128, %c8_129] : memref<48x32xbf16, #tpu.memory_space<vmem>>, vector<4x8xbf16>
    tpu.vector_store %arg13[%c12_128, %c8_129], %288 {strides = array<i32>} : memref<48x32xbf16, #tpu.memory_space<vmem>>, vector<4x8xbf16>,
    %cst_130 = arith.constant dense<0.000000e+00> : vector<4x8xf32>
    %290 = tpu.matmul %260, %283, %cst_130 {dimension_numbers = #tpu.dot_dimension_numbers<[1], [0], [0], [1], [0, 0, 1, 1], [], []>} : vector<4x16xf32>, vector<16x8xf32>, vector<4x8xf32> -> vector<4x8xf32>
    %291 = arith.truncf %290 : vector<4x8xf32> to vector<4x8xbf16>
    %c12_131 = arith.constant 12 : index
    %c16_132 = arith.constant 16 : index
    %292 = vector.load %arg13[%c12_131, %c16_132] : memref<48x32xbf16, #tpu.memory_space<vmem>>, vector<4x8xbf16>
    tpu.vector_store %arg13[%c12_131, %c16_132], %291 {strides = array<i32>} : memref<48x32xbf16, #tpu.memory_space<vmem>>, vector<4x8xbf16>,
    %cst_133 = arith.constant dense<0.000000e+00> : vector<4x8xf32>
    %293 = tpu.matmul %269, %283, %cst_133 {dimension_numbers = #tpu.dot_dimension_numbers<[1], [0], [0], [1], [0, 0, 1, 1], [], []>} : vector<4x16xf32>, vector<16x8xf32>, vector<4x8xf32> -> vector<4x8xf32>
    %294 = arith.truncf %293 : vector<4x8xf32> to vector<4x8xbf16>
    %c12_134 = arith.constant 12 : index
    %c24_135 = arith.constant 24 : index
    %295 = vector.load %arg13[%c12_134, %c24_135] : memref<48x32xbf16, #tpu.memory_space<vmem>>, vector<4x8xbf16>
    tpu.vector_store %arg13[%c12_134, %c24_135], %294 {strides = array<i32>} : memref<48x32xbf16, #tpu.memory_space<vmem>>, vector<4x8xbf16>,
    %296 = vector.extract_strided_slice %231 {offsets = [32, 0], sizes = [16, 8], strides = [1, 1]} : vector<128x8xf32> to vector<16x8xf32>
    %cst_136 = arith.constant dense<0.000000e+00> : vector<4x8xf32>
    %297 = tpu.matmul %242, %296, %cst_136 {dimension_numbers = #tpu.dot_dimension_numbers<[1], [0], [0], [1], [0, 0, 1, 1], [], []>} : vector<4x16xf32>, vector<16x8xf32>, vector<4x8xf32> -> vector<4x8xf32>
    %298 = arith.truncf %297 : vector<4x8xf32> to vector<4x8xbf16>
    %c16_137 = arith.constant 16 : index
    %c0_138 = arith.constant 0 : index
    %299 = vector.load %arg13[%c16_137, %c0_138] : memref<48x32xbf16, #tpu.memory_space<vmem>>, vector<4x8xbf16>
    tpu.vector_store %arg13[%c16_137, %c0_138], %298 {strides = array<i32>} : memref<48x32xbf16, #tpu.memory_space<vmem>>, vector<4x8xbf16>,
    %cst_139 = arith.constant dense<0.000000e+00> : vector<4x8xf32>
    %300 = tpu.matmul %251, %296, %cst_139 {dimension_numbers = #tpu.dot_dimension_numbers<[1], [0], [0], [1], [0, 0, 1, 1], [], []>} : vector<4x16xf32>, vector<16x8xf32>, vector<4x8xf32> -> vector<4x8xf32>
    %301 = arith.truncf %300 : vector<4x8xf32> to vector<4x8xbf16>
    %c16_140 = arith.constant 16 : index
    %c8_141 = arith.constant 8 : index
    %302 = vector.load %arg13[%c16_140, %c8_141] : memref<48x32xbf16, #tpu.memory_space<vmem>>, vector<4x8xbf16>
    tpu.vector_store %arg13[%c16_140, %c8_141], %301 {strides = array<i32>} : memref<48x32xbf16, #tpu.memory_space<vmem>>, vector<4x8xbf16>,
    %cst_142 = arith.constant dense<0.000000e+00> : vector<4x8xf32>
    %303 = tpu.matmul %260, %296, %cst_142 {dimension_numbers = #tpu.dot_dimension_numbers<[1], [0], [0], [1], [0, 0, 1, 1], [], []>} : vector<4x16xf32>, vector<16x8xf32>, vector<4x8xf32> -> vector<4x8xf32>
    %304 = arith.truncf %303 : vector<4x8xf32> to vector<4x8xbf16>
    %c16_143 = arith.constant 16 : index
    %c16_144 = arith.constant 16 : index
    %305 = vector.load %arg13[%c16_143, %c16_144] : memref<48x32xbf16, #tpu.memory_space<vmem>>, vector<4x8xbf16>
    tpu.vector_store %arg13[%c16_143, %c16_144], %304 {strides = array<i32>} : memref<48x32xbf16, #tpu.memory_space<vmem>>, vector<4x8xbf16>,
    %cst_145 = arith.constant dense<0.000000e+00> : vector<4x8xf32>
    %306 = tpu.matmul %269, %296, %cst_145 {dimension_numbers = #tpu.dot_dimension_numbers<[1], [0], [0], [1], [0, 0, 1, 1], [], []>} : vector<4x16xf32>, vector<16x8xf32>, vector<4x8xf32> -> vector<4x8xf32>
    %307 = arith.truncf %306 : vector<4x8xf32> to vector<4x8xbf16>
    %c16_146 = arith.constant 16 : index
    %c24_147 = arith.constant 24 : index
    %308 = vector.load %arg13[%c16_146, %c24_147] : memref<48x32xbf16, #tpu.memory_space<vmem>>, vector<4x8xbf16>
    tpu.vector_store %arg13[%c16_146, %c24_147], %307 {strides = array<i32>} : memref<48x32xbf16, #tpu.memory_space<vmem>>, vector<4x8xbf16>,
    %309 = vector.extract_strided_slice %231 {offsets = [48, 0], sizes = [16, 8], strides = [1, 1]} : vector<128x8xf32> to vector<16x8xf32>
    %cst_148 = arith.constant dense<0.000000e+00> : vector<4x8xf32>
    %310 = tpu.matmul %242, %309, %cst_148 {dimension_numbers = #tpu.dot_dimension_numbers<[1], [0], [0], [1], [0, 0, 1, 1], [], []>} : vector<4x16xf32>, vector<16x8xf32>, vector<4x8xf32> -> vector<4x8xf32>
    %311 = arith.truncf %310 : vector<4x8xf32> to vector<4x8xbf16>
    %c20 = arith.constant 20 : index
    %c0_149 = arith.constant 0 : index
    %312 = vector.load %arg13[%c20, %c0_149] : memref<48x32xbf16, #tpu.memory_space<vmem>>, vector<4x8xbf16>
    tpu.vector_store %arg13[%c20, %c0_149], %311 {strides = array<i32>} : memref<48x32xbf16, #tpu.memory_space<vmem>>, vector<4x8xbf16>,
    %cst_150 = arith.constant dense<0.000000e+00> : vector<4x8xf32>
    %313 = tpu.matmul %251, %309, %cst_150 {dimension_numbers = #tpu.dot_dimension_numbers<[1], [0], [0], [1], [0, 0, 1, 1], [], []>} : vector<4x16xf32>, vector<16x8xf32>, vector<4x8xf32> -> vector<4x8xf32>
    %314 = arith.truncf %313 : vector<4x8xf32> to vector<4x8xbf16>
    %c20_151 = arith.constant 20 : index
    %c8_152 = arith.constant 8 : index
    %315 = vector.load %arg13[%c20_151, %c8_152] : memref<48x32xbf16, #tpu.memory_space<vmem>>, vector<4x8xbf16>
    tpu.vector_store %arg13[%c20_151, %c8_152], %314 {strides = array<i32>} : memref<48x32xbf16, #tpu.memory_space<vmem>>, vector<4x8xbf16>,
    %cst_153 = arith.constant dense<0.000000e+00> : vector<4x8xf32>
    %316 = tpu.matmul %260, %309, %cst_153 {dimension_numbers = #tpu.dot_dimension_numbers<[1], [0], [0], [1], [0, 0, 1, 1], [], []>} : vector<4x16xf32>, vector<16x8xf32>, vector<4x8xf32> -> vector<4x8xf32>
    %317 = arith.truncf %316 : vector<4x8xf32> to vector<4x8xbf16>
    %c20_154 = arith.constant 20 : index
    %c16_155 = arith.constant 16 : index
    %318 = vector.load %arg13[%c20_154, %c16_155] : memref<48x32xbf16, #tpu.memory_space<vmem>>, vector<4x8xbf16>
    tpu.vector_store %arg13[%c20_154, %c16_155], %317 {strides = array<i32>} : memref<48x32xbf16, #tpu.memory_space<vmem>>, vector<4x8xbf16>,
    %cst_156 = arith.constant dense<0.000000e+00> : vector<4x8xf32>
    %319 = tpu.matmul %269, %309, %cst_156 {dimension_numbers = #tpu.dot_dimension_numbers<[1], [0], [0], [1], [0, 0, 1, 1], [], []>} : vector<4x16xf32>, vector<16x8xf32>, vector<4x8xf32> -> vector<4x8xf32>
    %320 = arith.truncf %319 : vector<4x8xf32> to vector<4x8xbf16>
    %c20_157 = arith.constant 20 : index
    %c24_158 = arith.constant 24 : index
    %321 = vector.load %arg13[%c20_157, %c24_158] : memref<48x32xbf16, #tpu.memory_space<vmem>>, vector<4x8xbf16>
    tpu.vector_store %arg13[%c20_157, %c24_158], %320 {strides = array<i32>} : memref<48x32xbf16, #tpu.memory_space<vmem>>, vector<4x8xbf16>,
    %322 = vector.extract_strided_slice %231 {offsets = [64, 0], sizes = [16, 8], strides = [1, 1]} : vector<128x8xf32> to vector<16x8xf32>
    %cst_159 = arith.constant dense<0.000000e+00> : vector<4x8xf32>
    %323 = tpu.matmul %242, %322, %cst_159 {dimension_numbers = #tpu.dot_dimension_numbers<[1], [0], [0], [1], [0, 0, 1, 1], [], []>} : vector<4x16xf32>, vector<16x8xf32>, vector<4x8xf32> -> vector<4x8xf32>
    %324 = arith.truncf %323 : vector<4x8xf32> to vector<4x8xbf16>
    %c24_160 = arith.constant 24 : index
    %c0_161 = arith.constant 0 : index
    %325 = vector.load %arg13[%c24_160, %c0_161] : memref<48x32xbf16, #tpu.memory_space<vmem>>, vector<4x8xbf16>
    tpu.vector_store %arg13[%c24_160, %c0_161], %324 {strides = array<i32>} : memref<48x32xbf16, #tpu.memory_space<vmem>>, vector<4x8xbf16>,
    %cst_162 = arith.constant dense<0.000000e+00> : vector<4x8xf32>
    %326 = tpu.matmul %251, %322, %cst_162 {dimension_numbers = #tpu.dot_dimension_numbers<[1], [0], [0], [1], [0, 0, 1, 1], [], []>} : vector<4x16xf32>, vector<16x8xf32>, vector<4x8xf32> -> vector<4x8xf32>
    %327 = arith.truncf %326 : vector<4x8xf32> to vector<4x8xbf16>
    %c24_163 = arith.constant 24 : index
    %c8_164 = arith.constant 8 : index
    %328 = vector.load %arg13[%c24_163, %c8_164] : memref<48x32xbf16, #tpu.memory_space<vmem>>, vector<4x8xbf16>
    tpu.vector_store %arg13[%c24_163, %c8_164], %327 {strides = array<i32>} : memref<48x32xbf16, #tpu.memory_space<vmem>>, vector<4x8xbf16>,
    %cst_165 = arith.constant dense<0.000000e+00> : vector<4x8xf32>
    %329 = tpu.matmul %260, %322, %cst_165 {dimension_numbers = #tpu.dot_dimension_numbers<[1], [0], [0], [1], [0, 0, 1, 1], [], []>} : vector<4x16xf32>, vector<16x8xf32>, vector<4x8xf32> -> vector<4x8xf32>
    %330 = arith.truncf %329 : vector<4x8xf32> to vector<4x8xbf16>
    %c24_166 = arith.constant 24 : index
    %c16_167 = arith.constant 16 : index
    %331 = vector.load %arg13[%c24_166, %c16_167] : memref<48x32xbf16, #tpu.memory_space<vmem>>, vector<4x8xbf16>
    tpu.vector_store %arg13[%c24_166, %c16_167], %330 {strides = array<i32>} : memref<48x32xbf16, #tpu.memory_space<vmem>>, vector<4x8xbf16>,
    %cst_168 = arith.constant dense<0.000000e+00> : vector<4x8xf32>
    %332 = tpu.matmul %269, %322, %cst_168 {dimension_numbers = #tpu.dot_dimension_numbers<[1], [0], [0], [1], [0, 0, 1, 1], [], []>} : vector<4x16xf32>, vector<16x8xf32>, vector<4x8xf32> -> vector<4x8xf32>
    %333 = arith.truncf %332 : vector<4x8xf32> to vector<4x8xbf16>
    %c24_169 = arith.constant 24 : index
    %c24_170 = arith.constant 24 : index
    %334 = vector.load %arg13[%c24_169, %c24_170] : memref<48x32xbf16, #tpu.memory_space<vmem>>, vector<4x8xbf16>
    tpu.vector_store %arg13[%c24_169, %c24_170], %333 {strides = array<i32>} : memref<48x32xbf16, #tpu.memory_space<vmem>>, vector<4x8xbf16>,
    %335 = vector.extract_strided_slice %231 {offsets = [80, 0], sizes = [16, 8], strides = [1, 1]} : vector<128x8xf32> to vector<16x8xf32>
    %cst_171 = arith.constant dense<0.000000e+00> : vector<4x8xf32>
    %336 = tpu.matmul %242, %335, %cst_171 {dimension_numbers = #tpu.dot_dimension_numbers<[1], [0], [0], [1], [0, 0, 1, 1], [], []>} : vector<4x16xf32>, vector<16x8xf32>, vector<4x8xf32> -> vector<4x8xf32>
    %337 = arith.truncf %336 : vector<4x8xf32> to vector<4x8xbf16>
    %c28 = arith.constant 28 : index
    %c0_172 = arith.constant 0 : index
    %338 = vector.load %arg13[%c28, %c0_172] : memref<48x32xbf16, #tpu.memory_space<vmem>>, vector<4x8xbf16>
    tpu.vector_store %arg13[%c28, %c0_172], %337 {strides = array<i32>} : memref<48x32xbf16, #tpu.memory_space<vmem>>, vector<4x8xbf16>,
    %cst_173 = arith.constant dense<0.000000e+00> : vector<4x8xf32>
    %339 = tpu.matmul %251, %335, %cst_173 {dimension_numbers = #tpu.dot_dimension_numbers<[1], [0], [0], [1], [0, 0, 1, 1], [], []>} : vector<4x16xf32>, vector<16x8xf32>, vector<4x8xf32> -> vector<4x8xf32>
    %340 = arith.truncf %339 : vector<4x8xf32> to vector<4x8xbf16>
    %c28_174 = arith.constant 28 : index
    %c8_175 = arith.constant 8 : index
    %341 = vector.load %arg13[%c28_174, %c8_175] : memref<48x32xbf16, #tpu.memory_space<vmem>>, vector<4x8xbf16>
    tpu.vector_store %arg13[%c28_174, %c8_175], %340 {strides = array<i32>} : memref<48x32xbf16, #tpu.memory_space<vmem>>, vector<4x8xbf16>,
    %cst_176 = arith.constant dense<0.000000e+00> : vector<4x8xf32>
    %342 = tpu.matmul %260, %335, %cst_176 {dimension_numbers = #tpu.dot_dimension_numbers<[1], [0], [0], [1], [0, 0, 1, 1], [], []>} : vector<4x16xf32>, vector<16x8xf32>, vector<4x8xf32> -> vector<4x8xf32>
    %343 = arith.truncf %342 : vector<4x8xf32> to vector<4x8xbf16>
    %c28_177 = arith.constant 28 : index
    %c16_178 = arith.constant 16 : index
    %344 = vector.load %arg13[%c28_177, %c16_178] : memref<48x32xbf16, #tpu.memory_space<vmem>>, vector<4x8xbf16>
    tpu.vector_store %arg13[%c28_177, %c16_178], %343 {strides = array<i32>} : memref<48x32xbf16, #tpu.memory_space<vmem>>, vector<4x8xbf16>,
    %cst_179 = arith.constant dense<0.000000e+00> : vector<4x8xf32>
    %345 = tpu.matmul %269, %335, %cst_179 {dimension_numbers = #tpu.dot_dimension_numbers<[1], [0], [0], [1], [0, 0, 1, 1], [], []>} : vector<4x16xf32>, vector<16x8xf32>, vector<4x8xf32> -> vector<4x8xf32>
    %346 = arith.truncf %345 : vector<4x8xf32> to vector<4x8xbf16>
    %c28_180 = arith.constant 28 : index
    %c24_181 = arith.constant 24 : index
    %347 = vector.load %arg13[%c28_180, %c24_181] : memref<48x32xbf16, #tpu.memory_space<vmem>>, vector<4x8xbf16>
    tpu.vector_store %arg13[%c28_180, %c24_181], %346 {strides = array<i32>} : memref<48x32xbf16, #tpu.memory_space<vmem>>, vector<4x8xbf16>,
    %348 = vector.extract_strided_slice %231 {offsets = [96, 0], sizes = [16, 8], strides = [1, 1]} : vector<128x8xf32> to vector<16x8xf32>
    %cst_182 = arith.constant dense<0.000000e+00> : vector<4x8xf32>
    %349 = tpu.matmul %242, %348, %cst_182 {dimension_numbers = #tpu.dot_dimension_numbers<[1], [0], [0], [1], [0, 0, 1, 1], [], []>} : vector<4x16xf32>, vector<16x8xf32>, vector<4x8xf32> -> vector<4x8xf32>
    %350 = arith.truncf %349 : vector<4x8xf32> to vector<4x8xbf16>
    %c32 = arith.constant 32 : index
    %c0_183 = arith.constant 0 : index
    %351 = vector.load %arg13[%c32, %c0_183] : memref<48x32xbf16, #tpu.memory_space<vmem>>, vector<4x8xbf16>
    tpu.vector_store %arg13[%c32, %c0_183], %350 {strides = array<i32>} : memref<48x32xbf16, #tpu.memory_space<vmem>>, vector<4x8xbf16>,
    %cst_184 = arith.constant dense<0.000000e+00> : vector<4x8xf32>
    %352 = tpu.matmul %251, %348, %cst_184 {dimension_numbers = #tpu.dot_dimension_numbers<[1], [0], [0], [1], [0, 0, 1, 1], [], []>} : vector<4x16xf32>, vector<16x8xf32>, vector<4x8xf32> -> vector<4x8xf32>
    %353 = arith.truncf %352 : vector<4x8xf32> to vector<4x8xbf16>
    %c32_185 = arith.constant 32 : index
    %c8_186 = arith.constant 8 : index
    %354 = vector.load %arg13[%c32_185, %c8_186] : memref<48x32xbf16, #tpu.memory_space<vmem>>, vector<4x8xbf16>
    tpu.vector_store %arg13[%c32_185, %c8_186], %353 {strides = array<i32>} : memref<48x32xbf16, #tpu.memory_space<vmem>>, vector<4x8xbf16>,
    %cst_187 = arith.constant dense<0.000000e+00> : vector<4x8xf32>
    %355 = tpu.matmul %260, %348, %cst_187 {dimension_numbers = #tpu.dot_dimension_numbers<[1], [0], [0], [1], [0, 0, 1, 1], [], []>} : vector<4x16xf32>, vector<16x8xf32>, vector<4x8xf32> -> vector<4x8xf32>
    %356 = arith.truncf %355 : vector<4x8xf32> to vector<4x8xbf16>
    %c32_188 = arith.constant 32 : index
    %c16_189 = arith.constant 16 : index
    %357 = vector.load %arg13[%c32_188, %c16_189] : memref<48x32xbf16, #tpu.memory_space<vmem>>, vector<4x8xbf16>
    tpu.vector_store %arg13[%c32_188, %c16_189], %356 {strides = array<i32>} : memref<48x32xbf16, #tpu.memory_space<vmem>>, vector<4x8xbf16>,
    %cst_190 = arith.constant dense<0.000000e+00> : vector<4x8xf32>
    %358 = tpu.matmul %269, %348, %cst_190 {dimension_numbers = #tpu.dot_dimension_numbers<[1], [0], [0], [1], [0, 0, 1, 1], [], []>} : vector<4x16xf32>, vector<16x8xf32>, vector<4x8xf32> -> vector<4x8xf32>
    %359 = arith.truncf %358 : vector<4x8xf32> to vector<4x8xbf16>
    %c32_191 = arith.constant 32 : index
    %c24_192 = arith.constant 24 : index
    %360 = vector.load %arg13[%c32_191, %c24_192] : memref<48x32xbf16, #tpu.memory_space<vmem>>, vector<4x8xbf16>
    tpu.vector_store %arg13[%c32_191, %c24_192], %359 {strides = array<i32>} : memref<48x32xbf16, #tpu.memory_space<vmem>>, vector<4x8xbf16>,
    %361 = vector.extract_strided_slice %231 {offsets = [112, 0], sizes = [16, 8], strides = [1, 1]} : vector<128x8xf32> to vector<16x8xf32>
    %cst_193 = arith.constant dense<0.000000e+00> : vector<4x8xf32>
    %362 = tpu.matmul %242, %361, %cst_193 {dimension_numbers = #tpu.dot_dimension_numbers<[1], [0], [0], [1], [0, 0, 1, 1], [], []>} : vector<4x16xf32>, vector<16x8xf32>, vector<4x8xf32> -> vector<4x8xf32>
    %363 = arith.truncf %362 : vector<4x8xf32> to vector<4x8xbf16>
    %c36 = arith.constant 36 : index
    %c0_194 = arith.constant 0 : index
    %364 = vector.load %arg13[%c36, %c0_194] : memref<48x32xbf16, #tpu.memory_space<vmem>>, vector<4x8xbf16>
    tpu.vector_store %arg13[%c36, %c0_194], %363 {strides = array<i32>} : memref<48x32xbf16, #tpu.memory_space<vmem>>, vector<4x8xbf16>,
    %cst_195 = arith.constant dense<0.000000e+00> : vector<4x8xf32>
    %365 = tpu.matmul %251, %361, %cst_195 {dimension_numbers = #tpu.dot_dimension_numbers<[1], [0], [0], [1], [0, 0, 1, 1], [], []>} : vector<4x16xf32>, vector<16x8xf32>, vector<4x8xf32> -> vector<4x8xf32>
    %366 = arith.truncf %365 : vector<4x8xf32> to vector<4x8xbf16>
    %c36_196 = arith.constant 36 : index
    %c8_197 = arith.constant 8 : index
    %367 = vector.load %arg13[%c36_196, %c8_197] : memref<48x32xbf16, #tpu.memory_space<vmem>>, vector<4x8xbf16>
    tpu.vector_store %arg13[%c36_196, %c8_197], %366 {strides = array<i32>} : memref<48x32xbf16, #tpu.memory_space<vmem>>, vector<4x8xbf16>,
    %cst_198 = arith.constant dense<0.000000e+00> : vector<4x8xf32>
    %368 = tpu.matmul %260, %361, %cst_198 {dimension_numbers = #tpu.dot_dimension_numbers<[1], [0], [0], [1], [0, 0, 1, 1], [], []>} : vector<4x16xf32>, vector<16x8xf32>, vector<4x8xf32> -> vector<4x8xf32>
    %369 = arith.truncf %368 : vector<4x8xf32> to vector<4x8xbf16>
    %c36_199 = arith.constant 36 : index
    %c16_200 = arith.constant 16 : index
    %370 = vector.load %arg13[%c36_199, %c16_200] : memref<48x32xbf16, #tpu.memory_space<vmem>>, vector<4x8xbf16>
    tpu.vector_store %arg13[%c36_199, %c16_200], %369 {strides = array<i32>} : memref<48x32xbf16, #tpu.memory_space<vmem>>, vector<4x8xbf16>,
    %cst_201 = arith.constant dense<0.000000e+00> : vector<4x8xf32>
    %371 = tpu.matmul %269, %361, %cst_201 {dimension_numbers = #tpu.dot_dimension_numbers<[1], [0], [0], [1], [0, 0, 1, 1], [], []>} : vector<4x16xf32>, vector<16x8xf32>, vector<4x8xf32> -> vector<4x8xf32>
    %372 = arith.truncf %371 : vector<4x8xf32> to vector<4x8xbf16>
    %c36_202 = arith.constant 36 : index
    %c24_203 = arith.constant 24 : index
    %373 = vector.load %arg13[%c36_202, %c24_203] : memref<48x32xbf16, #tpu.memory_space<vmem>>, vector<4x8xbf16>
    tpu.vector_store %arg13[%c36_202, %c24_203], %372 {strides = array<i32>} : memref<48x32xbf16, #tpu.memory_space<vmem>>, vector<4x8xbf16>,
    %374 = tpu.iota {dimensions = array<i32: 0>} : vector<32x1xi32>
    %c3_i32_204 = arith.constant 3 : i32
    %375 = vector.broadcast %c3_i32_204 : i32 to vector<32x1xi32>
    %376 = arith.andi %374, %375 : vector<32x1xi32>
    %c2_i32_205 = arith.constant 2 : i32
    %377 = vector.broadcast %c2_i32_205 : i32 to vector<32x1xi32>
    %378 = arith.shrsi %374, %377 : vector<32x1xi32>
    %c3_i32_206 = arith.constant 3 : i32
    %379 = vector.broadcast %c3_i32_206 : i32 to vector<32x1xi32>
    %380 = arith.andi %378, %379 : vector<32x1xi32>
    %cst_207 = arith.constant 0.000000e+00 : f32
    %381 = vector.broadcast %cst_207 : f32 to vector<32x64xf32>
    %c-1_i32_208 = arith.constant -1 : i32
    %382 = vector.broadcast %c-1_i32_208 : i32 to vector<32x1xi32>
    %383 = arith.addi %380, %382 : vector<32x1xi32>
    %c0_i32_209 = arith.constant 0 : i32
    %384 = vector.broadcast %c0_i32_209 : i32 to vector<32x1xi32>
    %385 = arith.cmpi sge, %383, %384 : vector<32x1xi32>
    %c-1_i32_210 = arith.constant -1 : i32
    %386 = vector.broadcast %c-1_i32_210 : i32 to vector<32x1xi32>
    %387 = arith.addi %380, %386 : vector<32x1xi32>
    %c4_i32 = arith.constant 4 : i32
    %388 = vector.broadcast %c4_i32 : i32 to vector<32x1xi32>
    %389 = arith.cmpi slt, %387, %388 : vector<32x1xi32>
    %390 = arith.andi %385, %389 : vector<32x1xi1>
    %c3_211 = arith.constant 3 : index
    %c0_212 = arith.constant 0 : index
    %391 = vector.load %arg13[%c3_211, %c0_212] : memref<48x32xbf16, #tpu.memory_space<vmem>>, vector<32x32xbf16>
    %c-1_i32_213 = arith.constant -1 : i32
    %392 = vector.broadcast %c-1_i32_213 : i32 to vector<32x1xi32>
    %393 = arith.addi %376, %392 : vector<32x1xi32>
    %c0_i32_214 = arith.constant 0 : i32
    %394 = vector.broadcast %c0_i32_214 : i32 to vector<32x1xi32>
    %395 = arith.cmpi sge, %393, %394 : vector<32x1xi32>
    %c-1_i32_215 = arith.constant -1 : i32
    %396 = vector.broadcast %c-1_i32_215 : i32 to vector<32x1xi32>
    %397 = arith.addi %376, %396 : vector<32x1xi32>
    %c4_i32_216 = arith.constant 4 : i32
    %398 = vector.broadcast %c4_i32_216 : i32 to vector<32x1xi32>
    %399 = arith.cmpi slt, %397, %398 : vector<32x1xi32>
    %400 = arith.andi %395, %399 : vector<32x1xi1>
    %401 = arith.andi %390, %400 : vector<32x1xi1>
    %cst_217 = arith.constant 0.000000e+00 : bf16
    %402 = vector.broadcast %cst_217 : bf16 to vector<32x32xbf16>
    %403 = vector.shape_cast %401 : vector<32x1xi1> to vector<32x1xi1>
    %404 = vector.broadcast %403 : vector<32x1xi1> to vector<32x32xi1>
    %405 = arith.select %404, %391, %402 : vector<32x32xi1>, vector<32x32xbf16>
    %c0_218 = arith.constant 0 : index
    %c0_219 = arith.constant 0 : index
    %c0_220 = arith.constant 0 : index
    %406 = vector.load %arg3[%c0_218, %c0_219, %c0_220] : memref<9x32x64xbf16, #tpu.memory_space<vmem>>, vector<1x32x64xbf16>
    %407 = vector.shape_cast %406 : vector<1x32x64xbf16> to vector<32x64xbf16>
    %cst_221 = arith.constant dense<0.000000e+00> : vector<32x64xf32>
    %408 = tpu.matmul %405, %407, %cst_221 {dimension_numbers = #tpu.dot_dimension_numbers<[1], [0], [0], [1], [0, 0, 1, 1], [], []>} : vector<32x32xbf16>, vector<32x64xbf16>, vector<32x64xf32> -> vector<32x64xf32>
    %409 = arith.addf %381, %408 : vector<32x64xf32>
    %c4_222 = arith.constant 4 : index
    %c0_223 = arith.constant 0 : index
    %410 = vector.load %arg13[%c4_222, %c0_223] : memref<48x32xbf16, #tpu.memory_space<vmem>>, vector<32x32xbf16>
    %c0_i32_224 = arith.constant 0 : i32
    %411 = vector.broadcast %c0_i32_224 : i32 to vector<32x1xi32>
    %412 = arith.addi %376, %411 : vector<32x1xi32>
    %c0_i32_225 = arith.constant 0 : i32
    %413 = vector.broadcast %c0_i32_225 : i32 to vector<32x1xi32>
    %414 = arith.cmpi sge, %412, %413 : vector<32x1xi32>
    %c0_i32_226 = arith.constant 0 : i32
    %415 = vector.broadcast %c0_i32_226 : i32 to vector<32x1xi32>
    %416 = arith.addi %376, %415 : vector<32x1xi32>
    %c4_i32_227 = arith.constant 4 : i32
    %417 = vector.broadcast %c4_i32_227 : i32 to vector<32x1xi32>
    %418 = arith.cmpi slt, %416, %417 : vector<32x1xi32>
    %419 = arith.andi %414, %418 : vector<32x1xi1>
    %420 = arith.andi %390, %419 : vector<32x1xi1>
    %cst_228 = arith.constant 0.000000e+00 : bf16
    %421 = vector.broadcast %cst_228 : bf16 to vector<32x32xbf16>
    %422 = vector.shape_cast %420 : vector<32x1xi1> to vector<32x1xi1>
    %423 = vector.broadcast %422 : vector<32x1xi1> to vector<32x32xi1>
    %424 = arith.select %423, %410, %421 : vector<32x32xi1>, vector<32x32xbf16>
    %c1_229 = arith.constant 1 : index
    %c0_230 = arith.constant 0 : index
    %c0_231 = arith.constant 0 : index
    %425 = vector.load %arg3[%c1_229, %c0_230, %c0_231] : memref<9x32x64xbf16, #tpu.memory_space<vmem>>, vector<1x32x64xbf16>
    %426 = vector.shape_cast %425 : vector<1x32x64xbf16> to vector<32x64xbf16>
    %cst_232 = arith.constant dense<0.000000e+00> : vector<32x64xf32>
    %427 = tpu.matmul %424, %426, %cst_232 {dimension_numbers = #tpu.dot_dimension_numbers<[1], [0], [0], [1], [0, 0, 1, 1], [], []>} : vector<32x32xbf16>, vector<32x64xbf16>, vector<32x64xf32> -> vector<32x64xf32>
    %428 = arith.addf %409, %427 : vector<32x64xf32>
    %c5_233 = arith.constant 5 : index
    %c0_234 = arith.constant 0 : index
    %429 = vector.load %arg13[%c5_233, %c0_234] : memref<48x32xbf16, #tpu.memory_space<vmem>>, vector<32x32xbf16>
    %c1_i32_235 = arith.constant 1 : i32
    %430 = vector.broadcast %c1_i32_235 : i32 to vector<32x1xi32>
    %431 = arith.addi %376, %430 : vector<32x1xi32>
    %c0_i32_236 = arith.constant 0 : i32
    %432 = vector.broadcast %c0_i32_236 : i32 to vector<32x1xi32>
    %433 = arith.cmpi sge, %431, %432 : vector<32x1xi32>
    %c1_i32_237 = arith.constant 1 : i32
    %434 = vector.broadcast %c1_i32_237 : i32 to vector<32x1xi32>
    %435 = arith.addi %376, %434 : vector<32x1xi32>
    %c4_i32_238 = arith.constant 4 : i32
    %436 = vector.broadcast %c4_i32_238 : i32 to vector<32x1xi32>
    %437 = arith.cmpi slt, %435, %436 : vector<32x1xi32>
    %438 = arith.andi %433, %437 : vector<32x1xi1>
    %439 = arith.andi %390, %438 : vector<32x1xi1>
    %cst_239 = arith.constant 0.000000e+00 : bf16
    %440 = vector.broadcast %cst_239 : bf16 to vector<32x32xbf16>
    %441 = vector.shape_cast %439 : vector<32x1xi1> to vector<32x1xi1>
    %442 = vector.broadcast %441 : vector<32x1xi1> to vector<32x32xi1>
    %443 = arith.select %442, %429, %440 : vector<32x32xi1>, vector<32x32xbf16>
    %c2_240 = arith.constant 2 : index
    %c0_241 = arith.constant 0 : index
    %c0_242 = arith.constant 0 : index
    %444 = vector.load %arg3[%c2_240, %c0_241, %c0_242] : memref<9x32x64xbf16, #tpu.memory_space<vmem>>, vector<1x32x64xbf16>
    %445 = vector.shape_cast %444 : vector<1x32x64xbf16> to vector<32x64xbf16>
    %cst_243 = arith.constant dense<0.000000e+00> : vector<32x64xf32>
    %446 = tpu.matmul %443, %445, %cst_243 {dimension_numbers = #tpu.dot_dimension_numbers<[1], [0], [0], [1], [0, 0, 1, 1], [], []>} : vector<32x32xbf16>, vector<32x64xbf16>, vector<32x64xf32> -> vector<32x64xf32>
    %447 = arith.addf %428, %446 : vector<32x64xf32>
    %c0_i32_244 = arith.constant 0 : i32
    %448 = vector.broadcast %c0_i32_244 : i32 to vector<32x1xi32>
    %449 = arith.addi %380, %448 : vector<32x1xi32>
    %c0_i32_245 = arith.constant 0 : i32
    %450 = vector.broadcast %c0_i32_245 : i32 to vector<32x1xi32>
    %451 = arith.cmpi sge, %449, %450 : vector<32x1xi32>
    %c0_i32_246 = arith.constant 0 : i32
    %452 = vector.broadcast %c0_i32_246 : i32 to vector<32x1xi32>
    %453 = arith.addi %380, %452 : vector<32x1xi32>
    %c4_i32_247 = arith.constant 4 : i32
    %454 = vector.broadcast %c4_i32_247 : i32 to vector<32x1xi32>
    %455 = arith.cmpi slt, %453, %454 : vector<32x1xi32>
    %456 = arith.andi %451, %455 : vector<32x1xi1>
    %c7_248 = arith.constant 7 : index
    %c0_249 = arith.constant 0 : index
    %457 = vector.load %arg13[%c7_248, %c0_249] : memref<48x32xbf16, #tpu.memory_space<vmem>>, vector<32x32xbf16>
    %c-1_i32_250 = arith.constant -1 : i32
    %458 = vector.broadcast %c-1_i32_250 : i32 to vector<32x1xi32>
    %459 = arith.addi %376, %458 : vector<32x1xi32>
    %c0_i32_251 = arith.constant 0 : i32
    %460 = vector.broadcast %c0_i32_251 : i32 to vector<32x1xi32>
    %461 = arith.cmpi sge, %459, %460 : vector<32x1xi32>
    %c-1_i32_252 = arith.constant -1 : i32
    %462 = vector.broadcast %c-1_i32_252 : i32 to vector<32x1xi32>
    %463 = arith.addi %376, %462 : vector<32x1xi32>
    %c4_i32_253 = arith.constant 4 : i32
    %464 = vector.broadcast %c4_i32_253 : i32 to vector<32x1xi32>
    %465 = arith.cmpi slt, %463, %464 : vector<32x1xi32>
    %466 = arith.andi %461, %465 : vector<32x1xi1>
    %467 = arith.andi %456, %466 : vector<32x1xi1>
    %cst_254 = arith.constant 0.000000e+00 : bf16
    %468 = vector.broadcast %cst_254 : bf16 to vector<32x32xbf16>
    %469 = vector.shape_cast %467 : vector<32x1xi1> to vector<32x1xi1>
    %470 = vector.broadcast %469 : vector<32x1xi1> to vector<32x32xi1>
    %471 = arith.select %470, %457, %468 : vector<32x32xi1>, vector<32x32xbf16>
    %c3_255 = arith.constant 3 : index
    %c0_256 = arith.constant 0 : index
    %c0_257 = arith.constant 0 : index
    %472 = vector.load %arg3[%c3_255, %c0_256, %c0_257] : memref<9x32x64xbf16, #tpu.memory_space<vmem>>, vector<1x32x64xbf16>
    %473 = vector.shape_cast %472 : vector<1x32x64xbf16> to vector<32x64xbf16>
    %cst_258 = arith.constant dense<0.000000e+00> : vector<32x64xf32>
    %474 = tpu.matmul %471, %473, %cst_258 {dimension_numbers = #tpu.dot_dimension_numbers<[1], [0], [0], [1], [0, 0, 1, 1], [], []>} : vector<32x32xbf16>, vector<32x64xbf16>, vector<32x64xf32> -> vector<32x64xf32>
    %475 = arith.addf %447, %474 : vector<32x64xf32>
    %c8_259 = arith.constant 8 : index
    %c0_260 = arith.constant 0 : index
    %476 = vector.load %arg13[%c8_259, %c0_260] : memref<48x32xbf16, #tpu.memory_space<vmem>>, vector<32x32xbf16>
    %c4_261 = arith.constant 4 : index
    %c0_262 = arith.constant 0 : index
    %c0_263 = arith.constant 0 : index
    %477 = vector.load %arg3[%c4_261, %c0_262, %c0_263] : memref<9x32x64xbf16, #tpu.memory_space<vmem>>, vector<1x32x64xbf16>
    %478 = vector.shape_cast %477 : vector<1x32x64xbf16> to vector<32x64xbf16>
    %cst_264 = arith.constant dense<0.000000e+00> : vector<32x64xf32>
    %479 = tpu.matmul %476, %478, %cst_264 {dimension_numbers = #tpu.dot_dimension_numbers<[1], [0], [0], [1], [0, 0, 1, 1], [], []>} : vector<32x32xbf16>, vector<32x64xbf16>, vector<32x64xf32> -> vector<32x64xf32>
    %480 = arith.addf %475, %479 : vector<32x64xf32>
    %c9_265 = arith.constant 9 : index
    %c0_266 = arith.constant 0 : index
    %481 = vector.load %arg13[%c9_265, %c0_266] : memref<48x32xbf16, #tpu.memory_space<vmem>>, vector<32x32xbf16>
    %c1_i32_267 = arith.constant 1 : i32
    %482 = vector.broadcast %c1_i32_267 : i32 to vector<32x1xi32>
    %483 = arith.addi %376, %482 : vector<32x1xi32>
    %c0_i32_268 = arith.constant 0 : i32
    %484 = vector.broadcast %c0_i32_268 : i32 to vector<32x1xi32>
    %485 = arith.cmpi sge, %483, %484 : vector<32x1xi32>
    %c1_i32_269 = arith.constant 1 : i32
    %486 = vector.broadcast %c1_i32_269 : i32 to vector<32x1xi32>
    %487 = arith.addi %376, %486 : vector<32x1xi32>
    %c4_i32_270 = arith.constant 4 : i32
    %488 = vector.broadcast %c4_i32_270 : i32 to vector<32x1xi32>
    %489 = arith.cmpi slt, %487, %488 : vector<32x1xi32>
    %490 = arith.andi %485, %489 : vector<32x1xi1>
    %491 = arith.andi %456, %490 : vector<32x1xi1>
    %cst_271 = arith.constant 0.000000e+00 : bf16
    %492 = vector.broadcast %cst_271 : bf16 to vector<32x32xbf16>
    %493 = vector.shape_cast %491 : vector<32x1xi1> to vector<32x1xi1>
    %494 = vector.broadcast %493 : vector<32x1xi1> to vector<32x32xi1>
    %495 = arith.select %494, %481, %492 : vector<32x32xi1>, vector<32x32xbf16>
    %c5_272 = arith.constant 5 : index
    %c0_273 = arith.constant 0 : index
    %c0_274 = arith.constant 0 : index
    %496 = vector.load %arg3[%c5_272, %c0_273, %c0_274] : memref<9x32x64xbf16, #tpu.memory_space<vmem>>, vector<1x32x64xbf16>
    %497 = vector.shape_cast %496 : vector<1x32x64xbf16> to vector<32x64xbf16>
    %cst_275 = arith.constant dense<0.000000e+00> : vector<32x64xf32>
    %498 = tpu.matmul %495, %497, %cst_275 {dimension_numbers = #tpu.dot_dimension_numbers<[1], [0], [0], [1], [0, 0, 1, 1], [], []>} : vector<32x32xbf16>, vector<32x64xbf16>, vector<32x64xf32> -> vector<32x64xf32>
    %499 = arith.addf %480, %498 : vector<32x64xf32>
    %c1_i32_276 = arith.constant 1 : i32
    %500 = vector.broadcast %c1_i32_276 : i32 to vector<32x1xi32>
    %501 = arith.addi %380, %500 : vector<32x1xi32>
    %c0_i32_277 = arith.constant 0 : i32
    %502 = vector.broadcast %c0_i32_277 : i32 to vector<32x1xi32>
    %503 = arith.cmpi sge, %501, %502 : vector<32x1xi32>
    %c1_i32_278 = arith.constant 1 : i32
    %504 = vector.broadcast %c1_i32_278 : i32 to vector<32x1xi32>
    %505 = arith.addi %380, %504 : vector<32x1xi32>
    %c4_i32_279 = arith.constant 4 : i32
    %506 = vector.broadcast %c4_i32_279 : i32 to vector<32x1xi32>
    %507 = arith.cmpi slt, %505, %506 : vector<32x1xi32>
    %508 = arith.andi %503, %507 : vector<32x1xi1>
    %c11 = arith.constant 11 : index
    %c0_280 = arith.constant 0 : index
    %509 = vector.load %arg13[%c11, %c0_280] : memref<48x32xbf16, #tpu.memory_space<vmem>>, vector<32x32xbf16>
    %c-1_i32_281 = arith.constant -1 : i32
    %510 = vector.broadcast %c-1_i32_281 : i32 to vector<32x1xi32>
    %511 = arith.addi %376, %510 : vector<32x1xi32>
    %c0_i32_282 = arith.constant 0 : i32
    %512 = vector.broadcast %c0_i32_282 : i32 to vector<32x1xi32>
    %513 = arith.cmpi sge, %511, %512 : vector<32x1xi32>
    %c-1_i32_283 = arith.constant -1 : i32
    %514 = vector.broadcast %c-1_i32_283 : i32 to vector<32x1xi32>
    %515 = arith.addi %376, %514 : vector<32x1xi32>
    %c4_i32_284 = arith.constant 4 : i32
    %516 = vector.broadcast %c4_i32_284 : i32 to vector<32x1xi32>
    %517 = arith.cmpi slt, %515, %516 : vector<32x1xi32>
    %518 = arith.andi %513, %517 : vector<32x1xi1>
    %519 = arith.andi %508, %518 : vector<32x1xi1>
    %cst_285 = arith.constant 0.000000e+00 : bf16
    %520 = vector.broadcast %cst_285 : bf16 to vector<32x32xbf16>
    %521 = vector.shape_cast %519 : vector<32x1xi1> to vector<32x1xi1>
    %522 = vector.broadcast %521 : vector<32x1xi1> to vector<32x32xi1>
    %523 = arith.select %522, %509, %520 : vector<32x32xi1>, vector<32x32xbf16>
    %c6_286 = arith.constant 6 : index
    %c0_287 = arith.constant 0 : index
    %c0_288 = arith.constant 0 : index
    %524 = vector.load %arg3[%c6_286, %c0_287, %c0_288] : memref<9x32x64xbf16, #tpu.memory_space<vmem>>, vector<1x32x64xbf16>
    %525 = vector.shape_cast %524 : vector<1x32x64xbf16> to vector<32x64xbf16>
    %cst_289 = arith.constant dense<0.000000e+00> : vector<32x64xf32>
    %526 = tpu.matmul %523, %525, %cst_289 {dimension_numbers = #tpu.dot_dimension_numbers<[1], [0], [0], [1], [0, 0, 1, 1], [], []>} : vector<32x32xbf16>, vector<32x64xbf16>, vector<32x64xf32> -> vector<32x64xf32>
    %527 = arith.addf %499, %526 : vector<32x64xf32>
    %c12_290 = arith.constant 12 : index
    %c0_291 = arith.constant 0 : index
    %528 = vector.load %arg13[%c12_290, %c0_291] : memref<48x32xbf16, #tpu.memory_space<vmem>>, vector<32x32xbf16>
    %c0_i32_292 = arith.constant 0 : i32
    %529 = vector.broadcast %c0_i32_292 : i32 to vector<32x1xi32>
    %530 = arith.addi %376, %529 : vector<32x1xi32>
    %c0_i32_293 = arith.constant 0 : i32
    %531 = vector.broadcast %c0_i32_293 : i32 to vector<32x1xi32>
    %532 = arith.cmpi sge, %530, %531 : vector<32x1xi32>
    %c0_i32_294 = arith.constant 0 : i32
    %533 = vector.broadcast %c0_i32_294 : i32 to vector<32x1xi32>
    %534 = arith.addi %376, %533 : vector<32x1xi32>
    %c4_i32_295 = arith.constant 4 : i32
    %535 = vector.broadcast %c4_i32_295 : i32 to vector<32x1xi32>
    %536 = arith.cmpi slt, %534, %535 : vector<32x1xi32>
    %537 = arith.andi %532, %536 : vector<32x1xi1>
    %538 = arith.andi %508, %537 : vector<32x1xi1>
    %cst_296 = arith.constant 0.000000e+00 : bf16
    %539 = vector.broadcast %cst_296 : bf16 to vector<32x32xbf16>
    %540 = vector.shape_cast %538 : vector<32x1xi1> to vector<32x1xi1>
    %541 = vector.broadcast %540 : vector<32x1xi1> to vector<32x32xi1>
    %542 = arith.select %541, %528, %539 : vector<32x32xi1>, vector<32x32xbf16>
    %c7_297 = arith.constant 7 : index
    %c0_298 = arith.constant 0 : index
    %c0_299 = arith.constant 0 : index
    %543 = vector.load %arg3[%c7_297, %c0_298, %c0_299] : memref<9x32x64xbf16, #tpu.memory_space<vmem>>, vector<1x32x64xbf16>
    %544 = vector.shape_cast %543 : vector<1x32x64xbf16> to vector<32x64xbf16>
    %cst_300 = arith.constant dense<0.000000e+00> : vector<32x64xf32>
    %545 = tpu.matmul %542, %544, %cst_300 {dimension_numbers = #tpu.dot_dimension_numbers<[1], [0], [0], [1], [0, 0, 1, 1], [], []>} : vector<32x32xbf16>, vector<32x64xbf16>, vector<32x64xf32> -> vector<32x64xf32>
    %546 = arith.addf %527, %545 : vector<32x64xf32>
    %c13 = arith.constant 13 : index
    %c0_301 = arith.constant 0 : index
    %547 = vector.load %arg13[%c13, %c0_301] : memref<48x32xbf16, #tpu.memory_space<vmem>>, vector<32x32xbf16>
    %c1_i32_302 = arith.constant 1 : i32
    %548 = vector.broadcast %c1_i32_302 : i32 to vector<32x1xi32>
    %549 = arith.addi %376, %548 : vector<32x1xi32>
    %c0_i32_303 = arith.constant 0 : i32
    %550 = vector.broadcast %c0_i32_303 : i32 to vector<32x1xi32>
    %551 = arith.cmpi sge, %549, %550 : vector<32x1xi32>
    %c1_i32_304 = arith.constant 1 : i32
    %552 = vector.broadcast %c1_i32_304 : i32 to vector<32x1xi32>
    %553 = arith.addi %376, %552 : vector<32x1xi32>
    %c4_i32_305 = arith.constant 4 : i32
    %554 = vector.broadcast %c4_i32_305 : i32 to vector<32x1xi32>
    %555 = arith.cmpi slt, %553, %554 : vector<32x1xi32>
    %556 = arith.andi %551, %555 : vector<32x1xi1>
    %557 = arith.andi %508, %556 : vector<32x1xi1>
    %cst_306 = arith.constant 0.000000e+00 : bf16
    %558 = vector.broadcast %cst_306 : bf16 to vector<32x32xbf16>
    %559 = vector.shape_cast %557 : vector<32x1xi1> to vector<32x1xi1>
    %560 = vector.broadcast %559 : vector<32x1xi1> to vector<32x32xi1>
    %561 = arith.select %560, %547, %558 : vector<32x32xi1>, vector<32x32xbf16>
    %c8_307 = arith.constant 8 : index
    %c0_308 = arith.constant 0 : index
    %c0_309 = arith.constant 0 : index
    %562 = vector.load %arg3[%c8_307, %c0_308, %c0_309] : memref<9x32x64xbf16, #tpu.memory_space<vmem>>, vector<1x32x64xbf16>
    %563 = vector.shape_cast %562 : vector<1x32x64xbf16> to vector<32x64xbf16>
    %cst_310 = arith.constant dense<0.000000e+00> : vector<32x64xf32>
    %564 = tpu.matmul %561, %563, %cst_310 {dimension_numbers = #tpu.dot_dimension_numbers<[1], [0], [0], [1], [0, 0, 1, 1], [], []>} : vector<32x32xbf16>, vector<32x64xbf16>, vector<32x64xf32> -> vector<32x64xf32>
    %565 = arith.addf %546, %564 : vector<32x64xf32>
    %566 = vector.extract_strided_slice %565 {offsets = [0, 0], sizes = [32, 16], strides = [1, 1]} : vector<32x64xf32> to vector<32x16xf32>
    %567 = vector.extract_strided_slice %565 {offsets = [0, 16], sizes = [32, 16], strides = [1, 1]} : vector<32x64xf32> to vector<32x16xf32>
    %568 = arith.maximumf %566, %567 : vector<32x16xf32>
    %569 = vector.extract_strided_slice %565 {offsets = [0, 32], sizes = [32, 16], strides = [1, 1]} : vector<32x64xf32> to vector<32x16xf32>
    %570 = vector.extract_strided_slice %565 {offsets = [0, 48], sizes = [32, 16], strides = [1, 1]} : vector<32x64xf32> to vector<32x16xf32>
    %571 = arith.maximumf %569, %570 : vector<32x16xf32>
    %572 = arith.maximumf %568, %571 : vector<32x16xf32>
    %c0_311 = arith.constant 0 : index
    %c0_312 = arith.constant 0 : index
    %c0_313 = arith.constant 0 : index
    %573 = vector.load %arg6[%c0_311, %c0_312, %c0_313] : memref<3x1x16xf32, #tpu.memory_space<vmem>>, vector<1x1x16xf32>
    %574 = vector.shape_cast %573 : vector<1x1x16xf32> to vector<1x16xf32>
    %575 = vector.broadcast %574 : vector<1x16xf32> to vector<32x16xf32>
    %576 = arith.addf %572, %575 : vector<32x16xf32>
    %cst_314 = arith.constant dense<0.000000e+00> : vector<16xf32>
    %577 = vector.multi_reduction <add>, %576, %cst_314 [0] : vector<32x16xf32> to vector<16xf32>
    %578 = vector.shape_cast %577 : vector<16xf32> to vector<1x16xf32>
    %cst_315 = arith.constant 3.125000e-02 : f32
    %579 = vector.broadcast %cst_315 : f32 to vector<1x16xf32>
    %580 = arith.mulf %578, %579 : vector<1x16xf32>
    %581 = arith.mulf %576, %576 : vector<32x16xf32>
    %cst_316 = arith.constant dense<0.000000e+00> : vector<16xf32>
    %582 = vector.multi_reduction <add>, %581, %cst_316 [0] : vector<32x16xf32> to vector<16xf32>
    %583 = vector.shape_cast %582 : vector<16xf32> to vector<1x16xf32>
    %cst_317 = arith.constant 3.125000e-02 : f32
    %584 = vector.broadcast %cst_317 : f32 to vector<1x16xf32>
    %585 = arith.mulf %583, %584 : vector<1x16xf32>
    %586 = arith.mulf %580, %580 : vector<1x16xf32>
    %587 = arith.subf %585, %586 : vector<1x16xf32>
    %588 = vector.broadcast %580 : vector<1x16xf32> to vector<32x16xf32>
    %589 = arith.subf %576, %588 : vector<32x16xf32>
    %cst_318 = arith.constant 9.99999974E-6 : f32
    %590 = vector.broadcast %cst_318 : f32 to vector<1x16xf32>
    %591 = arith.addf %587, %590 : vector<1x16xf32>
    %592 = math.rsqrt %591 : vector<1x16xf32>
    %593 = vector.broadcast %592 : vector<1x16xf32> to vector<32x16xf32>
    %594 = arith.mulf %589, %593 : vector<32x16xf32>
    %c1_319 = arith.constant 1 : index
    %c0_320 = arith.constant 0 : index
    %c0_321 = arith.constant 0 : index
    %595 = vector.load %arg6[%c1_319, %c0_320, %c0_321] : memref<3x1x16xf32, #tpu.memory_space<vmem>>, vector<1x1x16xf32>
    %596 = vector.shape_cast %595 : vector<1x1x16xf32> to vector<1x16xf32>
    %597 = vector.broadcast %596 : vector<1x16xf32> to vector<32x16xf32>
    %598 = arith.mulf %594, %597 : vector<32x16xf32>
    %c2_322 = arith.constant 2 : index
    %c0_323 = arith.constant 0 : index
    %c0_324 = arith.constant 0 : index
    %599 = vector.load %arg6[%c2_322, %c0_323, %c0_324] : memref<3x1x16xf32, #tpu.memory_space<vmem>>, vector<1x1x16xf32>
    %600 = vector.shape_cast %599 : vector<1x1x16xf32> to vector<1x16xf32>
    %601 = vector.broadcast %600 : vector<1x16xf32> to vector<32x16xf32>
    %602 = arith.addf %598, %601 : vector<32x16xf32>
    %cst_325 = arith.constant 2.000000e-01 : f32
    %603 = vector.broadcast %cst_325 : f32 to vector<32x16xf32>
    %604 = arith.mulf %603, %602 : vector<32x16xf32>
    %605 = arith.maximumf %602, %604 : vector<32x16xf32>
    %606 = tpu.iota {dimensions = array<i32: 0>} : vector<2x8xi32>
    %607 = tpu.iota {dimensions = array<i32: 1>} : vector<2x8xi32>
    %c2_i32_326 = arith.constant 2 : i32
    %608 = vector.broadcast %c2_i32_326 : i32 to vector<2x8xi32>
    %609 = arith.muli %608, %606 : vector<2x8xi32>
    %c0_i32_327 = arith.constant 0 : i32
    %610 = vector.broadcast %c0_i32_327 : i32 to vector<2x8xi32>
    %611 = arith.addi %610, %609 : vector<2x8xi32>
    %c0_i32_328 = arith.constant 0 : i32
    %612 = vector.broadcast %c0_i32_328 : i32 to vector<2x8xi32>
    %613 = arith.addi %611, %612 : vector<2x8xi32>
    %614 = arith.cmpi eq, %607, %613 : vector<2x8xi32>
    %615 = arith.extui %614 : vector<2x8xi1> to vector<2x8xi32>
    %616 = arith.sitofp %615 : vector<2x8xi32> to vector<2x8xf32>
    %c2_i32_329 = arith.constant 2 : i32
    %617 = vector.broadcast %c2_i32_329 : i32 to vector<2x8xi32>
    %618 = arith.muli %617, %606 : vector<2x8xi32>
    %c0_i32_330 = arith.constant 0 : i32
    %619 = vector.broadcast %c0_i32_330 : i32 to vector<2x8xi32>
    %620 = arith.addi %619, %618 : vector<2x8xi32>
    %c1_i32_331 = arith.constant 1 : i32
    %621 = vector.broadcast %c1_i32_331 : i32 to vector<2x8xi32>
    %622 = arith.addi %620, %621 : vector<2x8xi32>
    %623 = arith.cmpi eq, %607, %622 : vector<2x8xi32>
    %624 = arith.extui %623 : vector<2x8xi1> to vector<2x8xi32>
    %625 = arith.sitofp %624 : vector<2x8xi32> to vector<2x8xf32>
    %c2_i32_332 = arith.constant 2 : i32
    %626 = vector.broadcast %c2_i32_332 : i32 to vector<2x8xi32>
    %627 = arith.muli %626, %606 : vector<2x8xi32>
    %c4_i32_333 = arith.constant 4 : i32
    %628 = vector.broadcast %c4_i32_333 : i32 to vector<2x8xi32>
    %629 = arith.addi %628, %627 : vector<2x8xi32>
    %c0_i32_334 = arith.constant 0 : i32
    %630 = vector.broadcast %c0_i32_334 : i32 to vector<2x8xi32>
    %631 = arith.addi %629, %630 : vector<2x8xi32>
    %632 = arith.cmpi eq, %607, %631 : vector<2x8xi32>
    %633 = arith.extui %632 : vector<2x8xi1> to vector<2x8xi32>
    %634 = arith.sitofp %633 : vector<2x8xi32> to vector<2x8xf32>
    %c2_i32_335 = arith.constant 2 : i32
    %635 = vector.broadcast %c2_i32_335 : i32 to vector<2x8xi32>
    %636 = arith.muli %635, %606 : vector<2x8xi32>
    %c4_i32_336 = arith.constant 4 : i32
    %637 = vector.broadcast %c4_i32_336 : i32 to vector<2x8xi32>
    %638 = arith.addi %637, %636 : vector<2x8xi32>
    %c1_i32_337 = arith.constant 1 : i32
    %639 = vector.broadcast %c1_i32_337 : i32 to vector<2x8xi32>
    %640 = arith.addi %638, %639 : vector<2x8xi32>
    %641 = arith.cmpi eq, %607, %640 : vector<2x8xi32>
    %642 = arith.extui %641 : vector<2x8xi1> to vector<2x8xi32>
    %643 = arith.sitofp %642 : vector<2x8xi32> to vector<2x8xf32>
    %644 = vector.extract_strided_slice %605 {offsets = [0, 0], sizes = [8, 16], strides = [1, 1]} : vector<32x16xf32> to vector<8x16xf32>
    %cst_338 = arith.constant dense<0.000000e+00> : vector<2x16xf32>
    %645 = tpu.matmul %616, %644, %cst_338 {dimension_numbers = #tpu.dot_dimension_numbers<[1], [0], [0], [1], [0, 0, 1, 1], [], []>} : vector<2x8xf32>, vector<8x16xf32>, vector<2x16xf32> -> vector<2x16xf32>
    %646 = arith.truncf %645 : vector<2x16xf32> to vector<2x16xbf16>
    %c8_339 = arith.constant 8 : index
    %c0_340 = arith.constant 0 : index
    %647 = vector.load %arg14[%c8_339, %c0_340] : memref<24x64xbf16, #tpu.memory_space<vmem>>, vector<2x16xbf16>
    tpu.vector_store %arg14[%c8_339, %c0_340], %646 {strides = array<i32>} : memref<24x64xbf16, #tpu.memory_space<vmem>>, vector<2x16xbf16>,
    %cst_341 = arith.constant dense<0.000000e+00> : vector<2x16xf32>
    %648 = tpu.matmul %625, %644, %cst_341 {dimension_numbers = #tpu.dot_dimension_numbers<[1], [0], [0], [1], [0, 0, 1, 1], [], []>} : vector<2x8xf32>, vector<8x16xf32>, vector<2x16xf32> -> vector<2x16xf32>
    %649 = arith.truncf %648 : vector<2x16xf32> to vector<2x16xbf16>
    %c8_342 = arith.constant 8 : index
    %c16_343 = arith.constant 16 : index
    %650 = vector.load %arg14[%c8_342, %c16_343] : memref<24x64xbf16, #tpu.memory_space<vmem>>, vector<2x16xbf16>
    tpu.vector_store %arg14[%c8_342, %c16_343], %649 {strides = array<i32>} : memref<24x64xbf16, #tpu.memory_space<vmem>>, vector<2x16xbf16>,
    %cst_344 = arith.constant dense<0.000000e+00> : vector<2x16xf32>
    %651 = tpu.matmul %634, %644, %cst_344 {dimension_numbers = #tpu.dot_dimension_numbers<[1], [0], [0], [1], [0, 0, 1, 1], [], []>} : vector<2x8xf32>, vector<8x16xf32>, vector<2x16xf32> -> vector<2x16xf32>
    %652 = arith.truncf %651 : vector<2x16xf32> to vector<2x16xbf16>
    %c8_345 = arith.constant 8 : index
    %c32_346 = arith.constant 32 : index
    %653 = vector.load %arg14[%c8_345, %c32_346] : memref<24x64xbf16, #tpu.memory_space<vmem>>, vector<2x16xbf16>
    tpu.vector_store %arg14[%c8_345, %c32_346], %652 {strides = array<i32>} : memref<24x64xbf16, #tpu.memory_space<vmem>>, vector<2x16xbf16>,
    %cst_347 = arith.constant dense<0.000000e+00> : vector<2x16xf32>
    %654 = tpu.matmul %643, %644, %cst_347 {dimension_numbers = #tpu.dot_dimension_numbers<[1], [0], [0], [1], [0, 0, 1, 1], [], []>} : vector<2x8xf32>, vector<8x16xf32>, vector<2x16xf32> -> vector<2x16xf32>
    %655 = arith.truncf %654 : vector<2x16xf32> to vector<2x16xbf16>
    %c8_348 = arith.constant 8 : index
    %c48 = arith.constant 48 : index
    %656 = vector.load %arg14[%c8_348, %c48] : memref<24x64xbf16, #tpu.memory_space<vmem>>, vector<2x16xbf16>
    tpu.vector_store %arg14[%c8_348, %c48], %655 {strides = array<i32>} : memref<24x64xbf16, #tpu.memory_space<vmem>>, vector<2x16xbf16>,
    %657 = vector.extract_strided_slice %605 {offsets = [8, 0], sizes = [8, 16], strides = [1, 1]} : vector<32x16xf32> to vector<8x16xf32>
    %cst_349 = arith.constant dense<0.000000e+00> : vector<2x16xf32>
    %658 = tpu.matmul %616, %657, %cst_349 {dimension_numbers = #tpu.dot_dimension_numbers<[1], [0], [0], [1], [0, 0, 1, 1], [], []>} : vector<2x8xf32>, vector<8x16xf32>, vector<2x16xf32> -> vector<2x16xf32>
    %659 = arith.truncf %658 : vector<2x16xf32> to vector<2x16xbf16>
    %c10 = arith.constant 10 : index
    %c0_350 = arith.constant 0 : index
    %660 = vector.load %arg14[%c10, %c0_350] : memref<24x64xbf16, #tpu.memory_space<vmem>>, vector<2x16xbf16>
    tpu.vector_store %arg14[%c10, %c0_350], %659 {strides = array<i32>} : memref<24x64xbf16, #tpu.memory_space<vmem>>, vector<2x16xbf16>,
    %cst_351 = arith.constant dense<0.000000e+00> : vector<2x16xf32>
    %661 = tpu.matmul %625, %657, %cst_351 {dimension_numbers = #tpu.dot_dimension_numbers<[1], [0], [0], [1], [0, 0, 1, 1], [], []>} : vector<2x8xf32>, vector<8x16xf32>, vector<2x16xf32> -> vector<2x16xf32>
    %662 = arith.truncf %661 : vector<2x16xf32> to vector<2x16xbf16>
    %c10_352 = arith.constant 10 : index
    %c16_353 = arith.constant 16 : index
    %663 = vector.load %arg14[%c10_352, %c16_353] : memref<24x64xbf16, #tpu.memory_space<vmem>>, vector<2x16xbf16>
    tpu.vector_store %arg14[%c10_352, %c16_353], %662 {strides = array<i32>} : memref<24x64xbf16, #tpu.memory_space<vmem>>, vector<2x16xbf16>,
    %cst_354 = arith.constant dense<0.000000e+00> : vector<2x16xf32>
    %664 = tpu.matmul %634, %657, %cst_354 {dimension_numbers = #tpu.dot_dimension_numbers<[1], [0], [0], [1], [0, 0, 1, 1], [], []>} : vector<2x8xf32>, vector<8x16xf32>, vector<2x16xf32> -> vector<2x16xf32>
    %665 = arith.truncf %664 : vector<2x16xf32> to vector<2x16xbf16>
    %c10_355 = arith.constant 10 : index
    %c32_356 = arith.constant 32 : index
    %666 = vector.load %arg14[%c10_355, %c32_356] : memref<24x64xbf16, #tpu.memory_space<vmem>>, vector<2x16xbf16>
    tpu.vector_store %arg14[%c10_355, %c32_356], %665 {strides = array<i32>} : memref<24x64xbf16, #tpu.memory_space<vmem>>, vector<2x16xbf16>,
    %cst_357 = arith.constant dense<0.000000e+00> : vector<2x16xf32>
    %667 = tpu.matmul %643, %657, %cst_357 {dimension_numbers = #tpu.dot_dimension_numbers<[1], [0], [0], [1], [0, 0, 1, 1], [], []>} : vector<2x8xf32>, vector<8x16xf32>, vector<2x16xf32> -> vector<2x16xf32>
    %668 = arith.truncf %667 : vector<2x16xf32> to vector<2x16xbf16>
    %c10_358 = arith.constant 10 : index
    %c48_359 = arith.constant 48 : index
    %669 = vector.load %arg14[%c10_358, %c48_359] : memref<24x64xbf16, #tpu.memory_space<vmem>>, vector<2x16xbf16>
    tpu.vector_store %arg14[%c10_358, %c48_359], %668 {strides = array<i32>} : memref<24x64xbf16, #tpu.memory_space<vmem>>, vector<2x16xbf16>,
    %670 = vector.extract_strided_slice %605 {offsets = [16, 0], sizes = [8, 16], strides = [1, 1]} : vector<32x16xf32> to vector<8x16xf32>
    %cst_360 = arith.constant dense<0.000000e+00> : vector<2x16xf32>
    %671 = tpu.matmul %616, %670, %cst_360 {dimension_numbers = #tpu.dot_dimension_numbers<[1], [0], [0], [1], [0, 0, 1, 1], [], []>} : vector<2x8xf32>, vector<8x16xf32>, vector<2x16xf32> -> vector<2x16xf32>
    %672 = arith.truncf %671 : vector<2x16xf32> to vector<2x16xbf16>
    %c12_361 = arith.constant 12 : index
    %c0_362 = arith.constant 0 : index
    %673 = vector.load %arg14[%c12_361, %c0_362] : memref<24x64xbf16, #tpu.memory_space<vmem>>, vector<2x16xbf16>
    tpu.vector_store %arg14[%c12_361, %c0_362], %672 {strides = array<i32>} : memref<24x64xbf16, #tpu.memory_space<vmem>>, vector<2x16xbf16>,
    %cst_363 = arith.constant dense<0.000000e+00> : vector<2x16xf32>
    %674 = tpu.matmul %625, %670, %cst_363 {dimension_numbers = #tpu.dot_dimension_numbers<[1], [0], [0], [1], [0, 0, 1, 1], [], []>} : vector<2x8xf32>, vector<8x16xf32>, vector<2x16xf32> -> vector<2x16xf32>
    %675 = arith.truncf %674 : vector<2x16xf32> to vector<2x16xbf16>
    %c12_364 = arith.constant 12 : index
    %c16_365 = arith.constant 16 : index
    %676 = vector.load %arg14[%c12_364, %c16_365] : memref<24x64xbf16, #tpu.memory_space<vmem>>, vector<2x16xbf16>
    tpu.vector_store %arg14[%c12_364, %c16_365], %675 {strides = array<i32>} : memref<24x64xbf16, #tpu.memory_space<vmem>>, vector<2x16xbf16>,
    %cst_366 = arith.constant dense<0.000000e+00> : vector<2x16xf32>
    %677 = tpu.matmul %634, %670, %cst_366 {dimension_numbers = #tpu.dot_dimension_numbers<[1], [0], [0], [1], [0, 0, 1, 1], [], []>} : vector<2x8xf32>, vector<8x16xf32>, vector<2x16xf32> -> vector<2x16xf32>
    %678 = arith.truncf %677 : vector<2x16xf32> to vector<2x16xbf16>
    %c12_367 = arith.constant 12 : index
    %c32_368 = arith.constant 32 : index
    %679 = vector.load %arg14[%c12_367, %c32_368] : memref<24x64xbf16, #tpu.memory_space<vmem>>, vector<2x16xbf16>
    tpu.vector_store %arg14[%c12_367, %c32_368], %678 {strides = array<i32>} : memref<24x64xbf16, #tpu.memory_space<vmem>>, vector<2x16xbf16>,
    %cst_369 = arith.constant dense<0.000000e+00> : vector<2x16xf32>
    %680 = tpu.matmul %643, %670, %cst_369 {dimension_numbers = #tpu.dot_dimension_numbers<[1], [0], [0], [1], [0, 0, 1, 1], [], []>} : vector<2x8xf32>, vector<8x16xf32>, vector<2x16xf32> -> vector<2x16xf32>
    %681 = arith.truncf %680 : vector<2x16xf32> to vector<2x16xbf16>
    %c12_370 = arith.constant 12 : index
    %c48_371 = arith.constant 48 : index
    %682 = vector.load %arg14[%c12_370, %c48_371] : memref<24x64xbf16, #tpu.memory_space<vmem>>, vector<2x16xbf16>
    tpu.vector_store %arg14[%c12_370, %c48_371], %681 {strides = array<i32>} : memref<24x64xbf16, #tpu.memory_space<vmem>>, vector<2x16xbf16>,
    %683 = vector.extract_strided_slice %605 {offsets = [24, 0], sizes = [8, 16], strides = [1, 1]} : vector<32x16xf32> to vector<8x16xf32>
    %cst_372 = arith.constant dense<0.000000e+00> : vector<2x16xf32>
    %684 = tpu.matmul %616, %683, %cst_372 {dimension_numbers = #tpu.dot_dimension_numbers<[1], [0], [0], [1], [0, 0, 1, 1], [], []>} : vector<2x8xf32>, vector<8x16xf32>, vector<2x16xf32> -> vector<2x16xf32>
    %685 = arith.truncf %684 : vector<2x16xf32> to vector<2x16xbf16>
    %c14 = arith.constant 14 : index
    %c0_373 = arith.constant 0 : index
    %686 = vector.load %arg14[%c14, %c0_373] : memref<24x64xbf16, #tpu.memory_space<vmem>>, vector<2x16xbf16>
    tpu.vector_store %arg14[%c14, %c0_373], %685 {strides = array<i32>} : memref<24x64xbf16, #tpu.memory_space<vmem>>, vector<2x16xbf16>,
    %cst_374 = arith.constant dense<0.000000e+00> : vector<2x16xf32>
    %687 = tpu.matmul %625, %683, %cst_374 {dimension_numbers = #tpu.dot_dimension_numbers<[1], [0], [0], [1], [0, 0, 1, 1], [], []>} : vector<2x8xf32>, vector<8x16xf32>, vector<2x16xf32> -> vector<2x16xf32>
    %688 = arith.truncf %687 : vector<2x16xf32> to vector<2x16xbf16>
    %c14_375 = arith.constant 14 : index
    %c16_376 = arith.constant 16 : index
    %689 = vector.load %arg14[%c14_375, %c16_376] : memref<24x64xbf16, #tpu.memory_space<vmem>>, vector<2x16xbf16>
    tpu.vector_store %arg14[%c14_375, %c16_376], %688 {strides = array<i32>} : memref<24x64xbf16, #tpu.memory_space<vmem>>, vector<2x16xbf16>,
    %cst_377 = arith.constant dense<0.000000e+00> : vector<2x16xf32>
    %690 = tpu.matmul %634, %683, %cst_377 {dimension_numbers = #tpu.dot_dimension_numbers<[1], [0], [0], [1], [0, 0, 1, 1], [], []>} : vector<2x8xf32>, vector<8x16xf32>, vector<2x16xf32> -> vector<2x16xf32>
    %691 = arith.truncf %690 : vector<2x16xf32> to vector<2x16xbf16>
    %c14_378 = arith.constant 14 : index
    %c32_379 = arith.constant 32 : index
    %692 = vector.load %arg14[%c14_378, %c32_379] : memref<24x64xbf16, #tpu.memory_space<vmem>>, vector<2x16xbf16>
    tpu.vector_store %arg14[%c14_378, %c32_379], %691 {strides = array<i32>} : memref<24x64xbf16, #tpu.memory_space<vmem>>, vector<2x16xbf16>,
    %cst_380 = arith.constant dense<0.000000e+00> : vector<2x16xf32>
    %693 = tpu.matmul %643, %683, %cst_380 {dimension_numbers = #tpu.dot_dimension_numbers<[1], [0], [0], [1], [0, 0, 1, 1], [], []>} : vector<2x8xf32>, vector<8x16xf32>, vector<2x16xf32> -> vector<2x16xf32>
    %694 = arith.truncf %693 : vector<2x16xf32> to vector<2x16xbf16>
    %c14_381 = arith.constant 14 : index
    %c48_382 = arith.constant 48 : index
    %695 = vector.load %arg14[%c14_381, %c48_382] : memref<24x64xbf16, #tpu.memory_space<vmem>>, vector<2x16xbf16>
    tpu.vector_store %arg14[%c14_381, %c48_382], %694 {strides = array<i32>} : memref<24x64xbf16, #tpu.memory_space<vmem>>, vector<2x16xbf16>,
    %696 = tpu.iota {dimensions = array<i32: 0>} : vector<8x1xi32>
    %c1_i32_383 = arith.constant 1 : i32
    %697 = vector.broadcast %c1_i32_383 : i32 to vector<8x1xi32>
    %698 = arith.andi %696, %697 : vector<8x1xi32>
    %c1_i32_384 = arith.constant 1 : i32
    %699 = vector.broadcast %c1_i32_384 : i32 to vector<8x1xi32>
    %700 = arith.shrsi %696, %699 : vector<8x1xi32>
    %c1_i32_385 = arith.constant 1 : i32
    %701 = vector.broadcast %c1_i32_385 : i32 to vector<8x1xi32>
    %702 = arith.andi %700, %701 : vector<8x1xi32>
    %cst_386 = arith.constant 0.000000e+00 : f32
    %703 = vector.broadcast %cst_386 : f32 to vector<8x128xf32>
    %c-1_i32_387 = arith.constant -1 : i32
    %704 = vector.broadcast %c-1_i32_387 : i32 to vector<8x1xi32>
    %705 = arith.addi %702, %704 : vector<8x1xi32>
    %c0_i32_388 = arith.constant 0 : i32
    %706 = vector.broadcast %c0_i32_388 : i32 to vector<8x1xi32>
    %707 = arith.cmpi sge, %705, %706 : vector<8x1xi32>
    %c-1_i32_389 = arith.constant -1 : i32
    %708 = vector.broadcast %c-1_i32_389 : i32 to vector<8x1xi32>
    %709 = arith.addi %702, %708 : vector<8x1xi32>
    %c2_i32_390 = arith.constant 2 : i32
    %710 = vector.broadcast %c2_i32_390 : i32 to vector<8x1xi32>
    %711 = arith.cmpi slt, %709, %710 : vector<8x1xi32>
    %712 = arith.andi %707, %711 : vector<8x1xi1>
    %c5_391 = arith.constant 5 : index
    %c0_392 = arith.constant 0 : index
    %713 = vector.load %arg14[%c5_391, %c0_392] : memref<24x64xbf16, #tpu.memory_space<vmem>>, vector<8x64xbf16>
    %c-1_i32_393 = arith.constant -1 : i32
    %714 = vector.broadcast %c-1_i32_393 : i32 to vector<8x1xi32>
    %715 = arith.addi %698, %714 : vector<8x1xi32>
    %c0_i32_394 = arith.constant 0 : i32
    %716 = vector.broadcast %c0_i32_394 : i32 to vector<8x1xi32>
    %717 = arith.cmpi sge, %715, %716 : vector<8x1xi32>
    %c-1_i32_395 = arith.constant -1 : i32
    %718 = vector.broadcast %c-1_i32_395 : i32 to vector<8x1xi32>
    %719 = arith.addi %698, %718 : vector<8x1xi32>
    %c2_i32_396 = arith.constant 2 : i32
    %720 = vector.broadcast %c2_i32_396 : i32 to vector<8x1xi32>
    %721 = arith.cmpi slt, %719, %720 : vector<8x1xi32>
    %722 = arith.andi %717, %721 : vector<8x1xi1>
    %723 = arith.andi %712, %722 : vector<8x1xi1>
    %cst_397 = arith.constant 0.000000e+00 : bf16
    %724 = vector.broadcast %cst_397 : bf16 to vector<8x64xbf16>
    %725 = vector.shape_cast %723 : vector<8x1xi1> to vector<8x1xi1>
    %726 = vector.broadcast %725 : vector<8x1xi1> to vector<8x64xi1>
    %727 = arith.select %726, %713, %724 : vector<8x64xi1>, vector<8x64xbf16>
    %c0_398 = arith.constant 0 : index
    %c0_399 = arith.constant 0 : index
    %c0_400 = arith.constant 0 : index
    %728 = vector.load %arg4[%c0_398, %c0_399, %c0_400] : memref<9x64x128xbf16, #tpu.memory_space<vmem>>, vector<1x64x128xbf16>
    %729 = vector.shape_cast %728 : vector<1x64x128xbf16> to vector<64x128xbf16>
    %cst_401 = arith.constant dense<0.000000e+00> : vector<8x128xf32>
    %730 = tpu.matmul %727, %729, %cst_401 {dimension_numbers = #tpu.dot_dimension_numbers<[1], [0], [0], [1], [0, 0, 1, 1], [], []>} : vector<8x64xbf16>, vector<64x128xbf16>, vector<8x128xf32> -> vector<8x128xf32>
    %731 = arith.addf %703, %730 : vector<8x128xf32>
    %c6_402 = arith.constant 6 : index
    %c0_403 = arith.constant 0 : index
    %732 = vector.load %arg14[%c6_402, %c0_403] : memref<24x64xbf16, #tpu.memory_space<vmem>>, vector<8x64xbf16>
    %c0_i32_404 = arith.constant 0 : i32
    %733 = vector.broadcast %c0_i32_404 : i32 to vector<8x1xi32>
    %734 = arith.addi %698, %733 : vector<8x1xi32>
    %c0_i32_405 = arith.constant 0 : i32
    %735 = vector.broadcast %c0_i32_405 : i32 to vector<8x1xi32>
    %736 = arith.cmpi sge, %734, %735 : vector<8x1xi32>
    %c0_i32_406 = arith.constant 0 : i32
    %737 = vector.broadcast %c0_i32_406 : i32 to vector<8x1xi32>
    %738 = arith.addi %698, %737 : vector<8x1xi32>
    %c2_i32_407 = arith.constant 2 : i32
    %739 = vector.broadcast %c2_i32_407 : i32 to vector<8x1xi32>
    %740 = arith.cmpi slt, %738, %739 : vector<8x1xi32>
    %741 = arith.andi %736, %740 : vector<8x1xi1>
    %742 = arith.andi %712, %741 : vector<8x1xi1>
    %cst_408 = arith.constant 0.000000e+00 : bf16
    %743 = vector.broadcast %cst_408 : bf16 to vector<8x64xbf16>
    %744 = vector.shape_cast %742 : vector<8x1xi1> to vector<8x1xi1>
    %745 = vector.broadcast %744 : vector<8x1xi1> to vector<8x64xi1>
    %746 = arith.select %745, %732, %743 : vector<8x64xi1>, vector<8x64xbf16>
    %c1_409 = arith.constant 1 : index
    %c0_410 = arith.constant 0 : index
    %c0_411 = arith.constant 0 : index
    %747 = vector.load %arg4[%c1_409, %c0_410, %c0_411] : memref<9x64x128xbf16, #tpu.memory_space<vmem>>, vector<1x64x128xbf16>
    %748 = vector.shape_cast %747 : vector<1x64x128xbf16> to vector<64x128xbf16>
    %cst_412 = arith.constant dense<0.000000e+00> : vector<8x128xf32>
    %749 = tpu.matmul %746, %748, %cst_412 {dimension_numbers = #tpu.dot_dimension_numbers<[1], [0], [0], [1], [0, 0, 1, 1], [], []>} : vector<8x64xbf16>, vector<64x128xbf16>, vector<8x128xf32> -> vector<8x128xf32>
    %750 = arith.addf %731, %749 : vector<8x128xf32>
    %c7_413 = arith.constant 7 : index
    %c0_414 = arith.constant 0 : index
    %751 = vector.load %arg14[%c7_413, %c0_414] : memref<24x64xbf16, #tpu.memory_space<vmem>>, vector<8x64xbf16>
    %c1_i32_415 = arith.constant 1 : i32
    %752 = vector.broadcast %c1_i32_415 : i32 to vector<8x1xi32>
    %753 = arith.addi %698, %752 : vector<8x1xi32>
    %c0_i32_416 = arith.constant 0 : i32
    %754 = vector.broadcast %c0_i32_416 : i32 to vector<8x1xi32>
    %755 = arith.cmpi sge, %753, %754 : vector<8x1xi32>
    %c1_i32_417 = arith.constant 1 : i32
    %756 = vector.broadcast %c1_i32_417 : i32 to vector<8x1xi32>
    %757 = arith.addi %698, %756 : vector<8x1xi32>
    %c2_i32_418 = arith.constant 2 : i32
    %758 = vector.broadcast %c2_i32_418 : i32 to vector<8x1xi32>
    %759 = arith.cmpi slt, %757, %758 : vector<8x1xi32>
    %760 = arith.andi %755, %759 : vector<8x1xi1>
    %761 = arith.andi %712, %760 : vector<8x1xi1>
    %cst_419 = arith.constant 0.000000e+00 : bf16
    %762 = vector.broadcast %cst_419 : bf16 to vector<8x64xbf16>
    %763 = vector.shape_cast %761 : vector<8x1xi1> to vector<8x1xi1>
    %764 = vector.broadcast %763 : vector<8x1xi1> to vector<8x64xi1>
    %765 = arith.select %764, %751, %762 : vector<8x64xi1>, vector<8x64xbf16>
    %c2_420 = arith.constant 2 : index
    %c0_421 = arith.constant 0 : index
    %c0_422 = arith.constant 0 : index
    %766 = vector.load %arg4[%c2_420, %c0_421, %c0_422] : memref<9x64x128xbf16, #tpu.memory_space<vmem>>, vector<1x64x128xbf16>
    %767 = vector.shape_cast %766 : vector<1x64x128xbf16> to vector<64x128xbf16>
    %cst_423 = arith.constant dense<0.000000e+00> : vector<8x128xf32>
    %768 = tpu.matmul %765, %767, %cst_423 {dimension_numbers = #tpu.dot_dimension_numbers<[1], [0], [0], [1], [0, 0, 1, 1], [], []>} : vector<8x64xbf16>, vector<64x128xbf16>, vector<8x128xf32> -> vector<8x128xf32>
    %769 = arith.addf %750, %768 : vector<8x128xf32>
    %c0_i32_424 = arith.constant 0 : i32
    %770 = vector.broadcast %c0_i32_424 : i32 to vector<8x1xi32>
    %771 = arith.addi %702, %770 : vector<8x1xi32>
    %c0_i32_425 = arith.constant 0 : i32
    %772 = vector.broadcast %c0_i32_425 : i32 to vector<8x1xi32>
    %773 = arith.cmpi sge, %771, %772 : vector<8x1xi32>
    %c0_i32_426 = arith.constant 0 : i32
    %774 = vector.broadcast %c0_i32_426 : i32 to vector<8x1xi32>
    %775 = arith.addi %702, %774 : vector<8x1xi32>
    %c2_i32_427 = arith.constant 2 : i32
    %776 = vector.broadcast %c2_i32_427 : i32 to vector<8x1xi32>
    %777 = arith.cmpi slt, %775, %776 : vector<8x1xi32>
    %778 = arith.andi %773, %777 : vector<8x1xi1>
    %c7_428 = arith.constant 7 : index
    %c0_429 = arith.constant 0 : index
    %779 = vector.load %arg14[%c7_428, %c0_429] : memref<24x64xbf16, #tpu.memory_space<vmem>>, vector<8x64xbf16>
    %c-1_i32_430 = arith.constant -1 : i32
    %780 = vector.broadcast %c-1_i32_430 : i32 to vector<8x1xi32>
    %781 = arith.addi %698, %780 : vector<8x1xi32>
    %c0_i32_431 = arith.constant 0 : i32
    %782 = vector.broadcast %c0_i32_431 : i32 to vector<8x1xi32>
    %783 = arith.cmpi sge, %781, %782 : vector<8x1xi32>
    %c-1_i32_432 = arith.constant -1 : i32
    %784 = vector.broadcast %c-1_i32_432 : i32 to vector<8x1xi32>
    %785 = arith.addi %698, %784 : vector<8x1xi32>
    %c2_i32_433 = arith.constant 2 : i32
    %786 = vector.broadcast %c2_i32_433 : i32 to vector<8x1xi32>
    %787 = arith.cmpi slt, %785, %786 : vector<8x1xi32>
    %788 = arith.andi %783, %787 : vector<8x1xi1>
    %789 = arith.andi %778, %788 : vector<8x1xi1>
    %cst_434 = arith.constant 0.000000e+00 : bf16
    %790 = vector.broadcast %cst_434 : bf16 to vector<8x64xbf16>
    %791 = vector.shape_cast %789 : vector<8x1xi1> to vector<8x1xi1>
    %792 = vector.broadcast %791 : vector<8x1xi1> to vector<8x64xi1>
    %793 = arith.select %792, %779, %790 : vector<8x64xi1>, vector<8x64xbf16>
    %c3_435 = arith.constant 3 : index
    %c0_436 = arith.constant 0 : index
    %c0_437 = arith.constant 0 : index
    %794 = vector.load %arg4[%c3_435, %c0_436, %c0_437] : memref<9x64x128xbf16, #tpu.memory_space<vmem>>, vector<1x64x128xbf16>
    %795 = vector.shape_cast %794 : vector<1x64x128xbf16> to vector<64x128xbf16>
    %cst_438 = arith.constant dense<0.000000e+00> : vector<8x128xf32>
    %796 = tpu.matmul %793, %795, %cst_438 {dimension_numbers = #tpu.dot_dimension_numbers<[1], [0], [0], [1], [0, 0, 1, 1], [], []>} : vector<8x64xbf16>, vector<64x128xbf16>, vector<8x128xf32> -> vector<8x128xf32>
    %797 = arith.addf %769, %796 : vector<8x128xf32>
    %c8_439 = arith.constant 8 : index
    %c0_440 = arith.constant 0 : index
    %798 = vector.load %arg14[%c8_439, %c0_440] : memref<24x64xbf16, #tpu.memory_space<vmem>>, vector<8x64xbf16>
    %c4_441 = arith.constant 4 : index
    %c0_442 = arith.constant 0 : index
    %c0_443 = arith.constant 0 : index
    %799 = vector.load %arg4[%c4_441, %c0_442, %c0_443] : memref<9x64x128xbf16, #tpu.memory_space<vmem>>, vector<1x64x128xbf16>
    %800 = vector.shape_cast %799 : vector<1x64x128xbf16> to vector<64x128xbf16>
    %cst_444 = arith.constant dense<0.000000e+00> : vector<8x128xf32>
    %801 = tpu.matmul %798, %800, %cst_444 {dimension_numbers = #tpu.dot_dimension_numbers<[1], [0], [0], [1], [0, 0, 1, 1], [], []>} : vector<8x64xbf16>, vector<64x128xbf16>, vector<8x128xf32> -> vector<8x128xf32>
    %802 = arith.addf %797, %801 : vector<8x128xf32>
    %c9_445 = arith.constant 9 : index
    %c0_446 = arith.constant 0 : index
    %803 = vector.load %arg14[%c9_445, %c0_446] : memref<24x64xbf16, #tpu.memory_space<vmem>>, vector<8x64xbf16>
    %c1_i32_447 = arith.constant 1 : i32
    %804 = vector.broadcast %c1_i32_447 : i32 to vector<8x1xi32>
    %805 = arith.addi %698, %804 : vector<8x1xi32>
    %c0_i32_448 = arith.constant 0 : i32
    %806 = vector.broadcast %c0_i32_448 : i32 to vector<8x1xi32>
    %807 = arith.cmpi sge, %805, %806 : vector<8x1xi32>
    %c1_i32_449 = arith.constant 1 : i32
    %808 = vector.broadcast %c1_i32_449 : i32 to vector<8x1xi32>
    %809 = arith.addi %698, %808 : vector<8x1xi32>
    %c2_i32_450 = arith.constant 2 : i32
    %810 = vector.broadcast %c2_i32_450 : i32 to vector<8x1xi32>
    %811 = arith.cmpi slt, %809, %810 : vector<8x1xi32>
    %812 = arith.andi %807, %811 : vector<8x1xi1>
    %813 = arith.andi %778, %812 : vector<8x1xi1>
    %cst_451 = arith.constant 0.000000e+00 : bf16
    %814 = vector.broadcast %cst_451 : bf16 to vector<8x64xbf16>
    %815 = vector.shape_cast %813 : vector<8x1xi1> to vector<8x1xi1>
    %816 = vector.broadcast %815 : vector<8x1xi1> to vector<8x64xi1>
    %817 = arith.select %816, %803, %814 : vector<8x64xi1>, vector<8x64xbf16>
    %c5_452 = arith.constant 5 : index
    %c0_453 = arith.constant 0 : index
    %c0_454 = arith.constant 0 : index
    %818 = vector.load %arg4[%c5_452, %c0_453, %c0_454] : memref<9x64x128xbf16, #tpu.memory_space<vmem>>, vector<1x64x128xbf16>
    %819 = vector.shape_cast %818 : vector<1x64x128xbf16> to vector<64x128xbf16>
    %cst_455 = arith.constant dense<0.000000e+00> : vector<8x128xf32>
    %820 = tpu.matmul %817, %819, %cst_455 {dimension_numbers = #tpu.dot_dimension_numbers<[1], [0], [0], [1], [0, 0, 1, 1], [], []>} : vector<8x64xbf16>, vector<64x128xbf16>, vector<8x128xf32> -> vector<8x128xf32>
    %821 = arith.addf %802, %820 : vector<8x128xf32>
    %c1_i32_456 = arith.constant 1 : i32
    %822 = vector.broadcast %c1_i32_456 : i32 to vector<8x1xi32>
    %823 = arith.addi %702, %822 : vector<8x1xi32>
    %c0_i32_457 = arith.constant 0 : i32
    %824 = vector.broadcast %c0_i32_457 : i32 to vector<8x1xi32>
    %825 = arith.cmpi sge, %823, %824 : vector<8x1xi32>
    %c1_i32_458 = arith.constant 1 : i32
    %826 = vector.broadcast %c1_i32_458 : i32 to vector<8x1xi32>
    %827 = arith.addi %702, %826 : vector<8x1xi32>
    %c2_i32_459 = arith.constant 2 : i32
    %828 = vector.broadcast %c2_i32_459 : i32 to vector<8x1xi32>
    %829 = arith.cmpi slt, %827, %828 : vector<8x1xi32>
    %830 = arith.andi %825, %829 : vector<8x1xi1>
    %c9_460 = arith.constant 9 : index
    %c0_461 = arith.constant 0 : index
    %831 = vector.load %arg14[%c9_460, %c0_461] : memref<24x64xbf16, #tpu.memory_space<vmem>>, vector<8x64xbf16>
    %c-1_i32_462 = arith.constant -1 : i32
    %832 = vector.broadcast %c-1_i32_462 : i32 to vector<8x1xi32>
    %833 = arith.addi %698, %832 : vector<8x1xi32>
    %c0_i32_463 = arith.constant 0 : i32
    %834 = vector.broadcast %c0_i32_463 : i32 to vector<8x1xi32>
    %835 = arith.cmpi sge, %833, %834 : vector<8x1xi32>
    %c-1_i32_464 = arith.constant -1 : i32
    %836 = vector.broadcast %c-1_i32_464 : i32 to vector<8x1xi32>
    %837 = arith.addi %698, %836 : vector<8x1xi32>
    %c2_i32_465 = arith.constant 2 : i32
    %838 = vector.broadcast %c2_i32_465 : i32 to vector<8x1xi32>
    %839 = arith.cmpi slt, %837, %838 : vector<8x1xi32>
    %840 = arith.andi %835, %839 : vector<8x1xi1>
    %841 = arith.andi %830, %840 : vector<8x1xi1>
    %cst_466 = arith.constant 0.000000e+00 : bf16
    %842 = vector.broadcast %cst_466 : bf16 to vector<8x64xbf16>
    %843 = vector.shape_cast %841 : vector<8x1xi1> to vector<8x1xi1>
    %844 = vector.broadcast %843 : vector<8x1xi1> to vector<8x64xi1>
    %845 = arith.select %844, %831, %842 : vector<8x64xi1>, vector<8x64xbf16>
    %c6_467 = arith.constant 6 : index
    %c0_468 = arith.constant 0 : index
    %c0_469 = arith.constant 0 : index
    %846 = vector.load %arg4[%c6_467, %c0_468, %c0_469] : memref<9x64x128xbf16, #tpu.memory_space<vmem>>, vector<1x64x128xbf16>
    %847 = vector.shape_cast %846 : vector<1x64x128xbf16> to vector<64x128xbf16>
    %cst_470 = arith.constant dense<0.000000e+00> : vector<8x128xf32>
    %848 = tpu.matmul %845, %847, %cst_470 {dimension_numbers = #tpu.dot_dimension_numbers<[1], [0], [0], [1], [0, 0, 1, 1], [], []>} : vector<8x64xbf16>, vector<64x128xbf16>, vector<8x128xf32> -> vector<8x128xf32>
    %849 = arith.addf %821, %848 : vector<8x128xf32>
    %c10_471 = arith.constant 10 : index
    %c0_472 = arith.constant 0 : index
    %850 = vector.load %arg14[%c10_471, %c0_472] : memref<24x64xbf16, #tpu.memory_space<vmem>>, vector<8x64xbf16>
    %c0_i32_473 = arith.constant 0 : i32
    %851 = vector.broadcast %c0_i32_473 : i32 to vector<8x1xi32>
    %852 = arith.addi %698, %851 : vector<8x1xi32>
    %c0_i32_474 = arith.constant 0 : i32
    %853 = vector.broadcast %c0_i32_474 : i32 to vector<8x1xi32>
    %854 = arith.cmpi sge, %852, %853 : vector<8x1xi32>
    %c0_i32_475 = arith.constant 0 : i32
    %855 = vector.broadcast %c0_i32_475 : i32 to vector<8x1xi32>
    %856 = arith.addi %698, %855 : vector<8x1xi32>
    %c2_i32_476 = arith.constant 2 : i32
    %857 = vector.broadcast %c2_i32_476 : i32 to vector<8x1xi32>
    %858 = arith.cmpi slt, %856, %857 : vector<8x1xi32>
    %859 = arith.andi %854, %858 : vector<8x1xi1>
    %860 = arith.andi %830, %859 : vector<8x1xi1>
    %cst_477 = arith.constant 0.000000e+00 : bf16
    %861 = vector.broadcast %cst_477 : bf16 to vector<8x64xbf16>
    %862 = vector.shape_cast %860 : vector<8x1xi1> to vector<8x1xi1>
    %863 = vector.broadcast %862 : vector<8x1xi1> to vector<8x64xi1>
    %864 = arith.select %863, %850, %861 : vector<8x64xi1>, vector<8x64xbf16>
    %c7_478 = arith.constant 7 : index
    %c0_479 = arith.constant 0 : index
    %c0_480 = arith.constant 0 : index
    %865 = vector.load %arg4[%c7_478, %c0_479, %c0_480] : memref<9x64x128xbf16, #tpu.memory_space<vmem>>, vector<1x64x128xbf16>
    %866 = vector.shape_cast %865 : vector<1x64x128xbf16> to vector<64x128xbf16>
    %cst_481 = arith.constant dense<0.000000e+00> : vector<8x128xf32>
    %867 = tpu.matmul %864, %866, %cst_481 {dimension_numbers = #tpu.dot_dimension_numbers<[1], [0], [0], [1], [0, 0, 1, 1], [], []>} : vector<8x64xbf16>, vector<64x128xbf16>, vector<8x128xf32> -> vector<8x128xf32>
    %868 = arith.addf %849, %867 : vector<8x128xf32>
    %c11_482 = arith.constant 11 : index
    %c0_483 = arith.constant 0 : index
    %869 = vector.load %arg14[%c11_482, %c0_483] : memref<24x64xbf16, #tpu.memory_space<vmem>>, vector<8x64xbf16>
    %c1_i32_484 = arith.constant 1 : i32
    %870 = vector.broadcast %c1_i32_484 : i32 to vector<8x1xi32>
    %871 = arith.addi %698, %870 : vector<8x1xi32>
    %c0_i32_485 = arith.constant 0 : i32
    %872 = vector.broadcast %c0_i32_485 : i32 to vector<8x1xi32>
    %873 = arith.cmpi sge, %871, %872 : vector<8x1xi32>
    %c1_i32_486 = arith.constant 1 : i32
    %874 = vector.broadcast %c1_i32_486 : i32 to vector<8x1xi32>
    %875 = arith.addi %698, %874 : vector<8x1xi32>
    %c2_i32_487 = arith.constant 2 : i32
    %876 = vector.broadcast %c2_i32_487 : i32 to vector<8x1xi32>
    %877 = arith.cmpi slt, %875, %876 : vector<8x1xi32>
    %878 = arith.andi %873, %877 : vector<8x1xi1>
    %879 = arith.andi %830, %878 : vector<8x1xi1>
    %cst_488 = arith.constant 0.000000e+00 : bf16
    %880 = vector.broadcast %cst_488 : bf16 to vector<8x64xbf16>
    %881 = vector.shape_cast %879 : vector<8x1xi1> to vector<8x1xi1>
    %882 = vector.broadcast %881 : vector<8x1xi1> to vector<8x64xi1>
    %883 = arith.select %882, %869, %880 : vector<8x64xi1>, vector<8x64xbf16>
    %c8_489 = arith.constant 8 : index
    %c0_490 = arith.constant 0 : index
    %c0_491 = arith.constant 0 : index
    %884 = vector.load %arg4[%c8_489, %c0_490, %c0_491] : memref<9x64x128xbf16, #tpu.memory_space<vmem>>, vector<1x64x128xbf16>
    %885 = vector.shape_cast %884 : vector<1x64x128xbf16> to vector<64x128xbf16>
    %cst_492 = arith.constant dense<0.000000e+00> : vector<8x128xf32>
    %886 = tpu.matmul %883, %885, %cst_492 {dimension_numbers = #tpu.dot_dimension_numbers<[1], [0], [0], [1], [0, 0, 1, 1], [], []>} : vector<8x64xbf16>, vector<64x128xbf16>, vector<8x128xf32> -> vector<8x128xf32>
    %887 = arith.addf %868, %886 : vector<8x128xf32>
    %888 = vector.extract_strided_slice %887 {offsets = [0, 0], sizes = [8, 32], strides = [1, 1]} : vector<8x128xf32> to vector<8x32xf32>
    %889 = vector.extract_strided_slice %887 {offsets = [0, 32], sizes = [8, 32], strides = [1, 1]} : vector<8x128xf32> to vector<8x32xf32>
    %890 = arith.maximumf %888, %889 : vector<8x32xf32>
    %891 = vector.extract_strided_slice %887 {offsets = [0, 64], sizes = [8, 32], strides = [1, 1]} : vector<8x128xf32> to vector<8x32xf32>
    %892 = vector.extract_strided_slice %887 {offsets = [0, 96], sizes = [8, 32], strides = [1, 1]} : vector<8x128xf32> to vector<8x32xf32>
    %893 = arith.maximumf %891, %892 : vector<8x32xf32>
    %894 = arith.maximumf %890, %893 : vector<8x32xf32>
    %c0_493 = arith.constant 0 : index
    %c0_494 = arith.constant 0 : index
    %c0_495 = arith.constant 0 : index
    %895 = vector.load %arg7[%c0_493, %c0_494, %c0_495] : memref<3x1x32xf32, #tpu.memory_space<vmem>>, vector<1x1x32xf32>
    %896 = vector.shape_cast %895 : vector<1x1x32xf32> to vector<1x32xf32>
    %897 = vector.broadcast %896 : vector<1x32xf32> to vector<8x32xf32>
    %898 = arith.addf %894, %897 : vector<8x32xf32>
    %cst_496 = arith.constant dense<0.000000e+00> : vector<32xf32>
    %899 = vector.multi_reduction <add>, %898, %cst_496 [0] : vector<8x32xf32> to vector<32xf32>
    %900 = vector.shape_cast %899 : vector<32xf32> to vector<1x32xf32>
    %cst_497 = arith.constant 1.250000e-01 : f32
    %901 = vector.broadcast %cst_497 : f32 to vector<1x32xf32>
    %902 = arith.mulf %900, %901 : vector<1x32xf32>
    %903 = arith.mulf %898, %898 : vector<8x32xf32>
    %cst_498 = arith.constant dense<0.000000e+00> : vector<32xf32>
    %904 = vector.multi_reduction <add>, %903, %cst_498 [0] : vector<8x32xf32> to vector<32xf32>
    %905 = vector.shape_cast %904 : vector<32xf32> to vector<1x32xf32>
    %cst_499 = arith.constant 1.250000e-01 : f32
    %906 = vector.broadcast %cst_499 : f32 to vector<1x32xf32>
    %907 = arith.mulf %905, %906 : vector<1x32xf32>
    %908 = arith.mulf %902, %902 : vector<1x32xf32>
    %909 = arith.subf %907, %908 : vector<1x32xf32>
    %910 = vector.broadcast %902 : vector<1x32xf32> to vector<8x32xf32>
    %911 = arith.subf %898, %910 : vector<8x32xf32>
    %cst_500 = arith.constant 9.99999974E-6 : f32
    %912 = vector.broadcast %cst_500 : f32 to vector<1x32xf32>
    %913 = arith.addf %909, %912 : vector<1x32xf32>
    %914 = math.rsqrt %913 : vector<1x32xf32>
    %915 = vector.broadcast %914 : vector<1x32xf32> to vector<8x32xf32>
    %916 = arith.mulf %911, %915 : vector<8x32xf32>
    %c1_501 = arith.constant 1 : index
    %c0_502 = arith.constant 0 : index
    %c0_503 = arith.constant 0 : index
    %917 = vector.load %arg7[%c1_501, %c0_502, %c0_503] : memref<3x1x32xf32, #tpu.memory_space<vmem>>, vector<1x1x32xf32>
    %918 = vector.shape_cast %917 : vector<1x1x32xf32> to vector<1x32xf32>
    %919 = vector.broadcast %918 : vector<1x32xf32> to vector<8x32xf32>
    %920 = arith.mulf %916, %919 : vector<8x32xf32>
    %c2_504 = arith.constant 2 : index
    %c0_505 = arith.constant 0 : index
    %c0_506 = arith.constant 0 : index
    %921 = vector.load %arg7[%c2_504, %c0_505, %c0_506] : memref<3x1x32xf32, #tpu.memory_space<vmem>>, vector<1x1x32xf32>
    %922 = vector.shape_cast %921 : vector<1x1x32xf32> to vector<1x32xf32>
    %923 = vector.broadcast %922 : vector<1x32xf32> to vector<8x32xf32>
    %924 = arith.addf %920, %923 : vector<8x32xf32>
    %cst_507 = arith.constant 2.000000e-01 : f32
    %925 = vector.broadcast %cst_507 : f32 to vector<8x32xf32>
    %926 = arith.mulf %925, %924 : vector<8x32xf32>
    %927 = arith.maximumf %924, %926 : vector<8x32xf32>
    %928 = vector.extract_strided_slice %927 {offsets = [0, 0], sizes = [1, 32], strides = [1, 1]} : vector<8x32xf32> to vector<1x32xf32>
    %c0_508 = arith.constant 0 : index
    %c0_509 = arith.constant 0 : index
    %929 = vector.load %arg15[%c0_508, %c0_509] : memref<2x128xf32, #tpu.memory_space<vmem>>, vector<1x32xf32>
    tpu.vector_store %arg15[%c0_508, %c0_509], %928 {strides = array<i32>} : memref<2x128xf32, #tpu.memory_space<vmem>>, vector<1x32xf32>,
    %930 = vector.extract_strided_slice %927 {offsets = [1, 0], sizes = [1, 32], strides = [1, 1]} : vector<8x32xf32> to vector<1x32xf32>
    %c0_510 = arith.constant 0 : index
    %c32_511 = arith.constant 32 : index
    %931 = vector.load %arg15[%c0_510, %c32_511] : memref<2x128xf32, #tpu.memory_space<vmem>>, vector<1x32xf32>
    tpu.vector_store %arg15[%c0_510, %c32_511], %930 {strides = array<i32>} : memref<2x128xf32, #tpu.memory_space<vmem>>, vector<1x32xf32>,
    %932 = vector.extract_strided_slice %927 {offsets = [2, 0], sizes = [1, 32], strides = [1, 1]} : vector<8x32xf32> to vector<1x32xf32>
    %c0_512 = arith.constant 0 : index
    %c64 = arith.constant 64 : index
    %933 = vector.load %arg15[%c0_512, %c64] : memref<2x128xf32, #tpu.memory_space<vmem>>, vector<1x32xf32>
    tpu.vector_store %arg15[%c0_512, %c64], %932 {strides = array<i32>} : memref<2x128xf32, #tpu.memory_space<vmem>>, vector<1x32xf32>,
    %934 = vector.extract_strided_slice %927 {offsets = [3, 0], sizes = [1, 32], strides = [1, 1]} : vector<8x32xf32> to vector<1x32xf32>
    %c0_513 = arith.constant 0 : index
    %c96 = arith.constant 96 : index
    %935 = vector.load %arg15[%c0_513, %c96] : memref<2x128xf32, #tpu.memory_space<vmem>>, vector<1x32xf32>
    tpu.vector_store %arg15[%c0_513, %c96], %934 {strides = array<i32>} : memref<2x128xf32, #tpu.memory_space<vmem>>, vector<1x32xf32>,
    %936 = vector.extract_strided_slice %927 {offsets = [4, 0], sizes = [1, 32], strides = [1, 1]} : vector<8x32xf32> to vector<1x32xf32>
    %c1_514 = arith.constant 1 : index
    %c0_515 = arith.constant 0 : index
    %937 = vector.load %arg15[%c1_514, %c0_515] : memref<2x128xf32, #tpu.memory_space<vmem>>, vector<1x32xf32>
    tpu.vector_store %arg15[%c1_514, %c0_515], %936 {strides = array<i32>} : memref<2x128xf32, #tpu.memory_space<vmem>>, vector<1x32xf32>,
    %938 = vector.extract_strided_slice %927 {offsets = [5, 0], sizes = [1, 32], strides = [1, 1]} : vector<8x32xf32> to vector<1x32xf32>
    %c1_516 = arith.constant 1 : index
    %c32_517 = arith.constant 32 : index
    %939 = vector.load %arg15[%c1_516, %c32_517] : memref<2x128xf32, #tpu.memory_space<vmem>>, vector<1x32xf32>
    tpu.vector_store %arg15[%c1_516, %c32_517], %938 {strides = array<i32>} : memref<2x128xf32, #tpu.memory_space<vmem>>, vector<1x32xf32>,
    %940 = vector.extract_strided_slice %927 {offsets = [6, 0], sizes = [1, 32], strides = [1, 1]} : vector<8x32xf32> to vector<1x32xf32>
    %c1_518 = arith.constant 1 : index
    %c64_519 = arith.constant 64 : index
    %941 = vector.load %arg15[%c1_518, %c64_519] : memref<2x128xf32, #tpu.memory_space<vmem>>, vector<1x32xf32>
    tpu.vector_store %arg15[%c1_518, %c64_519], %940 {strides = array<i32>} : memref<2x128xf32, #tpu.memory_space<vmem>>, vector<1x32xf32>,
    %942 = vector.extract_strided_slice %927 {offsets = [7, 0], sizes = [1, 32], strides = [1, 1]} : vector<8x32xf32> to vector<1x32xf32>
    %c1_520 = arith.constant 1 : index
    %c96_521 = arith.constant 96 : index
    %943 = vector.load %arg15[%c1_520, %c96_521] : memref<2x128xf32, #tpu.memory_space<vmem>>, vector<1x32xf32>
    tpu.vector_store %arg15[%c1_520, %c96_521], %942 {strides = array<i32>} : memref<2x128xf32, #tpu.memory_space<vmem>>, vector<1x32xf32>,
    %c0_522 = arith.constant 0 : index
    %c0_523 = arith.constant 0 : index
    %944 = vector.load %arg15[%c0_522, %c0_523] : memref<2x128xf32, #tpu.memory_space<vmem>>, vector<2x128xf32>
    %c0_524 = arith.constant 0 : index
    %c0_525 = arith.constant 0 : index
    %945 = vector.load %arg8[%c0_524, %c0_525] : memref<128x32xf32, #tpu.memory_space<vmem>>, vector<128x32xf32>
    %cst_526 = arith.constant dense<0.000000e+00> : vector<2x32xf32>
    %946 = tpu.matmul %944, %945, %cst_526 {dimension_numbers = #tpu.dot_dimension_numbers<[1], [0], [0], [1], [0, 0, 1, 1], [], []>} : vector<2x128xf32>, vector<128x32xf32>, vector<2x32xf32> -> vector<2x32xf32>
    %c0_527 = arith.constant 0 : index
    %c0_528 = arith.constant 0 : index
    %947 = vector.load %arg9[%c0_527, %c0_528] : memref<1x32xf32, #tpu.memory_space<vmem>>, vector<1x32xf32>
    %948 = vector.broadcast %947 : vector<1x32xf32> to vector<2x32xf32>
    %949 = arith.addf %946, %948 : vector<2x32xf32>
    %c0_529 = arith.constant 0 : index
    %c0_530 = arith.constant 0 : index
    %950 = vector.load %arg10[%c0_529, %c0_530] : memref<32x128xf32, #tpu.memory_space<vmem>>, vector<32x128xf32>
    %cst_531 = arith.constant dense<0.000000e+00> : vector<2x128xf32>
    %951 = tpu.matmul %949, %950, %cst_531 {dimension_numbers = #tpu.dot_dimension_numbers<[1], [0], [0], [1], [0, 0, 1, 1], [], []>} : vector<2x32xf32>, vector<32x128xf32>, vector<2x128xf32> -> vector<2x128xf32>
    %c0_532 = arith.constant 0 : index
    %c0_533 = arith.constant 0 : index
    %952 = vector.load %arg11[%c0_532, %c0_533] : memref<1x128xf32, #tpu.memory_space<vmem>>, vector<1x128xf32>
    %953 = vector.broadcast %952 : vector<1x128xf32> to vector<2x128xf32>
    %954 = arith.addf %951, %953 : vector<2x128xf32>
    %c0_534 = arith.constant 0 : index
    %c0_535 = arith.constant 0 : index
    %955 = vector.load %arg12[%c0_534, %c0_535] : memref<2x128xf32, #tpu.memory_space<vmem>>, vector<2x128xf32>
    tpu.vector_store %arg12[%c0_534, %c0_535], %954 {strides = array<i32>} : memref<2x128xf32, #tpu.memory_space<vmem>>, vector<2x128xf32>,
    return
  }
  func.func @transform_0(%arg0: i32) -> (i32, i32) {
    %c0_i32 = arith.constant 0 : i32
    %c0_i32_0 = arith.constant 0 : i32
    %c0_i32_1 = arith.constant 0 : i32
    return %c0_i32, %c0_i32_0 : i32, i32
  }
  func.func @transform_1(%arg0: i32) -> (i32, i32, i32) {
    %c0_i32 = arith.constant 0 : i32
    %c0_i32_0 = arith.constant 0 : i32
    %c0_i32_1 = arith.constant 0 : i32
    %c0_i32_2 = arith.constant 0 : i32
    return %c0_i32, %c0_i32_0, %c0_i32_1 : i32, i32, i32
  }
  func.func @transform_2(%arg0: i32) -> (i32, i32, i32) {
    %c0_i32 = arith.constant 0 : i32
    %c0_i32_0 = arith.constant 0 : i32
    %c0_i32_1 = arith.constant 0 : i32
    %c0_i32_2 = arith.constant 0 : i32
    return %c0_i32, %c0_i32_0, %c0_i32_1 : i32, i32, i32
  }
  func.func @transform_3(%arg0: i32) -> (i32, i32, i32) {
    %c0_i32 = arith.constant 0 : i32
    %c0_i32_0 = arith.constant 0 : i32
    %c0_i32_1 = arith.constant 0 : i32
    %c0_i32_2 = arith.constant 0 : i32
    return %c0_i32, %c0_i32_0, %c0_i32_1 : i32, i32, i32
  }
  func.func @transform_4(%arg0: i32) -> (i32, i32, i32) {
    %c0_i32 = arith.constant 0 : i32
    %c0_i32_0 = arith.constant 0 : i32
    %c0_i32_1 = arith.constant 0 : i32
    %c0_i32_2 = arith.constant 0 : i32
    return %c0_i32, %c0_i32_0, %c0_i32_1 : i32, i32, i32
  }
  func.func @transform_5(%arg0: i32) -> (i32, i32, i32) {
    %c0_i32 = arith.constant 0 : i32
    %c0_i32_0 = arith.constant 0 : i32
    %c0_i32_1 = arith.constant 0 : i32
    %c0_i32_2 = arith.constant 0 : i32
    return %c0_i32, %c0_i32_0, %c0_i32_1 : i32, i32, i32
  }
  func.func @transform_6(%arg0: i32) -> (i32, i32, i32) {
    %c0_i32 = arith.constant 0 : i32
    %c0_i32_0 = arith.constant 0 : i32
    %c0_i32_1 = arith.constant 0 : i32
    %c0_i32_2 = arith.constant 0 : i32
    return %c0_i32, %c0_i32_0, %c0_i32_1 : i32, i32, i32
  }
  func.func @transform_7(%arg0: i32) -> (i32, i32) {
    %c0_i32 = arith.constant 0 : i32
    %c0_i32_0 = arith.constant 0 : i32
    %c0_i32_1 = arith.constant 0 : i32
    return %c0_i32, %c0_i32_0 : i32, i32
  }
  func.func @transform_8(%arg0: i32) -> (i32, i32) {
    %c0_i32 = arith.constant 0 : i32
    %c0_i32_0 = arith.constant 0 : i32
    %c0_i32_1 = arith.constant 0 : i32
    return %c0_i32, %c0_i32_0 : i32, i32
  }
  func.func @transform_9(%arg0: i32) -> (i32, i32) {
    %c0_i32 = arith.constant 0 : i32
    %c0_i32_0 = arith.constant 0 : i32
    %c0_i32_1 = arith.constant 0 : i32
    return %c0_i32, %c0_i32_0 : i32, i32
  }
  func.func @transform_10(%arg0: i32) -> (i32, i32) {
    %c0_i32 = arith.constant 0 : i32
    %c0_i32_0 = arith.constant 0 : i32
    %c0_i32_1 = arith.constant 0 : i32
    return %c0_i32, %c0_i32_0 : i32, i32
  }
  func.func @transform_11(%arg0: i32) -> (i32, i32) {
    %c0_i32 = arith.constant 0 : i32
    %c0_i32_0 = arith.constant 0 : i32
    %c0_i32_1 = arith.constant 0 : i32
    return %c0_i32, %c0_i32_0 : i32, i32
  }
}

</mosaic_0001>

<bundles_post_ra>
// kernel: hqr_cifar10_forward.1
= control target key start
LH: loop header
LB: loop body
LE: loop exit
PB: predicated region body
PF: predicated region fallthrough
CT: control target
= control target key end

     0   :  { %v19003_v1 = vlaneseq  ;;  %v19229_v29 = vmov 0  ;;  %v19231_v30 = vmov 0  ;;  %v19006_v33 = vmov 0   ;;  %s18974_s0 = inlined_call_operand.vmem [shape: bf16[160,16], index: 0, kind: input, shape index: {}]   ;;  %s18975_s1 = inlined_call_operand.vmem [shape: bf16[9,16,32], index: 1, kind: input, shape index: {}]   ;;  %s18976_s2 = inlined_call_operand.vmem [shape: bf16[9,32,64], index: 2, kind: input, shape index: {}]   ;;  %s18977_s3 = inlined_call_operand.vmem [shape: bf16[9,64,128], index: 3, kind: input, shape index: {}]   ;;  %s18978_s4 = inlined_call_operand.vmem [shape: f32[3,1,8], index: 4, kind: input, shape index: {}]   ;;  %s18979_s5 = inlined_call_operand.vmem [shape: f32[3,1,16], index: 5, kind: input, shape index: {}]   ;;  %s18980_s6 = inlined_call_operand.vmem [shape: f32[3,1,32], index: 6, kind: input, shape index: {}]   ;;  %s18981_s7 = inlined_call_operand.vmem [shape: f32[128,32], index: 7, kind: input, shape index: {}]   ;;  %s18982_s8 = inlined_call_operand.vmem [shape: f32[1,32], index: 8, kind: input, shape index: {}]   ;;  %s18983_s9 = inlined_call_operand.vmem [shape: f32[32,128], index: 9, kind: input, shape index: {}]   ;;  %s18984_s10 = inlined_call_operand.vmem [shape: f32[1,128], index: 10, kind: input, shape index: {}]   ;;  %s18985_s11 = inlined_call_operand.hbm [shape: f32[2,128], index: 11, kind: output, shape index: {}]  }
   0x1   :  { %v13047_v0 = vld [vmem:[%s18975_s1 + $0x8] sm:$0xff]   ;;  %v13246_v8 = vld [vmem:[%s18975_s1] sm:$0xff]   ;;  %v19237_v53 = vmov 0 }
   0x2   :  { %12026 = vmatprep.subr.bf16.mxu0 %v13047_v0  ;;  %v13230_v2 = vshrl.u32 %v19003_v1, 7  ;;  %v172_v38 = vld [vmem:[%s18974_s0 + $0x4] sm:$0xf]  ;;  %v173_v39 = vld [vmem:[%s18974_s0 + $0x8] sm:$0xf] }
   0x3   :  { %12027 = vmatpush3.bf16.msra.mxu0 %v13047_v0  ;;  %v171_v50 = vld [vmem:[%s18974_s0] sm:$0x8] }
   0x4   :  { %19221 = vst [vmem:[#allocation8_spill] sm:$0xff] %v13230_v2  ;;  %v13233_v3 = vadd.s32 8, %v13230_v2  ;;  %v13236_v4 = vadd.s32 16, %v13230_v2  ;;  %v13239_v5 = vadd.s32 24, %v13230_v2  ;;  %v59_v6 = vand.u32 7, %v13230_v2  ;;  %12044 = vmatprep.subr.bf16.mxu0 %v13246_v8 }
   0x5   :  { %v75_v7 = vshra.s32 %v13230_v2, 3 }
   0x6   :  { %19222 = vst [vmem:[#allocation9_spill] sm:$0xff] %v13233_v3  ;;  %19223 = vst [vmem:[#allocation10_spill] sm:$0xff] %v13236_v4  ;;  %v60_v9 = vand.u32 7, %v13233_v3  ;;  %v61_v10 = vand.u32 7, %v13236_v4  ;;  %v76_v11 = vshra.s32 %v13233_v3, 3  ;;  %v77_v12 = vshra.s32 %v13236_v4, 3 }
   0x7   :  { %19224 = vst [vmem:[#allocation11_spill] sm:$0xff] %v13239_v5  ;;  %v78_v13 = vshra.s32 %v13239_v5, 3  ;;  %v13253_v14 = vand.u32 7, %v75_v7  ;;  %v62_v15 = vand.u32 7, %v13239_v5  ;;  %v13261_v17 = vadd.s32 4294967295, %v59_v6  ;;  %v13049_v3 = vld [vmem:[%s18975_s1 + $0x10] sm:$0xff]  }
   0x8   :  { %v13257_v16 = vand.u32 7, %v76_v11  ;;  %v13263_v18 = vand.u32 7, %v77_v12  ;;  %v13271_v22 = vadd.s32 4294967295, %v60_v9  ;;  %v13275_v23 = vadd.s32 4294967295, %v61_v10 }
   0x9   :  { %v13265_v19 = vand.u32 7, %v78_v13  ;;  %v107_v20 = vadd.s32 4294967295, %v13253_v14  ;;  %v13285_v27 = vadd.s32 4294967295, %v62_v15  ;;  %vm18991_vm5 = vcmp.ge.s32.totalorder %v13261_v17, 0  ;;  %v13374_v13 = vld [vmem:[%s18974_s0 + $0xc] sm:$0xf] }
   0xa   :  { %v108_v21 = vadd.s32 4294967295, %v13257_v16  ;;  %v109_v24 = vadd.s32 4294967295, %v13263_v18  ;;  %vm18990_vm12 = vcmp.ge.s32.totalorder %v13271_v22, 0  ;;  %vm18986_vm14 = vcmp.ge.s32.totalorder %v13275_v23, 0 }
   0xb   :  { %v110_v25 = vadd.s32 4294967295, %v13265_v19  ;;  %vm123_vm0 = vcmp.ge.s32.totalorder %v107_v20, 0  ;;  %vm139_vm1 = vcmp.lt.s32.totalorder %v107_v20, 8  ;;  %vm18989_vm15 = vcmp.ge.s32.totalorder %v13285_v27, 0 }
   0xc   :  { %vm124_vm2 = vcmp.ge.s32.totalorder %v108_v21, 0  ;;  %vm140_vm3 = vcmp.lt.s32.totalorder %v108_v21, 8  ;;  %vm13279_vm4 = vmand %vm123_vm0, %vm139_vm1  ;;  %vm125_vm6 = vcmp.ge.s32.totalorder %v109_v24, 0  ;;  %vm141_vm8 = vcmp.lt.s32.totalorder %v109_v24, 8 }
   0xd   :  { %vm126_vm7 = vcmp.ge.s32.totalorder %v110_v25, 0  ;;  %vm142_vm9 = vcmp.lt.s32.totalorder %v110_v25, 8  ;;  %vm13288_vm10 = vmand %vm124_vm2, %vm140_vm3 }
   0xe   :  { %vm13292_vm11 = vmand %vm125_vm6, %vm141_vm8 }
   0xf   :  { %v19230_v29 = vsel %vm13292_vm11, 4294967295, %v19229_v29  ;;  %vm13297_vm13 = vmand %vm126_vm7, %vm142_vm9  ;;  %vm18987_vm7 = vsmask.f32 3328  ;;  %vm333_vm9 = vsmask.f32 7440 }
  0x10   :  { %v19232_v30 = vsel %vm13297_vm13, 4294967295, %v19231_v30  ;;  %vm252_vm0 = vmand %vm13279_vm4, %vm18991_vm5  ;;  %vm1698_vm5 = vcmp.lt.s32.totalorder %v13265_v19, 8 }
  0x11   :  { %vm253_vm1 = vmand %vm13288_vm10, %vm18990_vm12  ;;  %vm1682_vm12 = vcmp.ge.s32.totalorder %v13265_v19, 0 }
  0x12   :  { %vm13315_vm2 = vmand %vm13292_vm11, %vm18986_vm14 }
  0x13   :  { %vm13323_vm3 = vmand %vm13297_vm13, %vm18989_vm15 }
  0x14   :  { %vm300_vm6 = vmpackc.low %vm252_vm0, %vm252_vm0 }
  0x15   :  { %vm301_vm8 = vmpackc.low %vm253_vm1, %vm253_vm1  ;;  %v316_v34 = vsel %vm300_vm6, 65537, %v19006_v33 }
  0x16   :  { %vm302_vm14 = vmpackc.low %vm13315_vm2, %vm13315_vm2  ;;  %v317_v35 = vsel %vm301_vm8, 65537, %v19006_v33  ;;  %v336_v36 = vshll.u32 %v316_v34, 16  ;;  %v339_v37 = vshrl.u32 %v316_v34, 16  ;;  %vm1679_vm8 = vcmp.ge.s32.totalorder %v13253_v14, 0 }
  0x17   :  { %vm303_vm0 = vmpackc.low %vm13323_vm3, %vm13323_vm3  ;;  %v318_v40 = vsel %vm302_vm14, 65537, %v19006_v33  ;;  %v345_v41 = vshll.u32 %v317_v35, 16  ;;  %v349_v42 = vshrl.u32 %v317_v35, 16  ;;  %vm18988_vm14 = vcmask 130048  }
  0x18   :  { %v13343_v43 = vsel %vm303_vm0, 65537, %v19006_v33  ;;  %v338_v44 = vrot.slane %v336_v36, 5  ;;  %v341_v45 = vrot.slane %v339_v37, 4  ;;  %v355_v46 = vshll.u32 %v318_v40, 16  ;;  %vm626_vm1 = vmpackc.low %vm13279_vm4, %vm13279_vm4 }
  0x19   :  { %v347_v47 = vrot.slane %v345_v41, 5  ;;  %v351_v48 = vrot.slane %v349_v42, 4  ;;  %v359_v49 = vshrl.u32 %v318_v40, 16  ;;  %vm627_vm2 = vmpackc.low %vm13288_vm10, %vm13288_vm10  ;;  %v365_v56 = vshll.u32 %v13343_v43, 16 }
  0x1a   :  { %v342_v51 = vor.u32 %v341_v45, %v338_v44  ;;  %v357_v52 = vrot.slane %v355_v46, 5  ;;  %vm13356_vm3 = vmor %vm18987_vm7, %vm333_vm9  ;;  %vm494_vm6 = vcmp.ne.s16.totalorder %v338_v44, 0  ;;  %v642_v58 = vsel %vm626_vm1, %v172_v38, 0 }
  0x1b   :  { %v19238_v53 = vsel %vm13356_vm3, 4294967295, %v19237_v53  ;;  %v352_v54 = vor.u32 %v351_v48, %v347_v47  ;;  %v361_v55 = vrot.slane %v359_v49, 4  ;;  %v643_v59 = vsel %vm627_vm2, %v173_v39, 0  ;;  %vm13407_vm13 = vmand %vm1682_vm12, %vm1698_vm5 }
  0x1c   :  { %v343_v57 = vrot.slane %v342_v51, 4  ;;  %v11238_v62 = vcombine.low %v642_v58, %v643_v59  ;;  %vm1680_vm0 = vcmp.ge.s32.totalorder %v13257_v16, 0  ;;  %v511_v0 = vsel %vm494_vm6, %v171_v50, 0 }
  0x1d   :  { %v353_v60 = vrot.slane %v352_v54, 4  ;;  %v362_v61 = vor.u32 %v361_v55, %v357_v52  ;;  %vm1695_vm9 = vcmp.lt.s32.totalorder %v13253_v14, 8  ;;  %v13368_v12 = vrot.slane %v365_v56, 5 }
  0x1e   :  { %v348_v63 = vsel %vm13356_vm3, %v343_v57, %v347_v47  ;;  %12028 = vmatprep.mubr.msk.bf16.mxu0 %vm18988_vm14, %v11238_v62  ;;  %vm1681_vm6 = vcmp.ge.s32.totalorder %v13263_v18, 0  ;;  %vm1696_vm7 = vcmp.lt.s32.totalorder %v13257_v16, 8  ;;  %vm1697_vm14 = vcmp.lt.s32.totalorder %v13263_v18, 8 }
  0x1f   :  { %v358_v7 = vsel %vm13356_vm3, %v353_v60, %v357_v52  ;;  %v363_v11 = vrot.slane %v362_v61, 4  ;;  %vm495_vm1 = vcmp.ne.s16.totalorder %v348_v63, 0  ;;  %v19243_v36 = vmov 0 }
  0x20   :  { %vm496_vm2 = vcmp.ne.s16.totalorder %v358_v7, 0  ;;  %v512_v20 = vsel %vm495_vm1, %v172_v38, 0  ;;  %vm13390_vm1 = vmand %vm1679_vm8, %vm1695_vm9  ;;  %v19246_v37 = vmov 0  ;;  %vm19249_vm8 = vcmp.ge.s32.totalorder %v13261_v17, 0 }
  0x21   :  { %v368_v21 = vsel %vm13356_vm3, %v363_v11, %v13368_v12  ;;  %v513_v24 = vsel %vm496_vm2, %v173_v39, 0  ;;  %v13381_v25 = vcombine.low %v511_v0, %v512_v20  ;;  %vm13397_vm2 = vmand %vm1680_vm0, %vm1696_vm7  ;;  %v19247_v37 = vsel %vm13407_vm13, 4294967295, %v19246_v37 }
  0x22   :  { %vm497_vm15 = vcmp.ne.s16.totalorder %v368_v21, 0  ;;  %vm13403_vm3 = vmand %vm1681_vm6, %vm1697_vm14  ;;  %19248 = vst [vmem:[#allocation13_spill] sm:$0xff] %v19247_v37  ;;  %vm19252_vm7 = vcmp.ge.s32.totalorder %v13271_v22, 0  ;;  %vm19255_vm5 = vcmp.ge.s32.totalorder %v13275_v23, 0  ;;  %v13437_v41 = vadd.s32 1, %v59_v6 }
  0x23   :  { %v514_v32 = vsel %vm497_vm15, %v13374_v13, 0  ;;  %v19244_v36 = vsel %vm13403_vm3, 4294967295, %v19243_v36  ;;  %vm13415_vm15 = vmand %vm13390_vm1, %vm19249_vm8  ;;  %vm19258_vm0 = vcmp.ge.s32.totalorder %v13285_v27, 0  ;;  %v19259_v42 = vmov 0 }
  0x24   :  { %v13401_v35 = vcombine.low %v513_v24, %v514_v32  ;;  %19245 = vst [vmem:[#allocation12_spill] sm:$0xff] %v19244_v36  ;;  %vm13423_vm14 = vmand %vm13397_vm2, %vm19252_vm7  ;;  %v13449_v44 = vadd.s32 1, %v60_v9  ;;  %v47_v45 = vadd.s32 32, %v13230_v2  ;;  %v13454_v46 = vadd.s32 1, %v61_v10  ;;  %v14014_v36 = vld [vmem:[%s18974_s0 + $0x18] sm:$0xf] }
  0x25   :  { %vm13431_vm12 = vmand %vm13403_vm3, %vm19255_vm5  ;;  %vm18999_vm6 = vcmp.lt.s32.totalorder %v13437_v41, 8  ;;  %v369_v47 = vshrl.u32 %v13343_v43, 16  ;;  %v2991_v49 = vadd.s32 1, %v13265_v19  ;;  %v2988_v43 = vadd.s32 1, %v13253_v14 }
  0x26   :  { %vm13443_vm9 = vmand %vm13407_vm13, %vm19258_vm0  ;;  %19261 = vst [vmem:[#allocation14_spill] sm:$0xff] %v13454_v46  ;;  %vm18998_vm8 = vcmp.lt.s32.totalorder %v13449_v44, 8  ;;  %v79_v10 = vshra.s32 %v47_v45, 3  ;;  %vm18997_vm0 = vcmp.lt.s32.totalorder %v13454_v46, 8  ;;  %v2989_v19 = vadd.s32 1, %v13257_v16 }
  0x27   :  { %v19260_v42 = vsel %vm13443_vm9, 4294967295, %v19259_v42  ;;  %vm13462_vm7 = vmand %vm13390_vm1, %vm18999_vm6  ;;  %v63_v28 = vand.u32 7, %v47_v45  ;;  %v371_v52 = vrot.slane %v369_v47, 4  ;;  %v2990_v54 = vadd.s32 1, %v13263_v18 }
  0x28   :  { %vm13470_vm5 = vmand %vm13397_vm2, %vm18998_vm8  ;;  %v13502_v51 = vand.u32 7, %v79_v10  ;;  %v13516_v14 = vadd.s32 40, %v13230_v2  ;;  %v13520_v16 = vadd.s32 1, %v62_v15  ;;  %v13529_v55 = vadd.s32 48, %v13230_v2 }
  0x29   :  { %vm13480_vm1 = vmand %vm13279_vm4, %vm18999_vm6  ;;  %vm3005_vm6 = vcmp.ge.s32.totalorder %v2989_v19, 0  ;;  %v19273_v15 = vmov 0  ;;  %v13539_v58 = vadd.s32 4294967295, %v63_v28  ;;  %v372_v59 = vor.u32 %v371_v52, %v13368_v12 }
  0x2a   :  { %vm13489_vm2 = vmand %vm13288_vm10, %vm18998_vm8  ;;  %vm3023_vm8 = vcmp.lt.s32.totalorder %v2991_v49, 8  ;;  %19272 = vst [vmem:[#allocation15_spill] sm:$0xff] %v13520_v16  ;;  %v13526_v18 = vadd.s32 4294967295, %v13502_v51  ;;  %vm3021_vm9 = vcmp.lt.s32.totalorder %v2989_v19, 8  ;;  %v13551_v61 = vadd.s32 1, %v63_v28 }
  0x2b   :  { %vm13497_vm13 = vmand %vm13292_vm11, %vm18997_vm0  ;;  %vm3007_vm0 = vcmp.ge.s32.totalorder %v2991_v49, 0  ;;  %v64_v62 = vand.u32 7, %v13516_v14  ;;  %v19280_v11 = vmov 0  ;;  %v874_v12 = vshrl.u32 %v13381_v25, 16 }
  0x2c   :  { %vm1209_vm4 = vmpackc.low %vm13480_vm1, %vm13480_vm1  ;;  %vm3020_vm1 = vcmp.lt.s32.totalorder %v2988_v43, 8  ;;  %19277 = vst [vmem:[#allocation17_spill] sm:$0xff] %v13551_v61  ;;  %v13577_v20 = vrot.slane %v372_v59, 4  ;;  %v81_v31 = vshra.s32 %v13529_v55, 3  ;;  %v877_v32 = vshll.u32 %v13381_v25, 16 }
  0x2d   :  { %vm1210_vm10 = vmpackc.low %vm13489_vm2, %vm13489_vm2  ;;  %v1225_v56 = vsel %vm1209_vm4, 65537, %v19006_v33  ;;  %v19286_v48 = vmov 0  ;;  %v13606_v49 = vrot.slane %v874_v12, 3  ;;  %v882_v50 = vshrl.u32 %v13401_v35, 16 }
  0x2e   :  { %v13533_v57 = vsel %vm1210_vm10, 65537, %v19006_v33  ;;  %vm13535_vm3 = vmand %vm3007_vm0, %vm3023_vm8  ;;  %v1245_v63 = vshrl.u32 %v1225_v56, 16  ;;  %vm19279_vm10 = vcmp.ge.s32.totalorder %v13285_v27, 0  ;;  %vm143_vm0 = vcmp.lt.s32.totalorder %v13526_v18, 8 }
  0x2f   :  { %v19274_v15 = vsel %vm13535_vm3, 4294967295, %v19273_v15  ;;  %vm1211_vm11 = vmpackc.low %vm13497_vm13, %vm13497_vm13  ;;  %v1253_v0 = vshrl.u32 %v13533_v57, 16  ;;  %v80_v27 = vshra.s32 %v13516_v14, 3  ;;  %v1248_v10 = vshll.u32 %v1225_v56, 16 }
  0x30   :  { %19275 = vst [vmem:[#allocation16_spill] sm:$0xff] %v19274_v15  ;;  %vm19276_vm8 = vmpackc.low %vm13415_vm15, %vm13415_vm15  ;;  %v13590_v34 = vsel %vm1211_vm11, 65537, %v19006_v33  ;;  %v13595_v45 = vrot.slane %v1245_v63, 7  ;;  %v885_v26 = vshll.u32 %v13401_v35, 16  ;;  %v19289_v28 = vmov 0 }
  0x31   :  { %v1793_v60 = vsel %vm19276_vm8, 65537, %v19006_v33  ;;  %vm19278_vm4 = vmpackc.low %vm13423_vm14, %vm13423_vm14  ;;  %vm127_vm8 = vcmp.ge.s32.totalorder %v13526_v18, 0  ;;  %v13597_v47 = vrot.slane %v1253_v0, 7  ;;  %v13616_v52 = vand.u32 7, %v80_v27 }
  0x32   :  { %v1794_v7 = vsel %vm19278_vm4, 65537, %v19006_v33  ;;  %vm13565_vm15 = vmand %vm13535_vm3, %vm19279_vm10  ;;  %v1810_v21 = vshll.u32 %v1793_v60, 16  ;;  %v1813_v24 = vshrl.u32 %v1793_v60, 16  ;;  %19283 = vst [vmem:[#allocation19_spill] sm:$0xff] %v13595_v45  ;;  %vm19285_vm4 = vcmp.ge.s32.totalorder %v2988_v43, 0 }
  0x33   :  { %v19281_v11 = vsel %vm13565_vm15, 4294967295, %v19280_v11  ;;  %vm1779_vm2 = vmpackc.low %vm13431_vm12, %vm13431_vm12  ;;  %v1819_v38 = vshll.u32 %v1794_v7, 16  ;;  %v1823_v39 = vshrl.u32 %v1794_v7, 16  ;;  %19284 = vst [vmem:[#allocation20_spill] sm:$0xff] %v13597_v47  ;;  %vm19293_vm13 = vcmp.lt.s32.totalorder %v2990_v54, 8 }
  0x34   :  { %19282 = vst [vmem:[#allocation18_spill] sm:$0xff] %v19281_v11  ;;  %vm13602_vm14 = vmand %vm19285_vm4, %vm3020_vm1  ;;  %v13624_v43 = vsel %vm1779_vm2, 65537, %v19006_v33  ;;  %v13626_v14 = vrot.slane %v1810_v21, 5  ;;  %v1815_v56 = vrot.slane %v1813_v24, 4  ;;  %vm19294_vm1 = vcmp.ge.s32.totalorder %v2990_v54, 0 }
  0x35   :  { %v19287_v48 = vsel %vm13602_vm14, 4294967295, %v19286_v48  ;;  %vm13612_vm11 = vmand %vm3005_vm6, %vm3021_vm9  ;;  %v19295_v35 = vmov 0  ;;  %v13634_v19 = vand.u32 7, %v81_v31  ;;  %v13636_v59 = vrot.slane %v877_v32, 4  ;;  %v13687_v31 = vld [vmem:[%s18974_s0 + $0x10] sm:$0xf] }
  0x36   :  { %19288 = vst [vmem:[#allocation21_spill] sm:$0xff] %v19287_v48  ;;  %v19290_v28 = vsel %vm13612_vm11, 4294967295, %v19289_v28  ;;  %19292 = vst [vmem:[#allocation23_spill] sm:$0xff] %v13626_v14  ;;  %v13638_v60 = vrot.slane %v1819_v38, 5  ;;  %v1825_v63 = vrot.slane %v1823_v39, 4  ;;  %vm19299_vm12 = vcmp.ge.s32.totalorder %v13261_v17, 0 }
  0x37   :  { %19291 = vst [vmem:[#allocation22_spill] sm:$0xff] %v19290_v28  ;;  %vm13630_vm4 = vmand %vm19294_vm1, %vm19293_vm13  ;;  %v19005_v54 = vand.u32 7, %v13529_v55  ;;  %v13650_v0 = vor.u32 %v1248_v10, %v13595_v45  ;;  %vm19302_vm6 = vcmp.ge.s32.totalorder %v13271_v22, 0  ;;  %v13663_v17 = vadd.s32 1, %v13502_v51 }
  0x38   :  { %v19296_v35 = vsel %vm13630_vm4, 4294967295, %v19295_v35  ;;  %19298 = vst [vmem:[#allocation25_spill] sm:$0xff] %v13634_v19  ;;  %vm13644_vm9 = vmand %vm13602_vm14, %vm19299_vm12  ;;  %v1833_v21 = vshrl.u32 %v13624_v43, 16  ;;  %vm19305_vm12 = vcmp.ge.s32.totalorder %v13275_v23, 0  ;;  %v13690_v23 = vadd.s32 4294967295, %v13616_v52 }
  0x39   :  { %19297 = vst [vmem:[#allocation24_spill] sm:$0xff] %v19296_v35  ;;  %vm13656_vm2 = vmand %vm13612_vm11, %vm19302_vm6  ;;  %v13692_v32 = vrot.slane %v882_v50, 3  ;;  %v13694_v38 = vrot.slane %v885_v26, 4  ;;  %v1816_v39 = vor.u32 %v1815_v56, %v13626_v14  ;;  %v13702_v18 = vadd.s32 4294967295, %v13634_v19 }
  0x3a   :  { %vm13672_vm6 = vmand %vm13630_vm4, %vm19305_vm12  ;;  %vm19310_vm12 = vcmp.ge.s32.totalorder %v13539_v58, 0  ;;  %v1826_v10 = vor.u32 %v1825_v63, %v13638_v60  ;;  %v13705_v1 = vadd.s32 4294967295, %v64_v62  ;;  %v13709_v50 = vadd.s32 4294967295, %v19005_v54 }
  0x3b   :  { %vm13680_vm13 = vmand %vm127_vm8, %vm143_vm0  ;;  %v13711_v26 = vadd.s32 1, %v64_v62  ;;  %v13730_v62 = vadd.s32 56, %v13230_v2  ;;  %v13733_v63 = vadd.s32 64, %v13230_v2  ;;  %v13735_v6 = vrot.slane %v1833_v21, 4 }
  0x3c   :  { %vm256_vm0 = vmand %vm13680_vm13, %vm19310_vm12  ;;  %19311 = vst [vmem:[#allocation26_spill] sm:$0xff] %v13709_v50  ;;  %v13752_v21 = vrot.slane %v1816_v39, 4  ;;  %v13764_v25 = vrot.slane %v1826_v10, 4  ;;  %vm19318_vm15 = vcmp.lt.s32.totalorder %v13502_v51, 8  ;;  %v19324_v11 = vshll.u32 %v13533_v57, 16 }
  0x3d   :  { %vm304_vm8 = vmpackc.low %vm256_vm0, %vm256_vm0  ;;  %vm19314_vm0 = vnez %v19230_v29  ;;  %19315 = vst [vmem:[#allocation28_spill] sm:$0xff] %v13733_v63  ;;  %v82_v37 = vshra.s32 %v13730_v62, 3  ;;  %v83_v57 = vshra.s32 %v13733_v63, 3 }
  0x3e   :  { %vm19312_vm12 = vmpackc.low %vm13462_vm7, %vm13462_vm7  ;;  %v13722_v27 = vsel %vm304_vm8, 65537, %v19006_v33  ;;  %vm19317_vm8 = vnez %v19232_v30  ;;  %v13797_v15 = vor.u32 %v19324_v11, %v13597_v47  ;;  %v19331_v11 = vmov 0  }
  0x3f   :  { %v13719_v56 = vsel %vm19312_vm12, 65537, %v19006_v33  ;;  %vm628_vm1 = vmpackc.low %vm19314_vm0, %vm19314_vm0  ;;  %v375_v12 = vshll.u32 %v13722_v27, 16  ;;  %vm19319_vm0 = vcmp.ge.s32.totalorder %v13502_v51, 0  ;;  %v379_v19 = vshrl.u32 %v13722_v27, 16 }
  0x40   :  { %19313 = vst [vmem:[#allocation27_spill] sm:$0xff] %v13719_v56  ;;  %vm19316_vm7 = vmpackc.low %vm13470_vm5, %vm13470_vm5  ;;  %v644_v54 = vsel %vm628_vm1, %v13374_v13, 0  ;;  %v66_v13 = vand.u32 7, %v13730_v62  ;;  %v2555_v39 = vshrl.u32 %v13719_v56, 16  ;;  %v13873_v27 = vand.u32 7, %v83_v57 }
  0x41   :  { %v13743_v29 = vsel %vm19316_vm7, 65537, %v19006_v33  ;;  %vm629_vm12 = vmpackc.low %vm19317_vm8, %vm19317_vm8  ;;  %v13761_v33 = vadd.s32 1, %v13616_v52  ;;  %v13770_v5 = vrot.slane %v375_v12, 5  ;;  %v19320_v12 = vmov 0  ;;  %19325 = vst [vmem:[#allocation31_spill] sm:$0xff] %v13797_v15 }
  0x42   :  { %vm3102_vm5 = vmpackc.low %vm13644_vm9, %vm13644_vm9  ;;  %v645_v9 = vsel %vm629_vm12, %v13687_v31, 0  ;;  %v2563_v10 = vshrl.u32 %v13743_v29, 16  ;;  %vm19328_vm12 = vcmp.ge.s32.totalorder %v13539_v58, 0  ;;  %v13840_v47 = vrot.slane %v2555_v39, 7  ;;  %19342 = vst [vmem:[#allocation34_spill] sm:$0xff] %v13873_v27 }
  0x43   :  { %vm3103_vm1 = vmpackc.low %vm13656_vm2, %vm13656_vm2  ;;  %v11239_v4 = vcombine.low %v644_v54, %v645_v9  ;;  %v13789_v54 = vadd.s32 72, %v13230_v2  ;;  %v13792_v9 = vadd.s32 80, %v13230_v2  ;;  %v2566_v7 = vshll.u32 %v13743_v29, 16 }
  0x44   :  { %vm13783_vm10 = vmand %vm19319_vm0, %vm19318_vm15  ;;  %vm19326_vm15 = vnez %v19238_v53  ;;  %vm19327_vm0 = vcmask 130048   ;;  %19337 = vst [vmem:[#allocation32_spill] sm:$0xff] %v13840_v47  ;;  %vm19338_vm9 = vcmp.lt.s32.totalorder %v13449_v44, 8  ;;  %v13860_v44 = vadd.s32 4294967295, %v66_v13 }
  0x45   :  { %v19321_v12 = vsel %vm13783_vm10, 4294967295, %v19320_v12  ;;  %19323 = vst [vmem:[#allocation30_spill] sm:$0xff] %v13792_v9  ;;  %v378_v51 = vsel %vm19326_vm15, %v13577_v20, %v13770_v5  ;;  %12029 = vmatmul.mubr.msk.bf16.vlgmr.msra.gmra.mrb[0].mxu0 %vm19327_vm0, %v11239_v4  ;;  %vm13808_vm7 = vmand %vm13783_vm10, %vm19328_vm12  ;;  %v3118_v20 = vsel %vm3102_vm5, 65537, %v19331_v11  ;;  %v3119_v4 = vsel %vm3103_vm1, 65537, %v19331_v11 }
  0x46   :  { %19322 = vst [vmem:[#allocation29_spill] sm:$0xff] %v19321_v12  ;;  %vm19332_vm12 = vcmp.lt.s32.totalorder %v13437_v41, 8  ;;  %vm13835_vm3 = vcmp.ne.s16.totalorder %v378_v51, 0  ;;  %12045 = vmatpush3.bf16.msra.mxu0 %v13246_v8  ;;  %vm13847_vm2 = vmand %vm13612_vm11, %vm19338_vm9  ;;  %v13855_v8 = vrot.slane %v2563_v10, 7  ;;  %v84_v29 = vshra.s32 %v13789_v54, 3 }
  0x47   :  { %vm13830_vm0 = vmand %vm13602_vm14, %vm19332_vm12  ;;  %12062 = vmatprep.subr.bf16.mxu0 %v13049_v3  ;;  %v85_v39 = vshra.s32 %v13792_v9, 3  ;;  %v3135_v28 = vshll.u32 %v3118_v20, 16  ;;  %v3138_v48 = vshrl.u32 %v3118_v20, 16  ;;  %v3144_v45 = vshll.u32 %v3119_v4, 16 }
  0x48   :  { %19341 = vst [vmem:[#allocation33_spill] sm:$0xff] %v13855_v8  ;;  %v3148_v15 = vshrl.u32 %v3119_v4, 16  ;;  %v381_v3 = vrot.slane %v379_v19, 4  ;;  %v13871_v10 = vand.u32 7, %v82_v37  ;;  %v13875_v51 = vadd.s32 1, %v66_v13 }
  0x49   :  { %vm19343_vm5 = vcmp.lt.s32.totalorder %v13663_v17, 8  ;;  %vm19344_vm11 = vcmp.ge.s32.totalorder %v13663_v17, 0  ;;  %v19345_v4 = vmov 0  ;;  %v19348_v37 = vand.u32 7, %v13733_v63 }
  0x4a   :  { %vm13882_vm1 = vmand %vm19344_vm11, %vm19343_vm5  ;;  %v68_v13 = vand.u32 7, %v13789_v54  ;;  %v13895_v20 = vor.u32 %v2566_v7, %v13855_v8  ;;  %vm19353_vm5 = vcmp.lt.s32.totalorder %v13690_v23, 8  ;;  %vm19354_vm12 = vcmp.ge.s32.totalorder %v13690_v23, 0 }
  0x4b   :  { %v19346_v4 = vsel %vm13882_vm1, 4294967295, %v19345_v4  ;;  %v13890_v19 = vadd.s32 4294967295, %v19348_v37  ;;  %vm19351_vm11 = vmpackc.low %vm13672_vm6, %vm13672_vm6  ;;  %v13913_v54 = vand.u32 7, %v84_v29  ;;  %v13915_v7 = vand.u32 7, %v85_v39 }
  0x4c   :  { %19347 = vst [vmem:[#allocation35_spill] sm:$0xff] %v19346_v4  ;;  %19350 = vst [vmem:[#allocation37_spill] sm:$0xff] %v13895_v20  ;;  %v13903_v17 = vsel %vm19351_vm11, 65537, %v19331_v11  ;;  %v13917_v57 = vrot.slane %v3135_v28, 5  ;;  %v3140_v20 = vrot.slane %v3138_v48, 4  ;;  %v13919_v8 = vrot.slane %v3144_v45, 5 }
  0x4d   :  { %19349 = vst [vmem:[#allocation36_spill] sm:$0xff] %v13890_v19  ;;  %19352 = vst [vmem:[#allocation38_spill] sm:$0xff] %v13903_v17  ;;  %v3150_v22 = vrot.slane %v3148_v15, 4  ;;  %vm19360_vm6 = vcmp.lt.s32.totalorder %v13702_v18, 8  ;;  %vm19361_vm11 = vcmp.ge.s32.totalorder %v13702_v18, 0  ;;  %v19362_v23 = vmov 0 }
  0x4e   :  { %vm13909_vm9 = vmand %vm19354_vm12, %vm19353_vm5  ;;  %19357 = vst [vmem:[#allocation39_spill] sm:$0xff] %v13915_v7  ;;  %v13940_v15 = vld [vmem:[%s18974_s0 + $0x14] sm:$0xf]  ;;  %vm19367_vm5 = vcmp.ge.s32.totalorder %v13705_v1, 0  ;;  %v382_v48 = vor.u32 %v381_v3, %v13770_v5  ;;  %v13952_v18 = vadd.s32 4294967295, %v13871_v10  ;;  %v13955_v62 = vadd.s32 4294967295, %v13873_v27 }
  0x4f   :  { %19358 = vst [vmem:[#allocation40_spill] sm:$0xff] %v13917_v57  ;;  %19359 = vst [vmem:[#allocation41_spill] sm:$0xff] %v13919_v8  ;;  %v3158_v29 = vshrl.u32 %v13903_v17, 16  ;;  %v13978_v3 = vadd.s32 1, %v13871_v10  ;;  %v13980_v17 = vadd.s32 4294967295, %v68_v13  ;;  %v19376_v27 = vand.u32 7, %v13792_v9 }
  0x50   :  { %vm13925_vm14 = vmand %vm19361_vm11, %vm19360_vm6  ;;  %v14004_v47 = vadd.s32 4294967295, %v13915_v7  ;;  %v14006_v12 = vadd.s32 1, %v68_v13  ;;  %v3141_v41 = vor.u32 %v3140_v20, %v13917_v57  ;;  %v383_v46 = vrot.slane %v382_v48, 4 }
  0x51   :  { %v19363_v23 = vsel %vm13925_vm14, 4294967295, %v19362_v23  ;;  %vm19365_vm12 = vmpackc.low %vm13830_vm0, %vm13830_vm0  ;;  %vm19370_vm0 = vcmp.lt.s32.totalorder %v13551_v61, 8  ;;  %v13984_v56 = vadd.s32 4294967295, %v19376_v27  ;;  %v14001_v27 = vadd.s32 4294967295, %v13913_v54 }
  0x52   :  { %19364 = vst [vmem:[#allocation42_spill] sm:$0xff] %v19363_v23  ;;  %v13935_v28 = vsel %vm19365_vm12, 65537, %v19331_v11  ;;  %vm13946_vm6 = vmand %vm13909_vm9, %vm19367_vm5  ;;  %vm19373_vm5 = vcmp.ge.s32.totalorder %v13709_v50, 0  ;;  %v3151_v61 = vor.u32 %v3150_v22, %v13919_v8  ;;  %v14026_v22 = vrot.slane %v3158_v29, 4 }
  0x53   :  { %19366 = vst [vmem:[#allocation43_spill] sm:$0xff] %v13935_v28  ;;  %vm13962_vm11 = vmand %vm13680_vm13, %vm19370_vm0  ;;  %v3960_v45 = vshrl.u32 %v13935_v28, 16  ;;  %v14034_v9 = vadd.s32 88, %v13230_v2  ;;  %v14061_v37 = vadd.s32 96, %v13230_v2  ;;  %vm19397_vm0 = vcmp.ge.s32.totalorder %v13705_v1, 0 }
  0x54   :  { %vm13973_vm4 = vmand %vm13925_vm14, %vm19373_vm5  ;;  %19377 = vst [vmem:[#allocation44_spill] sm:$0xff] %v13984_v56  ;;  %vm19396_vm14 = vcmask 130048   ;;  %v14157_v30 = vadd.s32 112, %v13230_v2 }
  0x55   :  { %vm19378_vm5 = vmpackc.low %vm13847_vm2, %vm13847_vm2  ;;  %19379 = vst [vmem:[#allocation45_spill] sm:$0xff] %v14006_v12  ;;  %v14048_v14 = vrot.slane %v3960_v45, 7  ;;  %v19400_v45 = vsel %vm13835_vm3, %v13687_v31, 0 }
  0x56   :  { %v13993_v50 = vsel %vm19378_vm5, 65537, %v19331_v11  ;;  %vm305_vm12 = vmpackc.low %vm13946_vm6, %vm13946_vm6  ;;  %19380 = vst [vmem:[#allocation46_spill] sm:$0xff] %v14026_v22  ;;  %v14046_v22 = vrot.slane %v3141_v41, 4  ;;  %vm19386_vm5 = vcmp.ge.s32.totalorder %v13539_v58, 0  ;;  %v14063_v41 = vrot.slane %v3151_v61, 4 }
  0x57   :  { %vm306_vm2 = vmpackc.low %vm13973_vm4, %vm13973_vm4  ;;  %v321_v7 = vsel %vm305_vm12, 65537, %v19331_v11  ;;  %v3968_v8 = vshrl.u32 %v13993_v50, 16  ;;  %19385 = vst [vmem:[#allocation48_spill] sm:$0xff] %v14048_v14 }
  0x58   :  { %v14021_v13 = vsel %vm306_vm2, 65537, %v19331_v11  ;;  %v385_v20 = vshll.u32 %v321_v7, 16  ;;  %v389_v57 = vshrl.u32 %v321_v7, 16  ;;  %vm630_vm6 = vmpackc.low %vm13680_vm13, %vm13680_vm13  ;;  %vm19381_vm13 = vcmp.lt.s32.totalorder %v13711_v26, 8  ;;  %19384 = vst [vmem:[#allocation47_spill] sm:$0xff] %v14046_v22 }
  0x59   :  { %vm631_vm4 = vmpackc.low %vm13909_vm9, %vm13909_vm9  ;;  %v646_v5 = vsel %vm630_vm6, %v13940_v15, 0  ;;  %v395_v7 = vshll.u32 %v14021_v13, 16  ;;  %19389 = vst [vmem:[#allocation49_spill] sm:$0xff] %v14061_v37  ;;  %v14078_v61 = vrot.slane %v3968_v8, 7 }
  0x5a   :  { %v387_v48 = vrot.slane %v385_v20, 5  ;;  %v391_v63 = vrot.slane %v389_v57, 4  ;;  %v647_v24 = vsel %vm631_vm4, %v14014_v36, 0  ;;  %vm14042_vm12 = vmand %vm13909_vm9, %vm19381_vm13  ;;  %19390 = vst [vmem:[#allocation50_spill] sm:$0xff] %v14063_v41  ;;  %vm19391_vm4 = vcmp.lt.s32.totalorder %v13616_v52, 8 }
  0x5b   :  { %vm14054_vm2 = vmand %vm13882_vm1, %vm19386_vm5  ;;  %v11240_v20 = vcombine.low %v646_v5, %v647_v24  ;;  %vm19392_vm13 = vcmp.ge.s32.totalorder %v13616_v52, 0  ;;  %vm147_vm9 = vcmp.lt.s32.totalorder %v13955_v62, 8  ;;  %19395 = vst [vmem:[#allocation51_spill] sm:$0xff] %v14078_v61  ;;  %v3971_v24 = vshll.u32 %v13993_v50, 16 }
  0x5c   :  { %v388_v58 = vsel %vm19326_vm15, %v383_v46, %v387_v48  ;;  %v392_v4 = vor.u32 %v391_v63, %v387_v48  ;;  %vm14072_vm5 = vmand %vm19392_vm13, %vm19391_vm4  ;;  %v86_v52 = vshra.s32 %v14034_v9, 3  ;;  %v14095_v63 = vrot.slane %v395_v7, 5  ;;  %19415 = vst [vmem:[#allocation53_spill] sm:$0xff] %v14157_v30 }
  0x5d   :  { %vm499_vm10 = vcmp.ne.s16.totalorder %v388_v58, 0  ;;  %12032 = vmatprep.mubr.msk.bf16.mxu0 %vm19396_vm14, %v11240_v20  ;;  %vm14086_vm1 = vmand %vm14072_vm5, %vm19397_vm0  ;;  %v14100_v48 = vadd.s32 1, %v13913_v54  ;;  %v399_v58 = vshrl.u32 %v14021_v13, 16  ;;  %vm19401_vm0 = vcmp.lt.s32.totalorder %v13711_v26, 8 }
  0x5e   :  { %vm3106_vm13 = vmpackc.low %vm14054_vm2, %vm14054_vm2  ;;  %v393_v50 = vrot.slane %v392_v4, 4  ;;  %v516_v8 = vsel %vm499_vm10, %v13940_v15, 0  ;;  %v87_v15 = vshra.s32 %v14061_v37, 3  ;;  %v70_v13 = vand.u32 7, %v14034_v9 }
  0x5f   :  { %v11257_v28 = vcombine.low %v19400_v45, %v516_v8  ;;  %vm14112_vm4 = vmand %vm14072_vm5, %vm19401_vm0  ;;  %v56_v7 = vadd.s32 104, %v13230_v2  ;;  %vm19405_vm5 = vcmp.lt.s32.totalorder %v13520_v16, 8  ;;  %v19412_v9 = vmov 0 }
  0x60   :  { %vm1213_vm10 = vmpackc.low %vm13962_vm11, %vm13962_vm11  ;;  %v398_v40 = vsel %vm19326_vm15, %v393_v50, %v14095_v63  ;;  %v14154_v50 = vand.u32 7, %v86_v52  ;;  %v14165_v8 = vsel %vm3106_vm13, 65537, %v19331_v11  ;;  %v14174_v52 = vor.u32 %v3971_v24, %v14078_v61 }
  0x61   :  { %vm19404_vm3 = vmpackc.low %vm13808_vm7, %vm13808_vm7  ;;  %vm14141_vm14 = vcmp.ne.s16.totalorder %v398_v40, 0  ;;  %vm19410_vm7 = vcmp.lt.s32.totalorder %v13761_v33, 8  ;;  %19416 = vst [vmem:[#allocation54_spill] sm:$0xff] %v14165_v8  ;;  %v891_v40 = vshrl.u32 %v11257_v28, 16  ;;  %v894_v20 = vshll.u32 %v11257_v28, 16 }
  0x62   :  { %v14126_v31 = vsel %vm19404_vm3, 65537, %v19331_v11  ;;  %vm14137_vm0 = vmand %vm19317_vm8, %vm19405_vm5  ;;  %vm19411_vm3 = vcmp.ge.s32.totalorder %v13761_v33, 0  ;;  %19417 = vst [vmem:[#allocation55_spill] sm:$0xff] %v14174_v52  ;;  %v401_v57 = vrot.slane %v399_v58, 4  ;;  %v14181_v14 = vand.u32 7, %v87_v15 }
  0x63   :  { %vm14149_vm6 = vmand %vm19411_vm3, %vm19410_vm7  ;;  %v1853_v5 = vshrl.u32 %v14126_v31, 16  ;;  %v14189_v28 = vsel %vm1213_vm10, 65537, %v19331_v11  ;;  %vm19419_vm5 = vcmp.ge.s32.totalorder %v13705_v1, 0  ;;  %v14199_v58 = vadd.s32 4294967295, %v70_v13 }
  0x64   :  { %v19413_v9 = vsel %vm14149_vm6, 4294967295, %v19412_v9  ;;  %19418 = vst [vmem:[#allocation56_spill] sm:$0xff] %v14181_v14  ;;  %vm14195_vm7 = vmand %vm14149_vm6, %vm19419_vm5  ;;  %v72_v15 = vand.u32 7, %v56_v7  ;;  %v88_v33 = vshra.s32 %v56_v7, 3  ;;  %v3178_v61 = vshrl.u32 %v14165_v8, 16 }
  0x65   :  { %19414 = vst [vmem:[#allocation52_spill] sm:$0xff] %v19413_v9  ;;  %vm19422_vm3 = vcmp.lt.s32.totalorder %v13711_v26, 8  ;;  %v14213_v1 = vadd.s32 4294967295, %v14154_v50  ;;  %v19425_v52 = vand.u32 7, %v14061_v37  ;;  %v14219_v8 = vadd.s32 1, %v70_v13 }
  0x66   :  { %vm14206_vm11 = vmand %vm14149_vm6, %vm19422_vm3  ;;  %v893_v26 = vrot.slane %v891_v40, 3  ;;  %v896_v41 = vrot.slane %v894_v20, 4  ;;  %vm19427_vm13 = vcmp.lt.s32.totalorder %v13952_v18, 8  ;;  %vm19428_vm10 = vcmp.ge.s32.totalorder %v13952_v18, 0 }
  0x67   :  { %v14217_v7 = vadd.s32 4294967295, %v19425_v52  ;;  %vm14228_vm5 = vmand %vm19428_vm10, %vm19427_vm13  ;;  %v89_v52 = vshra.s32 %v14157_v30, 3  ;;  %v14234_v13 = vrot.slane %v1853_v5, 4  ;;  %vm19432_vm2 = vcmp.ge.s32.totalorder %v13955_v62, 0  ;;  %v14257_v62 = vld [vmem:[%s18974_s0 + $0x1c] sm:$0xf] }
  0x68   :  { %vm14240_vm8 = vmand %vm19432_vm2, %vm147_vm9  ;;  %v19433_v20 = vmov 0  ;;  %v402_v18 = vor.u32 %v401_v57, %v14095_v63  ;;  %v14246_v40 = vadd.s32 4294967295, %v14181_v14  ;;  %v14249_v16 = vadd.s32 1, %v14154_v50  ;;  %v14320_v63 = vld [vmem:[%s18974_s0 + $0x20] sm:$0xf] }
  0x69   :  { %19426 = vst [vmem:[#allocation57_spill] sm:$0xff] %v14217_v7  ;;  %19431 = vst [vmem:[#allocation58_spill] sm:$0xff] %v14234_v13  ;;  %v19434_v20 = vsel %vm14240_vm8, 4294967295, %v19433_v20  ;;  %vm19436_vm9 = vcmp.ge.s32.totalorder %v13860_v44, 0  ;;  %v14267_v5 = vand.u32 7, %v88_v33  ;;  %v14269_v57 = vadd.s32 4294967295, %v72_v15 }
  0x6a   :  { %19435 = vst [vmem:[#allocation59_spill] sm:$0xff] %v19434_v20  ;;  %vm14263_vm2 = vmand %vm14228_vm5, %vm19436_vm9  ;;  %v14271_v22 = vadd.s32 1, %v72_v15  ;;  %v14274_v14 = vadd.s32 120, %v13230_v2  ;;  %v14276_v37 = vrot.slane %v3178_v61, 4  ;;  %vm19442_vm10 = vcmp.ge.s32.totalorder %v13890_v19, 0 }
  0x6b   :  { %19439 = vst [vmem:[#allocation60_spill] sm:$0xff] %v14269_v57  ;;  %vm14282_vm13 = vmand %vm14240_vm8, %vm19442_vm10  ;;  %v880_v33 = vor.u32 %v13636_v59, %v13606_v49  ;;  %v888_v15 = vor.u32 %v13694_v38, %v13692_v32  ;;  %v14303_v49 = vand.u32 7, %v89_v52  ;;  %v19447_v59 = vand.u32 7, %v14157_v30 }
  0x6c   :  { %19440 = vst [vmem:[#allocation61_spill] sm:$0xff] %v14271_v22  ;;  %19441 = vst [vmem:[#allocation62_spill] sm:$0xff] %v14276_v37  ;;  %v14309_v38 = vor.u32 %v896_v41, %v893_v26  ;;  %v403_v41 = vrot.slane %v402_v18, 4  ;;  %v19484_v24 = vmov 0  ;;  %v19492_v45 = vmov 0 }
  0x6d   :  { %vm19445_vm3 = vmpackc.low %vm14042_vm12, %vm14042_vm12  ;;  %19446 = vst [vmem:[#allocation63_spill] sm:$0xff] %v14303_v49  ;;  %v14307_v32 = vadd.s32 4294967295, %v19447_v59 }
  0x6e   :  { %v14296_v61 = vsel %vm19445_vm3, 65537, %v19331_v11  ;;  %vm307_vm10 = vmpackc.low %vm14263_vm2, %vm14263_vm2  ;;  %vm19450_vm2 = vsmask.f32 4352 }
  0x6f   :  { %19448 = vst [vmem:[#allocation64_spill] sm:$0xff] %v14307_v32  ;;  %vm19449_vm12 = vmpackc.low %vm14086_vm1, %vm14086_vm1  ;;  %v323_v52 = vsel %vm307_vm10, 65537, %v19331_v11  ;;  %v14327_v26 = vsel %vm19450_vm2, %v880_v33, %v888_v15  ;;  %v14345_v33 = vadd.s32 4294967295, %v14267_v5 }
  0x70   :  { %v1798_v29 = vsel %vm19449_vm12, 65537, %v19331_v11  ;;  %vm308_vm3 = vmpackc.low %vm14282_vm13, %vm14282_vm13  ;;  %19451 = vst [vmem:[#allocation65_spill] sm:$0xff] %v14327_v26  ;;  %v405_v59 = vshll.u32 %v323_v52, 16  ;;  %v409_v2 = vshrl.u32 %v323_v52, 16  ;;  %vm19452_vm12 = vnez %v19363_v23 }
  0x71   :  { %v324_v46 = vsel %vm308_vm3, 65537, %v19331_v11  ;;  %vm632_vm9 = vmpackc.low %vm19452_vm12, %vm19452_vm12  ;;  %v90_v52 = vshra.s32 %v14274_v14, 3  ;;  %vm19455_vm3 = vcmp.lt.s32.totalorder %v13875_v51, 8  ;;  %v1859_v30 = vshll.u32 %v1798_v29, 16 }
  0x72   :  { %vm19453_vm13 = vmmov %vm19450_vm2  ;;  %v648_v18 = vsel %vm632_vm9, %v14257_v62, 0  ;;  %v407_v19 = vrot.slane %v405_v59, 5  ;;  %v411_v23 = vrot.slane %v409_v2, 4  ;;  %v415_v26 = vshll.u32 %v324_v46, 16 }
  0x73   :  { %v14338_v13 = vsel %vm19453_vm13, %v888_v15, %v14309_v38  ;;  %vm633_vm10 = vmpackc.low %vm14228_vm5, %vm14228_vm5  ;;  %v14365_v2 = vadd.s32 4294967295, %v14303_v49  ;;  %v1863_v37 = vshrl.u32 %v1798_v29, 16  ;;  %v14405_v4 = vand.u32 7, %v90_v52 }
  0x74   :  { %19454 = vst [vmem:[#allocation66_spill] sm:$0xff] %v14338_v13  ;;  %v649_v22 = vsel %vm633_vm10, %v14320_v63, 0  ;;  %vm14354_vm2 = vmand %vm14228_vm5, %vm19455_vm3  ;;  %v1289_v13 = vshrl.u32 %v14296_v61, 16  ;;  %v408_v32 = vsel %vm19326_vm15, %v403_v41, %v407_v19  ;;  %v412_v57 = vor.u32 %v411_v23, %v407_v19 }
  0x75   :  { %v11241_v59 = vcombine.low %v648_v18, %v649_v22  ;;  %vm19458_vm5 = vcmp.lt.s32.totalorder %v13871_v10, 8  ;;  %vm19459_vm3 = vcmp.ge.s32.totalorder %v13871_v10, 0  ;;  %vm19462_vm6 = vmpackc.low %vm14112_vm4, %vm14112_vm4  ;;  %vm14388_vm9 = vcmp.ne.s16.totalorder %v408_v32, 0 }
  0x76   :  { %vm14374_vm1 = vmand %vm19459_vm3, %vm19458_vm5  ;;  %v14386_v29 = vsel %vm19462_vm6, 65537, %v19331_v11  ;;  %vm19466_vm5 = vcmask 130048   ;;  %vm19467_vm3 = vcmp.ge.s32.totalorder %v13860_v44, 0  ;;  %v14403_v23 = vadd.s32 1, %v14267_v5 }
  0x77   :  { %19463 = vst [vmem:[#allocation67_spill] sm:$0xff] %v14386_v29  ;;  %12033 = vmatmul.mubr.msk.bf16.gmra.mrb[4].mxu0 %vm19466_vm5, %v11241_v59  ;;  %vm14397_vm13 = vmand %vm14374_vm1, %vm19467_vm3  ;;  %v413_v32 = vrot.slane %v412_v57, 4  ;;  %v14407_v41 = vrot.slane %v415_v26, 5  ;;  %v419_v18 = vshrl.u32 %v324_v46, 16  ;;  %v518_v59 = vsel %vm14388_vm9, %v14257_v62, 0 }
  0x78   :  { %19470 = vst [vmem:[#allocation68_spill] sm:$0xff] %v14403_v23  ;;  %vm1216_vm6 = vmpackc.low %vm14354_vm2, %vm14354_vm2  ;;  %vm19471_vm5 = vnez %v19260_v42  ;;  %v14419_v52 = vrot.slane %v1289_v13, 7  ;;  %v14421_v57 = vrot.slane %v1859_v30, 5  ;;  %v19474_v26 = vsel %vm14141_vm14, %v14014_v36, 0 }
  0x79   :  { %vm19473_vm9 = vmpackc.low %vm14195_vm7, %vm14195_vm7  ;;  %v11258_v46 = vcombine.low %v19474_v26, %v518_v59  ;;  %vm19475_vm4 = vcmp.lt.s32.totalorder %v13875_v51, 8  ;;  %v14441_v30 = vrot.slane %v1863_v37, 4  ;;  %v2599_v19 = vshrl.u32 %v14386_v29, 16 }
  0x7a   :  { %19472 = vst [vmem:[#allocation69_spill] sm:$0xff] %v14419_v52  ;;  %v3123_v62 = vsel %vm19473_vm9, 65537, %v19331_v11  ;;  %vm14437_vm3 = vmand %vm14374_vm1, %vm19475_vm4  ;;  %v418_v35 = vsel %vm19326_vm15, %v413_v32, %v14407_v41  ;;  %vm19482_vm4 = vcmp.lt.s32.totalorder %v13978_v3, 8  ;;  %vm19483_vm9 = vcmp.ge.s32.totalorder %v13978_v3, 0 }
  0x7b   :  { %vm19478_vm7 = vmpackc.low %vm14206_vm11, %vm14206_vm11  ;;  %vm14458_vm1 = vcmp.ne.s16.totalorder %v418_v35, 0  ;;  %v900_v39 = vshrl.u32 %v11258_v46, 16  ;;  %v903_v22 = vshll.u32 %v11258_v46, 16  ;;  %v1262_v32 = vshrl.u32 %v13590_v34, 16 }
  0x7c   :  { %v14450_v36 = vsel %vm19478_vm7, 65537, %v19331_v11  ;;  %vm1784_vm14 = vmpackc.low %vm14397_vm13, %vm14397_vm13  ;;  %v3184_v59 = vshll.u32 %v3123_v62, 16  ;;  %v14480_v3 = vsel %vm1216_vm6, 65537, %v19331_v11  ;;  %vm19487_vm11 = vcmp.ge.s32.totalorder %v13860_v44, 0 }
  0x7d   :  { %19479 = vst [vmem:[#allocation70_spill] sm:$0xff] %v14450_v36  ;;  %vm14466_vm10 = vmand %vm19483_vm9, %vm19482_vm4  ;;  %v421_v35 = vrot.slane %v419_v18, 4  ;;  %v3188_v9 = vshrl.u32 %v3123_v62, 16  ;;  %v902_v26 = vrot.slane %v900_v39, 3  ;;  %v905_v49 = vrot.slane %v903_v22, 4 }
  0x7e   :  { %v19485_v24 = vsel %vm14466_vm10, 4294967295, %v19484_v24  ;;  %vm14486_vm7 = vmand %vm14466_vm10, %vm19487_vm11  ;;  %v4004_v18 = vshrl.u32 %v14450_v36, 16  ;;  %v14510_v62 = vsel %vm1784_vm14, 65537, %v19331_v11  ;;  %vm19491_vm9 = vcmp.lt.s32.totalorder %v13875_v51, 8 }
  0x7f   :  { %19486 = vst [vmem:[#allocation71_spill] sm:$0xff] %v19485_v24  ;;  %vm19490_vm2 = vmpackc.low %vm14137_vm0, %vm14137_vm0  ;;  %v14521_v39 = vadd.s32 4294967295, %v14405_v4  ;;  %v1307_v22 = vshrl.u32 %v14480_v3, 16  ;;  %v19496_v51 = vand.u32 7, %v14274_v14  ;;  %v14533_v15 = vor.u32 %v905_v49, %v902_v26 }
  0x80   :  { %v14499_v44 = vsel %vm19490_vm2, 65537, %v19331_v11  ;;  %vm14516_vm0 = vmand %vm14466_vm10, %vm19491_vm9  ;;  %v14535_v24 = vrot.slane %v1262_v32, 7  ;;  %vm19498_vm2 = vcmp.lt.s32.totalorder %v14001_v27, 8  ;;  %vm19499_vm9 = vcmp.ge.s32.totalorder %v14001_v27, 0 }
  0x81   :  { %v19493_v45 = vsel %vm14516_vm0, 4294967295, %v19492_v45  ;;  %19495 = vst [vmem:[#allocation73_spill] sm:$0xff] %v14521_v39  ;;  %v14531_v10 = vadd.s32 4294967295, %v19496_v51  ;;  %vm14543_vm6 = vmand %vm19499_vm9, %vm19498_vm2  ;;  %v422_v39 = vor.u32 %v421_v35, %v14407_v41  ;;  %v19502_v23 = vmov %v19496_v51  ;;  %v14577_v41 = vld [vmem:[%s18974_s0 + $0x24] sm:$0xf] }
  0x82   :  { %19494 = vst [vmem:[#allocation72_spill] sm:$0xff] %v19493_v45  ;;  %v14537_v45 = vrot.slane %v2599_v19, 7  ;;  %v14550_v51 = vadd.s32 1, %v19502_v23  ;;  %v1271_v49 = vshrl.u32 %v14499_v44, 16  ;;  %v14553_v32 = vrot.slane %v3184_v59, 5 }
  0x83   :  { %v14555_v19 = vrot.slane %v3188_v9, 4  ;;  %v1883_v26 = vshrl.u32 %v14510_v62, 16  ;;  %vm19505_vm13 = vcmp.lt.s32.totalorder %v14004_v47, 8  ;;  %vm19506_vm2 = vcmp.ge.s32.totalorder %v14004_v47, 0  ;;  %v14597_v9 = vld [vmem:[%s18974_s0 + $0x28] sm:$0xf] }
  0x84   :  { %19497 = vst [vmem:[#allocation74_spill] sm:$0xff] %v14537_v45  ;;  %19503 = vst [vmem:[#allocation75_spill] sm:$0xff] %v14553_v32  ;;  %v19507_v27 = vmov 0  ;;  %vm19509_vm14 = vsmask.f32 4352  ;;  %v14571_v23 = vrot.slane %v4004_v18, 7 }
  0x85   :  { %19504 = vst [vmem:[#allocation76_spill] sm:$0xff] %v14555_v19  ;;  %vm14562_vm9 = vmand %vm19506_vm2, %vm19505_vm13  ;;  %v14569_v14 = vsel %vm19509_vm14, %v14309_v38, %v14533_v15  ;;  %vm19512_vm11 = vcmp.ge.s32.totalorder %v13980_v17, 0  ;;  %v14588_v38 = vadd.s32 1, %v14405_v4  ;;  %v14591_v35 = vrot.slane %v1307_v22, 7  ;;  %v1080_v59 = vld [vmem:[%s18974_s0 + $0x4] sm:$0xf] }
  0x86   :  { %v19508_v27 = vsel %vm14562_vm9, 4294967295, %v19507_v27  ;;  %19510 = vst [vmem:[#allocation77_spill] sm:$0xff] %v14569_v14  ;;  %19511 = vst [vmem:[#allocation78_spill] sm:$0xff] %v14571_v23  ;;  %vm19517_vm14 = vcmp.ge.s32.totalorder %v13984_v56, 0  ;;  %v423_v18 = vrot.slane %v422_v39, 4  ;;  %v14619_v19 = vrot.slane %v1271_v49, 7 }
  0x87   :  { %vm14583_vm13 = vmand %vm14543_vm6, %vm19512_vm11  ;;  %19515 = vst [vmem:[#allocation79_spill] sm:$0xff] %v14588_v38  ;;  %v1829_v47 = vshll.u32 %v13624_v43, 16  ;;  %v14628_v22 = vrot.slane %v1883_v26, 4  ;;  %v1274_v43 = vshll.u32 %v14499_v44, 16  ;;  %v19549_v29 = vmov 0 }
  0x88   :  { %19516 = vst [vmem:[#allocation80_spill] sm:$0xff] %v14591_v35  ;;  %vm14603_vm11 = vmand %vm14562_vm9, %vm19517_vm14  ;;  %vm19561_vm10 = vcmp.ge.s32.totalorder %v13980_v17, 0 }
  0x89   :  { %vm309_vm2 = vmpackc.low %vm14583_vm13, %vm14583_vm13  ;;  %v1831_v26 = vrot.slane %v1829_v47, 5 }
  0x8a   :  { %vm19520_vm14 = vmpackc.low %vm19471_vm5, %vm19471_vm5  ;;  %v325_v42 = vsel %vm309_vm2, 65537, %v19331_v11  ;;  %vm19532_vm5 = vcmask 130048  }
  0x8b   :  { %v1796_v23 = vsel %vm19520_vm14, 65537, %v19331_v11  ;;  %vm19521_vm13 = vmpackc.low %vm14437_vm3, %vm14437_vm3  ;;  %v425_v49 = vshll.u32 %v325_v42, 16  ;;  %v429_v32 = vshrl.u32 %v325_v42, 16  ;;  %v1832_v20 = vsel %vm19326_vm15, %v13764_v25, %v1831_v26 }
  0x8c   :  { %v14636_v39 = vsel %vm19521_vm13, 65537, %v19331_v11  ;;  %vm310_vm4 = vmpackc.low %vm14603_vm11, %vm14603_vm11  ;;  %v1839_v56 = vshll.u32 %v1796_v23, 16  ;;  %v1843_v46 = vshrl.u32 %v1796_v23, 16  ;;  %v1280_v23 = vshrl.u32 %v14189_v28, 16 }
  0x8d   :  { %19522 = vst [vmem:[#allocation81_spill] sm:$0xff] %v14636_v39  ;;  %vm19523_vm3 = vmpackc.low %vm14486_vm7, %vm14486_vm7  ;;  %v326_v14 = vsel %vm310_vm4, 65537, %v19331_v11  ;;  %v427_v45 = vrot.slane %v425_v49, 5  ;;  %v1836_v42 = vor.u32 %v13735_v6, %v1831_v26  ;;  %v19526_v49 = vshll.u32 %v14296_v61, 16 }
  0x8e   :  { %v14651_v13 = vsel %vm19523_vm3, 65537, %v19331_v11  ;;  %vm634_vm11 = vmpackc.low %vm14240_vm8, %vm14240_vm8  ;;  %vm19525_vm3 = vcmp.ne.s16.totalorder %v13650_v0, 0  ;;  %vm19528_vm4 = vcmp.lt.s32.totalorder %v13913_v54, 8  ;;  %v431_v61 = vrot.slane %v429_v32, 4  ;;  %v14711_v32 = vld [vmem:[%s18974_s0 + $0x14] sm:$0xf] }
  0x8f   :  { %19524 = vst [vmem:[#allocation82_spill] sm:$0xff] %v14651_v13  ;;  %vm635_vm2 = vmpackc.low %vm14543_vm6, %vm14543_vm6  ;;  %v650_v44 = vsel %vm634_vm11, %v14577_v41, 0  ;;  %v14670_v47 = vsel %vm19525_vm3, %v1080_v59, 0  ;;  %v14677_v38 = vor.u32 %v19526_v49, %v14419_v52  ;;  %v3208_v25 = vshrl.u32 %v14651_v13, 16 }
  0x90   :  { %v651_v39 = vsel %vm635_vm2, %v14597_v9, 0  ;;  %vm19529_vm11 = vcmp.ge.s32.totalorder %v13913_v54, 0  ;;  %v435_v59 = vshll.u32 %v326_v14, 16  ;;  %v439_v26 = vshrl.u32 %v326_v14, 16  ;;  %19536 = vst [vmem:[#allocation84_spill] sm:$0xff] %v14711_v32 }
  0x91   :  { %v11242_v36 = vcombine.low %v650_v44, %v651_v39  ;;  %19527 = vst [vmem:[#allocation83_spill] sm:$0xff] %v14677_v38  ;;  %v428_v39 = vsel %vm19326_vm15, %v423_v18, %v427_v45  ;;  %vm14686_vm2 = vmand %vm19529_vm11, %vm19528_vm4  ;;  %vm19533_vm14 = vcmp.ge.s32.totalorder %v13980_v17, 0  ;;  %v14706_v18 = vld [vmem:[%s18974_s0 + $0x10] sm:$0xf]  ;;  %v1841_v44 = vrot.slane %v1839_v56, 5 }
  0x92   :  { %vm503_vm13 = vcmp.ne.s16.totalorder %v428_v39, 0  ;;  %vm14698_vm4 = vmand %vm14686_vm2, %vm19533_vm14  ;;  %v1845_v49 = vrot.slane %v1843_v46, 4  ;;  %v19537_v39 = vsel %vm14458_vm1, %v14320_v63, 0  ;;  %vm19538_vm14 = vcmp.lt.s32.totalorder %v14006_v12, 8 }
  0x93   :  { %12036 = vmatprep.mubr.msk.bf16.mxu0 %vm19532_vm5, %v11242_v36  ;;  %v520_v14 = vsel %vm503_vm13, %v14577_v41, 0  ;;  %v1837_v36 = vrot.slane %v1836_v42, 4  ;;  %vm14723_vm11 = vmand %vm14686_vm2, %vm19538_vm14  ;;  %v14727_v38 = vrot.slane %v1280_v23, 7  ;;  %v19541_v41 = vand.u32 7, %v13529_v55  ;;  %v1727_v23 = vld [vmem:[%s18974_s0 + $0x4] sm:$0x8] }
  0x94   :  { %v11259_v6 = vcombine.low %v19537_v39, %v520_v14  ;;  %v19542_v63 = vshll.u32 %v13590_v34, 16  ;;  %v14740_v46 = vor.u32 %v1274_v43, %v14619_v19  ;;  %v432_v14 = vor.u32 %v431_v61, %v427_v45  ;;  %vm19543_vm1 = vmmov %vm19538_vm14 }
  0x95   :  { %v14731_v42 = vadd.s32 1, %v19541_v41  ;;  %v1842_v55 = vsel %vm19326_vm15, %v1837_v36, %v1841_v44  ;;  %vm14753_vm13 = vmand %vm14543_vm6, %vm19543_vm1  ;;  %v14760_v41 = vld [vmem:[%s18974_s0 + $0x8] sm:$0xf]  ;;  %v437_v0 = vrot.slane %v435_v59, 5  ;;  %vm19547_vm14 = vcmp.lt.s32.totalorder %v14100_v48, 8 }
  0x96   :  { %v14737_v37 = vor.u32 %v19542_v63, %v14535_v24  ;;  %v909_v43 = vshrl.u32 %v11259_v6, 16  ;;  %v912_v39 = vshll.u32 %v11259_v6, 16  ;;  %v19546_v63 = vld [vmem:[#allocation23_spill] sm:$0xff]  ;;  %vm19548_vm5 = vcmp.ge.s32.totalorder %v14100_v48, 0  ;;  %v14774_v6 = vld [vmem:[%s18974_s0 + $0xc] sm:$0xf] }
  0x97   :  { %vm1968_vm2 = vcmp.ne.s16.totalorder %v19546_v63, 0  ;;  %vm14767_vm3 = vmand %vm19548_vm5, %vm19547_vm14  ;;  %v441_v45 = vrot.slane %v439_v26, 4  ;;  %v19552_v61 = vshll.u32 %v14480_v3, 16  ;;  %v1846_v59 = vor.u32 %v1845_v49, %v1841_v44  ;;  %v19559_v3 = vld [vmem:[#allocation28_spill] sm:$0xff] }
  0x98   :  { %v19550_v29 = vsel %vm14767_vm3, 4294967295, %v19549_v29  ;;  %v911_v63 = vrot.slane %v909_v43, 3  ;;  %v914_v56 = vrot.slane %v912_v39, 4  ;;  %v19554_v48 = vsel %vm19326_vm15, %v13752_v21, %v13638_v60  ;;  %vm14809_vm0 = vmand %vm14767_vm3, %vm19561_vm10 }
  0x99   :  { %19551 = vst [vmem:[#allocation23_spill] sm:$0xff] %v19550_v29  ;;  %v14779_v36 = vor.u32 %v19552_v61, %v14591_v35  ;;  %vm14786_vm6 = vcmp.ne.s16.totalorder %v19554_v48, 0  ;;  %vm14790_vm5 = vcmp.ne.s16.totalorder %v1832_v20, 0  ;;  %v19560_v44 = vand.u32 7, %v19559_v3 }
  0x9a   :  { %vm1971_vm7 = vcmp.ne.s16.totalorder %v1842_v55, 0  ;;  %v1985_v60 = vsel %vm1968_vm2, %v1727_v23, 0  ;;  %v1986_v21 = vsel %vm14786_vm6, %v14760_v41, 0  ;;  %v433_v20 = vrot.slane %v432_v14, 4 }
  0x9b   :  { %19553 = vst [vmem:[#allocation85_spill] sm:$0xff] %v14779_v36  ;;  %v14800_v49 = vadd.s32 1, %v19560_v44  ;;  %v14815_v39 = vor.u32 %v914_v56, %v911_v63  ;;  %v1987_v23 = vsel %vm14790_vm5, %v14774_v6, 0  ;;  %v1988_v55 = vsel %vm1971_vm7, %v14706_v18, 0  ;;  %v19619_v36 = vld [vmem:[#allocation12_spill] sm:$0xff] }
  0x9c   :  { %v14821_v14 = vrot.slane %v3208_v25, 4  ;;  %vm19565_vm2 = vcmp.lt.s32.totalorder %v14213_v1, 8  ;;  %vm19566_vm6 = vcmp.ge.s32.totalorder %v14213_v1, 0  ;;  %v11295_v56 = vcombine.low %v1985_v60, %v1986_v21  ;;  %v19793_v25 = vld [vmem:[#allocation34_spill] sm:$0xff] }
  0x9d   :  { %vm14830_vm14 = vmand %vm19566_vm6, %vm19565_vm2  ;;  %v11296_v61 = vcombine.low %v1987_v23, %v1988_v55  ;;  %v1849_v12 = vshll.u32 %v14126_v31, 16  ;;  %vm19569_vm7 = vcmp.lt.s32.totalorder %v14246_v40, 8  ;;  %vm19570_vm5 = vcmp.ge.s32.totalorder %v14246_v40, 0 }
  0x9e   :  { %19564 = vst [vmem:[#allocation28_spill] sm:$0xff] %v14821_v14  ;;  %vm14839_vm1 = vmand %vm19570_vm5, %vm19569_vm7  ;;  %v442_v63 = vor.u32 %v441_v45, %v437_v0  ;;  %vm19573_vm10 = vsmask.f32 4352  ;;  %v14849_v26 = vrot.slane %v1846_v59, 4  ;;  %vm19575_vm2 = vcmp.ge.s32.totalorder %v14199_v58, 0 }
  0x9f   :  { %v14846_v1 = vsel %vm19573_vm10, %v14533_v15, %v14815_v39  ;;  %vm14855_vm6 = vmand %vm14830_vm14, %vm19575_vm2  ;;  %v2049_v40 = vshrl.u32 %v11295_v56, 16  ;;  %v2052_v3 = vshll.u32 %v11295_v56, 16  ;;  %v2057_v45 = vshrl.u32 %v11296_v61, 16  ;;  %v14864_v59 = vld [vmem:[%s18974_s0 + $0x2c] sm:$0xf] }
  0xa0   :  { %19574 = vst [vmem:[#allocation86_spill] sm:$0xff] %v14846_v1  ;;  %v2060_v44 = vshll.u32 %v11296_v61, 16  ;;  %v438_v15 = vsel %vm19326_vm15, %v433_v20, %v437_v0  ;;  %vm19578_vm10 = vcmp.ge.s32.totalorder %v14217_v7, 0  ;;  %v19581_v21 = vshll.u32 %v14189_v28, 16  ;;  %vm311_vm5 = vmpackc.low %vm14855_vm6, %vm14855_vm6  ;;  %v14891_v28 = vld [vmem:[%s18974_s0 + $0x30] sm:$0xf] }
  0xa1   :  { %vm14870_vm7 = vmand %vm14839_vm1, %vm19578_vm10  ;;  %v1851_v20 = vrot.slane %v1849_v12, 5  ;;  %v2051_v55 = vrot.slane %v2049_v40, 3  ;;  %v2054_v56 = vrot.slane %v2052_v3, 4  ;;  %v2059_v61 = vrot.slane %v2057_v45, 3  ;;  %v19582_v3 = vld [vmem:[#allocation58_spill] sm:$0xff]  ;;  %v19614_v7 = vld [vmem:[#allocation53_spill] sm:$0xff] }
  0xa2   :  { %v14877_v23 = vor.u32 %v19581_v21, %v14727_v38  ;;  %v2062_v48 = vrot.slane %v2060_v44, 4  ;;  %vm312_vm6 = vmpackc.low %vm14870_vm7, %vm14870_vm7  ;;  %v327_v12 = vsel %vm311_vm5, 65537, %v19331_v11  ;;  %v443_v31 = vrot.slane %v442_v63, 4 }
  0xa3   :  { %v1852_v40 = vsel %vm19326_vm15, %v14849_v26, %v1851_v20  ;;  %v1856_v45 = vor.u32 %v19582_v3, %v1851_v20  ;;  %vm14901_vm2 = vcmp.ne.s16.totalorder %v438_v15, 0  ;;  %v445_v21 = vshll.u32 %v327_v12, 16  ;;  %vm636_vm10 = vmpackc.low %vm14562_vm9, %vm14562_vm9 }
  0xa4   :  { %v449_v0 = vshrl.u32 %v327_v12, 16  ;;  %v2055_v60 = vor.u32 %v2054_v56, %v2051_v55  ;;  %vm19585_vm7 = vmpackc.low %vm14753_vm13, %vm14753_vm13  ;;  %v328_v26 = vsel %vm312_vm6, 65537, %v19331_v11  ;;  %v652_v15 = vsel %vm636_vm10, %v14864_v59, 0 }
  0xa5   :  { %v14914_v63 = vsel %vm19585_vm7, 65537, %v19331_v11  ;;  %vm637_vm5 = vmpackc.low %vm14830_vm14, %vm14830_vm14  ;;  %v14921_v20 = vor.u32 %v2062_v48, %v2059_v61  ;;  %v447_v55 = vrot.slane %v445_v21, 5  ;;  %v1857_v12 = vrot.slane %v1856_v45, 4 }
  0xa6   :  { %v451_v56 = vrot.slane %v449_v0, 4  ;;  %v653_v34 = vsel %vm637_vm5, %v14891_v28, 0  ;;  %v521_v3 = vsel %vm14901_vm2, %v14597_v9, 0  ;;  %vm19586_vm13 = vcmp.lt.s32.totalorder %v14219_v8, 8  ;;  %v19589_v0 = vld [vmem:[#allocation30_spill] sm:$0xff] }
  0xa7   :  { %v11243_v29 = vcombine.low %v652_v15, %v653_v34  ;;  %vm14934_vm10 = vmand %vm14830_vm14, %vm19586_vm13  ;;  %v19590_v61 = vand.u32 7, %v19589_v0  ;;  %vm19591_vm5 = vsmask.f32 4352  ;;  %v448_v44 = vsel %vm19326_vm15, %v443_v31, %v447_v55  ;;  %v19602_v34 = vld [vmem:[#allocation60_spill] sm:$0xff] }
  0xa8   :  { %v14946_v9 = vsel %vm19591_vm5, %v2055_v60, %v14921_v20  ;;  %v452_v17 = vor.u32 %v451_v56, %v447_v55  ;;  %v455_v21 = vshll.u32 %v328_v26, 16  ;;  %vm19593_vm14 = vcmp.lt.s32.totalorder %v14154_v50, 8  ;;  %vm19597_vm5 = vmpackc.low %vm14698_vm4, %vm14698_vm4 }
  0xa9   :  { %v14942_v45 = vadd.s32 1, %v19590_v61  ;;  %19592 = vst [vmem:[#allocation58_spill] sm:$0xff] %v14946_v9  ;;  %vm19594_vm2 = vcmp.ge.s32.totalorder %v14154_v50, 0  ;;  %v1862_v60 = vsel %vm19326_vm15, %v1857_v12, %v14421_v57  ;;  %v1325_v31 = vshrl.u32 %v14914_v63, 16 }
  0xaa   :  { %vm14954_vm13 = vmand %vm19594_vm2, %vm19593_vm14  ;;  %v14970_v50 = vsel %vm19597_vm5, 65537, %v19331_v11  ;;  %v459_v55 = vshrl.u32 %v328_v26, 16  ;;  %vm505_vm14 = vcmp.ne.s16.totalorder %v448_v44, 0  ;;  %vm19598_vm2 = vcmask 130048   ;;  %v19603_v26 = vld [vmem:[#allocation64_spill] sm:$0xff] }
  0xab   :  { %12037 = vmatmul.mubr.msk.bf16.gmra.mrb[8].mxu0 %vm19598_vm2, %v11243_v29  ;;  %vm19599_vm6 = vcmp.ge.s32.totalorder %v14199_v58, 0  ;;  %v1903_v12 = vshrl.u32 %v14970_v50, 16  ;;  %v522_v54 = vsel %vm505_vm14, %v14864_v59, 0  ;;  %vm14988_vm2 = vcmp.ne.s16.totalorder %v1852_v40, 0  ;;  %v15008_v40 = vld [vmem:[%s18974_s0 + $0x18] sm:$0xf] }
  0xac   :  { %vm14977_vm7 = vmand %vm14954_vm13, %vm19599_vm6  ;;  %vm14992_vm6 = vcmp.ne.s16.totalorder %v1862_v60, 0  ;;  %v1328_v61 = vshll.u32 %v14914_v63, 16  ;;  %v11260_v44 = vcombine.low %v521_v3, %v522_v54  ;;  %vm19608_vm3 = vcmp.lt.s32.totalorder %v14219_v8, 8  ;;  %19611 = vst [vmem:[#allocation30_spill] sm:$0xff] %v15008_v40  ;;  %v19612_v60 = vld [vmem:[#allocation49_spill] sm:$0xff] }
  0xad   :  { %vm15001_vm14 = vmand %vm14954_vm13, %vm19608_vm3  ;;  %v19613_v14 = vand.u32 7, %v19612_v60  ;;  %v19615_v63 = vand.u32 7, %v19614_v7  ;;  %v453_v54 = vrot.slane %v452_v17, 4  ;;  %v457_v35 = vrot.slane %v455_v21, 5 }
  0xae   :  { %vm1788_vm3 = vmpackc.low %vm14977_vm7, %vm14977_vm7  ;;  %v1989_v15 = vsel %vm14988_vm2, %v14711_v32, 0  ;;  %v1990_v60 = vsel %vm14992_vm6, %v15008_v40, 0  ;;  %vm19620_vm5 = vnez %v19619_v36  ;;  %vm19624_vm2 = vcmp.lt.s32.totalorder %v14249_v16, 8 }
  0xaf   :  { %v15012_v9 = vadd.s32 1, %v19613_v14  ;;  %v15016_v3 = vadd.s32 1, %v19615_v63  ;;  %v19617_v14 = vld [vmem:[#allocation14_spill] sm:$0xff]  ;;  %vm19623_vm7 = vmpackc.low %vm14934_vm10, %vm14934_vm10  ;;  %vm19625_vm6 = vcmp.ge.s32.totalorder %v14249_v16, 0  ;;  %v19626_v21 = vmov 0 }
  0xb0   :  { %vm19618_vm13 = vcmp.lt.s32.totalorder %v19617_v14, 8  ;;  %v15041_v17 = vsel %vm19623_vm7, 65537, %v19331_v11  ;;  %vm15047_vm9 = vmand %vm19625_vm6, %vm19624_vm2  ;;  %v461_v36 = vrot.slane %v459_v55, 4  ;;  %v918_v56 = vshrl.u32 %v11260_v44, 16  ;;  %v19636_v55 = vld [vmem:[#allocation61_spill] sm:$0xff] }
  0xb1   :  { %19616 = vst [vmem:[#allocation60_spill] sm:$0xff] %v15016_v3  ;;  %vm15031_vm4 = vmand %vm19620_vm5, %vm19618_vm13  ;;  %v19627_v21 = vsel %vm15047_vm9, 4294967295, %v19626_v21  ;;  %v921_v29 = vshll.u32 %v11260_v44, 16  ;;  %v15051_v0 = vrot.slane %v1325_v31, 7  ;;  %v15053_v63 = vrot.slane %v1903_v12, 4  ;;  %v19637_v14 = vld [vmem:[#allocation17_spill] sm:$0xff] }
  0xb2   :  { %19628 = vst [vmem:[#allocation49_spill] sm:$0xff] %v19627_v21  ;;  %vm19629_vm10 = vmpackc.low %vm14723_vm11, %vm14723_vm11  ;;  %vm19633_vm13 = vcmp.ge.s32.totalorder %v14199_v58, 0  ;;  %v15080_v13 = vsel %vm1788_vm3, 65537, %v19331_v11  ;;  %v920_v43 = vrot.slane %v918_v56, 3  ;;  %v11297_v44 = vcombine.low %v1989_v15, %v1990_v60  ;;  %v19639_v58 = vld [vmem:[#allocation29_spill] sm:$0xff] }
  0xb3   :  { %v15061_v48 = vsel %vm19629_vm10, 65537, %v19331_v11  ;;  %vm19631_vm5 = vmpackc.low %vm14809_vm0, %vm14809_vm0  ;;  %v923_v12 = vrot.slane %v921_v29, 4  ;;  %vm19638_vm0 = vcmp.lt.s32.totalorder %v19637_v14, 8  ;;  %vm19640_vm6 = vnez %v19639_v58 }
  0xb4   :  { %19630 = vst [vmem:[#allocation53_spill] sm:$0xff] %v15061_v48  ;;  %v15069_v16 = vsel %vm19631_vm5, 65537, %v19331_v11  ;;  %vm15075_vm7 = vmand %vm15047_vm9, %vm19633_vm13  ;;  %v458_v1 = vsel %vm19326_vm15, %v453_v54, %v457_v35  ;;  %v1343_v32 = vshrl.u32 %v15041_v17, 16  ;;  %vm19643_vm3 = vcmp.lt.s32.totalorder %v14219_v8, 8  ;;  %v15433_v48 = vld [vmem:[%s18974_s0 + $0x3c] sm:$0xf] }
  0xb5   :  { %19632 = vst [vmem:[#allocation12_spill] sm:$0xff] %v15069_v16  ;;  %vm15090_vm10 = vmand %vm19640_vm6, %vm19638_vm0  ;;  %v3228_v52 = vshrl.u32 %v15069_v16, 16  ;;  %v19644_v15 = vmov 0  ;;  %v1866_v60 = vor.u32 %v14441_v30, %v14421_v57  ;;  %v462_v56 = vor.u32 %v461_v36, %v457_v35 }
  0xb6   :  { %vm15102_vm5 = vmand %vm15047_vm9, %vm19643_vm3  ;;  %v15113_v54 = vor.u32 %v923_v12, %v920_v43  ;;  %v2066_v8 = vshrl.u32 %v11297_v44, 16  ;;  %v2069_v29 = vshll.u32 %v11297_v44, 16  ;;  %v1923_v58 = vshrl.u32 %v15080_v13, 16 }
  0xb7   :  { %v19645_v15 = vsel %vm15102_vm5, 4294967295, %v19644_v15  ;;  %vm19647_vm3 = vcmp.lt.s32.totalorder %v14345_v33, 8  ;;  %vm19648_vm2 = vcmp.ge.s32.totalorder %v14345_v33, 0  ;;  %v15125_v30 = vor.u32 %v1328_v61, %v15051_v0 }
  0xb8   :  { %19646 = vst [vmem:[#allocation29_spill] sm:$0xff] %v19645_v15  ;;  %vm15120_vm11 = vmand %vm19648_vm2, %vm19647_vm3  ;;  %v1879_v36 = vshll.u32 %v14510_v62, 16  ;;  %vm15129_vm0 = vcmp.ne.s16.totalorder %v458_v1, 0  ;;  %vm19653_vm6 = vcmp.lt.s32.totalorder %v14365_v2, 8  ;;  %vm19654_vm13 = vcmp.ge.s32.totalorder %v14365_v2, 0 }
  0xb9   :  { %vm15137_vm9 = vmand %vm19654_vm13, %vm19653_vm6  ;;  %vm19657_vm2 = vsmask.f32 4352  ;;  %v2068_v12 = vrot.slane %v2066_v8, 3  ;;  %v2071_v44 = vrot.slane %v2069_v29, 4  ;;  %v15146_v62 = vrot.slane %v3228_v52, 4 }
  0xba   :  { %v15144_v61 = vsel %vm19657_vm2, %v14815_v39, %v15113_v54  ;;  %v1346_v1 = vshll.u32 %v15041_v17, 16  ;;  %vm19659_vm13 = vmpackc.low %vm15075_vm7, %vm15075_vm7  ;;  %vm19661_vm6 = vcmp.ge.s32.totalorder %v19602_v34, 0  ;;  %v15165_v52 = vrot.slane %v1866_v60, 4 }
  0xbb   :  { %19658 = vst [vmem:[#allocation87_spill] sm:$0xff] %v15146_v62  ;;  %v15155_v2 = vsel %vm19659_vm13, 65537, %v19331_v11  ;;  %vm15161_vm3 = vmand %vm15120_vm11, %vm19661_vm6  ;;  %v15167_v8 = vrot.slane %v1343_v32, 7  ;;  %vm19665_vm2 = vcmp.ge.s32.totalorder %v19603_v26, 0  ;;  %v463_v31 = vrot.slane %v462_v56, 4  ;;  %v19726_v26 = vld [vmem:[#allocation33_spill] sm:$0xff] }
  0xbc   :  { %19660 = vst [vmem:[#allocation88_spill] sm:$0xff] %v15155_v2  ;;  %19664 = vst [vmem:[#allocation89_spill] sm:$0xff] %v15165_v52  ;;  %v15177_v29 = vor.u32 %v2071_v44, %v2068_v12  ;;  %v1899_v35 = vshll.u32 %v14970_v50, 16  ;;  %v523_v60 = vsel %vm15129_vm0, %v14891_v28, 0  ;;  %v184_v56 = vld [vmem:[%s18974_s0 + $0x34] sm:$0xf] }
  0xbd   :  { %vm15173_vm5 = vmand %vm15137_vm9, %vm19665_vm2  ;;  %v19671_v50 = vld [vmem:[#allocation68_spill] sm:$0xff]  ;;  %v15199_v28 = vrot.slane %v1879_v36, 5  ;;  %v15203_v43 = vrot.slane %v1923_v58, 4  ;;  %v3248_v12 = vshrl.u32 %v15155_v2, 16  ;;  %v15209_v44 = vld [vmem:[%s18974_s0 + $0x38] sm:$0xf] }
  0xbe   :  { %19668 = vst [vmem:[#allocation90_spill] sm:$0xff] %v15177_v29  ;;  %vm19669_vm7 = vmpackc.low %vm15001_vm14, %vm15001_vm14  ;;  %vm3033_vm0 = vcmp.lt.s32.totalorder %v19671_v50, 8  ;;  %v1919_v17 = vshll.u32 %v15080_v13, 16  ;;  %v15231_v2 = vrot.slane %v1899_v35, 5  ;;  %v19677_v35 = vld [vmem:[#allocation73_spill] sm:$0xff]  ;;  %vm19684_vm2 = vcmask 130048  }
  0xbf   :  { %v15189_v32 = vsel %vm19669_vm7, 65537, %v19331_v11  ;;  %vm313_vm13 = vmpackc.low %vm15161_vm3, %vm15161_vm3  ;;  %19672 = vst [vmem:[#allocation68_spill] sm:$0xff] %v15199_v28  ;;  %vm19673_vm3 = vsmask.f32 4352  ;;  %v1886_v13 = vor.u32 %v14628_v22, %v15199_v28  ;;  %v15451_v28 = vld [vmem:[%s18974_s0 + $0x40] sm:$0xf] }
  0xc0   :  { %19670 = vst [vmem:[#allocation91_spill] sm:$0xff] %v15189_v32  ;;  %vm314_vm14 = vmpackc.low %vm15173_vm5, %vm15173_vm5  ;;  %v329_v39 = vsel %vm313_vm13, 65537, %v19331_v11  ;;  %v15218_v36 = vsel %vm19673_vm3, %v14921_v20, %v15177_v29  ;;  %vm19676_vm13 = vcmp.lt.s32.totalorder %v19636_v55, 8  ;;  %v1906_v57 = vor.u32 %v15053_v63, %v15231_v2 }
  0xc1   :  { %19674 = vst [vmem:[#allocation92_spill] sm:$0xff] %v15218_v36  ;;  %v330_v58 = vsel %vm314_vm14, 65537, %v19331_v11  ;;  %v465_v59 = vshll.u32 %v329_v39, 16  ;;  %v469_v14 = vshrl.u32 %v329_v39, 16  ;;  %vm638_vm7 = vmpackc.low %vm14839_vm1, %vm14839_vm1  ;;  %v15267_v63 = vrot.slane %v3248_v12, 4 }
  0xc2   :  { %v475_v21 = vshll.u32 %v330_v58, 16  ;;  %v479_v15 = vshrl.u32 %v330_v58, 16  ;;  %vm639_vm5 = vmpackc.low %vm15120_vm11, %vm15120_vm11  ;;  %v654_v20 = vsel %vm638_vm7, %v184_v56, 0  ;;  %19675 = vst [vmem:[#allocation93_spill] sm:$0xff] %v15231_v2  ;;  %v15278_v12 = vld [vmem:[%s18974_s0 + $0x1c] sm:$0xf] }
  0xc3   :  { %v467_v62 = vrot.slane %v465_v59, 5  ;;  %v471_v16 = vrot.slane %v469_v14, 4  ;;  %v655_v32 = vsel %vm639_vm5, %v15209_v44, 0  ;;  %vm1174_vm14 = vmand %vm15120_vm11, %vm19676_vm13  ;;  %v15246_v14 = vor.u32 %v1346_v1, %v15167_v8  ;;  %19683 = vst [vmem:[#allocation94_spill] sm:$0xff] %v15267_v63 }
  0xc4   :  { %v11244_v39 = vcombine.low %v654_v20, %v655_v32  ;;  %vm1222_vm7 = vmpackc.low %vm1174_vm14, %vm1174_vm14  ;;  %vm19678_vm11 = vcmp.lt.s32.totalorder %v14267_v5, 8  ;;  %vm19679_vm5 = vcmp.ge.s32.totalorder %v14267_v5, 0  ;;  %v15265_v1 = vrot.slane %v1919_v17, 5  ;;  %19719 = vst [vmem:[#allocation107_spill] sm:$0xff] %v15451_v28 }
  0xc5   :  { %v468_v22 = vsel %vm19326_vm15, %v463_v31, %v467_v62  ;;  %v472_v58 = vor.u32 %v471_v16, %v467_v62  ;;  %v15254_v36 = vsel %vm1222_vm7, 65537, %v19331_v11  ;;  %vm15260_vm13 = vmand %vm19679_vm5, %vm19678_vm11  ;;  %v477_v20 = vrot.slane %v475_v21, 5 }
  0xc6   :  { %19682 = vst [vmem:[#allocation73_spill] sm:$0xff] %v15265_v1  ;;  %vm507_vm3 = vcmp.ne.s16.totalorder %v468_v22, 0  ;;  %12040 = vmatprep.mubr.msk.bf16.mxu0 %vm19684_vm2, %v11244_v39  ;;  %vm19685_vm7 = vmmov %vm19661_vm6  ;;  %v481_v5 = vrot.slane %v479_v15, 4  ;;  %v1361_v31 = vshrl.u32 %v15254_v36, 16  ;;  %v15280_v21 = vrot.slane %v1886_v13, 4 }
  0xc7   :  { %vm1742_vm6 = vmand %vm15260_vm13, %vm19685_vm7  ;;  %v473_v16 = vrot.slane %v472_v58, 4  ;;  %v524_v62 = vsel %vm507_vm3, %v184_v56, 0  ;;  %vm19687_vm2 = vcmp.lt.s32.totalorder %v19636_v55, 8  ;;  %v15291_v56 = vrot.slane %v1906_v57, 4  ;;  %v15309_v57 = vld [vmem:[%s18974_s0 + $0x24] sm:$0xf] }
  0xc8   :  { %vm1790_vm11 = vmpackc.low %vm1742_vm6, %vm1742_vm6  ;;  %19686 = vst [vmem:[#allocation95_spill] sm:$0xff] %v15280_v21  ;;  %v11261_v17 = vcombine.low %v523_v60, %v524_v62  ;;  %v15304_v60 = vld [vmem:[%s18974_s0 + $0x20] sm:$0xf]  ;;  %v1926_v32 = vor.u32 %v15203_v43, %v15265_v1  ;;  %v19692_v62 = vmov 0  ;;  %v482_v22 = vor.u32 %v481_v5, %v477_v20  ;;  %v15407_v15 = vld [vmem:[%s18974_s0 + $0x38] sm:$0xf] }
  0xc9   :  { %v1806_v39 = vsel %vm1790_vm11, 65537, %v19331_v11  ;;  %vm15287_vm5 = vmand %vm15260_vm13, %vm19687_vm2  ;;  %19690 = vst [vmem:[#allocation96_spill] sm:$0xff] %v15291_v56  ;;  %v478_v13 = vsel %vm19326_vm15, %v473_v16, %v477_v20  ;;  %vm19691_vm13 = vcmp.ge.s32.totalorder %v19671_v50, 0  ;;  %v15327_v43 = vrot.slane %v1361_v31, 7  ;;  %v15339_v50 = vld [vmem:[%s18974_s0 + $0x28] sm:$0xf] }
  0xca   :  { %v1943_v58 = vshrl.u32 %v1806_v39, 16  ;;  %vm2535_vm6 = vmpackc.low %vm15287_vm5, %vm15287_vm5  ;;  %v1939_v16 = vshll.u32 %v1806_v39, 16  ;;  %v927_v59 = vshrl.u32 %v11261_v17, 16  ;;  %v930_v55 = vshll.u32 %v11261_v17, 16  ;;  %19709 = vst [vmem:[#allocation104_spill] sm:$0xff] %v15407_v15 }
  0xcb   :  { %vm15317_vm7 = vmand %vm19691_vm13, %vm3033_vm0  ;;  %vm15323_vm11 = vcmp.ne.s16.totalorder %v478_v13, 0  ;;  %19697 = vst [vmem:[#allocation98_spill] sm:$0xff] %v15327_v43  ;;  %v1364_v39 = vshll.u32 %v15254_v36, 16  ;;  %vm19698_vm0 = vcmp.ge.s32.totalorder %v19602_v34, 0  ;;  %vm1710_vm3 = vcmp.lt.s32.totalorder %v14405_v4, 8 }
  0xcc   :  { %v19693_v62 = vsel %vm15317_vm7, 4294967295, %v19692_v62  ;;  %v1945_v1 = vrot.slane %v1943_v58, 4  ;;  %vm3067_vm2 = vmand %vm15317_vm7, %vm19698_vm0  ;;  %v929_v20 = vrot.slane %v927_v59, 3  ;;  %v932_v5 = vrot.slane %v930_v55, 4  ;;  %v15344_v36 = vld [vmem:[%s18974_s0 + $0x2c] sm:$0xf] }
  0xcd   :  { %19694 = vst [vmem:[#allocation97_spill] sm:$0xff] %v19693_v62  ;;  %vm3115_vm14 = vmpackc.low %vm3067_vm2, %vm3067_vm2  ;;  %v15346_v34 = vrot.slane %v1939_v16, 5  ;;  %v15357_v13 = vrot.slane %v1926_v32, 4  ;;  %v15365_v16 = vld [vmem:[%s18974_s0 + $0x3c] sm:$0xf]  ;;  %v483_v63 = vrot.slane %v482_v22, 4 }
  0xce   :  { %vm19700_vm0 = vmpackc.low %vm15031_vm4, %vm15031_vm4  ;;  %v15355_v17 = vsel %vm3115_vm14, 65537, %v19331_v11  ;;  %v15367_v7 = vor.u32 %v932_v5, %v929_v20  ;;  %v15372_v62 = vld [vmem:[%s18974_s0 + $0x30] sm:$0xf]  ;;  %v15377_v32 = vld [vmem:[%s18974_s0 + $0x34] sm:$0xf]  ;;  %v15389_v22 = vsel %vm2535_vm6, 65537, %v19331_v11  ;;  %v15428_v5 = vor.u32 %v1364_v39, %v15327_v43 }
  0xcf   :  { %19699 = vst [vmem:[#allocation99_spill] sm:$0xff] %v15346_v34  ;;  %v2540_v31 = vsel %vm19700_vm0, 65537, %v19331_v11  ;;  %19701 = vst [vmem:[#allocation100_spill] sm:$0xff] %v15355_v17  ;;  %v3268_v58 = vshrl.u32 %v15355_v17, 16  ;;  %v1946_v55 = vor.u32 %v1945_v1, %v15346_v34  ;;  %vm19705_vm4 = vcmp.lt.s32.totalorder %v19677_v35, 8 }
  0xd0   :  { %19702 = vst [vmem:[#allocation101_spill] sm:$0xff] %v15357_v13  ;;  %v2572_v59 = vshrl.u32 %v2540_v31, 16  ;;  %19703 = vst [vmem:[#allocation102_spill] sm:$0xff] %v15377_v32  ;;  %vm19706_vm14 = vcmp.ge.s32.totalorder %v19677_v35, 0  ;;  %v15402_v1 = vld [vmem:[%s18974_s0 + $0x40] sm:$0xf] }
  0xd1   :  { %19704 = vst [vmem:[#allocation103_spill] sm:$0xff] %v15389_v22  ;;  %vm15395_vm2 = vmand %vm19706_vm14, %vm19705_vm4  ;;  %vm19711_vm6 = vcmp.ge.s32.totalorder %v14531_v10, 0  ;;  %v19714_v22 = vld [vmem:[#allocation79_spill] sm:$0xff]  ;;  %v2575_v2 = vshll.u32 %v2540_v31, 16  ;;  %v15438_v56 = vrot.slane %v3268_v58, 4  ;;  %v15467_v21 = vrot.slane %v1946_v55, 4 }
  0xd2   :  { %vm19710_vm5 = vmpackc.low %vm15090_vm10, %vm15090_vm10  ;;  %19715 = vst [vmem:[#allocation79_spill] sm:$0xff] %v15433_v48  ;;  %v15436_v13 = vrot.slane %v2572_v59, 7  ;;  %v15456_v31 = vld [vmem:[%s18974_s0 + $0x44] sm:$0xf]  ;;  %v19721_v59 = vld [vmem:[#allocation32_spill] sm:$0xff]  ;;  %vm19164_vm14 = vcmp.lt.s32.totalorder %v14800_v49, 8 }
  0xd3   :  { %v2542_v35 = vsel %vm19710_vm5, 65537, %v19331_v11  ;;  %vm15421_vm0 = vmand %vm15395_vm2, %vm19711_vm6  ;;  %19717 = vst [vmem:[#allocation106_spill] sm:$0xff] %v15438_v56  ;;  %vm19718_vm5 = vsmask.f32 4352  ;;  %v19722_v58 = vld [vmem:[#allocation27_spill] sm:$0xff]  ;;  %v19744_v29 = vmov 0 }
  0xd4   :  { %19716 = vst [vmem:[#allocation105_spill] sm:$0xff] %v15436_v13  ;;  %vm315_vm10 = vmpackc.low %vm15421_vm0, %vm15421_vm0  ;;  %v15446_v39 = vsel %vm19718_vm5, %v15113_v54, %v15367_v7  ;;  %v19723_v34 = vshll.u32 %v19722_v58, 16  ;;  %v2590_v52 = vshrl.u32 %v2542_v35, 16  ;;  %v2457_v58 = vld [vmem:[%s18974_s0 + $0x8] sm:$0xf]  ;;  %vm19725_vm5 = vcmp.lt.s32.totalorder %v14550_v51, 8 }
  0xd5   :  { %19720 = vst [vmem:[#allocation108_spill] sm:$0xff] %v15456_v31  ;;  %v331_v54 = vsel %vm315_vm10, 65537, %v19331_v11  ;;  %vm640_vm6 = vmpackc.low %vm15137_vm9, %vm15137_vm9  ;;  %v15485_v17 = vor.u32 %v2575_v2, %v15436_v13  ;;  %v2593_v31 = vshll.u32 %v2542_v35, 16  ;;  %vm1242_vm13 = vsmask.f32 4368 }
  0xd6   :  { %v2560_v56 = vor.u32 %v19723_v34, %v19721_v59  ;;  %19724 = vst [vmem:[#allocation27_spill] sm:$0xff] %v15467_v21  ;;  %v485_v43 = vshll.u32 %v331_v54, 16  ;;  %v489_v32 = vshrl.u32 %v331_v54, 16  ;;  %vm641_vm0 = vmpackc.low %vm15395_vm2, %vm15395_vm2  ;;  %v656_v34 = vsel %vm640_vm6, %v15365_v16, 0  ;;  %v19735_v54 = vld [vmem:[#allocation67_spill] sm:$0xff] }
  0xd7   :  { %v657_v55 = vsel %vm641_vm0, %v15402_v1, 0  ;;  %vm1176_vm4 = vmand %vm15395_vm2, %vm19725_vm5  ;;  %v15487_v48 = vrot.slane %v2590_v52, 7  ;;  %vm19727_vm2 = vcmp.ge.s32.totalorder %v14405_v4, 0  ;;  %v19736_v2 = vshll.u32 %v19735_v54, 16 }
  0xd8   :  { %vm2697_vm10 = vcmp.ne.s16.totalorder %v2560_v56, 0  ;;  %v487_v59 = vrot.slane %v485_v43, 5  ;;  %v491_v21 = vrot.slane %v489_v32, 4  ;;  %v11245_v28 = vcombine.low %v656_v34, %v657_v55  ;;  %vm1224_vm6 = vmpackc.low %vm1176_vm4, %vm1176_vm4  ;;  %v19731_v32 = vld [vmem:[#allocation81_spill] sm:$0xff]  ;;  %v19734_v55 = vld [vmem:[#allocation74_spill] sm:$0xff] }
  0xd9   :  { %v1240_v15 = vsel %vm1224_vm6, 65537, %v19331_v11  ;;  %vm15494_vm0 = vmand %vm19727_vm2, %vm1710_vm3  ;;  %v15501_v43 = vsel %vm2697_vm10, %v2457_v58, 0  ;;  %v2617_v52 = vshrl.u32 %v19731_v32, 16  ;;  %vm19732_vm4 = vcmask 130048  }
  0xda   :  { %19730 = vst [vmem:[#allocation33_spill] sm:$0xff] %v15501_v43  ;;  %v488_v35 = vsel %vm19326_vm15, %v483_v63, %v487_v59  ;;  %v492_v34 = vor.u32 %v491_v21, %v487_v59  ;;  %12041 = vmatmul.mubr.msk.bf16.gmra.mrb[12].mxu0 %vm19732_vm4, %v11245_v28  ;;  %v1379_v4 = vshrl.u32 %v1240_v15, 16  ;;  %vm19733_vm3 = vcmp.ge.s32.totalorder %v14531_v10, 0  ;;  %v19737_v43 = vld [vmem:[#allocation65_spill] sm:$0xff]  ;;  %vm19738_vm5 = vmmov %vm19732_vm4  ;;  %v19762_v63 = vld [vmem:[#allocation31_spill] sm:$0xff] }
  0xdb   :  { %vm1744_vm6 = vmand %vm15494_vm0, %vm19733_vm3  ;;  %v15514_v56 = vor.u32 %v19736_v2, %v19734_v55  ;;  %vm509_vm10 = vcmp.ne.s16.totalorder %v488_v35, 0  ;;  %v1382_v58 = vshll.u32 %v1240_v15, 16  ;;  %12046 = vmatprep.mubr.msk.bf16.mxu0 %vm19738_vm5, %v19737_v43  ;;  %v15520_v28 = vor.u32 %v2593_v31, %v15487_v48 }
  0xdc   :  { %vm1792_vm2 = vmpackc.low %vm1744_vm6, %vm1744_vm6  ;;  %v493_v21 = vrot.slane %v492_v34, 4  ;;  %v526_v59 = vsel %vm509_vm10, %v15365_v16, 0  ;;  %v1381_v13 = vrot.slane %v1379_v4, 7  ;;  %vm19739_vm4 = vcmp.lt.s32.totalorder %v14550_v51, 8 }
  0xdd   :  { %v1808_v54 = vsel %vm1792_vm2, 65537, %v19331_v11  ;;  %vm2489_vm3 = vmand %vm15494_vm0, %vm19739_vm4  ;;  %v19740_v15 = vsel %vm15323_vm11, %v15209_v44, 0  ;;  %v15534_v35 = vrot.slane %v2617_v52, 7  ;;  %vm19742_vm2 = vcmp.lt.s32.totalorder %v19714_v22, 8  ;;  %v1096_v44 = vld [vmem:[%s18974_s0 + $0x44] sm:$0x1] }
  0xde   :  { %v11262_v2 = vcombine.low %v19740_v15, %v526_v59  ;;  %vm2537_vm5 = vmpackc.low %vm2489_vm3, %vm2489_vm3  ;;  %v1959_v31 = vshll.u32 %v1808_v54, 16  ;;  %v1963_v43 = vshrl.u32 %v1808_v54, 16  ;;  %vm510_vm10 = vcmp.ne.s16.totalorder %v493_v21, 0 }
  0xdf   :  { %v15537_v16 = vsel %vm2537_vm5, 65537, %v19331_v11  ;;  %vm19743_vm0 = vcmp.ge.s32.totalorder %v19714_v22, 0  ;;  %v1386_v20 = vrot.slane %v1381_v13, 4  ;;  %v527_v34 = vsel %vm510_vm10, %v15402_v1, 0  ;;  %v15568_v1 = vld [vmem:[%s18975_s1 + $0x18] sm:$0xff]  }
  0xe0   :  { %19741 = vst [vmem:[#allocation81_spill] sm:$0xff] %v15537_v16  ;;  %vm15543_vm4 = vmand %vm19743_vm0, %vm19742_vm2  ;;  %vm19747_vm11 = vcmp.ge.s32.totalorder %v14531_v10, 0  ;;  %v936_v22 = vshrl.u32 %v11262_v2, 16  ;;  %v939_v21 = vshll.u32 %v11262_v2, 16  ;;  %v15560_v59 = vrot.slane %v1959_v31, 5 }
  0xe1   :  { %v19745_v29 = vsel %vm15543_vm4, 4294967295, %v19744_v29  ;;  %vm15556_vm3 = vmand %vm15543_vm4, %vm19747_vm11  ;;  %v11263_v54 = vcombine.low %v527_v34, %v527_v34  ;;  %vm1403_vm2 = vcmp.ne.s16.totalorder %v1386_v20, 0  ;;  %v15571_v10 = vrot.slane %v1963_v43, 4  ;;  %v19755_v43 = vld [vmem:[#allocation66_spill] sm:$0xff] }
  0xe2   :  { %19746 = vst [vmem:[#allocation74_spill] sm:$0xff] %v19745_v29  ;;  %vm3117_vm5 = vmpackc.low %vm15556_vm3, %vm15556_vm3  ;;  %v2620_v15 = vshll.u32 %v19731_v32, 16  ;;  %vm19750_vm0 = vcmp.lt.s32.totalorder %v14550_v51, 8  ;;  %v19751_v2 = vmov 0  ;;  %v938_v31 = vrot.slane %v936_v22, 3  ;;  %v19757_v29 = vld [vmem:[#allocation77_spill] sm:$0xff] }
  0xe3   :  { %vm15578_vm11 = vmand %vm15543_vm4, %vm19750_vm0  ;;  %v941_v34 = vrot.slane %v939_v21, 4  ;;  %v15582_v4 = vor.u32 %v1382_v58, %v1381_v13  ;;  %v15584_v52 = vsel %vm1403_vm2, %v1096_v44, 0  ;;  %v15587_v20 = vsel %vm3117_vm5, 65537, %v19331_v11  ;;  %v13124_v13 = vld [vmem:[%s18975_s1 + $0x10] sm:$0xff]  }
  0xe4   :  { %v19752_v2 = vsel %vm15578_vm11, 4294967295, %v19751_v2  ;;  %19754 = vst [vmem:[#allocation65_spill] sm:$0xff] %v15587_v20  ;;  %vm19756_vm3 = vcmask 130048   ;;  %v945_v32 = vshrl.u32 %v11263_v54, 16  ;;  %v948_v51 = vshll.u32 %v11263_v54, 16  ;;  %v19763_v20 = vld [vmem:[#allocation19_spill] sm:$0xff] }
  0xe5   :  { %19753 = vst [vmem:[#allocation67_spill] sm:$0xff] %v19752_v2  ;;  %12047 = vmatmul.mubr.msk.bf16.vlgmr.msra.gmra.mrb[0].mxu0 %vm19756_vm3, %v19755_v43  ;;  %vm19758_vm0 = vmmov %vm19756_vm3  ;;  %v942_v58 = vor.u32 %v941_v34, %v938_v31  ;;  %vm19759_vm5 = vsmask.f32 256  ;;  %v19760_v44 = vmov 0  ;;  %v15607_v21 = vor.u32 %v2620_v15, %v15534_v35  ;;  %v19765_v34 = vld [vmem:[#allocation20_spill] sm:$0xff] }
  0xe6   :  { %12050 = vmatprep.mubr.msk.bf16.mxu0 %vm19758_vm0, %v19757_v29  ;;  %12063 = vmatpush3.bf16.msra.mxu0 %v13124_v13  ;;  %vm15600_vm2 = vmor %vm19759_vm5, %vm1242_vm13  ;;  %v947_v54 = vrot.slane %v945_v32, 3  ;;  %v950_v43 = vrot.slane %v948_v51, 4  ;;  %v19764_v13 = vrot.slane %v19763_v20, 4  ;;  %v19766_v2 = vrot.slane %v19765_v34, 4 }
  0xe7   :  { %v19761_v44 = vsel %vm15600_vm2, 4294967295, %v19760_v44  ;;  %12080 = vmatprep.subr.bf16.mxu0 %v15568_v1  ;;  %vm19767_vm3 = vcmp.lt.s32.totalorder %v14731_v42, 8  ;;  %vm19771_vm5 = vsmask.f32 4352  ;;  %v19772_v20 = vrot.slane %v14535_v24, 4 }
  0xe8   :  { %v1259_v31 = vsel %vm15600_vm2, %v19764_v13, %v19762_v63  ;;  %v1268_v16 = vsel %vm15600_vm2, %v19766_v2, %v14737_v37  ;;  %vm15625_vm0 = vmand %vm19452_vm12, %vm19767_vm3  ;;  %v15631_v63 = vsel %vm19771_vm5, %v15367_v7, %v942_v58  ;;  %v951_v2 = vor.u32 %v950_v43, %v947_v54 }
  0xe9   :  { %v1277_v37 = vsel %vm15600_vm2, %v19772_v20, %v14740_v46  ;;  %vm1388_vm13 = vcmp.ne.s16.totalorder %v1259_v31, 0  ;;  %vm1389_vm10 = vcmp.ne.s16.totalorder %v1268_v16, 0  ;;  %vm15648_vm5 = vmand %vm14240_vm8, %vm19164_vm14  ;;  %v19776_v54 = vrot.slane %v14619_v19, 4  ;;  %v19777_v31 = vld [vmem:[#allocation83_spill] sm:$0xff]  ;;  %v19779_v20 = vld [vmem:[#allocation25_spill] sm:$0xff] }
  0xea   :  { %vm1390_vm3 = vcmp.ne.s16.totalorder %v1277_v37, 0  ;;  %v1405_v51 = vsel %vm1388_vm13, %v14760_v41, 0  ;;  %v1406_v7 = vsel %vm1389_vm10, %v14774_v6, 0  ;;  %v19778_v34 = vrot.slane %v14727_v38, 4  ;;  %vm1217_vm8 = vmpackc.low %vm15648_vm5, %vm15648_vm5 }
  0xeb   :  { %v1407_v16 = vsel %vm1390_vm3, %v14706_v18, 0  ;;  %v11275_v13 = vcombine.low %v14670_v47, %v1405_v51  ;;  %v1286_v43 = vsel %vm15600_vm2, %v19776_v54, %v14877_v23  ;;  %vm1685_vm10 = vcmp.ge.s32.totalorder %v19779_v20, 0  ;;  %v19785_v51 = vld [vmem:[#allocation84_spill] sm:$0xff] }
  0xec   :  { %v1295_v15 = vsel %vm15600_vm2, %v19778_v34, %v19777_v31  ;;  %vm1701_vm13 = vcmp.lt.s32.totalorder %v19779_v20, 8  ;;  %vm19780_vm3 = vsmask.f32 4352  ;;  %v11276_v19 = vcombine.low %v1406_v7, %v1407_v16  ;;  %v19786_v31 = vld [vmem:[#allocation86_spill] sm:$0xff] }
  0xed   :  { %v15670_v47 = vsel %vm19780_vm3, %v942_v58, %v951_v2  ;;  %vm1391_vm14 = vcmp.ne.s16.totalorder %v1286_v43, 0  ;;  %vm1392_vm12 = vcmp.ne.s16.totalorder %v1295_v15, 0  ;;  %vm19781_vm6 = vcmp.lt.s32.totalorder %v14942_v45, 8 }
  0xee   :  { %vm19782_vm4 = vnez %v19508_v27  ;;  %v1469_v23 = vshrl.u32 %v11275_v13, 16  ;;  %v1471_v37 = vshll.u32 %v11275_v13, 16  ;;  %v1408_v24 = vsel %vm1391_vm14, %v19785_v51, 0 }
  0xef   :  { %vm15676_vm11 = vmand %vm19782_vm4, %vm19781_vm6  ;;  %v1409_v54 = vsel %vm1392_vm12, %v15008_v40, 0  ;;  %vm19787_vm3 = vcmask 130048   ;;  %v1476_v58 = vshll.u32 %v11276_v19, 16  ;;  %v1480_v2 = vshrl.u32 %v11276_v19, 16  ;;  %v19860_v40 = vld [vmem:[#allocation64_spill] sm:$0xff] }
  0xf0   :  { %12051 = vmatmul.mubr.msk.bf16.gmra.mrb[4].mxu0 %vm19787_vm3, %v19786_v31  ;;  %v11277_v7 = vcombine.low %v1408_v24, %v1409_v54  ;;  %vm19788_vm6 = vmpackc.low %vm15625_vm0, %vm15625_vm0  ;;  %v1473_v16 = vrot.slane %v1471_v37, 1  ;;  %v1233_v34 = vsel %vm1217_vm8, 65537, %v19331_v11  ;;  %vm19790_vm0 = vcmp.lt.s32.totalorder %v15012_v9, 8 }
  0xf1   :  { %v1231_v27 = vsel %vm19788_vm6, 65537, %v19331_v11  ;;  %vm1219_vm4 = vmpackc.low %vm15676_vm11, %vm15676_vm11  ;;  %v1478_v15 = vrot.slane %v1476_v58, 1  ;;  %v1316_v38 = vshrl.u32 %v1233_v34, 16  ;;  %v1319_v54 = vshll.u32 %v1233_v34, 16 }
  0xf2   :  { %vm19789_vm14 = vmmov %vm19787_vm3  ;;  %v1298_v13 = vshrl.u32 %v1231_v27, 16  ;;  %v1301_v43 = vshll.u32 %v1231_v27, 16  ;;  %v1488_v19 = vshrl.u32 %v11277_v7, 16  ;;  %v1474_v37 = vor.u32 %v1473_v16, %v1469_v23 }
  0xf3   :  { %12054 = vmatprep.mubr.msk.bf16.mxu0 %vm19789_vm14, %v15144_v61  ;;  %vm15705_vm12 = vmand %vm14839_vm1, %vm19790_vm0  ;;  %v1484_v61 = vshll.u32 %v11277_v7, 16  ;;  %v1235_v31 = vsel %vm1219_vm4, 65537, %v19331_v11  ;;  %v1482_v46 = vor.u32 %v1480_v2, %v1478_v15  ;;  %v1318_v29 = vrot.slane %v1316_v38, 7 }
  0xf4   :  { %v1300_v24 = vrot.slane %v1298_v13, 7  ;;  %v1334_v22 = vshrl.u32 %v1235_v31, 16  ;;  %vm1221_vm1 = vmpackc.low %vm15705_vm12, %vm15705_vm12  ;;  %vm1687_vm11 = vcmp.ge.s32.totalorder %v19793_v25, 0  ;;  %vm1703_vm5 = vcmp.lt.s32.totalorder %v19793_v25, 8  ;;  %v19795_v13 = vld [vmem:[#allocation39_spill] sm:$0xff] }
  0xf5   :  { %v1486_v27 = vrot.slane %v1484_v61, 1  ;;  %vm19794_vm8 = vsmask.f32 7424  ;;  %v1337_v16 = vshll.u32 %v1235_v31, 16  ;;  %vm1705_vm6 = vcmp.lt.s32.totalorder %v19795_v13, 8  ;;  %vm15759_vm12 = vmand %vm1685_vm10, %vm1701_vm13 }
  0xf6   :  { %v15716_v58 = vsel %vm19794_vm8, %v1474_v37, %v1478_v15  ;;  %v1303_v23 = vor.u32 %v1301_v43, %v1300_v24  ;;  %v1305_v7 = vrot.slane %v1300_v24, 4  ;;  %vm19796_vm4 = vmmov %vm19794_vm8  ;;  %v1321_v61 = vor.u32 %v1319_v54, %v1318_v29  ;;  %v19800_v43 = vld [vmem:[#allocation56_spill] sm:$0xff]  ;;  %v19801_v37 = vld [vmem:[#allocation69_spill] sm:$0xff] }
  0xf7   :  { %v15721_v2 = vsel %vm19796_vm4, %v1482_v46, %v1486_v27  ;;  %v1490_v34 = vor.u32 %v1488_v19, %v1486_v27  ;;  %v1323_v38 = vrot.slane %v1318_v29, 4  ;;  %vm19797_vm14 = vcmp.lt.s32.totalorder %v15016_v3, 8  ;;  %v19803_v19 = vld [vmem:[#allocation85_spill] sm:$0xff]  ;;  %v19805_v46 = vld [vmem:[#allocation80_spill] sm:$0xff] }
  0xf8   :  { %vm15727_vm0 = vmand %vm15137_vm9, %vm19797_vm14  ;;  %v19802_v24 = vrot.slane %v19801_v37, 4  ;;  %v1313_v29 = vsel %vm15600_vm2, %v1305_v7, %v19803_v19  ;;  %v1336_v54 = vrot.slane %v1334_v22, 7  ;;  %v1237_v33 = vsel %vm1221_vm1, 65537, %v19331_v11 }
  0xf9   :  { %vm19804_vm9 = vmmov %vm19787_vm3  ;;  %vm1394_vm14 = vcmp.ne.s16.totalorder %v1313_v29, 0  ;;  %v19806_v27 = vrot.slane %v19805_v46, 4  ;;  %v1331_v22 = vsel %vm15600_vm2, %v1323_v38, %v15125_v30  ;;  %v1352_v19 = vshrl.u32 %v1237_v33, 16  ;;  %v19810_v29 = vld [vmem:[#allocation26_spill] sm:$0xff]  ;;  %v19848_v46 = vld [vmem:[#allocation79_spill] sm:$0xff] }
  0xfa   :  { %v1304_v31 = vsel %vm15600_vm2, %v19802_v24, %v1303_v23  ;;  %12055 = vmatmul.mubr.msk.bf16.gmra.mrb[8].mxu0 %vm19804_vm9, %v15446_v39  ;;  %vm19809_vm1 = vmmov %vm19787_vm3  ;;  %v1411_v7 = vsel %vm1394_vm14, %v15304_v60, 0  ;;  %vm1396_vm8 = vcmp.ne.s16.totalorder %v1331_v22, 0  ;;  %v1339_v37 = vor.u32 %v1337_v16, %v1336_v54 }
  0xfb   :  { %vm1393_vm4 = vcmp.ne.s16.totalorder %v1304_v31, 0  ;;  %v1322_v23 = vsel %vm15600_vm2, %v19806_v27, %v1321_v61  ;;  %12058 = vmatprep.mubr.msk.bf16.mxu0 %vm19809_vm1, %v15631_v63  ;;  %vm1223_vm3 = vmpackc.low %vm15727_vm0, %vm15727_vm0  ;;  %v1413_v38 = vsel %vm1396_vm8, %v15339_v50, 0  ;;  %v1341_v31 = vrot.slane %v1336_v54, 4 }
  0xfc   :  { %v1410_v39 = vsel %vm1393_vm4, %v15278_v12, 0  ;;  %vm1395_vm9 = vcmp.ne.s16.totalorder %v1322_v23, 0  ;;  %v1355_v63 = vshll.u32 %v1237_v33, 16  ;;  %vm19811_vm10 = vcmp.ge.s32.totalorder %v19810_v29, 0 }
  0xfd   :  { %v11278_v30 = vcombine.low %v1410_v39, %v1411_v7  ;;  %v1412_v61 = vsel %vm1395_vm9, %v15309_v57, 0  ;;  %vm15776_vm13 = vmand %vm15759_vm12, %vm19811_vm10  ;;  %v19814_v23 = vrot.slane %v15051_v0, 4  ;;  %v1239_v16 = vsel %vm1223_vm3, 65537, %v19331_v11 }
  0xfe   :  { %v11279_v24 = vcombine.low %v1412_v61, %v1413_v38  ;;  %v1349_v33 = vsel %vm15600_vm2, %v1341_v31, %v15246_v14  ;;  %v1354_v38 = vrot.slane %v1352_v19, 7  ;;  %vm1783_vm4 = vmpackc.low %vm15776_vm13, %vm15776_vm13  ;;  %vm19819_vm10 = vsmask.f32 7424 }
  0xff   :  { %v1492_v15 = vshll.u32 %v11278_v30, 16  ;;  %v1496_v27 = vshrl.u32 %v11278_v30, 16  ;;  %v1340_v22 = vsel %vm15600_vm2, %v19814_v23, %v1339_v37  ;;  %vm1398_vm8 = vcmp.ne.s16.totalorder %v1349_v33, 0  ;;  %vm15797_vm3 = vmand %vm1687_vm11, %vm1703_vm5 }
 0x100   :  { %v1500_v54 = vshll.u32 %v11279_v24, 16  ;;  %vm1397_vm0 = vcmp.ne.s16.totalorder %v1340_v22, 0  ;;  %v1504_v39 = vshrl.u32 %v11279_v24, 16  ;;  %v1415_v30 = vsel %vm1398_vm8, %v15372_v62, 0  ;;  %v19817_v24 = vld [vmem:[#allocation63_spill] sm:$0xff]  ;;  %vm19818_vm9 = vmmov %vm19809_vm1 }
 0x101   :  { %v1494_v7 = vrot.slane %v1492_v15, 1  ;;  %v1414_v61 = vsel %vm1397_vm0, %v15344_v36, 0  ;;  %v1370_v37 = vshrl.u32 %v1239_v16, 16  ;;  %v1373_v23 = vshll.u32 %v1239_v16, 16  ;;  %vm19823_vm5 = vmmov %vm19809_vm1 }
 0x102   :  { %v1502_v0 = vrot.slane %v1500_v54, 1  ;;  %12059 = vmatmul.mubr.msk.bf16.gmra.mrb[12].mxu0 %vm19818_vm9, %v15670_v47  ;;  %v11280_v15 = vcombine.low %v1414_v61, %v1415_v30  ;;  %v1357_v22 = vor.u32 %v1355_v63, %v1354_v38  ;;  %vm19820_vm0 = vcmp.ge.s32.totalorder %v19795_v13, 0  ;;  %v19831_v61 = vld [vmem:[#allocation36_spill] sm:$0xff] }
 0x103   :  { %v1495_v31 = vsel %vm19819_vm10, %v1490_v34, %v1494_v7  ;;  %v1498_v19 = vor.u32 %v1496_v27, %v1494_v7  ;;  %vm15810_vm11 = vmand %vm19820_vm0, %vm1705_vm6  ;;  %12064 = vmatprep.mubr.msk.bf16.mxu0 %vm19823_vm5, %v15716_v58  ;;  %v1359_v33 = vrot.slane %v1354_v38, 4  ;;  %v1372_v25 = vrot.slane %v1370_v37, 7 }
 0x104   :  { %v1506_v54 = vor.u32 %v1504_v39, %v1502_v0  ;;  %v19824_v47 = vcombine.low %v15584_v52, %v15584_v52  ;;  %vm19825_vm8 = vcmp.lt.s32.totalorder %v19800_v43, 8  ;;  %vm19826_vm9 = vcmp.ge.s32.totalorder %v19800_v43, 0  ;;  %v19840_v43 = vld [vmem:[#allocation57_spill] sm:$0xff] }
 0x105   :  { %vm15825_vm10 = vmand %vm19826_vm9, %vm19825_vm8  ;;  %vm19829_vm6 = vsmask.f32 7424  ;;  %v1508_v58 = vshll.u32 %v11280_v15, 16  ;;  %v19830_v39 = vrot.slane %v15167_v8, 4  ;;  %v1512_v52 = vshrl.u32 %v11280_v15, 16  ;;  %v19835_v8 = vld [vmem:[#allocation44_spill] sm:$0xff] }
 0x106   :  { %v15819_v34 = vshll.u32 %v19824_v47, 16  ;;  %v15830_v27 = vsel %vm19829_vm6, %v1498_v19, %v1502_v0  ;;  %vm19832_vm0 = vcmp.ge.s32.totalorder %v19831_v61, 0  ;;  %v1367_v0 = vsel %vm15600_vm2, %v1359_v33, %v15428_v5  ;;  %v19845_v33 = vld [vmem:[#allocation98_spill] sm:$0xff]  ;;  %v19856_v19 = vld [vmem:[#allocation89_spill] sm:$0xff] }
 0x107   :  { %v1358_v7 = vsel %vm15600_vm2, %v19830_v39, %v1357_v22  ;;  %vm15840_vm5 = vmand %vm15797_vm3, %vm19832_vm0  ;;  %v1375_v30 = vor.u32 %v1373_v23, %v1372_v25  ;;  %v1377_v37 = vrot.slane %v1372_v25, 4  ;;  %vm19836_vm9 = vcmp.ge.s32.totalorder %v19835_v8, 0  ;;  %v19839_v22 = vld [vmem:[#allocation102_spill] sm:$0xff]  ;;  %v19844_v25 = vld [vmem:[#allocation104_spill] sm:$0xff] }
 0x108   :  { %vm1399_vm8 = vcmp.ne.s16.totalorder %v1358_v7, 0  ;;  %vm15851_vm6 = vmand %vm15810_vm11, %vm19836_vm9  ;;  %v1510_v15 = vrot.slane %v1508_v58, 1  ;;  %vm1400_vm0 = vcmp.ne.s16.totalorder %v1367_v0, 0  ;;  %vm19841_vm14 = vcmp.ge.s32.totalorder %v19840_v43, 0 }
 0x109   :  { %v1416_v47 = vsel %vm1399_vm8, %v19839_v22, 0  ;;  %vm15861_vm1 = vmand %vm15825_vm10, %vm19841_vm14  ;;  %v1417_v23 = vsel %vm1400_vm0, %v19844_v25, 0  ;;  %v19846_v7 = vrot.slane %v19845_v33, 4  ;;  %v1385_v0 = vsel %vm15600_vm2, %v1377_v37, %v15582_v4  ;;  %v15886_v4 = vld [vmem:[%s18975_s1 + $0x20] sm:$0xff]  }
 0x10a   :  { %v1799_v39 = vsel %vm1783_vm4, 65537, %v19331_v11  ;;  %vm1785_vm14 = vmpackc.low %vm15840_vm5, %vm15840_vm5  ;;  %vm19847_vm8 = vsmask.f32 7424  ;;  %v11281_v43 = vcombine.low %v1416_v47, %v1417_v23  ;;  %v1514_v8 = vor.u32 %v1512_v52, %v1510_v15  ;;  %v19850_v52 = vld [vmem:[#allocation107_spill] sm:$0xff] }
 0x10b   :  { %v1376_v58 = vsel %vm15600_vm2, %v19846_v7, %v1375_v30  ;;  %v1511_v33 = vsel %vm19847_vm8, %v1506_v54, %v1510_v15  ;;  %vm1787_vm0 = vmpackc.low %vm15851_vm6, %vm15851_vm6  ;;  %vm1402_vm13 = vcmp.ne.s16.totalorder %v1385_v0, 0  ;;  %v1869_v37 = vshll.u32 %v1799_v39, 16 }
 0x10c   :  { %vm1401_vm9 = vcmp.ne.s16.totalorder %v1376_v58, 0  ;;  %v1873_v7 = vshrl.u32 %v1799_v39, 16  ;;  %vm1789_vm4 = vmpackc.low %vm15861_vm1, %vm15861_vm1  ;;  %vm19849_vm8 = vcmask 130048   ;;  %v1516_v54 = vshll.u32 %v11281_v43, 16 }
 0x10d   :  { %v1418_v30 = vsel %vm1401_vm9, %v19848_v46, 0  ;;  %12065 = vmatmul.mubr.msk.bf16.vlgmr.msra.gmra.mrb[0].mxu0 %vm19849_vm8, %v15721_v2  ;;  %v1419_v15 = vsel %vm1402_vm13, %v19850_v52, 0  ;;  %v1520_v47 = vshrl.u32 %v11281_v43, 16  ;;  %v1801_v23 = vsel %vm1785_vm14, 65537, %v19331_v11  ;;  %vm19851_vm9 = vmmov %vm19849_vm8 }
 0x10e   :  { %12068 = vmatprep.mubr.msk.bf16.mxu0 %vm19851_vm9, %v1495_v31  ;;  %12081 = vmatpush3.bf16.msra.mxu0 %v15568_v1  ;;  %v11282_v39 = vcombine.low %v1418_v30, %v1419_v15  ;;  %v1871_v58 = vrot.slane %v1869_v37, 5  ;;  %v1875_v0 = vrot.slane %v1873_v7, 4  ;;  %v1889_v13 = vshll.u32 %v1801_v23, 16 }
 0x10f   :  { %v1518_v2 = vrot.slane %v1516_v54, 1  ;;  %12098 = vmatprep.subr.bf16.mxu0 %v15886_v4  ;;  %v1893_v61 = vshrl.u32 %v1801_v23, 16  ;;  %v1803_v43 = vsel %vm1787_vm0, 65537, %v19331_v11  ;;  %v1805_v1 = vsel %vm1789_vm4, 65537, %v19331_v11 }
 0x110   :  { %vm19852_vm5 = vcmp.lt.s32.totalorder %v19817_v24, 8  ;;  %vm19853_vm14 = vcmp.ge.s32.totalorder %v19817_v24, 0  ;;  %v1524_v38 = vshll.u32 %v11282_v39, 16  ;;  %v1528_v30 = vshrl.u32 %v11282_v39, 16 }
 0x111   :  { %vm15923_vm13 = vmand %vm19853_vm14, %vm19852_vm5  ;;  %v1872_v37 = vsel %vm19326_vm15, %v19856_v19, %v1871_v58  ;;  %v1876_v7 = vor.u32 %v1875_v0, %v1871_v58  ;;  %vm19857_vm6 = vsmask.f32 7424  ;;  %v1522_v5 = vor.u32 %v1520_v47, %v1518_v2 }
 0x112   :  { %v1519_v54 = vsel %vm19857_vm6, %v1514_v8, %v1518_v2  ;;  %vm15931_vm1 = vcmp.ne.s16.totalorder %v1872_v37, 0  ;;  %v1891_v23 = vrot.slane %v1889_v13, 5  ;;  %v1526_v24 = vrot.slane %v1524_v38, 1  ;;  %v19864_v8 = vld [vmem:[#allocation95_spill] sm:$0xff]  ;;  %vm19865_vm8 = vmmov %vm19857_vm6  ;;  %v19866_v37 = vld [vmem:[#allocation68_spill] sm:$0xff] }
 0x113   :  { %v1877_v29 = vrot.slane %v1876_v7, 4  ;;  %v1991_v20 = vsel %vm15931_vm1, %v15278_v12, 0  ;;  %v1895_v39 = vrot.slane %v1893_v61, 4  ;;  %vm19861_vm0 = vcmp.ge.s32.totalorder %v19860_v40, 0  ;;  %vm19869_vm1 = vmmov %vm19851_vm9 }
 0x114   :  { %vm15942_vm4 = vmand %vm15923_vm13, %vm19861_vm0  ;;  %v1892_v47 = vsel %vm19326_vm15, %v19864_v8, %v1891_v23  ;;  %v1909_v13 = vshll.u32 %v1803_v43, 16  ;;  %v1913_v0 = vshrl.u32 %v1803_v43, 16  ;;  %v1929_v2 = vshll.u32 %v1805_v1, 16 }
 0x115   :  { %v1527_v38 = vsel %vm19865_vm8, %v1522_v5, %v1526_v24  ;;  %v1530_v19 = vor.u32 %v1528_v30, %v1526_v24  ;;  %v1882_v61 = vsel %vm19326_vm15, %v1877_v29, %v19866_v37  ;;  %v1896_v7 = vor.u32 %v1895_v39, %v1891_v23  ;;  %12069 = vmatmul.mubr.msk.bf16.gmra.mrb[4].mxu0 %vm19851_vm9, %v15830_v27  ;;  %vm1791_vm6 = vmpackc.low %vm15942_vm4, %vm15942_vm4 }
 0x116   :  { %vm1975_vm5 = vcmp.ne.s16.totalorder %v1882_v61, 0  ;;  %vm15955_vm14 = vcmp.ne.s16.totalorder %v1892_v47, 0  ;;  %v1911_v8 = vrot.slane %v1909_v13, 5  ;;  %v1915_v40 = vrot.slane %v1913_v0, 4  ;;  %12072 = vmatprep.mubr.msk.bf16.mxu0 %vm19869_vm1, %v1511_v33  ;;  %vm19871_vm0 = vmmov %vm19865_vm8 }
 0x117   :  { %v19870_v24 = vrot.slane %v15819_v34, 1  ;;  %v1992_v27 = vsel %vm1975_vm5, %v15304_v60, 0  ;;  %v1897_v43 = vrot.slane %v1896_v7, 4  ;;  %v1993_v30 = vsel %vm15955_vm14, %v15309_v57, 0 }
 0x119   :  { %v15966_v29 = vsel %vm19871_vm0, %v1530_v19, %v19870_v24 }
 0x11a   :  { %16 = vsyncpa [#allocation6], 0  ;;  %v11298_v5 = vcombine.low %v1991_v20, %v1992_v27  ;;  %v19872_v23 = vld [vmem:[#allocation96_spill] sm:$0xff]  ;;  %v1916_v58 = vor.u32 %v1915_v40, %v1911_v8  ;;  %v1931_v33 = vrot.slane %v1929_v2, 5  ;;  %v19873_v47 = vld [vmem:[#allocation93_spill] sm:$0xff]  ;;  %v1933_v0 = vshrl.u32 %v1805_v1, 16 }
 0x11b   :  { %v1912_v39 = vsel %vm19326_vm15, %v19872_v23, %v1911_v8  ;;  %v1902_v34 = vsel %vm19326_vm15, %v1897_v43, %v19873_v47  ;;  %v1807_v19 = vsel %vm1791_vm6, 65537, %v19331_v11  ;;  %v19876_v2 = vld [vmem:[#allocation101_spill] sm:$0xff]  ;;  %vm19880_vm14 = vmmov %vm19869_vm1  ;;  %v16092_v32 = vld [vmem:[%s18975_s1 + $0x28] sm:$0xff]   ;;  %s13154_s14 = smov 112   ;;  %s13159_s20 = smov 16  }
 0x11c   :  { %vm15978_vm4 = vcmp.ne.s16.totalorder %v1912_v39, 0  ;;  %v2075_v37 = vshrl.u32 %v11298_v5, 16  ;;  %v2078_v61 = vshll.u32 %v11298_v5, 16  ;;  %vm1977_vm8 = vcmp.ne.s16.totalorder %v1902_v34, 0  ;;  %v19877_v43 = vld [vmem:[#allocation73_spill] sm:$0xff]  ;;  %vm19881_vm6 = vmmov %vm19869_vm1  ;;  %s13160_s21 = smov 24  }
 0x11d   :  { %v1917_v20 = vrot.slane %v1916_v58, 4  ;;  %v1994_v7 = vsel %vm1977_vm8, %v15339_v50, 0  ;;  %v1995_v40 = vsel %vm15978_vm4, %v15344_v36, 0  ;;  %v1932_v15 = vsel %vm19326_vm15, %v19876_v2, %v1931_v33  ;;  %12073 = vmatmul.mubr.msk.bf16.gmra.mrb[8].mxu0 %vm19880_vm14, %v1519_v54  ;;  %v19888_v2 = vld [vmem:[#allocation90_spill] sm:$0xff]  ;;  %s13163_s23 = smov 48   ;;  %s13165_s12 = smov [#allocation5]  }
 0x11e   :  { %v1935_v8 = vrot.slane %v1933_v0, 4  ;;  %v2077_v24 = vrot.slane %v2075_v37, 3  ;;  %v2080_v27 = vrot.slane %v2078_v61, 4  ;;  %v11299_v1 = vcombine.low %v1993_v30, %v1994_v7  ;;  %12076 = vmatprep.mubr.msk.bf16.mxu0 %vm19881_vm6, %v1527_v38  ;;  %v19884_v7 = vld [vmem:[#allocation13_spill] sm:$0xff]  ;;  %s11228_s13 = sshll.u32 %s13165_s12, 4  ;;  %s11229_s13 = int_to_ptr.vmem [resolvable:$true] %s11228_s13 }
 0x11f   :  { %v1922_v5 = vsel %vm19326_vm15, %v1917_v20, %v19877_v43  ;;  %vm15993_vm5 = vcmp.ne.s16.totalorder %v1932_v15, 0  ;;  %v1949_v58 = vshll.u32 %v1807_v19, 16  ;;  %v19882_v20 = vld [vmem:[#allocation15_spill] sm:$0xff]  ;;  %vm19885_vm0 = vnez %v19884_v7  ;;  %p13133_p1 = scmp.lt.s32.totalorder %s11229_s13, %s11229_s13 }
 0x120   :  { %vm1979_vm9 = vcmp.ne.s16.totalorder %v1922_v5, 0  ;;  %v1936_v23 = vor.u32 %v1935_v8, %v1931_v33  ;;  %v2081_v47 = vor.u32 %v2080_v27, %v2077_v24  ;;  %v2084_v34 = vshrl.u32 %v11299_v1, 16  ;;  %v19891_v5 = vld [vmem:[#allocation27_spill] sm:$0xff] }
 0x121   :  { %v2087_v13 = vshll.u32 %v11299_v1, 16  ;;  %v1996_v0 = vsel %vm1979_vm9, %v15372_v62, 0  ;;  %v1997_v33 = vsel %vm15993_vm5, %v19839_v22, 0  ;;  %v1951_v61 = vrot.slane %v1949_v58, 5  ;;  %v19890_v1 = vld [vmem:[#allocation99_spill] sm:$0xff] }
 0x122   :  { %v11300_v30 = vcombine.low %v1995_v40, %v1996_v0  ;;  %v1937_v37 = vrot.slane %v1936_v23, 4  ;;  %vm19883_vm1 = vcmp.lt.s32.totalorder %v19882_v20, 8  ;;  %vm19889_vm8 = vsmask.f32 4352  ;;  %v19904_v0 = vld [vmem:[#allocation108_spill] sm:$0xff] }
 0x123   :  { %vm16007_vm4 = vmand %vm19885_vm0, %vm19883_vm1  ;;  %v16013_v15 = vsel %vm19889_vm8, %v19888_v2, %v2081_v47  ;;  %v2086_v38 = vrot.slane %v2084_v34, 3  ;;  %v2089_v40 = vrot.slane %v2087_v13, 4  ;;  %v1953_v8 = vshrl.u32 %v1807_v19, 16 }
 0x124   :  { %v2093_v24 = vshrl.u32 %v11300_v30, 16  ;;  %v2096_v27 = vshll.u32 %v11300_v30, 16  ;;  %v1942_v43 = vsel %vm19326_vm15, %v1937_v37, %v19890_v1  ;;  %v1952_v23 = vsel %vm19326_vm15, %v19891_v5, %v1951_v61  ;;  %vm2525_vm14 = vmpackc.low %vm16007_vm4, %vm16007_vm4 }
 0x125   :  { %v2090_v39 = vor.u32 %v2089_v40, %v2086_v38  ;;  %vm1981_vm9 = vcmp.ne.s16.totalorder %v1942_v43, 0  ;;  %v1955_v58 = vrot.slane %v1953_v8, 4  ;;  %vm16021_vm5 = vcmp.ne.s16.totalorder %v1952_v23, 0  ;;  %vm19894_vm6 = vmmov %vm19889_vm8  ;;  %v19901_v23 = vld [vmem:[#allocation58_spill] sm:$0xff] }
 0x126   :  { %v2095_v19 = vrot.slane %v2093_v24, 3  ;;  %v2098_v34 = vrot.slane %v2096_v27, 4  ;;  %v1998_v13 = vsel %vm1981_vm9, %v19844_v25, 0  ;;  %v1999_v30 = vsel %vm16021_vm5, %v19848_v46, 0  ;;  %v19896_v24 = vld [vmem:[#allocation37_spill] sm:$0xff]  ;;  %v19897_v27 = vld [vmem:[#allocation32_spill] sm:$0xff]  ;;  %vm19903_vm8 = vmmov %vm19894_vm6 }
 0x127   :  { %v16033_v37 = vsel %vm19894_vm6, %v2081_v47, %v2090_v39  ;;  %v11301_v7 = vcombine.low %v1997_v33, %v1998_v13  ;;  %v1956_v2 = vor.u32 %v1955_v58, %v1951_v61  ;;  %v19895_v38 = vor.u32 %v15571_v10, %v15560_v59 }
 0x128   :  { %v2099_v54 = vor.u32 %v2098_v34, %v2095_v19  ;;  %v2541_v8 = vsel %vm2525_vm14, 65537, %v19331_v11  ;;  %v19898_v1 = vrot.slane %v19897_v27, 4  ;;  %v19899_v5 = vrot.slane %v19726_v26, 4 }
 0x129   :  { %v1967_v40 = vrot.slane %v19895_v38, 4  ;;  %vm19900_vm1 = vcmask 130048   ;;  %v2102_v10 = vshrl.u32 %v11301_v7, 16  ;;  %v2105_v33 = vshll.u32 %v11301_v7, 16  ;;  %v16063_v7 = vld [vmem:[%s18974_s0 + $0xc] sm:$0xf] }
 0x12a   :  { %v2569_v43 = vsel %vm15600_vm2, %v19898_v1, %v19896_v24  ;;  %v2578_v47 = vsel %vm15600_vm2, %v19899_v5, %v15485_v17  ;;  %12077 = vmatmul.mubr.msk.bf16.gmra.mrb[12].mxu0 %vm19900_vm1, %v15966_v29  ;;  %v1957_v61 = vrot.slane %v1956_v2, 4  ;;  %vm19902_vm4 = vmmov %vm19900_vm1  ;;  %v16054_v58 = vsel %vm19903_vm8, %v2090_v39, %v2099_v54  ;;  %v16068_v39 = vld [vmem:[%s18974_s0 + $0x10] sm:$0xf] }
 0x12b   :  { %vm1984_vm0 = vcmp.ne.s16.totalorder %v1967_v40, 0  ;;  %12082 = vmatprep.mubr.msk.bf16.mxu0 %vm19902_vm4, %v19901_v23  ;;  %v2581_v34 = vshrl.u32 %v2541_v8, 16  ;;  %v2584_v26 = vshll.u32 %v2541_v8, 16  ;;  %v2104_v13 = vrot.slane %v2102_v10, 3  ;;  %v19905_v40 = vld [vmem:[#allocation24_spill] sm:$0xff] }
 0x12c   :  { %v2001_v19 = vsel %vm1984_vm0, %v19904_v0, 0  ;;  %v2107_v38 = vrot.slane %v2105_v33, 4  ;;  %v1962_v17 = vsel %vm19326_vm15, %v1957_v61, %v15560_v59  ;;  %vm2698_vm5 = vcmp.ne.s16.totalorder %v2569_v43, 0  ;;  %v19910_v61 = vld [vmem:[#allocation16_spill] sm:$0xff] }
 0x12d   :  { %v11303_v29 = vcombine.low %v2001_v19, %v2001_v19  ;;  %vm1983_vm9 = vcmp.ne.s16.totalorder %v1962_v17, 0  ;;  %v2583_v2 = vrot.slane %v2581_v34, 7  ;;  %vm2699_vm14 = vcmp.ne.s16.totalorder %v2578_v47, 0  ;;  %v19913_v17 = vld [vmem:[#allocation105_spill] sm:$0xff]  ;;  %v19916_v47 = vld [vmem:[#allocation92_spill] sm:$0xff] }
 0x12e   :  { %vm19906_vm6 = vnez %v19905_v40  ;;  %v2108_v59 = vor.u32 %v2107_v38, %v2104_v13  ;;  %v2000_v8 = vsel %vm1983_vm9, %v19850_v52, 0  ;;  %vm19907_vm0 = vcmp.lt.s32.totalorder %v14731_v42, 8 }
 0x12f   :  { %v2120_v24 = vshrl.u32 %v11303_v29, 16  ;;  %v2123_v27 = vshll.u32 %v11303_v29, 16  ;;  %vm16078_vm4 = vmand %vm15759_vm12, %vm19907_vm0  ;;  %v11302_v5 = vcombine.low %v1999_v30, %v2000_v8  ;;  %v2586_v43 = vor.u32 %v2584_v26, %v2583_v2  ;;  %v16097_v30 = vld [vmem:[%s18974_s0 + $0x14] sm:$0xf] }
 0x130   :  { %v2588_v10 = vrot.slane %v2583_v2, 4  ;;  %v2715_v33 = vsel %vm2698_vm5, %v16063_v7, 0  ;;  %vm19911_vm8 = vnez %v19910_v61  ;;  %vm19912_vm9 = vsmask.f32 4352  ;;  %v19915_v8 = vld [vmem:[#allocation33_spill] sm:$0xff]  ;;  %vm19918_vm0 = vmpackc.low %vm19906_vm6, %vm19906_vm6 }
 0x131   :  { %vm3647_vm1 = vmpackc.low %vm19911_vm8, %vm19911_vm8  ;;  %v16087_v23 = vsel %vm19912_vm9, %v2099_v54, %v2108_v59  ;;  %v2122_v19 = vrot.slane %v2120_v24, 3  ;;  %v2125_v34 = vrot.slane %v2123_v27, 4  ;;  %v2716_v26 = vsel %vm2699_vm14, %v16068_v39, 0  ;;  %v16104_v54 = vld [vmem:[%s18974_s0 + $0x18] sm:$0xf] }
 0x132   :  { %v2111_v13 = vshrl.u32 %v11302_v5, 16  ;;  %v2114_v38 = vshll.u32 %v11302_v5, 16  ;;  %v19914_v29 = vrot.slane %v19913_v17, 4  ;;  %v11334_v24 = vcombine.low %v19915_v8, %v2715_v33 }
 0x133   :  { %vm19917_vm5 = vcmask 130048   ;;  %v2126_v27 = vor.u32 %v2125_v34, %v2122_v19  ;;  %v16122_v5 = vsel %vm19918_vm0, %v16097_v30, 0  ;;  %vm19921_vm9 = vcmp.lt.s32.totalorder %v14800_v49, 8 }
 0x134   :  { %v2587_v2 = vsel %vm15600_vm2, %v19914_v29, %v2586_v43  ;;  %12083 = vmatmul.mubr.msk.bf16.vlgmr.msra.gmra.mrb[0].mxu0 %vm19917_vm5, %v19916_v47  ;;  %19919 = vst [vmem:[#allocation66_spill] sm:$0xff] %v16122_v5  ;;  %v16130_v43 = vsel %vm3647_vm1, %v16104_v54, 0  ;;  %vm16136_vm5 = vmand %vm15797_vm3, %vm19921_vm9  ;;  %vm19924_vm12 = vcmask 130048   ;;  %v2113_v19 = vrot.slane %v2111_v13, 3  ;;  %v16150_v47 = vld [vmem:[%s18974_s0 + $0x1c] sm:$0xf] }
 0x135   :  { %vm2700_vm14 = vcmp.ne.s16.totalorder %v2587_v2, 0  ;;  %19920 = vst [vmem:[#allocation77_spill] sm:$0xff] %v16130_v43  ;;  %12086 = vmatprep.mubr.msk.bf16.mxu0 %vm19924_vm12, %v16013_v15  ;;  %12099 = vmatpush3.bf16.msra.mxu0 %v15886_v4  ;;  %v2116_v34 = vrot.slane %v2114_v38, 4  ;;  %v2778_v29 = vshrl.u32 %v11334_v24, 16  ;;  %v2780_v8 = vshll.u32 %v11334_v24, 16  ;;  %vm19926_vm1 = vmpackc.low %vm16078_vm4, %vm16078_vm4 }
 0x136   :  { %v2717_v17 = vsel %vm2700_vm14, %v16097_v30, 0  ;;  %12116 = vmatprep.subr.bf16.mxu0 %v16092_v32  ;;  %v2596_v4 = vsel %vm15600_vm2, %v2588_v10, %v15520_v28  ;;  %v19925_v13 = vrot.slane %v15487_v48, 4  ;;  %v2544_v38 = vsel %vm19926_vm1, 65537, %v19331_v11  ;;  %vm2530_vm12 = vmpackc.low %vm16136_vm5, %vm16136_vm5  ;;  %v16199_v48 = vld [vmem:[%s18974_s0 + $0x20] sm:$0xf] }
 0x137   :  { %v11335_v2 = vcombine.low %v2716_v26, %v2717_v17  ;;  %v2117_v15 = vor.u32 %v2116_v34, %v2113_v19  ;;  %vm2701_vm3 = vcmp.ne.s16.totalorder %v2596_v4, 0  ;;  %v2782_v28 = vrot.slane %v2780_v8, 1 }
 0x138   :  { %v2605_v26 = vsel %vm15600_vm2, %v19925_v13, %v15514_v56  ;;  %vm19927_vm0 = vcmp.lt.s32.totalorder %v14942_v45, 8  ;;  %vm19930_vm8 = vsmask.f32 4352  ;;  %v2718_v33 = vsel %vm2701_vm3, %v16104_v54, 0  ;;  %v19932_v13 = vld [vmem:[#allocation53_spill] sm:$0xff] }
 0x139   :  { %v2785_v10 = vshll.u32 %v11335_v2, 16  ;;  %v2789_v24 = vshrl.u32 %v11335_v2, 16  ;;  %vm2702_vm14 = vcmp.ne.s16.totalorder %v2605_v26, 0  ;;  %vm16173_vm9 = vmand %vm15810_vm11, %vm19927_vm0  ;;  %v2118_v56 = vsel %vm19930_vm8, %v2108_v59, %v2117_v15 }
 0x13a   :  { %vm19931_vm4 = vmmov %vm19930_vm8  ;;  %v2719_v19 = vsel %vm2702_vm14, %v16150_v47, 0  ;;  %v2783_v34 = vor.u32 %v2782_v28, %v2778_v29  ;;  %v2608_v8 = vshrl.u32 %v2544_v38, 16  ;;  %v2611_v4 = vshll.u32 %v2544_v38, 16 }
 0x13b   :  { %v16179_v1 = vsel %vm19931_vm4, %v2117_v15, %v2126_v27  ;;  %v2787_v17 = vrot.slane %v2785_v10, 1  ;;  %v11336_v2 = vcombine.low %v2718_v33, %v2719_v19  ;;  %v2546_v16 = vsel %vm2530_vm12, 65537, %v19331_v11  ;;  %vm2532_vm11 = vmpackc.low %vm16173_vm9, %vm16173_vm9 }
 0x13c   :  { %v2635_v26 = vshrl.u32 %v19932_v13, 16  ;;  %v2638_v14 = vshll.u32 %v19932_v13, 16  ;;  %vm19933_vm8 = vcmask 130048   ;;  %vm19934_vm5 = vsmask.f32 7424 }
 0x13d   :  { %12087 = vmatmul.mubr.msk.bf16.gmra.mrb[4].mxu0 %vm19933_vm8, %v16033_v37  ;;  %v16192_v59 = vsel %vm19934_vm5, %v2783_v34, %v2787_v17  ;;  %v2791_v27 = vor.u32 %v2789_v24, %v2787_v17  ;;  %v2793_v29 = vshll.u32 %v11336_v2, 16  ;;  %v2610_v15 = vrot.slane %v2608_v8, 7  ;;  %vm19935_vm3 = vmmov %vm19933_vm8  ;;  %v16205_v24 = vld [vmem:[%s18974_s0 + $0x24] sm:$0xf] }
 0x13e   :  { %12090 = vmatprep.mubr.msk.bf16.mxu0 %vm19935_vm3, %v16054_v58  ;;  %v2797_v38 = vshrl.u32 %v11336_v2, 16  ;;  %v2626_v28 = vshrl.u32 %v2546_v16, 16  ;;  %v2629_v10 = vshll.u32 %v2546_v16, 16  ;;  %v2637_v33 = vrot.slane %v2635_v26, 7  ;;  %vm19936_vm1 = vmmov %vm19934_vm5 }
 0x13f   :  { %v2795_v19 = vrot.slane %v2793_v29, 1  ;;  %v2613_v37 = vor.u32 %v2611_v4, %v2610_v15  ;;  %v2615_v13 = vrot.slane %v2610_v15, 4  ;;  %v2548_v34 = vsel %vm2532_vm11, 65537, %v19331_v11  ;;  %vm19944_vm5 = vmmov %vm19935_vm3 }
 0x140   :  { %v2628_v58 = vrot.slane %v2626_v28, 7  ;;  %v2640_v17 = vor.u32 %v2638_v14, %v2637_v33  ;;  %v2642_v2 = vrot.slane %v2637_v33, 4  ;;  %v2644_v8 = vshrl.u32 %v2548_v34, 16  ;;  %v16220_v14 = vld [vmem:[%s18974_s0 + $0x28] sm:$0xf] }
 0x141   :  { %v16208_v16 = vsel %vm19936_vm1, %v2791_v27, %v2795_v19  ;;  %v19937_v26 = vrot.slane %v19734_v55, 4  ;;  %v2623_v29 = vsel %vm15600_vm2, %v2615_v13, %v15607_v21  ;;  %v2799_v15 = vor.u32 %v2797_v38, %v2795_v19  ;;  %v16235_v33 = vld [vmem:[%s18974_s0 + $0x2c] sm:$0xf] }
 0x142   :  { %vm2704_vm14 = vcmp.ne.s16.totalorder %v2623_v29, 0  ;;  %v2631_v28 = vor.u32 %v2629_v10, %v2628_v58  ;;  %v2633_v27 = vrot.slane %v2628_v58, 4  ;;  %vm19938_vm0 = vcmp.lt.s32.totalorder %v15012_v9, 8 }
 0x143   :  { %v2614_v4 = vsel %vm15600_vm2, %v19937_v26, %v2613_v37  ;;  %vm16226_vm9 = vmand %vm15825_vm10, %vm19938_vm0  ;;  %v2721_v38 = vsel %vm2704_vm14, %v16205_v24, 0  ;;  %v2646_v19 = vrot.slane %v2644_v8, 7  ;;  %v2647_v10 = vshll.u32 %v2548_v34, 16  ;;  %v19942_v26 = vld [vmem:[#allocation91_spill] sm:$0xff] }
 0x144   :  { %vm2703_vm12 = vcmp.ne.s16.totalorder %v2614_v4, 0  ;;  %v19941_v13 = vrot.slane %v15534_v35, 4  ;;  %v2641_v58 = vsel %vm15600_vm2, %v2633_v27, %v2640_v17  ;;  %v2653_v4 = vshrl.u32 %v19942_v26, 16  ;;  %vm19943_vm10 = vmmov %vm19935_vm3 }
 0x145   :  { %v2720_v21 = vsel %vm2703_vm12, %v16199_v48, 0  ;;  %12091 = vmatmul.mubr.msk.bf16.gmra.mrb[8].mxu0 %vm19943_vm10, %v16087_v23  ;;  %vm2706_vm11 = vcmp.ne.s16.totalorder %v2641_v58, 0  ;;  %v2649_v29 = vor.u32 %v2647_v10, %v2646_v19  ;;  %v2651_v43 = vrot.slane %v2646_v19, 4  ;;  %vm2534_vm8 = vmpackc.low %vm16226_vm9, %vm16226_vm9  ;;  %v16255_v23 = vld [vmem:[%s18974_s0 + $0x30] sm:$0xf]  ;;  %v19948_v10 = vld [vmem:[#allocation103_spill] sm:$0xff] }
 0x146   :  { %v11337_v37 = vcombine.low %v2720_v21, %v2721_v38  ;;  %v2632_v63 = vsel %vm15600_vm2, %v19941_v13, %v2631_v28  ;;  %12094 = vmatprep.mubr.msk.bf16.mxu0 %vm19944_vm5, %v2118_v56  ;;  %v2723_v17 = vsel %vm2706_vm11, %v16235_v33, 0  ;;  %vm19945_vm3 = vcmp.lt.s32.totalorder %v15016_v3, 8  ;;  %vm19950_vm9 = vmmov %vm19944_vm5  ;;  %v19962_v3 = vld [vmem:[#allocation30_spill] sm:$0xff] }
 0x147   :  { %vm2705_vm4 = vcmp.ne.s16.totalorder %v2632_v63, 0  ;;  %vm16261_vm1 = vmand %vm15923_vm13, %vm19945_vm3  ;;  %v2650_v27 = vsel %vm15600_vm2, %v2642_v2, %v2649_v29  ;;  %v2655_v55 = vrot.slane %v2653_v4, 7  ;;  %v2656_v21 = vshll.u32 %v19942_v26, 16  ;;  %v16280_v26 = vld [vmem:[%s18974_s0 + $0x34] sm:$0xf] }
 0x148   :  { %v2801_v35 = vshll.u32 %v11337_v37, 16  ;;  %v2722_v34 = vsel %vm2705_vm4, %v16220_v14, 0  ;;  %v2805_v8 = vshrl.u32 %v11337_v37, 16  ;;  %vm2707_vm12 = vcmp.ne.s16.totalorder %v2650_v27, 0  ;;  %vm2536_vm13 = vmpackc.low %vm16261_vm1, %vm16261_vm1 }
 0x149   :  { %v11338_v56 = vcombine.low %v2722_v34, %v2723_v17  ;;  %v2550_v19 = vsel %vm2534_vm8, 65537, %v19331_v11  ;;  %v2671_v37 = vshrl.u32 %v19948_v10, 16  ;;  %v2658_v63 = vor.u32 %v2656_v21, %v2655_v55  ;;  %vm19953_vm4 = vmmov %vm19944_vm5 }
 0x14a   :  { %v2803_v38 = vrot.slane %v2801_v35, 1  ;;  %v2724_v31 = vsel %vm2707_vm12, %v16255_v23, 0  ;;  %vm19949_vm14 = vsmask.f32 7424  ;;  %v2660_v29 = vrot.slane %v2655_v55, 4  ;;  %vm19961_vm12 = vmmov %vm19953_vm4 }
 0x14b   :  { %v2809_v13 = vshll.u32 %v11338_v56, 16  ;;  %v2813_v58 = vshrl.u32 %v11338_v56, 16  ;;  %v2662_v35 = vshrl.u32 %v2550_v19, 16  ;;  %v2659_v17 = vsel %vm15600_vm2, %v2651_v43, %v2658_v63  ;;  %vm19951_vm10 = vmmov %vm19949_vm14 }
 0x14c   :  { %v16275_v2 = vsel %vm19949_vm14, %v2799_v15, %v2803_v38  ;;  %v2807_v4 = vor.u32 %v2805_v8, %v2803_v38  ;;  %v2665_v56 = vshll.u32 %v2550_v19, 16  ;;  %v2673_v27 = vrot.slane %v2671_v37, 7  ;;  %vm19957_vm1 = vmmov %vm19951_vm10 }
 0x14d   :  { %v2811_v34 = vrot.slane %v2809_v13, 1  ;;  %vm2708_vm0 = vcmp.ne.s16.totalorder %v2659_v17, 0  ;;  %v2664_v28 = vrot.slane %v2662_v35, 7  ;;  %v2674_v21 = vshll.u32 %v19948_v10, 16  ;;  %12095 = vmatmul.mubr.msk.bf16.gmra.mrb[12].mxu0 %vm19950_vm9, %v16179_v1  ;;  %v16299_v10 = vld [vmem:[%s18974_s0 + $0x38] sm:$0xf] }
 0x14e   :  { %v2552_v15 = vsel %vm2536_vm13, 65537, %v19331_v11  ;;  %v2725_v55 = vsel %vm2708_vm0, %v16280_v26, 0  ;;  %v2678_v13 = vrot.slane %v2673_v27, 4  ;;  %v19952_v43 = vcombine.low %v14760_v41, %v14774_v6  ;;  %vm19964_vm13 = vmmov %vm19953_vm4 }
 0x14f   :  { %v16289_v8 = vsel %vm19951_vm10, %v2807_v4, %v2811_v34  ;;  %v2815_v38 = vor.u32 %v2813_v58, %v2811_v34  ;;  %v11339_v19 = vcombine.low %v2724_v31, %v2725_v55  ;;  %v2667_v37 = vor.u32 %v2665_v56, %v2664_v28  ;;  %v19954_v4 = vld [vmem:[#allocation18_spill] sm:$0xff]  ;;  %v19956_v31 = vld [vmem:[#allocation81_spill] sm:$0xff]  ;;  %vm19966_vm10 = vmmov %vm19957_vm1 }
 0x150   :  { %12100 = vmatprep.mubr.msk.bf16.mxu0 %vm19953_vm4, %v19952_v43  ;;  %v2669_v1 = vrot.slane %v2664_v28, 4  ;;  %v2676_v63 = vor.u32 %v2674_v21, %v2673_v27  ;;  %vm19955_vm11 = vnez %v19954_v4  ;;  %v16307_v58 = vld [vmem:[%s18974_s0 + $0x3c] sm:$0xf]  ;;  %v2680_v41 = vshrl.u32 %v2552_v15, 16 }
 0x151   :  { %vm3105_vm8 = vmpackc.low %vm19955_vm11, %vm19955_vm11  ;;  %v2683_v6 = vshll.u32 %v2552_v15, 16  ;;  %v2689_v35 = vshrl.u32 %v19956_v31, 16  ;;  %v2692_v34 = vshll.u32 %v19956_v31, 16  ;;  %v2817_v17 = vshll.u32 %v11339_v19, 16 }
 0x152   :  { %v2668_v56 = vsel %vm15600_vm2, %v2660_v29, %v2667_v37  ;;  %v2677_v27 = vsel %vm15600_vm2, %v2669_v1, %v2676_v63  ;;  %v2821_v28 = vshrl.u32 %v11339_v19, 16  ;;  %v2682_v21 = vrot.slane %v2680_v41, 7  ;;  %v16326_v19 = vld [vmem:[%s18975_s1 + $0x30] sm:$0xff]   ;;  %v16331_v1 = vld [vmem:[%s18974_s0 + $0x40] sm:$0xf] }
 0x153   :  { %vm2709_vm5 = vcmp.ne.s16.totalorder %v2668_v56, 0  ;;  %vm2710_vm3 = vcmp.ne.s16.totalorder %v2677_v27, 0  ;;  %v2691_v55 = vrot.slane %v2689_v35, 7  ;;  %v2819_v43 = vrot.slane %v2817_v17, 1  ;;  %v16339_v17 = vld [vmem:[%s18974_s0 + $0x44] sm:$0xf] }
 0x154   :  { %v2726_v5 = vsel %vm2709_vm5, %v16299_v10, 0  ;;  %v2727_v15 = vsel %vm2710_vm3, %v16307_v58, 0  ;;  %v3121_v29 = vsel %vm3105_vm8, 65537, %v19331_v11  ;;  %v2685_v63 = vor.u32 %v2683_v6, %v2682_v21  ;;  %v19958_v27 = vld [vmem:[#allocation41_spill] sm:$0xff]  ;;  %vm19973_vm5 = vmmov %vm19961_vm12 }
 0x155   :  { %v11340_v37 = vcombine.low %v2726_v5, %v2727_v15  ;;  %v2687_v41 = vrot.slane %v2682_v21, 4  ;;  %v2694_v31 = vor.u32 %v2692_v34, %v2691_v55  ;;  %v16334_v35 = vsel %vm19957_vm1, %v2815_v38, %v2819_v43  ;;  %v2473_v5 = vld [vmem:[%s18974_s0 + $0x48] sm:$0x1]  ;;  %v19959_v15 = vld [vmem:[#allocation47_spill] sm:$0xff]  ;;  %vm19975_vm3 = vmmov %vm19973_vm5 }
 0x156   :  { %v2823_v4 = vor.u32 %v2821_v28, %v2819_v43  ;;  %v2696_v56 = vrot.slane %v2691_v55, 4  ;;  %v3147_v6 = vsel %vm19326_vm15, %v19959_v15, %v19958_v27  ;;  %v19960_v38 = vcombine.low %v14706_v18, %v19785_v51  ;;  %v19965_v18 = vld [vmem:[#allocation38_spill] sm:$0xff] }
 0x157   :  { %v2825_v34 = vshll.u32 %v11340_v37, 16  ;;  %v2686_v28 = vsel %vm15600_vm2, %v2678_v13, %v2685_v63  ;;  %v2695_v21 = vsel %vm15600_vm2, %v2687_v41, %v2694_v31  ;;  %v2829_v43 = vshrl.u32 %v11340_v37, 16 }
 0x158   :  { %12101 = vmatmul.mubr.msk.bf16.vlgmr.msra.gmra.mrb[0].mxu0 %vm19961_vm12, %v19960_v38  ;;  %v19963_v55 = vcombine.low %v19962_v3, %v15278_v12  ;;  %vm2711_vm14 = vcmp.ne.s16.totalorder %v2686_v28, 0  ;;  %vm2712_vm0 = vcmp.ne.s16.totalorder %v2695_v21, 0  ;;  %vm2713_vm9 = vcmp.ne.s16.totalorder %v2696_v56, 0  ;;  %v3052_v56 = vld [vmem:[%s18974_s0 + $0x8] sm:$0x8]  ;;  %vm19980_vm12 = vmmov %vm19957_vm1 }
 0x159   :  { %12117 = vmatpush3.bf16.msra.mxu0 %v16092_v32  ;;  %v3154_v51 = vshll.u32 %v19965_v18, 16  ;;  %v2827_v27 = vrot.slane %v2825_v34, 1  ;;  %v2728_v13 = vsel %vm2711_vm14, %v16331_v1, 0  ;;  %v2729_v63 = vsel %vm2712_vm0, %v16339_v17, 0  ;;  %v19967_v28 = vld [vmem:[#allocation40_spill] sm:$0xff]  ;;  %v19968_v18 = vld [vmem:[#allocation50_spill] sm:$0xff] }
 0x15a   :  { %12104 = vmatprep.mubr.msk.bf16.mxu0 %vm19964_vm13, %v19963_v55  ;;  %12134 = vmatprep.subr.bf16.mxu0 %v16326_v19  ;;  %v2730_v37 = vsel %vm2713_vm9, %v2473_v5, 0  ;;  %v11341_v41 = vcombine.low %v2728_v13, %v2729_v63  ;;  %v3164_v12 = vshll.u32 %v3121_v29, 16  ;;  %v3168_v38 = vshrl.u32 %v3121_v29, 16 }
 0x15b   :  { %v11342_v31 = vcombine.low %v2730_v37, %v2730_v37  ;;  %v3156_v3 = vrot.slane %v3154_v51, 5  ;;  %v16366_v15 = vsel %vm19966_vm10, %v2823_v4, %v2827_v27  ;;  %v2831_v32 = vor.u32 %v2829_v43, %v2827_v27  ;;  %v19969_v51 = vld [vmem:[#allocation46_spill] sm:$0xff] }
 0x15c   :  { %vm3293_vm4 = vcmp.ne.s16.totalorder %v19967_v28, 0  ;;  %v2833_v34 = vshll.u32 %v11341_v41, 16  ;;  %v2837_v21 = vshrl.u32 %v11341_v41, 16  ;;  %v3166_v63 = vrot.slane %v3164_v12, 5 }
 0x15d   :  { %v2841_v55 = vshll.u32 %v11342_v31, 16  ;;  %v3157_v5 = vsel %vm19326_vm15, %v19968_v18, %v3156_v3  ;;  %v3161_v13 = vor.u32 %v19969_v51, %v3156_v3  ;;  %v3170_v4 = vrot.slane %v3168_v38, 4 }
 0x15e   :  { %vm3294_vm11 = vcmp.ne.s16.totalorder %v3147_v6, 0  ;;  %v2835_v43 = vrot.slane %v2833_v34, 1  ;;  %vm16376_vm8 = vcmp.ne.s16.totalorder %v3157_v5, 0  ;;  %v3310_v29 = vsel %vm3293_vm4, %v3052_v56, 0  ;;  %v19977_v5 = vld [vmem:[#allocation25_spill] sm:$0xff] }
 0x15f   :  { %v2843_v27 = vrot.slane %v2841_v55, 1  ;;  %v19972_v41 = vcombine.low %v15304_v60, %v15309_v57  ;;  %v3162_v31 = vrot.slane %v3161_v13, 4  ;;  %v3171_v28 = vor.u32 %v3170_v4, %v3166_v63  ;;  %v19976_v57 = vld [vmem:[#allocation54_spill] sm:$0xff]  ;;  %v19978_v13 = vld [vmem:[#allocation75_spill] sm:$0xff]  ;;  %v19979_v4 = vld [vmem:[#allocation76_spill] sm:$0xff] }
 0x160   :  { %v3311_v18 = vsel %vm3294_vm11, %v16063_v7, 0  ;;  %v3312_v6 = vsel %vm16376_vm8, %v16068_v39, 0  ;;  %v19974_v3 = vcombine.low %v15339_v50, %v15344_v36  ;;  %v16393_v12 = vsel %vm19957_vm1, %v2831_v32, %v2835_v43 }
 0x161   :  { %12105 = vmatmul.mubr.msk.bf16.gmra.mrb[4].mxu0 %vm19973_vm5, %v19972_v41  ;;  %v2839_v56 = vor.u32 %v2837_v21, %v2835_v43  ;;  %v11354_v60 = vcombine.low %v3310_v29, %v3311_v18  ;;  %v3174_v38 = vshll.u32 %v19976_v57, 16  ;;  %v3167_v34 = vsel %vm19326_vm15, %v3162_v31, %v3166_v63  ;;  %v19983_v18 = vld [vmem:[#allocation62_spill] sm:$0xff]  ;;  %vm19991_vm5 = vmmov %vm19975_vm3 }
 0x162   :  { %12108 = vmatprep.mubr.msk.bf16.mxu0 %vm19975_vm3, %v19974_v3  ;;  %v3172_v55 = vrot.slane %v3171_v28, 4  ;;  %v2994_v51 = vadd.s32 1, %v19977_v5  ;;  %v3191_v37 = vor.u32 %v19979_v4, %v19978_v13  ;;  %vm3296_vm13 = vcmp.ne.s16.totalorder %v3167_v34, 0 }
 0x163   :  { %v16402_v50 = vsel %vm19980_vm12, %v2839_v56, %v2843_v27  ;;  %v3374_v36 = vshrl.u32 %v11354_v60, 16  ;;  %v3377_v32 = vshll.u32 %v11354_v60, 16  ;;  %v3313_v21 = vsel %vm3296_vm13, %v16097_v30, 0  ;;  %v19984_v56 = vld [vmem:[#allocation26_spill] sm:$0xff] }
 0x164   :  { %v3176_v43 = vrot.slane %v3174_v38, 5  ;;  %vm3010_vm14 = vcmp.ge.s32.totalorder %v2994_v51, 0  ;;  %vm3026_vm0 = vcmp.lt.s32.totalorder %v2994_v51, 8  ;;  %v11355_v29 = vcombine.low %v3312_v6, %v3313_v21  ;;  %v19986_v30 = vld [vmem:[#allocation82_spill] sm:$0xff] }
 0x165   :  { %v3376_v41 = vrot.slane %v3374_v36, 3  ;;  %v3379_v63 = vrot.slane %v3377_v32, 4  ;;  %vm16405_vm9 = vmand %vm3010_vm14, %vm3026_vm0  ;;  %v19981_v31 = vmov 0  ;;  %v3192_v28 = vrot.slane %v3191_v37, 4  ;;  %v19987_v6 = vld [vmem:[#allocation34_spill] sm:$0xff] }
 0x166   :  { %v19982_v31 = vsel %vm16405_vm9, 4294967295, %v19981_v31  ;;  %v3177_v27 = vsel %vm19326_vm15, %v3172_v55, %v3176_v43  ;;  %v3181_v3 = vor.u32 %v19983_v18, %v3176_v43  ;;  %vm19985_vm10 = vcmp.ge.s32.totalorder %v19984_v56, 0  ;;  %v19996_v56 = vld [vmem:[#allocation36_spill] sm:$0xff] }
 0x167   :  { %vm3060_vm4 = vmand %vm16405_vm9, %vm19985_vm10  ;;  %v3204_v60 = vshll.u32 %v19986_v30, 16  ;;  %v2996_v57 = vadd.s32 1, %v19987_v6  ;;  %v3380_v38 = vor.u32 %v3379_v63, %v3376_v41  ;;  %v3382_v34 = vshrl.u32 %v11355_v29, 16  ;;  %v19998_v30 = vld [vmem:[#allocation12_spill] sm:$0xff]  ;;  %v19999_v6 = vld [vmem:[#allocation39_spill] sm:$0xff] }
 0x168   :  { %v3385_v5 = vshll.u32 %v11355_v29, 16  ;;  %vm16418_vm11 = vcmp.ne.s16.totalorder %v3177_v27, 0  ;;  %vm3108_vm8 = vmpackc.low %vm3060_vm4, %vm3060_vm4  ;;  %v19990_v55 = vcombine.low %v15372_v62, %v19839_v22  ;;  %v3182_v4 = vrot.slane %v3181_v3, 4  ;;  %v19993_v22 = vld [vmem:[#allocation28_spill] sm:$0xff] }
 0x169   :  { %v3314_v37 = vsel %vm16418_vm11, %v16104_v54, 0  ;;  %v3124_v36 = vsel %vm3108_vm8, 65537, %v19331_v11  ;;  %v3206_v32 = vrot.slane %v3204_v60, 5  ;;  %v19992_v21 = vcombine.low %v19844_v25, %v19848_v46 }
 0x16a   :  { %12109 = vmatmul.mubr.msk.bf16.gmra.mrb[8].mxu0 %vm19991_vm5, %v19990_v55  ;;  %v3384_v43 = vrot.slane %v3382_v34, 3  ;;  %v3387_v29 = vrot.slane %v3385_v5, 4  ;;  %v3194_v41 = vshll.u32 %v3124_v36, 16  ;;  %v3198_v63 = vshrl.u32 %v3124_v36, 16 }
 0x16b   :  { %12112 = vmatprep.mubr.msk.bf16.mxu0 %vm19975_vm3, %v19992_v21  ;;  %v3187_v62 = vsel %vm19326_vm15, %v3182_v4, %v19978_v13  ;;  %vm3012_vm1 = vcmp.ge.s32.totalorder %v2996_v57, 0  ;;  %vm3028_vm12 = vcmp.lt.s32.totalorder %v2996_v57, 8  ;;  %v3211_v54 = vor.u32 %v19993_v22, %v3206_v32 }
 0x16c   :  { %v3388_v27 = vor.u32 %v3387_v29, %v3384_v43  ;;  %vm3298_vm13 = vcmp.ne.s16.totalorder %v3187_v62, 0  ;;  %v3196_v18 = vrot.slane %v3194_v41, 5  ;;  %v3200_v3 = vrot.slane %v3198_v63, 4  ;;  %vm16438_vm14 = vmand %vm3012_vm1, %vm3028_vm12  ;;  %v20004_v62 = vld [vmem:[#allocation87_spill] sm:$0xff] }
 0x16d   :  { %v19994_v25 = vmov 0  ;;  %v3315_v46 = vsel %vm3298_vm13, %v16150_v47, 0  ;;  %vm19997_vm0 = vcmp.ge.s32.totalorder %v19996_v56, 0  ;;  %v3212_v13 = vrot.slane %v3211_v54, 4  ;;  %vm20005_vm12 = vmmov %vm19975_vm3 }
 0x16e   :  { %v19995_v25 = vsel %vm16438_vm14, 4294967295, %v19994_v25  ;;  %vm3062_vm10 = vmand %vm16438_vm14, %vm19997_vm0  ;;  %v3224_v60 = vshll.u32 %v19998_v30, 16  ;;  %v2998_v57 = vadd.s32 1, %v19999_v6  ;;  %vm20000_vm4 = vsmask.f32 4352 }
 0x16f   :  { %v16450_v34 = vsel %vm20000_vm4, %v3380_v38, %v3388_v27  ;;  %v11356_v5 = vcombine.low %v3314_v37, %v3315_v46  ;;  %v3197_v51 = vsel %vm19326_vm15, %v3192_v28, %v3196_v18  ;;  %v3201_v55 = vor.u32 %v3200_v3, %v3196_v18  ;;  %vm3110_vm11 = vmpackc.low %vm3062_vm10, %vm3062_vm10 }
 0x170   :  { %vm16454_vm8 = vcmp.ne.s16.totalorder %v3197_v51, 0  ;;  %v3126_v36 = vsel %vm3110_vm11, 65537, %v19331_v11  ;;  %v3226_v21 = vrot.slane %v3224_v60, 5  ;;  %vm3014_vm5 = vcmp.ge.s32.totalorder %v2998_v57, 0  ;;  %v20009_v60 = vld [vmem:[#allocation44_spill] sm:$0xff] }
 0x171   :  { %v3391_v43 = vshrl.u32 %v11356_v5, 16  ;;  %v3394_v29 = vshll.u32 %v11356_v5, 16  ;;  %v3202_v41 = vrot.slane %v3201_v55, 4  ;;  %v3316_v38 = vsel %vm16454_vm8, %v16199_v48, 0  ;;  %v20011_v5 = vld [vmem:[#allocation56_spill] sm:$0xff] }
 0x172   :  { %v20003_v28 = vcombine.low %v19850_v52, %v19904_v0  ;;  %v3214_v37 = vshll.u32 %v3126_v36, 16  ;;  %v3218_v63 = vshrl.u32 %v3126_v36, 16  ;;  %vm3030_vm1 = vcmp.lt.s32.totalorder %v2998_v57, 8  ;;  %v20008_v52 = vld [vmem:[#allocation88_spill] sm:$0xff] }
 0x173   :  { %v3231_v22 = vor.u32 %v20004_v62, %v3226_v21  ;;  %v3393_v54 = vrot.slane %v3391_v43, 3  ;;  %v3396_v18 = vrot.slane %v3394_v29, 4  ;;  %v3207_v3 = vsel %vm19326_vm15, %v3202_v41, %v3206_v32  ;;  %vm16471_vm13 = vmand %vm3014_vm5, %vm3030_vm1 }
 0x174   :  { %12113 = vmatmul.mubr.msk.bf16.gmra.mrb[12].mxu0 %vm19975_vm3, %v20003_v28  ;;  %v20006_v46 = vmov 0  ;;  %v3244_v0 = vshll.u32 %v20008_v52, 16  ;;  %vm3300_vm0 = vcmp.ne.s16.totalorder %v3207_v3, 0  ;;  %v3216_v56 = vrot.slane %v3214_v37, 5 }
 0x175   :  { %12118 = vmatprep.mubr.msk.bf16.mxu0 %vm20005_vm12, %v16192_v59  ;;  %v20007_v46 = vsel %vm16471_vm13, 4294967295, %v20006_v46  ;;  %v3220_v30 = vrot.slane %v3218_v63, 4  ;;  %vm20010_vm10 = vcmp.ge.s32.totalorder %v20009_v60, 0  ;;  %v3232_v59 = vrot.slane %v3231_v22, 4  ;;  %v16495_v63 = vld [vmem:[%s18975_s1 + $0x38] sm:$0xff]  }
 0x176   :  { %vm3064_vm4 = vmand %vm16471_vm13, %vm20010_vm10  ;;  %v3397_v6 = vor.u32 %v3396_v18, %v3393_v54  ;;  %v3317_v57 = vsel %vm3300_vm0, %v16205_v24, 0  ;;  %v3246_v32 = vrot.slane %v3244_v0, 5  ;;  %v3000_v51 = vadd.s32 1, %v20011_v5  ;;  %v20017_v54 = vld [vmem:[#allocation23_spill] sm:$0xff]  ;;  %v20024_v60 = vld [vmem:[#allocation94_spill] sm:$0xff] }
 0x177   :  { %vm3112_vm11 = vmpackc.low %vm3064_vm4, %vm3064_vm4  ;;  %v11357_v55 = vcombine.low %v3316_v38, %v3317_v57  ;;  %v3217_v4 = vsel %vm19326_vm15, %v3212_v13, %v3216_v56  ;;  %v3221_v36 = vor.u32 %v3220_v30, %v3216_v56  ;;  %vm20012_vm8 = vsmask.f32 4352 }
 0x178   :  { %v3128_v43 = vsel %vm3112_vm11, 65537, %v19331_v11  ;;  %v16486_v29 = vsel %vm20012_vm8, %v3388_v27, %v3397_v6  ;;  %vm16488_vm5 = vcmp.ne.s16.totalorder %v3217_v4, 0  ;;  %v20015_v27 = vld [vmem:[#allocation45_spill] sm:$0xff]  ;;  %vm20018_vm1 = vnez %v20017_v54 }
 0x179   :  { %v3234_v28 = vshll.u32 %v3128_v43, 16  ;;  %v3238_v37 = vshrl.u32 %v3128_v43, 16  ;;  %v3400_v38 = vshrl.u32 %v11357_v55, 16  ;;  %v3403_v62 = vshll.u32 %v11357_v55, 16 }
 0x17a   :  { %v3222_v13 = vrot.slane %v3221_v36, 4  ;;  %v3318_v22 = vsel %vm16488_vm5, %v16220_v14, 0  ;;  %vm20016_vm3 = vcmp.lt.s32.totalorder %v20015_v27, 8  ;;  %vm3016_vm0 = vcmp.ge.s32.totalorder %v3000_v51, 0 }
 0x17b   :  { %vm16504_vm12 = vmand %vm20018_vm1, %vm20016_vm3  ;;  %v3236_v3 = vrot.slane %v3234_v28, 5  ;;  %v3240_v52 = vrot.slane %v3238_v37, 4  ;;  %vm3032_vm10 = vcmp.lt.s32.totalorder %v3000_v51, 8  ;;  %vm20021_vm4 = vcmask 130048   ;;  %v20026_v51 = vld [vmem:[#allocation57_spill] sm:$0xff] }
 0x17c   :  { %12119 = vmatmul.mubr.msk.bf16.vlgmr.msra.gmra.mrb[0].mxu0 %vm20021_vm4, %v16208_v16  ;;  %v3402_v0 = vrot.slane %v3400_v38, 3  ;;  %v3405_v56 = vrot.slane %v3403_v62, 4  ;;  %v3227_v14 = vsel %vm19326_vm15, %v3222_v13, %v3226_v21  ;;  %vm16512_vm11 = vmand %vm3016_vm0, %vm3032_vm10  ;;  %v20022_v30 = vmov 0  ;;  %v20028_v21 = vld [vmem:[#allocation100_spill] sm:$0xff]  ;;  %v20033_v38 = vld [vmem:[#allocation61_spill] sm:$0xff] }
 0x17d   :  { %v20023_v30 = vsel %vm16512_vm11, 4294967295, %v20022_v30  ;;  %v3251_v57 = vor.u32 %v20024_v60, %v3246_v32  ;;  %vm20025_vm8 = vmmov %vm20021_vm4  ;;  %12135 = vmatpush3.bf16.msra.mxu0 %v16326_v19  ;;  %vm3302_vm5 = vcmp.ne.s16.totalorder %v3227_v14, 0  ;;  %v3237_v16 = vsel %vm19326_vm15, %v3232_v59, %v3236_v3  ;;  %v20031_v59 = vld [vmem:[#allocation72_spill] sm:$0xff] }
 0x17e   :  { %12122 = vmatprep.mubr.msk.bf16.mxu0 %vm20025_vm8, %v16275_v2  ;;  %v3241_v5 = vor.u32 %v3240_v52, %v3236_v3  ;;  %vm20027_vm3 = vcmp.ge.s32.totalorder %v20026_v51, 0  ;;  %v3264_v55 = vshll.u32 %v20028_v21, 16  ;;  %12152 = vmatprep.subr.bf16.mxu0 %v16495_v63  ;;  %v3406_v4 = vor.u32 %v3405_v56, %v3402_v0  ;;  %v20039_v56 = vld [vmem:[#allocation63_spill] sm:$0xff]  ;;  %v20043_v51 = vld [vmem:[#allocation29_spill] sm:$0xff] }
 0x17f   :  { %vm3066_vm0 = vmand %vm16512_vm11, %vm20027_vm3  ;;  %v3319_v36 = vsel %vm3302_vm5, %v16235_v33, 0  ;;  %vm16529_vm10 = vcmp.ne.s16.totalorder %v3237_v16, 0  ;;  %v3252_v19 = vrot.slane %v3251_v57, 4  ;;  %vm20032_vm8 = vnez %v20031_v59  ;;  %v20035_v33 = vld [vmem:[#allocation97_spill] sm:$0xff]  ;;  %v20040_v16 = vld [vmem:[#allocation106_spill] sm:$0xff] }
 0x180   :  { %vm3114_vm4 = vmpackc.low %vm3066_vm0, %vm3066_vm0  ;;  %v11358_v43 = vcombine.low %v3318_v22, %v3319_v36  ;;  %v3242_v41 = vrot.slane %v3241_v5, 4  ;;  %v3320_v28 = vsel %vm16529_vm10, %v16255_v23, 0  ;;  %vm20034_vm5 = vcmp.lt.s32.totalorder %v20033_v38, 8  ;;  %v20041_v5 = vld [vmem:[#allocation21_spill] sm:$0xff]  ;;  %v20045_v36 = vld [vmem:[#allocation22_spill] sm:$0xff] }
 0x181   :  { %v3130_v37 = vsel %vm3114_vm4, 65537, %v19331_v11  ;;  %vm16544_vm3 = vmand %vm15317_vm7, %vm20034_vm5  ;;  %vm20038_vm0 = vsmask.f32 4352  ;;  %v3266_v3 = vrot.slane %v3264_v55, 5  ;;  %v3002_v14 = vadd.s32 1, %v20039_v56  ;;  %v20047_v2 = vld [vmem:[#allocation67_spill] sm:$0xff] }
 0x182   :  { %v16549_v13 = vsel %vm20038_vm0, %v3397_v6, %v3406_v4  ;;  %v3254_v27 = vshll.u32 %v3130_v37, 16  ;;  %v3258_v22 = vshrl.u32 %v3130_v37, 16  ;;  %v3409_v23 = vshrl.u32 %v11358_v43, 16  ;;  %v20050_v38 = vld [vmem:[#allocation35_spill] sm:$0xff]  ;;  %vm20052_vm13 = vmpackc.low %vm20032_vm8, %vm20032_vm8  ;;  %v20058_v56 = vld [vmem:[#allocation64_spill] sm:$0xff] }
 0x183   :  { %v3412_v52 = vshll.u32 %v11358_v43, 16  ;;  %v3247_v0 = vsel %vm19326_vm15, %v3242_v41, %v3246_v32  ;;  %v3271_v6 = vor.u32 %v20040_v16, %v3266_v3  ;;  %vm20042_vm5 = vnez %v20041_v5 }
 0x184   :  { %vm3304_vm4 = vcmp.ne.s16.totalorder %v3247_v0, 0  ;;  %v3256_v60 = vrot.slane %v3254_v27, 5  ;;  %v3260_v57 = vrot.slane %v3258_v22, 4  ;;  %vm20044_vm1 = vnez %v20043_v51  ;;  %v20057_v22 = vld [vmem:[#allocation65_spill] sm:$0xff] }
 0x185   :  { %v3411_v32 = vrot.slane %v3409_v23, 3  ;;  %v3414_v21 = vrot.slane %v3412_v52, 4  ;;  %v3321_v55 = vsel %vm3304_vm4, %v16280_v26, 0  ;;  %vm3018_vm2 = vcmp.ge.s32.totalorder %v3002_v14, 0 }
 0x186   :  { %vm20046_vm11 = vnez %v20045_v36  ;;  %vm20049_vm9 = vcmask 130048   ;;  %v11359_v43 = vcombine.low %v3320_v28, %v3321_v55  ;;  %v3257_v41 = vsel %vm19326_vm15, %v3252_v19, %v3256_v60  ;;  %v20063_v19 = vld [vmem:[#allocation14_spill] sm:$0xff] }
 0x187   :  { %12123 = vmatmul.mubr.msk.bf16.gmra.mrb[4].mxu0 %vm20049_vm9, %v16289_v8  ;;  %v3261_v37 = vor.u32 %v3260_v57, %v3256_v60  ;;  %vm3034_vm14 = vcmp.lt.s32.totalorder %v3002_v14, 8  ;;  %vm20051_vm4 = vnez %v20050_v38  ;;  %v16587_v27 = vsel %vm20052_vm13, 65537, %v19331_v11 }
 0x188   :  { %vm3648_vm10 = vmpackc.low %vm20051_vm4, %vm20051_vm4  ;;  %12126 = vmatprep.mubr.msk.bf16.mxu0 %vm20049_vm9, %v16334_v35  ;;  %v3415_v8 = vor.u32 %v3414_v21, %v3411_v32  ;;  %vm16591_vm0 = vcmp.ne.s16.totalorder %v3257_v41, 0  ;;  %v3284_v23 = vshll.u32 %v20057_v22, 16  ;;  %v3418_v52 = vshrl.u32 %v11359_v43, 16  ;;  %v20061_v41 = vld [vmem:[#allocation52_spill] sm:$0xff] }
 0x189   :  { %vm16595_vm7 = vmand %vm3018_vm2, %vm3034_vm14  ;;  %v3421_v0 = vshll.u32 %v11359_v43, 16  ;;  %v3262_v59 = vrot.slane %v3261_v37, 4  ;;  %vm20059_vm13 = vcmp.ge.s32.totalorder %v20058_v56, 0  ;;  %v3272_v35 = vrot.slane %v3271_v6, 4 }
 0x18a   :  { %vm3068_vm8 = vmand %vm16595_vm7, %vm20059_vm13  ;;  %vm20060_vm9 = vsmask.f32 4352  ;;  %v3322_v60 = vsel %vm16591_vm0, %v16299_v10, 0  ;;  %v3286_v57 = vrot.slane %v3284_v23, 5  ;;  %v3288_v16 = vshrl.u32 %v20057_v22, 16 }
 0x18b   :  { %v16605_v14 = vsel %vm20060_vm9, %v3406_v4, %v3415_v8  ;;  %vm3116_vm2 = vmpackc.low %vm3068_vm8, %vm3068_vm8  ;;  %v3420_v32 = vrot.slane %v3418_v52, 3  ;;  %v3423_v21 = vrot.slane %v3421_v0, 4  ;;  %v3267_v55 = vsel %vm19326_vm15, %v3262_v59, %v3266_v3  ;;  %v20069_v0 = vld [vmem:[#allocation49_spill] sm:$0xff] }
 0x18c   :  { %v3132_v43 = vsel %vm3116_vm2, 65537, %v19331_v11  ;;  %vm20062_vm14 = vnez %v20061_v41  ;;  %vm3306_vm9 = vcmp.ne.s16.totalorder %v3267_v55, 0  ;;  %v3290_v37 = vrot.slane %v3288_v16, 4  ;;  %vm20067_vm2 = vmpackc.low %vm16504_vm12, %vm16504_vm12 }
 0x18d   :  { %v3274_v4 = vshll.u32 %v3132_v43, 16  ;;  %v3278_v6 = vshrl.u32 %v3132_v43, 16  ;;  %vm20064_vm0 = vcmp.lt.s32.totalorder %v20063_v19, 8  ;;  %v16631_v3 = vsel %vm20067_vm2, 65537, %v19331_v11  ;;  %vm20077_vm13 = vmpackc.low %vm20046_vm11, %vm20046_vm11 }
 0x18e   :  { %vm16621_vm8 = vmand %vm19906_vm6, %vm20064_vm0  ;;  %v3424_v23 = vor.u32 %v3423_v21, %v3420_v32  ;;  %v3323_v52 = vsel %vm3306_vm9, %v16307_v58, 0  ;;  %vm20070_vm0 = vnez %v20069_v0  ;;  %v3291_v16 = vor.u32 %v3290_v37, %v3286_v57  ;;  %v3863_v32 = vld [vmem:[%s18974_s0 + $0x10] sm:$0xf] }
 0x18f   :  { %vm20068_vm6 = vmpackc.low %vm20042_vm5, %vm20042_vm5  ;;  %v11360_v59 = vcombine.low %v3322_v60, %v3323_v52  ;;  %v3276_v18 = vrot.slane %v3274_v4, 5  ;;  %v3280_v56 = vrot.slane %v3278_v6, 4  ;;  %vm20071_vm12 = vcmp.lt.s32.totalorder %v19882_v20, 8  ;;  %v20090_v52 = vld [vmem:[#allocation74_spill] sm:$0xff] }
 0x190   :  { %v16640_v40 = vsel %vm20068_vm6, %v16063_v7, 0  ;;  %vm20072_vm9 = vnez %v19910_v61  ;;  %vm20075_vm5 = vcmask 130048   ;;  %vm20076_vm6 = vsmask.f32 4352 }
 0x191   :  { %vm16649_vm2 = vmand %vm20072_vm9, %vm20071_vm12  ;;  %12127 = vmatmul.mubr.msk.bf16.gmra.mrb[8].mxu0 %vm20075_vm5, %v16366_v15  ;;  %v16656_v7 = vsel %vm20076_vm6, %v3415_v8, %v3424_v23  ;;  %v16664_v5 = vsel %vm20077_vm13, %v16068_v39, 0  ;;  %v16672_v20 = vsel %vm3648_vm10, %v16150_v47, 0  ;;  %v3427_v39 = vshrl.u32 %v11360_v59, 16  ;;  %v3862_v8 = vld [vmem:[%s18974_s0 + $0xc] sm:$0xf] }
 0x192   :  { %vm20078_vm12 = vmpackc.low %vm20062_vm14, %vm20062_vm14  ;;  %v3430_v15 = vshll.u32 %v11360_v59, 16  ;;  %v3277_v47 = vsel %vm19326_vm15, %v3272_v35, %v3276_v18  ;;  %v3281_v36 = vor.u32 %v3280_v56, %v3276_v18  ;;  %vm20080_vm10 = vnez %v19982_v31  ;;  %v3053_v35 = vld [vmem:[%s18974_s0 + $0x48] sm:$0xf] }
 0x193   :  { %v16680_v61 = vsel %vm20078_vm12, %v16199_v48, 0  ;;  %vm20079_vm13 = vmmov %vm20075_vm5  ;;  %vm16708_vm6 = vcmp.ne.s16.totalorder %v3277_v47, 0  ;;  %v3292_v51 = vrot.slane %v3291_v16, 4  ;;  %v3429_v60 = vrot.slane %v3427_v39, 3  ;;  %v3866_v39 = vld [vmem:[%s18974_s0 + $0x1c] sm:$0xf] }
 0x194   :  { %12130 = vmatprep.mubr.msk.bf16.mxu0 %vm20079_vm13, %v16393_v12  ;;  %vm3650_vm9 = vmpackc.low %vm20080_vm10, %vm20080_vm10  ;;  %vm20086_vm13 = vnez %v20047_v2  ;;  %v3432_v21 = vrot.slane %v3430_v15, 4  ;;  %v3282_v55 = vrot.slane %v3281_v36, 4  ;;  %v11374_v43 = vcombine.low %v16640_v40, %v16664_v5 }
 0x195   :  { %vm20081_vm14 = vmpackc.low %vm20044_vm1, %vm20044_vm1  ;;  %vm20085_vm1 = vnez %v20035_v33  ;;  %vm3309_vm11 = vcmp.ne.s16.totalorder %v3292_v51, 0  ;;  %v11376_v41 = vcombine.low %v16672_v20, %v16680_v61  ;;  %v16734_v4 = vsel %vm3650_vm9, %v16205_v24, 0  ;;  %v20103_v51 = vld [vmem:[#allocation43_spill] sm:$0xff]  ;;  %v13127_v20 = vld [vmem:[%s18974_s0 + $0x30] sm:$0xf] }
 0x196   :  { %v16698_v48 = vsel %vm20081_vm14, 65537, %v19331_v11  ;;  %vm20082_vm5 = vmpackc.low %vm16544_vm3, %vm16544_vm3  ;;  %vm20088_vm14 = vnez %v20007_v46  ;;  %v3433_v2 = vor.u32 %v3432_v21, %v3429_v60  ;;  %v3287_v6 = vsel %vm19326_vm15, %v3282_v55, %v3286_v57  ;;  %v20105_v55 = vld [vmem:[#allocation55_spill] sm:$0xff] }
 0x197   :  { %v16706_v12 = vsel %vm20082_vm5, 65537, %v19331_v11  ;;  %vm20087_vm3 = vmpackc.low %vm20086_vm13, %vm20086_vm13  ;;  %vm20089_vm13 = vnez %v20023_v30  ;;  %v3324_v37 = vsel %vm16708_vm6, %v16331_v1, 0  ;;  %v3326_v19 = vsel %vm3309_vm11, %v3053_v35, 0 }
 0x198   :  { %v16724_v62 = vsel %vm20087_vm3, 65537, %v19331_v11  ;;  %vm3654_vm5 = vmpackc.low %vm20088_vm14, %vm20088_vm14  ;;  %vm20091_vm12 = vnez %v20090_v52  ;;  %vm3308_vm10 = vcmp.ne.s16.totalorder %v3287_v6, 0  ;;  %v11362_v24 = vcombine.low %v3326_v19, %v3326_v19 }
 0x199   :  { %vm3656_vm3 = vmpackc.low %vm20089_vm13, %vm20089_vm13  ;;  %v16748_v59 = vsel %vm3654_vm5, %v16280_v26, 0  ;;  %vm20093_vm9 = vsmask.f32 4352  ;;  %v3325_v18 = vsel %vm3308_vm10, %v16339_v17, 0  ;;  %vm20094_vm6 = vcmask 130048  }
 0x19a   :  { %vm3659_vm14 = vmpackc.low %vm20091_vm12, %vm20091_vm12  ;;  %v16762_v57 = vsel %vm20093_vm9, %v3424_v23, %v3433_v2  ;;  %v16768_v56 = vsel %vm3656_vm3, %v16307_v58, 0  ;;  %12131 = vmatmul.mubr.msk.bf16.gmra.mrb[12].mxu0 %vm20094_vm6, %v16402_v50  ;;  %v3445_v0 = vshrl.u32 %v11362_v24, 16  ;;  %v3448_v16 = vshll.u32 %v11362_v24, 16  ;;  %v20096_v58 = vld [vmem:[#allocation17_spill] sm:$0xff] }
 0x19b   :  { %vm20092_vm15 = vmpackc.low %vm20070_vm0, %vm20070_vm0  ;;  %vm20097_vm5 = vcmp.lt.s32.totalorder %v20096_v58, 8  ;;  %v20104_v60 = vshll.u32 %v20103_v51, 16  ;;  %vm20110_vm12 = vnez %v19982_v31 }
 0x19c   :  { %v16756_v53 = vsel %vm20092_vm15, %v16299_v10, 0  ;;  %vm3658_vm11 = vmpackc.low %vm16595_vm7, %vm16595_vm7  ;;  %v11361_v10 = vcombine.low %v3324_v37, %v3325_v18  ;;  %v3447_v47 = vrot.slane %v3445_v0, 3  ;;  %v3450_v36 = vrot.slane %v3448_v16, 4  ;;  %v20108_v18 = vld [vmem:[#allocation51_spill] sm:$0xff] }
 0x19d   :  { %v11379_v26 = vcombine.low %v16748_v59, %v16756_v53  ;;  %vm3930_vm0 = vmpackc.low %vm16649_vm2, %vm16649_vm2  ;;  %v16796_v15 = vsel %vm3658_vm11, %v16339_v17, 0  ;;  %vm20109_vm2 = vcmp.lt.s32.totalorder %v14731_v42, 8 }
 0x19e   :  { %vm20095_vm10 = vmpackc.low %vm20085_vm1, %vm20085_vm1  ;;  %v3436_v33 = vshrl.u32 %v11361_v10, 16  ;;  %v3439_v38 = vshll.u32 %v11361_v10, 16  ;;  %v3946_v22 = vsel %vm3930_vm0, 65537, %v19331_v11  ;;  %v3451_v24 = vor.u32 %v3450_v36, %v3447_v47 }
 0x19f   :  { %v16781_v23 = vsel %vm20095_vm10, %v16331_v1, 0  ;;  %vm16787_vm3 = vmand %vm20051_vm4, %vm20097_vm5  ;;  %v16803_v1 = vsel %vm3659_vm14, %v3053_v35, 0  ;;  %v20102_v35 = vld [vmem:[#allocation48_spill] sm:$0xff]  ;;  %v3975_v10 = vrot.slane %v20108_v18, 4  ;;  %v3986_v58 = vshrl.u32 %v3946_v22, 16  ;;  %v20117_v18 = vld [vmem:[#allocation78_spill] sm:$0xff] }
 0x1a0   :  { %vm20100_vm15 = vmmov %vm20094_vm6  ;;  %v11380_v50 = vcombine.low %v16768_v56, %v16781_v23  ;;  %v11381_v17 = vcombine.low %v16796_v15, %v16803_v1  ;;  %v3965_v21 = vor.u32 %v20104_v60, %v20102_v35  ;;  %v20106_v6 = vrot.slane %v20102_v35, 4 }
 0x1a1   :  { %12136 = vmatprep.mubr.msk.bf16.mxu0 %vm20100_vm15, %v16450_v34  ;;  %vm20101_vm4 = vmpackc.low %vm16621_vm8, %vm16621_vm8  ;;  %vm20107_vm8 = vnez %v19761_v44  ;;  %v3438_v19 = vrot.slane %v3436_v33, 3  ;;  %v3441_v52 = vrot.slane %v3439_v38, 4  ;;  %v3989_v35 = vshll.u32 %v3946_v22, 16  ;;  %v16848_v38 = vld [vmem:[%s18975_s1 + $0x40] sm:$0xff]  }
 0x1a2   :  { %v3945_v34 = vsel %vm20101_vm4, 65537, %v19331_v11  ;;  %v3974_v37 = vsel %vm20107_vm8, %v20106_v6, %v20105_v55  ;;  %vm3931_vm1 = vmpackc.low %vm16787_vm3, %vm16787_vm3  ;;  %vm4102_vm11 = vcmp.ne.s16.totalorder %v3965_v21, 0  ;;  %v3988_v36 = vrot.slane %v3986_v58, 7 }
 0x1a3   :  { %v3977_v0 = vshrl.u32 %v3945_v34, 16  ;;  %v3980_v16 = vshll.u32 %v3945_v34, 16  ;;  %vm16841_vm14 = vmand %vm20110_vm12, %vm20109_vm2  ;;  %v3442_v33 = vor.u32 %v3441_v52, %v3438_v19  ;;  %vm4103_vm9 = vcmp.ne.s16.totalorder %v3974_v37, 0  ;;  %v3865_v37 = vld [vmem:[%s18974_s0 + $0x18] sm:$0xf] }
 0x1a4   :  { %v3947_v34 = vsel %vm3931_vm1, 65537, %v19331_v11  ;;  %v4119_v22 = vsel %vm4102_vm11, %v3862_v8, 0  ;;  %v4120_v42 = vsel %vm4103_vm9, %v3863_v32, 0  ;;  %vm20113_vm0 = vmmov %vm20094_vm6  ;;  %vm20114_vm6 = vsmask.f32 4352 }
 0x1a5   :  { %v3979_v47 = vrot.slane %v3977_v0, 7  ;;  %12137 = vmatmul.mubr.msk.bf16.vlgmr.msra.gmra.mrb[0].mxu0 %vm20113_vm0, %v16486_v29  ;;  %v16854_v31 = vsel %vm20114_vm6, %v3433_v2, %v3442_v33  ;;  %vm20115_vm10 = vmmov %vm20114_vm6  ;;  %v11393_v60 = vcombine.low %v4119_v22, %v4120_v42  ;;  %v3995_v55 = vshrl.u32 %v3947_v34, 16  ;;  %v3864_v29 = vld [vmem:[%s18974_s0 + $0x14] sm:$0xf]  ;;  %v20118_v0 = vld [vmem:[#allocation70_spill] sm:$0xff] }
 0x1a6   :  { %v16857_v51 = vsel %vm20115_vm10, %v3442_v33, %v3451_v24  ;;  %vm3933_vm5 = vmpackc.low %vm16841_vm14, %vm16841_vm14  ;;  %12153 = vmatpush3.bf16.msra.mxu0 %v16495_v63  ;;  %v3991_v21 = vor.u32 %v3989_v35, %v3988_v36  ;;  %v3993_v6 = vrot.slane %v3988_v36, 4  ;;  %vm20120_vm1 = vcmp.lt.s32.totalorder %v14800_v49, 8  ;;  %v3867_v49 = vld [vmem:[%s18974_s0 + $0x20] sm:$0xf] }
 0x1a7   :  { %vm20116_vm3 = vmmov %vm20113_vm0  ;;  %v3982_v2 = vor.u32 %v3980_v16, %v3979_v47  ;;  %v3984_v8 = vrot.slane %v3979_v47, 4  ;;  %12170 = vmatprep.subr.bf16.mxu0 %v16848_v38  ;;  %v4183_v19 = vshrl.u32 %v11393_v60, 16  ;;  %v4185_v52 = vshll.u32 %v11393_v60, 16 }
 0x1a8   :  { %12140 = vmatprep.mubr.msk.bf16.mxu0 %vm20116_vm3, %v16549_v13  ;;  %v3997_v24 = vrot.slane %v3995_v55, 7  ;;  %v3998_v13 = vshll.u32 %v3947_v34, 16  ;;  %v20119_v16 = vshll.u32 %v20118_v0, 16  ;;  %v3949_v35 = vsel %vm3933_vm5, 65537, %v19331_v11  ;;  %vm20124_vm9 = vmmov %vm20113_vm0 }
 0x1a9   :  { %v3983_v63 = vsel %vm20107_vm8, %v3975_v10, %v3982_v2  ;;  %v3992_v32 = vsel %vm20107_vm8, %v3984_v8, %v3991_v21  ;;  %v4187_v33 = vrot.slane %v4185_v52, 1  ;;  %vm20121_vm2 = vnez %v19995_v25  ;;  %vm20125_vm6 = vmmov %vm20116_vm3 }
 0x1aa   :  { %v4009_v58 = vor.u32 %v20119_v16, %v20117_v18  ;;  %vm4104_vm15 = vcmp.ne.s16.totalorder %v3983_v63, 0  ;;  %vm4105_vm4 = vcmp.ne.s16.totalorder %v3992_v32, 0  ;;  %v4000_v34 = vor.u32 %v3998_v13, %v3997_v24  ;;  %vm16889_vm12 = vmand %vm20121_vm2, %vm20120_vm1 }
 0x1ab   :  { %v4121_v47 = vsel %vm4104_vm15, %v3864_v29, 0  ;;  %v4122_v36 = vsel %vm4105_vm4, %v3865_v37, 0  ;;  %v4002_v22 = vrot.slane %v3997_v24, 4  ;;  %v4011_v42 = vrot.slane %v20117_v18, 4  ;;  %vm3935_vm11 = vmpackc.low %vm16889_vm12, %vm16889_vm12 }
 0x1ac   :  { %v11394_v60 = vcombine.low %v4121_v47, %v4122_v36  ;;  %v4188_v55 = vor.u32 %v4187_v33, %v4183_v19  ;;  %v4001_v2 = vsel %vm20107_vm8, %v3993_v6, %v4000_v34  ;;  %v4013_v8 = vshrl.u32 %v3949_v35, 16  ;;  %v3868_v36 = vld [vmem:[%s18974_s0 + $0x24] sm:$0xf] }
 0x1ad   :  { %v4010_v29 = vsel %vm20107_vm8, %v4002_v22, %v4009_v58  ;;  %vm4106_vm14 = vcmp.ne.s16.totalorder %v4001_v2, 0  ;;  %v4016_v21 = vshll.u32 %v3949_v35, 16  ;;  %v4022_v37 = vshrl.u32 %v16587_v27, 16  ;;  %12141 = vmatmul.mubr.msk.bf16.gmra.mrb[4].mxu0 %vm20124_vm9, %v16605_v14  ;;  %vm20134_vm9 = vmmov %vm20125_vm6 }
 0x1ae   :  { %v4190_v19 = vshll.u32 %v11394_v60, 16  ;;  %v4194_v52 = vshrl.u32 %v11394_v60, 16  ;;  %vm4107_vm0 = vcmp.ne.s16.totalorder %v4010_v29, 0  ;;  %v4123_v24 = vsel %vm4106_vm14, %v3866_v39, 0  ;;  %12144 = vmatprep.mubr.msk.bf16.mxu0 %vm20125_vm6, %v16656_v7 }
 0x1af   :  { %v4124_v6 = vsel %vm4107_vm0, %v3867_v49, 0  ;;  %v4015_v13 = vrot.slane %v4013_v8, 7  ;;  %v4024_v63 = vrot.slane %v4022_v37, 7  ;;  %v4025_v32 = vshll.u32 %v16587_v27, 16 }
 0x1b0   :  { %v4192_v18 = vrot.slane %v4190_v19, 1  ;;  %v11395_v0 = vcombine.low %v4123_v24, %v4124_v6  ;;  %v3951_v16 = vsel %vm3935_vm11, 65537, %v19331_v11  ;;  %v4040_v58 = vshrl.u32 %v16631_v3, 16 }
 0x1b1   :  { %vm20126_vm10 = vcmp.lt.s32.totalorder %v14942_v45, 8  ;;  %vm20127_vm5 = vnez %v20007_v46  ;;  %v4018_v7 = vor.u32 %v4016_v21, %v4015_v13  ;;  %v4020_v35 = vrot.slane %v4015_v13, 4  ;;  %v3869_v45 = vld [vmem:[%s18974_s0 + $0x28] sm:$0xf] }
 0x1b2   :  { %vm16919_vm3 = vmand %vm20127_vm5, %vm20126_vm10  ;;  %v4027_v33 = vor.u32 %v4025_v32, %v4024_v63  ;;  %v4029_v34 = vrot.slane %v4024_v63, 4  ;;  %vm20130_vm15 = vsmask.f32 7424  ;;  %v4196_v10 = vor.u32 %v4194_v52, %v4192_v18 }
 0x1b3   :  { %v16924_v27 = vsel %vm20130_vm15, %v4188_v55, %v4192_v18  ;;  %v4198_v47 = vshll.u32 %v11395_v0, 16  ;;  %v4202_v46 = vshrl.u32 %v11395_v0, 16  ;;  %v4019_v39 = vsel %vm20107_vm8, %v4011_v42, %v4018_v7  ;;  %vm3937_vm4 = vmpackc.low %vm16919_vm3, %vm16919_vm3 }
 0x1b4   :  { %v4028_v22 = vsel %vm20107_vm8, %v4020_v35, %v4027_v33  ;;  %v4031_v60 = vshrl.u32 %v3951_v16, 16  ;;  %v4034_v55 = vshll.u32 %v3951_v16, 16  ;;  %vm4108_vm1 = vcmp.ne.s16.totalorder %v4019_v39, 0  ;;  %vm20135_vm0 = vmmov %vm20130_vm15 }
 0x1b5   :  { %v4200_v49 = vrot.slane %v4198_v47, 1  ;;  %vm4109_vm12 = vcmp.ne.s16.totalorder %v4028_v22, 0  ;;  %v4042_v2 = vrot.slane %v4040_v58, 7  ;;  %v4125_v8 = vsel %vm4108_vm1, %v3868_v36, 0  ;;  %12145 = vmatmul.mubr.msk.bf16.gmra.mrb[8].mxu0 %vm20134_vm9, %v16762_v57  ;;  %v3871_v57 = vld [vmem:[%s18974_s0 + $0x30] sm:$0xf]  ;;  %vm20136_vm3 = vmmov %vm20135_vm0 }
 0x1b6   :  { %v4126_v29 = vsel %vm4109_vm12, %v3869_v45, 0  ;;  %v4033_v21 = vrot.slane %v4031_v60, 7  ;;  %v4043_v37 = vshll.u32 %v16631_v3, 16  ;;  %vm20131_vm14 = vcmp.lt.s32.totalorder %v15012_v9, 8  ;;  %12148 = vmatprep.mubr.msk.bf16.mxu0 %vm20125_vm6, %v16854_v31  ;;  %v3870_v9 = vld [vmem:[%s18974_s0 + $0x2c] sm:$0xf]  ;;  %vm20141_vm1 = vmmov %vm20125_vm6 }
 0x1b7   :  { %vm16944_vm11 = vmand %vm20089_vm13, %vm20131_vm14  ;;  %v16951_v19 = vsel %vm20135_vm0, %v4196_v10, %v4200_v49  ;;  %v11396_v52 = vcombine.low %v4125_v8, %v4126_v29  ;;  %v4204_v24 = vor.u32 %v4202_v46, %v4200_v49  ;;  %v3953_v6 = vsel %vm3937_vm4, 65537, %v19331_v11  ;;  %v20137_v60 = vld [vmem:[#allocation60_spill] sm:$0xff] }
 0x1b8   :  { %v4036_v30 = vor.u32 %v4034_v55, %v4033_v21  ;;  %v4038_v3 = vrot.slane %v4033_v21, 4  ;;  %v4045_v13 = vor.u32 %v4043_v37, %v4042_v2  ;;  %v4047_v63 = vrot.slane %v4042_v2, 4  ;;  %vm3939_vm13 = vmpackc.low %vm16944_vm11, %vm16944_vm11  ;;  %v3872_v55 = vld [vmem:[%s18974_s0 + $0x34] sm:$0xf]  ;;  %v20142_v21 = vld [vmem:[#allocation71_spill] sm:$0xff] }
 0x1b9   :  { %v4206_v32 = vshll.u32 %v11396_v52, 16  ;;  %v4210_v18 = vshrl.u32 %v11396_v52, 16  ;;  %v4049_v0 = vshrl.u32 %v3953_v6, 16  ;;  %v4052_v16 = vshll.u32 %v3953_v6, 16  ;;  %v3873_v37 = vld [vmem:[%s18974_s0 + $0x38] sm:$0xf]  ;;  %vm20145_vm6 = vmmov %vm20136_vm3 }
 0x1ba   :  { %v4037_v31 = vsel %vm20107_vm8, %v4029_v34, %v4036_v30  ;;  %v4046_v58 = vsel %vm20107_vm8, %v4038_v3, %v4045_v13  ;;  %v4058_v14 = vshrl.u32 %v16698_v48, 16  ;;  %v4061_v7 = vshll.u32 %v16698_v48, 16 }
 0x1bb   :  { %v4208_v35 = vrot.slane %v4206_v32, 1  ;;  %vm4110_vm10 = vcmp.ne.s16.totalorder %v4037_v31, 0  ;;  %vm4111_vm5 = vcmp.ne.s16.totalorder %v4046_v58, 0  ;;  %v4051_v33 = vrot.slane %v4049_v0, 7  ;;  %v13125_v32 = vld [vmem:[%s18974_s0 + $0x28] sm:$0xf] }
 0x1bc   :  { %v4127_v10 = vsel %vm4110_vm10, %v3870_v9, 0  ;;  %v4128_v47 = vsel %vm4111_vm5, %v3871_v57, 0  ;;  %v4060_v36 = vrot.slane %v4058_v14, 7  ;;  %v3955_v45 = vsel %vm3939_vm13, 65537, %v19331_v11 }
 0x1bd   :  { %v16973_v46 = vsel %vm20136_vm3, %v4204_v24, %v4208_v35  ;;  %v11397_v34 = vcombine.low %v4127_v10, %v4128_v47  ;;  %v4212_v39 = vor.u32 %v4210_v18, %v4208_v35  ;;  %v4054_v22 = vor.u32 %v4052_v16, %v4051_v33  ;;  %12149 = vmatmul.mubr.msk.bf16.gmra.mrb[12].mxu0 %vm20141_vm1, %v16857_v51  ;;  %vm3652_vm3 = vmpackc.low %vm20121_vm2, %vm20121_vm2 }
 0x1be   :  { %vm20138_vm15 = vcmp.lt.s32.totalorder %v20137_v60, 8  ;;  %v4056_v49 = vrot.slane %v4051_v33, 4  ;;  %v4063_v2 = vor.u32 %v4061_v7, %v4060_v36  ;;  %v4065_v8 = vrot.slane %v4060_v36, 4  ;;  %v3875_v33 = vld [vmem:[%s18974_s0 + $0x40] sm:$0xf]  ;;  %v20148_v60 = vld [vmem:[#allocation77_spill] sm:$0xff] }
 0x1bf   :  { %vm16979_vm4 = vmand %vm16595_vm7, %vm20138_vm15  ;;  %v4067_v29 = vshrl.u32 %v3955_v45, 16  ;;  %vm20143_vm12 = vnez %v20142_v21  ;;  %v4214_v28 = vshll.u32 %v11397_v34, 16  ;;  %v4055_v42 = vsel %vm20107_vm8, %v4047_v63, %v4054_v22  ;;  %v20147_v22 = vld [vmem:[#allocation66_spill] sm:$0xff] }
 0x1c0   :  { %vm3651_vm14 = vmpackc.low %vm20143_vm12, %vm20143_vm12  ;;  %v4218_v52 = vshrl.u32 %v11397_v34, 16  ;;  %v4070_v24 = vshll.u32 %v3955_v45, 16  ;;  %v4064_v51 = vsel %vm20107_vm8, %v4056_v49, %v4063_v2  ;;  %vm4112_vm11 = vcmp.ne.s16.totalorder %v4055_v42, 0  ;;  %v3876_v42 = vld [vmem:[%s18974_s0 + $0x44] sm:$0xf] }
 0x1c1   :  { %vm20144_vm7 = vmmov %vm20141_vm1  ;;  %v4069_v6 = vrot.slane %v4067_v29, 7  ;;  %v4076_v9 = vshrl.u32 %v16706_v12, 16  ;;  %v4216_v30 = vrot.slane %v4214_v28, 1  ;;  %vm4113_vm0 = vcmp.ne.s16.totalorder %v4064_v51, 0 }
 0x1c2   :  { %12154 = vmatprep.mubr.msk.bf16.mxu0 %vm20144_vm7, %v11374_v43  ;;  %vm3941_vm9 = vmpackc.low %vm16979_vm4, %vm16979_vm4  ;;  %v4129_v3 = vsel %vm4112_vm11, %v3872_v55, 0  ;;  %v4079_v13 = vshll.u32 %v16706_v12, 16  ;;  %v4130_v63 = vsel %vm4113_vm0, %v3873_v37, 0  ;;  %v3667_v57 = vsel %vm3651_vm14, %v13125_v32, 0  ;;  %v3874_v12 = vld [vmem:[%s18974_s0 + $0x3c] sm:$0xf] }
 0x1c3   :  { %v4072_v40 = vor.u32 %v4070_v24, %v4069_v6  ;;  %v4074_v5 = vrot.slane %v4069_v6, 4  ;;  %v4078_v43 = vrot.slane %v4076_v9, 7  ;;  %v17016_v18 = vsel %vm20145_vm6, %v4212_v39, %v4216_v30  ;;  %vm20150_vm15 = vmmov %vm20141_vm1  ;;  %v13126_v37 = vld [vmem:[%s18974_s0 + $0x2c] sm:$0xf] }
 0x1c4   :  { %v11398_v0 = vcombine.low %v4129_v3, %v4130_v63  ;;  %v3957_v16 = vsel %vm3941_vm9, 65537, %v19331_v11  ;;  %v4220_v31 = vor.u32 %v4218_v52, %v4216_v30  ;;  %vm20146_vm13 = vnez %v20017_v54  ;;  %vm20151_vm12 = vmmov %vm20145_vm6  ;;  %v3878_v24 = vld [vmem:[%s18974_s0 + $0x4c] sm:$0x1]  ;;  %v3877_v30 = vld [vmem:[%s18974_s0 + $0x48] sm:$0xf]  ;;  %s13153_s0 = smov 120  }
 0x1c5   :  { %v4073_v58 = vsel %vm20107_vm8, %v4065_v8, %v4072_v40  ;;  %v4081_v14 = vor.u32 %v4079_v13, %v4078_v43  ;;  %v4085_v7 = vshrl.u32 %v3957_v16, 16  ;;  %vm3653_vm10 = vmpackc.low %vm20146_vm13, %vm20146_vm13  ;;  %v4083_v10 = vrot.slane %v4078_v43, 4 }
 0x1c6   :  { %v4222_v35 = vshll.u32 %v11398_v0, 16  ;;  %vm4114_vm5 = vcmp.ne.s16.totalorder %v4073_v58, 0  ;;  %v4088_v47 = vshll.u32 %v3957_v16, 16  ;;  %v4094_v39 = vshrl.u32 %v16724_v62, 16  ;;  %vm20152_vm11 = vmmov %vm20141_vm1 }
 0x1c7   :  { %v4082_v36 = vsel %vm20107_vm8, %v4074_v5, %v4081_v14  ;;  %v4131_v45 = vsel %vm4114_vm5, %v3874_v12, 0  ;;  %v4087_v34 = vrot.slane %v4085_v7, 7  ;;  %v20149_v48 = vcombine.low %v20147_v22, %v20148_v60  ;;  %vm20153_vm9 = vmmov %vm20145_vm6 }
 0x1c8   :  { %v4224_v55 = vrot.slane %v4222_v35, 1  ;;  %vm4115_vm4 = vcmp.ne.s16.totalorder %v4082_v36, 0  ;;  %v4226_v49 = vshrl.u32 %v11398_v0, 16  ;;  %v4097_v2 = vshll.u32 %v16724_v62, 16  ;;  %vm20154_vm0 = vmmov %vm20141_vm1 }
 0x1c9   :  { %12155 = vmatmul.mubr.msk.bf16.vlgmr.msra.gmra.mrb[0].mxu0 %vm20150_vm15, %v20149_v48  ;;  %v4132_v8 = vsel %vm4115_vm4, %v3875_v33, 0  ;;  %v4090_v29 = vor.u32 %v4088_v47, %v4087_v34  ;;  %v4092_v21 = vrot.slane %v4087_v34, 4  ;;  %v4096_v28 = vrot.slane %v4094_v39, 7  ;;  %vm20159_vm5 = vmmov %vm20154_vm0 }
 0x1ca   :  { %12158 = vmatprep.mubr.msk.bf16.mxu0 %vm20141_vm1, %v11376_v41  ;;  %12171 = vmatpush3.bf16.msra.mxu0 %v16848_v38  ;;  %v3668_v62 = vsel %vm3652_vm3, %v13126_v37, 0  ;;  %v3669_v61 = vsel %vm3653_vm10, %v13127_v20, 0  ;;  %v4225_v41 = vsel %vm20151_vm12, %v4220_v31, %v4224_v55  ;;  %v11399_v38 = vcombine.low %v4131_v45, %v4132_v8  ;;  %vm20158_vm10 = vmmov %vm20154_vm0 }
 0x1cb   :  { %v4091_v25 = vsel %vm20107_vm8, %v4083_v10, %v4090_v29  ;;  %v4099_v52 = vor.u32 %v4097_v2, %v4096_v28  ;;  %v4101_v51 = vrot.slane %v4096_v28, 4  ;;  %v11377_v54 = vcombine.low %v16734_v4, %v3667_v57  ;;  %vm20160_vm3 = vmmov %vm20154_vm0 }
 0x1cc   :  { %v4228_v6 = vor.u32 %v4226_v49, %v4224_v55  ;;  %v4230_v9 = vshll.u32 %v11399_v38, 16  ;;  %vm4116_vm2 = vcmp.ne.s16.totalorder %v4091_v25, 0  ;;  %v11378_v3 = vcombine.low %v3668_v62, %v3669_v61  ;;  %vm20161_vm15 = vmmov %vm20154_vm0 }
 0x1cd   :  { %v4100_v13 = vsel %vm20107_vm8, %v4092_v21, %v4099_v52  ;;  %v4133_v63 = vsel %vm4116_vm2, %v3876_v42, 0  ;;  %vm4118_vm14 = vcmp.ne.s16.totalorder %v4101_v51, 0  ;;  %v4234_v5 = vshrl.u32 %v11399_v38, 16  ;;  %vm20155_vm8 = vmmov %vm20145_vm6 }
 0x1ce   :  { %v4232_v40 = vrot.slane %v4230_v9, 1  ;;  %vm4117_vm7 = vcmp.ne.s16.totalorder %v4100_v13, 0  ;;  %v4135_v43 = vsel %vm4118_vm14, %v3878_v24, 0  ;;  %vm20156_vm6 = vmmov %vm20154_vm0 }
 0x1cf   :  { %v4134_v32 = vsel %vm4117_vm7, %v3877_v30, 0  ;;  %v11401_v0 = vcombine.low %v4135_v43, %v4135_v43  ;;  %vm20157_vm13 = vmmov %vm20155_vm8  ;;  %v13157_v43 = vmov 0.0  }
 0x1d0   :  { %v4233_v4 = vsel %vm20153_vm9, %v4228_v6, %v4232_v40  ;;  %v11400_v57 = vcombine.low %v4133_v63, %v4134_v32  ;;  %v4236_v16 = vor.u32 %v4234_v5, %v4232_v40  ;;  %vm20162_vm4 = vmmov %vm20154_vm0  ;;  %v13155_v5 = vmov 0.0|0.0   ;;  %12564 = vmatprep.subr.bf16.mxu0 %v13157_v43  ;;  %v17186_v32 = vld [vmem:[%s18978_s4] ss:$0 sm:$0xff] }
 0x1d1   :  { %12159 = vmatmul.mubr.msk.bf16.gmra.mrb[4].mxu0 %vm20152_vm11, %v11377_v54  ;;  %v4246_v12 = vshll.u32 %v11401_v0, 16  ;;  %vm20163_vm1 = vmmov %vm20154_vm0  ;;  %12718 = vmatprep.subr.bf16.mxu1 %v13155_v5  ;;  %vm19191_vm11 = vmmov 0   ;;  %vm19190_vm9 = vcmask 64512  }
 0x1d2   :  { %12162 = vmatprep.mubr.msk.bf16.mxu0 %vm20154_vm0, %v11378_v3  ;;  %v4238_v31 = vshll.u32 %v11400_v57, 16  ;;  %v4242_v44 = vshrl.u32 %v11400_v57, 16  ;;  %vm20164_vm12 = vmmov %vm20154_vm0  ;;  %12192 = vmatprep.mubr.msk.f32.mxu1 %vm19191_vm11, %v13157_v43 }
 0x1d3   :  { %v4248_v14 = vrot.slane %v4246_v12, 1  ;;  %vm20165_vm2 = vmmov %vm20154_vm0 }
 0x1d4   :  { %v4240_v58 = vrot.slane %v4238_v31, 1  ;;  %vm20166_vm14 = vmmov %vm20154_vm0 }
 0x1d5   :  { %vm20167_vm7 = vmmov %vm20154_vm0 }
 0x1d6   :  { %v4241_v7 = vsel %vm20155_vm8, %v4236_v16, %v4240_v58  ;;  %v4244_v35 = vor.u32 %v4242_v44, %v4240_v58 }
 0x1d8   :  { %v4249_v33 = vsel %vm20157_vm13, %v4244_v35, %v4248_v14  ;;  %vm20170_vm13 = vmmov %vm20163_vm1 }
 0x1d9   :  { %12163 = vmatmul.mubr.msk.bf16.gmra.mrb[8].mxu0 %vm20156_vm6, %v11379_v26 }
 0x1da   :  { %12166 = vmatprep.mubr.msk.bf16.mxu0 %vm20158_vm10, %v11380_v50  ;;  %vm20171_vm10 = vmmov %vm20163_vm1 }
 0x1e1   :  { %12167 = vmatmul.mubr.msk.bf16.gmra.mrb[12].mxu0 %vm20159_vm5, %v11381_v17 }
 0x1e2   :  { %12172 = vmatprep.mubr.msk.bf16.mxu0 %vm20160_vm3, %v16924_v27  ;;  %vm20172_vm3 = vmmov %vm20163_vm1 }
 0x1e9   :  { %12173 = vmatmul.mubr.msk.bf16.vlgmr.msra.gmra.mrb[0].mxu0 %vm20161_vm15, %v16951_v19  ;;  %vm20173_vm15 = vmmov %vm20163_vm1 }
 0x1ea   :  { %12176 = vmatprep.mubr.msk.bf16.mxu0 %vm20162_vm4, %v16973_v46  ;;  %vm20174_vm4 = vmmov %vm20163_vm1 }
 0x1f1   :  { %12177 = vmatmul.mubr.msk.bf16.gmra.mrb[4].mxu0 %vm20163_vm1, %v17016_v18 }
 0x1f2   :  { %12180 = vmatprep.mubr.msk.bf16.mxu0 %vm20164_vm12, %v4225_v41  ;;  %vm20175_vm12 = vmmov %vm20163_vm1 }
 0x1f9   :  { %12181 = vmatmul.mubr.msk.bf16.gmra.mrb[8].mxu0 %vm20165_vm2, %v4233_v4  ;;  %vm20176_vm2 = vmmov %vm20163_vm1 }
 0x1fa   :  { %12184 = vmatprep.mubr.msk.bf16.mxu0 %vm20166_vm14, %v4241_v7  ;;  %vm20177_vm14 = vmmov %vm20163_vm1 }
 0x201   :  { %12185 = vmatmul.mubr.msk.bf16.gmra.mrb[12].mxu0 %vm20167_vm7, %v4249_v33  ;;  %vm20178_vm7 = vmmov %vm20163_vm1 }
 0x202   :  { %12572 = vmatprep.mubr.msk.bf16.mxu0 %vm19191_vm11, %v13157_v43 }
 0x2bc   :  { %v12174_v59 = vpop.f32.mrb[0].mxu0 }
 0x2bd   :  { %4413 = vrot.lane.b32.xlu1 %v12174_v59, %s13153_s0  ;;  %v4314_v53 = vpop.f32.mrb[1].mxu0 }
 0x2be   :  { %4409 = vrot.lane.b32.xlu0 %v4314_v53, %s13153_s0  ;;  %v12175_v26 = vpop.f32.mrb[2].mxu0 }
 0x2bf   :  { %v4317_v56 = vpop.f32.mrb[3].mxu0 }
 0x2c1   :  { %4415 = vrot.lane.b32.xlu1 %v12175_v26, %s13153_s0 }
 0x2c2   :  { %4411 = vrot.lane.b32.xlu0 %v4317_v56, %s13153_s0 }
 0x2c4   :  { %v12178_v23 = vpop.f32.mrb[4].mxu0 }
 0x2c5   :  { %v4330_v50 = vpop.f32.mrb[5].mxu0 }
 0x2c6   :  { %4417 = vrot.lane.b32.xlu0 %v4330_v50, %s13153_s0  ;;  %v12179_v15 = vpop.f32.mrb[6].mxu0 }
 0x2c7   :  { %v4333_v1 = vpop.f32.mrb[7].mxu0 }
 0x2c8   :  { %4419 = vrot.lane.b32.xlu1 %v4333_v1, %s13153_s0 }
 0x2ca   :  { %4421 = vrot.lane.b32.xlu0 %v12178_v23, %s13153_s0 }
 0x2cc   :  { %4423 = vrot.lane.b32.xlu1 %v12179_v15, %s13153_s0  ;;  %v12182_v17 = vpop.f32.mrb[8].mxu0 }
 0x2cd   :  { %v4346_v27 = vpop.f32.mrb[9].mxu0 }
 0x2ce   :  { %4425 = vrot.lane.b32.xlu0 %v4346_v27, %s13153_s0  ;;  %v12183_v19 = vpop.f32.mrb[10].mxu0 }
 0x2cf   :  { %v4349_v46 = vpop.f32.mrb[11].mxu0 }
 0x2d0   :  { %4427 = vrot.lane.b32.xlu1 %v4349_v46, %s13153_s0 }
 0x2d2   :  { %4429 = vrot.lane.b32.xlu0 %v12182_v17, %s13153_s0 }
 0x2d4   :  { %4431 = vrot.lane.b32.xlu1 %v12183_v19, %s13153_s0  ;;  %v12186_v18 = vpop.f32.mrb[12].mxu0 }
 0x2d5   :  { %v4362_v10 = vpop.f32.mrb[13].mxu0 }
 0x2d6   :  { %4433 = vrot.lane.b32.xlu0 %v4362_v10, %s13153_s0  ;;  %v12187_v47 = vpop.f32.mrb[14].mxu0 }
 0x2d7   :  { %v4365_v36 = vpop.f32.mrb[15].mxu0 }
 0x2d8   :  { %4435 = vrot.lane.b32.xlu1 %v4365_v36, %s13153_s0 }
 0x2da   :  { %4437 = vrot.lane.b32.xlu0 %v12186_v18, %s13153_s0 }
 0x2dc   :  { %4439 = vrot.lane.b32.xlu1 %v12187_v47, %s13153_s0 }
 0x32f   :  { %v4414_v45 = vpop.permute.xlu1 %4413 }
 0x330   :  { %v4410_v34 = vpop.permute.xlu0 %4409  ;;  %v4459_v60 = vmax.f32 %v12174_v59, %v4414_v45 }
 0x331   :  { %v4457_v39 = vmax.f32 %v4314_v53, %v4410_v34 }
 0x333   :  { %4489 = vrot.lane.b32.xlu0 %v4457_v39, %s13154_s14  ;;  %v4416_v55 = vpop.permute.xlu1 %4415 }
 0x334   :  { %v4412_v22 = vpop.permute.xlu0 %4411  ;;  %v17125_v2 = vmax.f32 %v12175_v26, %v4416_v55 }
 0x335   :  { %v4458_v48 = vmax.f32 %v4317_v56, %v4412_v22 }
 0x337   :  { %4493 = vrot.lane.b32.xlu0 %v4459_v60, %s13154_s14  ;;  %4491 = vrot.lane.b32.xlu1 %v4458_v48, %s13154_s14 }
 0x338   :  { %v4418_v49 = vpop.permute.xlu0 %4417 }
 0x339   :  { %v17127_v8 = vmax.f32 %v4330_v50, %v4418_v49 }
 0x33a   :  { %v4420_v29 = vpop.permute.xlu1 %4419 }
 0x33b   :  { %4497 = vrot.lane.b32.xlu0 %v17127_v8, %s13154_s14  ;;  %4495 = vrot.lane.b32.xlu1 %v17125_v2, %s13154_s14  ;;  %v17133_v28 = vmax.f32 %v4333_v1, %v4420_v29 }
 0x33c   :  { %v4422_v21 = vpop.permute.xlu0 %4421 }
 0x33d   :  { %v17135_v37 = vmax.f32 %v12178_v23, %v4422_v21 }
 0x33e   :  { %v4424_v62 = vpop.permute.xlu1 %4423 }
 0x33f   :  { %4501 = vrot.lane.b32.xlu0 %v17135_v37, %s13154_s14  ;;  %4499 = vrot.lane.b32.xlu1 %v17133_v28, %s13154_s14  ;;  %v17141_v61 = vmax.f32 %v12179_v15, %v4424_v62 }
 0x340   :  { %v4426_v20 = vpop.permute.xlu0 %4425 }
 0x341   :  { %v17143_v41 = vmax.f32 %v4346_v27, %v4426_v20 }
 0x342   :  { %v4428_v38 = vpop.permute.xlu1 %4427 }
 0x343   :  { %4505 = vrot.lane.b32.xlu0 %v17143_v41, %s13154_s14  ;;  %4503 = vrot.lane.b32.xlu1 %v17141_v61, %s13154_s14  ;;  %v17149_v25 = vmax.f32 %v4349_v46, %v4428_v38 }
 0x344   :  { %v4430_v42 = vpop.permute.xlu0 %4429 }
 0x345   :  { %v17151_v52 = vmax.f32 %v12182_v17, %v4430_v42 }
 0x346   :  { %v4432_v24 = vpop.permute.xlu1 %4431 }
 0x347   :  { %4509 = vrot.lane.b32.xlu0 %v17151_v52, %s13154_s14  ;;  %4507 = vrot.lane.b32.xlu1 %v17149_v25, %s13154_s14  ;;  %v17157_v54 = vmax.f32 %v12183_v19, %v4432_v24 }
 0x348   :  { %v4434_v51 = vpop.permute.xlu0 %4433 }
 0x349   :  { %v17159_v6 = vmax.f32 %v4362_v10, %v4434_v51 }
 0x34a   :  { %v4436_v9 = vpop.permute.xlu1 %4435 }
 0x34b   :  { %4513 = vrot.lane.b32.xlu0 %v17159_v6, %s13154_s14  ;;  %4511 = vrot.lane.b32.xlu1 %v17157_v54, %s13154_s14  ;;  %v17165_v3 = vmax.f32 %v4365_v36, %v4436_v9 }
 0x34c   :  { %v4438_v30 = vpop.permute.xlu0 %4437 }
 0x34d   :  { %v17167_v13 = vmax.f32 %v12186_v18, %v4438_v30 }
 0x34e   :  { %v4440_v63 = vpop.permute.xlu1 %4439 }
 0x34f   :  { %4517 = vrot.lane.b32.xlu0 %v17167_v13, %s13154_s14  ;;  %4515 = vrot.lane.b32.xlu1 %v17165_v3, %s13154_s14  ;;  %v17173_v40 = vmax.f32 %v12187_v47, %v4440_v63 }
 0x353   :  { %4519 = vrot.lane.b32.xlu1 %v17173_v40, %s13154_s14 }
 0x3a5   :  { %v4490_v0 = vpop.permute.xlu0 %4489 }
 0x3a6   :  { %v4537_v4 = vmax.f32 %v4457_v39, %v4490_v0 }
 0x3a8   :  { %v17189_v57 = vadd.f32 %v17186_v32, %v4537_v4 }
 0x3a9   :  { %v4494_v12 = vpop.permute.xlu0 %4493  ;;  %v4492_v16 = vpop.permute.xlu1 %4491 }
 0x3aa   :  { %v4539_v31 = vmax.f32 %v4459_v60, %v4494_v12  ;;  %v4538_v44 = vmax.f32 %v4458_v48, %v4492_v16  ;;  %v4615_v58 = vmul.f32 %v17189_v57, %v17189_v57  ;;  %v4577_v59 = vsel %vm19190_vm9, %v17189_v57, 0.0 }
 0x3ac   :  { %v17194_v14 = vadd.f32 %v17186_v32, %v4539_v31  ;;  %v17197_v7 = vadd.f32 %v17186_v32, %v4538_v44  ;;  %v4631_v1 = vsel %vm19190_vm9, %v4615_v58, 0.0 }
 0x3ad   :  { %v4498_v35 = vpop.permute.xlu0 %4497  ;;  %v4496_v33 = vpop.permute.xlu1 %4495 }
 0x3ae   :  { %v4617_v53 = vmul.f32 %v17194_v14, %v17194_v14  ;;  %v4578_v26 = vsel %vm19190_vm9, %v17197_v7, 0.0  ;;  %v4616_v56 = vmul.f32 %v17197_v7, %v17197_v7  ;;  %v4541_v50 = vmax.f32 %v17127_v8, %v4498_v35 }
 0x3af   :  { %v4579_v23 = vadd.f32 %v4578_v26, %v4577_v59  ;;  %v4540_v15 = vmax.f32 %v17125_v2, %v4496_v33  ;;  %v4580_v17 = vsel %vm19190_vm9, %v17194_v14, 0.0 }
 0x3b0   :  { %v4632_v27 = vsel %vm19190_vm9, %v4616_v56, 0.0  ;;  %v17214_v46 = vadd.f32 %v17186_v32, %v4541_v50  ;;  %v4634_v45 = vsel %vm19190_vm9, %v4617_v53, 0.0 }
 0x3b1   :  { %v4633_v19 = vadd.f32 %v4632_v27, %v4631_v1  ;;  %v4581_v18 = vadd.f32 %v4580_v17, %v4579_v23  ;;  %v17217_v10 = vadd.f32 %v17186_v32, %v4540_v15  ;;  %v4502_v47 = vpop.permute.xlu0 %4501  ;;  %v4500_v36 = vpop.permute.xlu1 %4499 }
 0x3b2   :  { %v4543_v34 = vmax.f32 %v17135_v37, %v4502_v47  ;;  %v4542_v39 = vmax.f32 %v17133_v28, %v4500_v36  ;;  %v4619_v22 = vmul.f32 %v17214_v46, %v17214_v46  ;;  %v4584_v29 = vsel %vm19190_vm9, %v17214_v46, 0.0 }
 0x3b3   :  { %v4635_v60 = vadd.f32 %v4634_v45, %v4633_v19  ;;  %v4582_v48 = vsel %vm19190_vm9, %v17217_v10, 0.0  ;;  %v4618_v49 = vmul.f32 %v17217_v10, %v17217_v10 }
 0x3b4   :  { %v4583_v55 = vadd.f32 %v4582_v48, %v4581_v18  ;;  %v17229_v2 = vadd.f32 %v17186_v32, %v4543_v34  ;;  %v17232_v8 = vadd.f32 %v17186_v32, %v4542_v39  ;;  %v4638_v9 = vsel %vm19190_vm9, %v4619_v22, 0.0 }
 0x3b5   :  { %v4506_v21 = vpop.permute.xlu0 %4505  ;;  %v4504_v28 = vpop.permute.xlu1 %4503  ;;  %v4636_v37 = vsel %vm19190_vm9, %v4618_v49, 0.0 }
 0x3b6   :  { %v4621_v62 = vmul.f32 %v17229_v2, %v17229_v2  ;;  %v4585_v20 = vadd.f32 %v4584_v29, %v4583_v55  ;;  %v4637_v38 = vadd.f32 %v4636_v37, %v4635_v60  ;;  %v4586_v42 = vsel %vm19190_vm9, %v17232_v8, 0.0 }
 0x3b7   :  { %v4620_v24 = vmul.f32 %v17232_v8, %v17232_v8  ;;  %v4545_v51 = vmax.f32 %v17143_v41, %v4506_v21  ;;  %v4544_v63 = vmax.f32 %v17141_v61, %v4504_v28  ;;  %v4588_v0 = vsel %vm19190_vm9, %v17229_v2, 0.0 }
 0x3b8   :  { %v4587_v30 = vadd.f32 %v4586_v42, %v4585_v20  ;;  %v4639_v4 = vadd.f32 %v4638_v9, %v4637_v38  ;;  %v4642_v61 = vsel %vm19190_vm9, %v4621_v62, 0.0 }
 0x3b9   :  { %v4640_v12 = vsel %vm19190_vm9, %v4620_v24, 0.0  ;;  %v17250_v16 = vadd.f32 %v17186_v32, %v4545_v51  ;;  %v4510_v31 = vpop.permute.xlu0 %4509  ;;  %v4508_v44 = vpop.permute.xlu1 %4507  ;;  %v17253_v35 = vadd.f32 %v17186_v32, %v4544_v63 }
 0x3ba   :  { %v4589_v58 = vadd.f32 %v4588_v0, %v4587_v30  ;;  %v4547_v41 = vmax.f32 %v17151_v52, %v4510_v31  ;;  %v4546_v33 = vmax.f32 %v17149_v25, %v4508_v44  ;;  %v4641_v59 = vadd.f32 %v4640_v12, %v4639_v4 }
 0x3bb   :  { %v4623_v53 = vmul.f32 %v17250_v16, %v17250_v16  ;;  %v4590_v26 = vsel %vm19190_vm9, %v17253_v35, 0.0  ;;  %v4622_v56 = vmul.f32 %v17253_v35, %v17253_v35  ;;  %v4592_v17 = vsel %vm19190_vm9, %v17250_v16, 0.0 }
 0x3bc   :  { %v17265_v23 = vadd.f32 %v17186_v32, %v4547_v41  ;;  %v17268_v50 = vadd.f32 %v17186_v32, %v4546_v33  ;;  %v4643_v52 = vadd.f32 %v4642_v61, %v4641_v59  ;;  %v4591_v25 = vadd.f32 %v4590_v26, %v4589_v58 }
 0x3bd   :  { %v4514_v15 = vpop.permute.xlu0 %4513  ;;  %v4512_v1 = vpop.permute.xlu1 %4511  ;;  %v4644_v27 = vsel %vm19190_vm9, %v4622_v56, 0.0  ;;  %v4646_v39 = vsel %vm19190_vm9, %v4623_v53, 0.0 }
 0x3be   :  { %v4625_v19 = vmul.f32 %v17265_v23, %v17265_v23  ;;  %v4594_v18 = vsel %vm19190_vm9, %v17268_v50, 0.0  ;;  %v4645_v47 = vadd.f32 %v4644_v27, %v4643_v52  ;;  %v4593_v36 = vadd.f32 %v4592_v17, %v4591_v25 }
 0x3bf   :  { %v4624_v45 = vmul.f32 %v17268_v50, %v17268_v50  ;;  %v4549_v34 = vmax.f32 %v17159_v6, %v4514_v15  ;;  %v4548_v22 = vmax.f32 %v17157_v54, %v4512_v1  ;;  %v4596_v28 = vsel %vm19190_vm9, %v17265_v23, 0.0 }
 0x3c0   :  { %v4647_v60 = vadd.f32 %v4646_v39, %v4645_v47  ;;  %v4595_v48 = vadd.f32 %v4594_v18, %v4593_v36  ;;  %v4650_v54 = vsel %vm19190_vm9, %v4625_v19, 0.0 }
 0x3c1   :  { %v4648_v55 = vsel %vm19190_vm9, %v4624_v45, 0.0  ;;  %v17284_v49 = vadd.f32 %v17186_v32, %v4549_v34  ;;  %v4518_v29 = vpop.permute.xlu0 %4517  ;;  %v4516_v21 = vpop.permute.xlu1 %4515  ;;  %v17289_v37 = vadd.f32 %v17186_v32, %v4548_v22 }
 0x3c2   :  { %v4551_v6 = vmax.f32 %v17167_v13, %v4518_v29  ;;  %v4550_v62 = vmax.f32 %v17165_v3, %v4516_v21  ;;  %v4649_v20 = vadd.f32 %v4648_v55, %v4647_v60  ;;  %v4597_v42 = vadd.f32 %v4596_v28, %v4595_v48 }
 0x3c3   :  { %v4627_v38 = vmul.f32 %v17284_v49, %v17284_v49  ;;  %v4598_v24 = vsel %vm19190_vm9, %v17289_v37, 0.0  ;;  %v4626_v51 = vmul.f32 %v17289_v37, %v17289_v37  ;;  %v4600_v0 = vsel %vm19190_vm9, %v17284_v49, 0.0 }
 0x3c4   :  { %v17301_v9 = vadd.f32 %v17186_v32, %v4551_v6  ;;  %v17304_v13 = vadd.f32 %v17186_v32, %v4550_v62  ;;  %v4651_v3 = vadd.f32 %v4650_v54, %v4649_v20  ;;  %v4599_v30 = vadd.f32 %v4598_v24, %v4597_v42 }
 0x3c5   :  { %v4520_v63 = vpop.permute.xlu1 %4519  ;;  %v4652_v4 = vsel %vm19190_vm9, %v4626_v51, 0.0  ;;  %v4654_v33 = vsel %vm19190_vm9, %v4627_v38, 0.0 }
 0x3c6   :  { %v4602_v12 = vsel %vm19190_vm9, %v17304_v13, 0.0  ;;  %v4653_v31 = vadd.f32 %v4652_v4, %v4651_v3  ;;  %v4601_v44 = vadd.f32 %v4600_v0, %v4599_v30  ;;  %v4628_v58 = vmul.f32 %v17304_v13, %v17304_v13 }
 0x3c7   :  { %v4552_v41 = vmax.f32 %v17173_v40, %v4520_v63  ;;  %v4629_v61 = vmul.f32 %v17301_v9, %v17301_v9  ;;  %v4604_v52 = vsel %vm19190_vm9, %v17301_v9, 0.0 }
 0x3c8   :  { %v4655_v59 = vadd.f32 %v4654_v33, %v4653_v31  ;;  %v4603_v53 = vadd.f32 %v4602_v12, %v4601_v44  ;;  %v4656_v26 = vsel %vm19190_vm9, %v4628_v58, 0.0  ;;  %v20168_v12 = vld [vmem:[#allocation8_spill] sm:$0xff]  ;;  %v20169_v44 = vlaneseq }
 0x3c9   :  { %v4575_v56 = vadd.f32 %v17186_v32, %v4552_v41  ;;  %v4658_v40 = vsel %vm19190_vm9, %v4629_v61, 0.0  ;;  %v17348_v31 = vmul.u32 2, %v20168_v12 }
 0x3ca   :  { %v4657_v25 = vadd.f32 %v4656_v26, %v4655_v59  ;;  %v4605_v15 = vadd.f32 %v4604_v52, %v4603_v53  ;;  %v17351_v58 = vand.u32 127, %v20169_v44 }
 0x3cb   :  { %v4606_v1 = vsel %vm19190_vm9, %v4575_v56, 0.0  ;;  %v4630_v17 = vmul.f32 %v4575_v56, %v4575_v56  ;;  %v4791_v41 = vadd.s32 1, %v17348_v31  ;;  %v17361_v61 = vadd.s32 8, %v17348_v31 }
 0x3cc   :  { %v4659_v27 = vadd.f32 %v4658_v40, %v4657_v25  ;;  %v4607_v19 = vadd.f32 %v4606_v1, %v4605_v15  ;;  %vm4788_vm0 = vcmp.eq.s32.totalorder %v17351_v58, %v17348_v31  ;;  %v17377_v25 = vld [vmem:[%s18978_s4 + $0x1] ss:$0 sm:$0xff] }
 0x3cd   :  { %v4660_v18 = vsel %vm19190_vm9, %v4630_v17, 0.0  ;;  %vm4792_vm8 = vcmp.eq.s32.totalorder %v17351_v58, %v4791_v41  ;;  %v17358_v33 = vsel %vm4788_vm0, 1.0, %v13157_v43  ;;  %v17380_v15 = vadd.s32 1, %v17361_v61  ;;  %vm20179_vm0 = vmmov %vm20163_vm1 }
 0x3ce   :  { %v4608_v47 = vrot.slane %v4607_v19, 4  ;;  %v4661_v36 = vadd.f32 %v4660_v18, %v4659_v27  ;;  %v17368_v26 = vsel %vm4792_vm8, 1.0, %v13157_v43  ;;  %vm4796_vm6 = vcmp.eq.s32.totalorder %v17351_v58, %v17361_v61  ;;  %vm20180_vm8 = vmmov %vm20179_vm0 }
 0x3cf   :  { %vm4800_vm5 = vcmp.eq.s32.totalorder %v17351_v58, %v17380_v15 }
 0x3d0   :  { %v4609_v45 = vadd.f32 %v4608_v47, %v4607_v19  ;;  %v4662_v34 = vrot.slane %v4661_v36, 4  ;;  %v17395_v19 = vld [vmem:[%s18978_s4 + $0x2] ss:$0 sm:$0xff]  ;;  %s13158_s4 = smov 8  }
 0x3d2   :  { %v4610_v39 = vrot.slane %v4609_v45, 2  ;;  %v4663_v32 = vadd.f32 %v4662_v34, %v4661_v36 }
 0x3d4   :  { %v4611_v22 = vadd.f32 %v4610_v39, %v4609_v45  ;;  %v4664_v60 = vrot.slane %v4663_v32, 2 }
 0x3d6   :  { %v4612_v48 = vrot.slane %v4611_v22, 1  ;;  %v4665_v55 = vadd.f32 %v4664_v60, %v4663_v32 }
 0x3d8   :  { %v4613_v29 = vadd.f32 %v4612_v48, %v4611_v22  ;;  %v4666_v21 = vrot.slane %v4665_v55, 1 }
 0x3da   :  { %v17324_v28 = vmul.f32 0.0078125, %v4613_v29  ;;  %v4667_v6 = vadd.f32 %v4666_v21, %v4665_v55 }
 0x3dc   :  { %v4668_v62 = vmul.f32 0.0078125, %v4667_v6  ;;  %v4669_v54 = vmul.f32 %v17324_v28, %v17324_v28  ;;  %v4686_v20 = vsub.f32 %v4575_v56, %v17324_v28  ;;  %v4677_v42 = vsub.f32 %v17229_v2, %v17324_v28 }
 0x3dd   :  { %v4678_v24 = vsub.f32 %v17253_v35, %v17324_v28  ;;  %v4679_v51 = vsub.f32 %v17250_v16, %v17324_v28  ;;  %v4680_v3 = vsub.f32 %v17268_v50, %v17324_v28  ;;  %v4681_v30 = vsub.f32 %v17265_v23, %v17324_v28 }
 0x3de   :  { %v4670_v38 = vsub.f32 %v4668_v62, %v4669_v54  ;;  %v4682_v63 = vsub.f32 %v17289_v37, %v17324_v28  ;;  %v4683_v4 = vsub.f32 %v17284_v49, %v17324_v28  ;;  %v4684_v2 = vsub.f32 %v17304_v13, %v17324_v28 }
 0x3df   :  { %v4685_v35 = vsub.f32 %v17301_v9, %v17324_v28  ;;  %v4671_v59 = vsub.f32 %v17189_v57, %v17324_v28  ;;  %v4672_v53 = vsub.f32 %v17197_v7, %v17324_v28  ;;  %v4673_v56 = vsub.f32 %v17194_v14, %v17324_v28 }
 0x3e0   :  { %v4687_v0 = vadd.f32 1e-05, %v4670_v38  ;;  %v4674_v57 = vsub.f32 %v17217_v10, %v17324_v28  ;;  %v4675_v7 = vsub.f32 %v17214_v46, %v17324_v28  ;;  %v4676_v1 = vsub.f32 %v17232_v8, %v17324_v28 }
 0x3e2   :  { %13118 = vrsqrt.f32 %v4687_v0 }
 0x3ec   :  { %v17372_v52 = vpop.eup %13118 }
 0x3ed   :  { %v4704_v14 = vmul.f32 %v17372_v52, %v4686_v20  ;;  %v4689_v17 = vmul.f32 %v17372_v52, %v4671_v59  ;;  %v4690_v40 = vmul.f32 %v17372_v52, %v4672_v53  ;;  %v4691_v27 = vmul.f32 %v17372_v52, %v4673_v56 }
 0x3ee   :  { %v4692_v10 = vmul.f32 %v17372_v52, %v4674_v57  ;;  %v4693_v46 = vmul.f32 %v17372_v52, %v4675_v7  ;;  %v4694_v18 = vmul.f32 %v17372_v52, %v4676_v1  ;;  %v4695_v8 = vmul.f32 %v17372_v52, %v4677_v42 }
 0x3ef   :  { %v4728_v47 = vmul.f32 %v17377_v25, %v4704_v14  ;;  %v4713_v36 = vmul.f32 %v17377_v25, %v4689_v17  ;;  %v4714_v45 = vmul.f32 %v17377_v25, %v4690_v40  ;;  %v4715_v34 = vmul.f32 %v17377_v25, %v4691_v27 }
 0x3f0   :  { %v4716_v39 = vmul.f32 %v17377_v25, %v4692_v10  ;;  %v4717_v32 = vmul.f32 %v17377_v25, %v4693_v46  ;;  %v4718_v22 = vmul.f32 %v17377_v25, %v4694_v18  ;;  %v4696_v60 = vmul.f32 %v17372_v52, %v4678_v24 }
 0x3f1   :  { %v4737_v48 = vadd.f32 %v17395_v19, %v4713_v36  ;;  %v4738_v55 = vadd.f32 %v17395_v19, %v4714_v45  ;;  %v4739_v29 = vadd.f32 %v17395_v19, %v4715_v34  ;;  %v4719_v21 = vmul.f32 %v17377_v25, %v4695_v8 }
 0x3f2   :  { %v4740_v6 = vadd.f32 %v17395_v19, %v4716_v39  ;;  %v4741_v62 = vadd.f32 %v17395_v19, %v4717_v32  ;;  %v4742_v54 = vadd.f32 %v17395_v19, %v4718_v22  ;;  %v4720_v20 = vmul.f32 %v17377_v25, %v4696_v60 }
 0x3f3   :  { %v4753_v38 = vmul.f32 0.2, %v4737_v48  ;;  %v4754_v42 = vmul.f32 0.2, %v4738_v55  ;;  %v4755_v0 = vmul.f32 0.2, %v4739_v29  ;;  %v4743_v24 = vadd.f32 %v17395_v19, %v4719_v21 }
 0x3f4   :  { %v4756_v44 = vmul.f32 0.2, %v4740_v6  ;;  %v4757_v41 = vmul.f32 0.2, %v4741_v62  ;;  %v4758_v59 = vmul.f32 0.2, %v4742_v54  ;;  %v4744_v53 = vadd.f32 %v17395_v19, %v4720_v20 }
 0x3f5   :  { %v4769_v56 = vmax.f32 %v4737_v48, %v4753_v38  ;;  %v4770_v57 = vmax.f32 %v4738_v55, %v4754_v42  ;;  %v4771_v7 = vmax.f32 %v4739_v29, %v4755_v0  ;;  %v4759_v1 = vmul.f32 0.2, %v4743_v24 }
 0x3f6   :  { %v4772_v14 = vmax.f32 %v4740_v6, %v4756_v44  ;;  %v4773_v17 = vmax.f32 %v4741_v62, %v4757_v41  ;;  %v4774_v40 = vmax.f32 %v4742_v54, %v4758_v59  ;;  %v4760_v27 = vmul.f32 0.2, %v4744_v53 }
 0x3f7   :  { %v12719_v10 = vpack.c.bf16 %v4770_v57, %v4769_v56  ;;  %v4775_v46 = vmax.f32 %v4743_v24, %v4759_v1  ;;  %v4697_v18 = vmul.f32 %v17372_v52, %v4679_v51  ;;  %v4698_v8 = vmul.f32 %v17372_v52, %v4680_v3 }
 0x3f8   :  { %v17429_v36 = vpack.c.bf16 %v4772_v14, %v4771_v7  ;;  %v17431_v45 = vpack.c.bf16 %v4774_v40, %v4773_v17  ;;  %v4776_v34 = vmax.f32 %v4744_v53, %v4760_v27  ;;  %v4699_v39 = vmul.f32 %v17372_v52, %v4681_v30 }
 0x3f9   :  { %12720 = vmatpush3.bf16.msra.mxu1 %v12719_v10  ;;  %v4721_v16 = vmul.f32 %v17377_v25, %v4697_v18  ;;  %v4722_v51 = vmul.f32 %v17377_v25, %v4698_v8  ;;  %v4700_v50 = vmul.f32 %v17372_v52, %v4682_v63  ;;  %v4701_v3 = vmul.f32 %v17372_v52, %v4683_v4 }
 0x3fa   :  { %12721 = vmatprep.subr.bf16.mxu1 %v13155_v5  ;;  %v17448_v23 = vpack.c.bf16 %v4776_v34, %v4775_v46  ;;  %v4723_v30 = vmul.f32 %v17377_v25, %v4699_v39  ;;  %v4702_v32 = vmul.f32 %v17372_v52, %v4684_v2  ;;  %v4703_v37 = vmul.f32 %v17372_v52, %v4685_v35 }
 0x3fb   :  { %v4745_v49 = vadd.f32 %v17395_v19, %v4721_v16  ;;  %v4746_v63 = vadd.f32 %v17395_v19, %v4722_v51  ;;  %v4724_v4 = vmul.f32 %v17377_v25, %v4700_v50  ;;  %v4725_v22 = vmul.f32 %v17377_v25, %v4701_v3 }
 0x3fc   :  { %12193 = vmatmul.mubr.msk.f32.vlgmr.msra.gmra.mrb[0].mxu1 %vm20170_vm13, %v17358_v33  ;;  %v4747_v13 = vadd.f32 %v17395_v19, %v4723_v30  ;;  %v4726_v2 = vmul.f32 %v17377_v25, %v4702_v32  ;;  %v4727_v60 = vmul.f32 %v17377_v25, %v4703_v37  ;;  %v4752_v9 = vadd.f32 %v17395_v19, %v4728_v47  ;;  %vm20182_vm13 = vmmov %vm20179_vm0 }
 0x3fd   :  { %12723 = vmatpush3.bf16.msra.mxu1 %v12719_v10  ;;  %12199 = vmatprep.mubr.msk.f32.mxu1 %vm19191_vm11, %v13157_v43  ;;  %v4761_v28 = vmul.f32 0.2, %v4745_v49  ;;  %v4762_v35 = vmul.f32 0.2, %v4746_v63  ;;  %v4748_v52 = vadd.f32 %v17395_v19, %v4724_v4  ;;  %v4749_v48 = vadd.f32 %v17395_v19, %v4725_v22 }
 0x3fe   :  { %12724 = vmatprep.subr.bf16.mxu1 %v13155_v5  ;;  %v4763_v55 = vmul.f32 0.2, %v4747_v13  ;;  %v4750_v29 = vadd.f32 %v17395_v19, %v4726_v2  ;;  %v4751_v21 = vadd.f32 %v17395_v19, %v4727_v60  ;;  %v4768_v25 = vmul.f32 0.2, %v4752_v9  ;;  %v20200_v60 = vld [vmem:[#allocation9_spill] sm:$0xff] }
 0x3ff   :  { %v4777_v6 = vmax.f32 %v4745_v49, %v4761_v28  ;;  %v4778_v47 = vmax.f32 %v4746_v63, %v4762_v35  ;;  %v4764_v62 = vmul.f32 0.2, %v4748_v52  ;;  %v4765_v54 = vmul.f32 0.2, %v4749_v48 }
 0x400   :  { %12200 = vmatmul.mubr.msk.f32.vlgmr.msra.gmra.mrb[2].mxu1 %vm20171_vm10, %v17368_v26  ;;  %v4779_v20 = vmax.f32 %v4747_v13, %v4763_v55  ;;  %v4766_v38 = vmul.f32 0.2, %v4750_v29  ;;  %v4767_v42 = vmul.f32 0.2, %v4751_v21  ;;  %v4784_v0 = vmax.f32 %v4752_v9, %v4768_v25  ;;  %vm20183_vm10 = vmmov %vm20179_vm0 }
 0x401   :  { %12726 = vmatpush3.bf16.msra.mxu1 %v12719_v10  ;;  %12206 = vmatprep.mubr.msk.f32.mxu1 %vm19191_vm11, %v13157_v43  ;;  %v17484_v19 = vsel %vm4796_vm6, 1.0, %v13157_v43  ;;  %v17486_v24 = vpack.c.bf16 %v4778_v47, %v4777_v6  ;;  %v4780_v44 = vmax.f32 %v4748_v52, %v4764_v62  ;;  %v4781_v41 = vmax.f32 %v4749_v48, %v4765_v54  ;;  %vm20181_vm6 = vmmov %vm20179_vm0 }
 0x402   :  { %12727 = vmatprep.subr.bf16.mxu1 %v13155_v5  ;;  %v4782_v59 = vmax.f32 %v4750_v29, %v4766_v38  ;;  %v4783_v53 = vmax.f32 %v4751_v21, %v4767_v42  ;;  %v17502_v7 = vsel %vm4800_vm5, 1.0, %v13157_v43  ;;  %vm20184_vm5 = vmmov %vm20179_vm0  ;;  %v7271_v2 = vshra.s32 %v20168_v12, 2 }
 0x403   :  { %v17491_v56 = vpack.c.bf16 %v4780_v44, %v4779_v20  ;;  %v7272_v9 = vshra.s32 %v20200_v60, 2  ;;  %v7267_v62 = vand.u32 3, %v20168_v12  ;;  %v7268_v20 = vand.u32 3, %v20200_v60 }
 0x404   :  { %12207 = vmatmul.mubr.msk.f32.vlgmr.msra.gmra.mrb[4].mxu1 %vm20172_vm3, %v17484_v19  ;;  %v17495_v57 = vpack.c.bf16 %v4782_v59, %v4781_v41  ;;  %v17497_v61 = vpack.c.bf16 %v4784_v0, %v4783_v53  ;;  %vm20185_vm3 = vmmov %vm20179_vm0  ;;  %v17683_v55 = vand.u32 3, %v7271_v2 }
 0x405   :  { %12729 = vmatpush3.bf16.msra.mxu1 %v12719_v10  ;;  %12213 = vmatprep.mubr.msk.f32.mxu1 %vm19191_vm11, %v13157_v43  ;;  %v17685_v29 = vand.u32 3, %v7272_v9  ;;  %v17695_v44 = vadd.s32 1, %v7268_v20 }
 0x406   :  { %12730 = vmatprep.subr.bf16.mxu1 %v13155_v5  ;;  %v8166_v54 = vadd.s32 1, %v17683_v55 }
 0x407   :  { %v8167_v38 = vadd.s32 1, %v17685_v29 }
 0x408   :  { %12214 = vmatmul.mubr.msk.f32.vlgmr.msra.gmra.mrb[6].mxu1 %vm20173_vm15, %v17502_v7  ;;  %vm20186_vm15 = vmmov %vm20179_vm0 }
 0x409   :  { %12732 = vmatpush3.bf16.msra.mxu1 %v17429_v36  ;;  %12220 = vmatprep.mubr.msk.f32.mxu1 %vm19191_vm11, %v13157_v43 }
 0x40a   :  { %12733 = vmatprep.subr.bf16.mxu1 %v13155_v5 }
 0x40c   :  { %12221 = vmatmul.mubr.msk.f32.vlgmr.msra.gmra.mrb[8].mxu1 %vm20174_vm4, %v17358_v33  ;;  %vm20187_vm4 = vmmov %vm20179_vm0 }
 0x40d   :  { %12735 = vmatpush3.bf16.msra.mxu1 %v17429_v36  ;;  %12227 = vmatprep.mubr.msk.f32.mxu1 %vm19191_vm11, %v13157_v43 }
 0x40e   :  { %12736 = vmatprep.subr.bf16.mxu1 %v13155_v5 }
 0x410   :  { %12228 = vmatmul.mubr.msk.f32.vlgmr.msra.gmra.mrb[10].mxu1 %vm20163_vm1, %v17368_v26  ;;  %vm20188_vm1 = vmmov %vm20179_vm0 }
 0x411   :  { %12738 = vmatpush3.bf16.msra.mxu1 %v17429_v36  ;;  %12234 = vmatprep.mubr.msk.f32.mxu1 %vm19191_vm11, %v13157_v43 }
 0x412   :  { %12739 = vmatprep.subr.bf16.mxu1 %v13155_v5 }
 0x414   :  { %12235 = vmatmul.mubr.msk.f32.vlgmr.msra.gmra.mrb[12].mxu1 %vm20175_vm12, %v17484_v19  ;;  %vm20189_vm12 = vmmov %vm20179_vm0 }
 0x415   :  { %12741 = vmatpush3.bf16.msra.mxu1 %v17429_v36  ;;  %12241 = vmatprep.mubr.msk.f32.mxu1 %vm19191_vm11, %v13157_v43 }
 0x416   :  { %12742 = vmatprep.subr.bf16.mxu1 %v13155_v5 }
 0x418   :  { %12242 = vmatmul.mubr.msk.f32.vlgmr.msra.gmra.mrb[14].mxu1 %vm20176_vm2, %v17502_v7  ;;  %vm20190_vm2 = vmmov %vm20179_vm0 }
 0x419   :  { %12744 = vmatpush3.bf16.msra.mxu1 %v17431_v45  ;;  %12248 = vmatprep.mubr.msk.f32.mxu1 %vm19191_vm11, %v13157_v43 }
 0x41a   :  { %12745 = vmatprep.subr.bf16.mxu1 %v13155_v5 }
 0x41c   :  { %12249 = vmatmul.mubr.msk.f32.vlgmr.msra.gmra.mrb[16].mxu1 %vm20177_vm14, %v17358_v33  ;;  %vm20191_vm14 = vmmov %vm20179_vm0 }
 0x41d   :  { %12747 = vmatpush3.bf16.msra.mxu1 %v17431_v45  ;;  %12255 = vmatprep.mubr.msk.f32.mxu1 %vm19191_vm11, %v13157_v43 }
 0x41e   :  { %12748 = vmatprep.subr.bf16.mxu1 %v13155_v5 }
 0x420   :  { %12256 = vmatmul.mubr.msk.f32.vlgmr.msra.gmra.mrb[18].mxu1 %vm20178_vm7, %v17368_v26  ;;  %vm20192_vm7 = vmmov %vm20179_vm0 }
 0x421   :  { %12750 = vmatpush3.bf16.msra.mxu1 %v17431_v45  ;;  %12262 = vmatprep.mubr.msk.f32.mxu1 %vm19191_vm11, %v13157_v43 }
 0x422   :  { %12751 = vmatprep.subr.bf16.mxu1 %v13155_v5 }
 0x424   :  { %12263 = vmatmul.mubr.msk.f32.vlgmr.msra.gmra.mrb[20].mxu1 %vm20179_vm0, %v17484_v19 }
 0x425   :  { %12753 = vmatpush3.bf16.msra.mxu1 %v17431_v45  ;;  %12269 = vmatprep.mubr.msk.f32.mxu1 %vm19191_vm11, %v13157_v43 }
 0x426   :  { %12754 = vmatprep.subr.bf16.mxu1 %v13155_v5 }
 0x428   :  { %12270 = vmatmul.mubr.msk.f32.vlgmr.msra.gmra.mrb[22].mxu1 %vm20180_vm8, %v17502_v7  ;;  %vm20193_vm8 = vmmov %vm20179_vm0 }
 0x429   :  { %12756 = vmatpush3.bf16.msra.mxu1 %v17448_v23  ;;  %12276 = vmatprep.mubr.msk.f32.mxu1 %vm19191_vm11, %v13157_v43 }
 0x42a   :  { %12757 = vmatprep.subr.bf16.mxu1 %v13155_v5 }
 0x42c   :  { %12277 = vmatmul.mubr.msk.f32.vlgmr.msra.gmra.mrb[24].mxu1 %vm20181_vm6, %v17358_v33  ;;  %vm20194_vm6 = vmmov %vm20179_vm0 }
 0x42d   :  { %12759 = vmatpush3.bf16.msra.mxu1 %v17448_v23  ;;  %12283 = vmatprep.mubr.msk.f32.mxu1 %vm19191_vm11, %v13157_v43 }
 0x42e   :  { %12760 = vmatprep.subr.bf16.mxu1 %v13155_v5 }
 0x430   :  { %12284 = vmatmul.mubr.msk.f32.vlgmr.msra.gmra.mrb[26].mxu1 %vm20182_vm13, %v17368_v26  ;;  %vm20195_vm13 = vmmov %vm20179_vm0 }
 0x431   :  { %12762 = vmatpush3.bf16.msra.mxu1 %v17448_v23  ;;  %12290 = vmatprep.mubr.msk.f32.mxu1 %vm19191_vm11, %v13157_v43 }
 0x432   :  { %12763 = vmatprep.subr.bf16.mxu1 %v13155_v5 }
 0x434   :  { %12291 = vmatmul.mubr.msk.f32.vlgmr.msra.gmra.mrb[28].mxu1 %vm20183_vm10, %v17484_v19  ;;  %vm20196_vm10 = vmmov %vm20179_vm0 }
 0x435   :  { %12765 = vmatpush3.bf16.msra.mxu1 %v17448_v23  ;;  %12297 = vmatprep.mubr.msk.f32.mxu1 %vm19191_vm11, %v13157_v43 }
 0x436   :  { %12766 = vmatprep.subr.bf16.mxu1 %v13155_v5 }
 0x438   :  { %12298 = vmatmul.mubr.msk.f32.vlgmr.msra.gmra.mrb[30].mxu1 %vm20184_vm5, %v17502_v7  ;;  %vm20197_vm5 = vmmov %vm20179_vm0 }
 0x439   :  { %12768 = vmatpush3.bf16.msra.mxu1 %v17486_v24  ;;  %12304 = vmatprep.mubr.msk.f32.mxu1 %vm19191_vm11, %v13157_v43 }
 0x43a   :  { %12769 = vmatprep.subr.bf16.mxu1 %v13155_v5 }
 0x43c   :  { %12305 = vmatmul.mubr.msk.f32.vlgmr.msra.gmra.mrb[32].mxu1 %vm20185_vm3, %v17358_v33  ;;  %vm20198_vm3 = vmmov %vm20179_vm0 }
 0x43d   :  { %12771 = vmatpush3.bf16.msra.mxu1 %v17486_v24  ;;  %12311 = vmatprep.mubr.msk.f32.mxu1 %vm19191_vm11, %v13157_v43 }
 0x43e   :  { %12772 = vmatprep.subr.bf16.mxu1 %v13155_v5 }
 0x440   :  { %12312 = vmatmul.mubr.msk.f32.vlgmr.msra.gmra.mrb[34].mxu1 %vm20186_vm15, %v17368_v26  ;;  %vm20199_vm15 = vmmov %vm20179_vm0 }
 0x441   :  { %12774 = vmatpush3.bf16.msra.mxu1 %v17486_v24  ;;  %12318 = vmatprep.mubr.msk.f32.mxu1 %vm19191_vm11, %v13157_v43 }
 0x442   :  { %12775 = vmatprep.subr.bf16.mxu1 %v13155_v5 }
 0x444   :  { %12319 = vmatmul.mubr.msk.f32.vlgmr.msra.gmra.mrb[36].mxu1 %vm20187_vm4, %v17484_v19  ;;  %vm4880_vm4 = vcmask 62468  }
 0x445   :  { %12777 = vmatpush3.bf16.msra.mxu1 %v17486_v24  ;;  %12325 = vmatprep.mubr.msk.f32.mxu1 %vm19191_vm11, %v13157_v43  ;;  %v17693_v24 = vadd.s32 1, %v7267_v62 }
 0x446   :  { %12778 = vmatprep.subr.bf16.mxu1 %v13155_v5 }
 0x448   :  { %12326 = vmatmul.mubr.msk.f32.vlgmr.msra.gmra.mrb[38].mxu1 %vm20188_vm1, %v17502_v7  ;;  %vm5199_vm1 = vcmask 64518  }
 0x449   :  { %12780 = vmatpush3.bf16.msra.mxu1 %v17491_v56  ;;  %12332 = vmatprep.mubr.msk.f32.mxu1 %vm19191_vm11, %v13157_v43 }
 0x44a   :  { %12781 = vmatprep.subr.bf16.mxu1 %v13155_v5 }
 0x44c   :  { %12333 = vmatmul.mubr.msk.f32.vlgmr.msra.gmra.mrb[40].mxu1 %vm20189_vm12, %v17358_v33  ;;  %vm5506_vm12 = vcmask 58368  }
 0x44d   :  { %12783 = vmatpush3.bf16.msra.mxu1 %v17491_v56  ;;  %12339 = vmatprep.mubr.msk.f32.mxu1 %vm19191_vm11, %v13157_v43 }
 0x44e   :  { %12784 = vmatprep.subr.bf16.mxu1 %v13155_v5 }
 0x450   :  { %12340 = vmatmul.mubr.msk.f32.vlgmr.msra.gmra.mrb[42].mxu1 %vm20190_vm2, %v17368_v26  ;;  %vm8170_vm2 = vcmp.ge.s32.totalorder %v8166_v54, 0 }
 0x451   :  { %12786 = vmatpush3.bf16.msra.mxu1 %v17491_v56  ;;  %12346 = vmatprep.mubr.msk.f32.mxu1 %vm19191_vm11, %v13157_v43 }
 0x452   :  { %12787 = vmatprep.subr.bf16.mxu1 %v13155_v5 }
 0x454   :  { %12347 = vmatmul.mubr.msk.f32.vlgmr.msra.gmra.mrb[44].mxu1 %vm20191_vm14, %v17484_v19  ;;  %vm8174_vm14 = vcmp.lt.s32.totalorder %v8166_v54, 4 }
 0x455   :  { %12789 = vmatpush3.bf16.msra.mxu1 %v17491_v56  ;;  %12353 = vmatprep.mubr.msk.f32.mxu1 %vm19191_vm11, %v13157_v43 }
 0x456   :  { %12790 = vmatprep.subr.bf16.mxu1 %v13155_v5 }
 0x458   :  { %12354 = vmatmul.mubr.msk.f32.vlgmr.msra.gmra.mrb[46].mxu1 %vm20192_vm7, %v17502_v7  ;;  %vm8171_vm7 = vcmp.ge.s32.totalorder %v8167_v38, 0 }
 0x459   :  { %12792 = vmatpush3.bf16.msra.mxu1 %v17495_v57  ;;  %12360 = vmatprep.mubr.msk.f32.mxu1 %vm19191_vm11, %v13157_v43 }
 0x45a   :  { %12793 = vmatprep.subr.bf16.mxu1 %v13155_v5 }
 0x45c   :  { %12361 = vmatmul.mubr.msk.f32.vlgmr.msra.gmra.mrb[48].mxu1 %vm20179_vm0, %v17358_v33  ;;  %vm8175_vm0 = vcmp.lt.s32.totalorder %v8167_v38, 4 }
 0x45d   :  { %12795 = vmatpush3.bf16.msra.mxu1 %v17495_v57  ;;  %12367 = vmatprep.mubr.msk.f32.mxu1 %vm19191_vm11, %v13157_v43 }
 0x45e   :  { %12796 = vmatprep.subr.bf16.mxu1 %v13155_v5 }
 0x460   :  { %12368 = vmatmul.mubr.msk.f32.vlgmr.msra.gmra.mrb[50].mxu1 %vm20193_vm8, %v17368_v26  ;;  %vm17698_vm8 = vmand %vm8170_vm2, %vm8174_vm14 }
 0x461   :  { %12798 = vmatpush3.bf16.msra.mxu1 %v17495_v57  ;;  %12374 = vmatprep.mubr.msk.f32.mxu1 %vm19191_vm11, %v13157_v43 }
 0x462   :  { %12799 = vmatprep.subr.bf16.mxu1 %v13155_v5 }
 0x464   :  { %12375 = vmatmul.mubr.msk.f32.vlgmr.msra.gmra.mrb[52].mxu1 %vm20194_vm6, %v17484_v19  ;;  %vm19213_vm6 = vcmp.lt.s32.totalorder %v17693_v24, 4 }
 0x465   :  { %12801 = vmatpush3.bf16.msra.mxu1 %v17495_v57  ;;  %12381 = vmatprep.mubr.msk.f32.mxu1 %vm19191_vm11, %v13157_v43  ;;  %v17702_v57 = vadd.s32 4294967295, %v7267_v62 }
 0x466   :  { %12802 = vmatprep.subr.bf16.mxu1 %v13155_v5 }
 0x467   :  { %vm19208_vm2 = vcmp.ge.s32.totalorder %v17702_v57, 0 }
 0x468   :  { %12382 = vmatmul.mubr.msk.f32.vlgmr.msra.gmra.mrb[54].mxu1 %vm20195_vm13, %v17502_v7  ;;  %vm17705_vm13 = vmand %vm8171_vm7, %vm8175_vm0 }
 0x469   :  { %12804 = vmatpush3.bf16.msra.mxu1 %v17497_v61  ;;  %12388 = vmatprep.mubr.msk.f32.mxu1 %vm19191_vm11, %v13157_v43 }
 0x46a   :  { %12805 = vmatprep.subr.bf16.mxu1 %v13155_v5 }
 0x46c   :  { %12389 = vmatmul.mubr.msk.f32.vlgmr.msra.gmra.mrb[56].mxu1 %vm20196_vm10, %v17358_v33  ;;  %vm19214_vm10 = vcmp.lt.s32.totalorder %v17695_v44, 4 }
 0x46d   :  { %12807 = vmatpush3.bf16.msra.mxu1 %v17497_v61  ;;  %12395 = vmatprep.mubr.msk.f32.mxu1 %vm19191_vm11, %v13157_v43  ;;  %vm8457_vm14 = vmand %vm17705_vm13, %vm19214_vm10 }
 0x46e   :  { %12808 = vmatprep.subr.bf16.mxu1 %v13155_v5 }
 0x470   :  { %12396 = vmatmul.mubr.msk.f32.vlgmr.msra.gmra.mrb[58].mxu1 %vm20197_vm5, %v17368_v26  ;;  %vm8348_vm5 = vmpackc.low %vm17698_vm8, %vm17698_vm8 }
 0x471   :  { %12810 = vmatpush3.bf16.msra.mxu1 %v17497_v61  ;;  %12402 = vmatprep.mubr.msk.f32.mxu1 %vm19191_vm11, %v13157_v43 }
 0x472   :  { %12811 = vmatprep.subr.bf16.mxu1 %v13155_v5 }
 0x474   :  { %12403 = vmatmul.mubr.msk.f32.vlgmr.msra.gmra.mrb[60].mxu1 %vm20198_vm3, %v17484_v19  ;;  %vm8349_vm3 = vmpackc.low %vm17705_vm13, %vm17705_vm13 }
 0x475   :  { %12813 = vmatpush3.bf16.msra.mxu1 %v17497_v61  ;;  %12409 = vmatprep.mubr.msk.f32.mxu1 %vm19191_vm11, %v13157_v43 }
 0x478   :  { %12410 = vmatmul.mubr.msk.f32.vlgmr.msra.gmra.mrb[62].mxu1 %vm20199_vm15, %v17502_v7  ;;  %v17709_v7 = vadd.s32 4294967295, %v7268_v20  ;;  %vm8456_vm15 = vmand %vm17698_vm8, %vm19213_vm6 }
 0x479   :  { %vm8468_vm0 = vmpackc.low %vm8456_vm15, %vm8456_vm15 }
 0x47a   :  { %vm19210_vm7 = vcmp.ge.s32.totalorder %v17709_v7, 0 }
 0x47b   :  { %vm8185_vm15 = vmand %vm17705_vm13, %vm19210_vm7 }
 0x4cf   :  { %v4872_v15 = vpop.f32.mrb[0].mxu1 }
 0x4d0   :  { %v4876_v1 = vpack.c.bf16 %v4872_v15, %v4872_v15  ;;  %v12194_v14 = vpop.f32.mrb[1].mxu1  ;;  %v17720_v15 = vsel %vm8348_vm5, 65537, %v19331_v11  ;;  %vm8469_vm5 = vmpackc.low %vm8457_vm14, %vm8457_vm14  ;;  %vm5813_vm14 = vcmask 60418  }
 0x4d1   :  { %v17723_v14 = vsel %vm8349_vm3, 65537, %v19331_v11  ;;  %vm8184_vm3 = vmand %vm17698_vm8, %vm19208_vm2 }
 0x4d2   :  { %v4878_v17 = vrot.slane %v4876_v1, 4  ;;  %vm8196_vm9 = vmpackc.low %vm8184_vm3, %vm8184_vm3 }
 0x4d3   :  { %v4951_v40 = vpop.f32.mrb[2].mxu1 }
 0x4d4   :  { %4881 = vst.msk [vmem:[#allocation2] sm:$0x30] %vm4880_vm4, %v4878_v17  ;;  %v4955_v27 = vpack.c.bf16 %v4951_v40, %v4951_v40  ;;  %v12201_v10 = vpop.f32.mrb[3].mxu1 }
 0x4d5   :  { %v8472_v10 = vsel %vm8468_vm0, 65537, %v19331_v11  ;;  %vm8197_vm0 = vmpackc.low %vm8185_vm15, %vm8185_vm15 }
 0x4d6   :  { %v4957_v46 = vrot.slane %v4955_v27, 4  ;;  %v11516_v27 = vcombine.low %v17720_v15, %v17723_v14 }
 0x4d7   :  { %v5032_v18 = vpop.f32.mrb[4].mxu1 }
 0x4d8   :  { %v5036_v8 = vpack.c.bf16 %v5032_v18, %v5032_v18  ;;  %4958 = vrot.lane.b32.xlu0 %v4957_v46, %s13158_s4  ;;  %v12208_v36 = vpop.f32.mrb[5].mxu1  ;;  %v8473_v18 = vsel %vm8469_vm5, 65537, %v19331_v11 }
 0x4da   :  { %v5038_v45 = vrot.slane %v5036_v8, 4 }
 0x4db   :  { %v5113_v34 = vpop.f32.mrb[6].mxu1 }
 0x4dc   :  { %v5117_v39 = vpack.c.bf16 %v5113_v34, %v5113_v34  ;;  %5039 = vrot.lane.b32.xlu0 %v5038_v45, %s13159_s20  ;;  %v12215_v16 = vpop.f32.mrb[7].mxu1  ;;  %v17744_v45 = vcombine.low %v8472_v10, %v8473_v18  ;;  %v20205_v10 = vld [vmem:[#allocation10_spill] sm:$0xff] }
 0x4de   :  { %v5119_v51 = vrot.slane %v5117_v39, 4  ;;  %v8200_v39 = vsel %vm8196_vm9, 65537, %v19331_v11 }
 0x4df   :  { %v5191_v50 = vpop.f32.mrb[8].mxu1 }
 0x4e0   :  { %v5195_v3 = vpack.c.bf16 %v5191_v50, %v5191_v50  ;;  %5120 = vrot.lane.b32.xlu1 %v5119_v51, %s13160_s21  ;;  %v12222_v23 = vpop.f32.mrb[9].mxu1  ;;  %v8201_v51 = vsel %vm8197_vm0, 65537, %v19331_v11 }
 0x4e1   :  { %v17753_v23 = vcombine.low %v8200_v39, %v8201_v51 }
 0x4e2   :  { %v5197_v30 = vrot.slane %v5195_v3, 2 }
 0x4e3   :  { %v5267_v32 = vpop.f32.mrb[10].mxu1 }
 0x4e4   :  { %5200 = vst.msk [vmem:[#allocation2] sm:$0xc0] %vm5199_vm1, %v5197_v30  ;;  %v5271_v37 = vpack.c.bf16 %v5267_v32, %v5267_v32  ;;  %v12229_v49 = vpop.f32.mrb[11].mxu1 }
 0x4e6   :  { %v5273_v63 = vrot.slane %v5271_v37, 2 }
 0x4e7   :  { %v5345_v4 = vpop.f32.mrb[12].mxu1 }
 0x4e8   :  { %v5349_v22 = vpack.c.bf16 %v5345_v4, %v5345_v4  ;;  %5274 = vrot.lane.b32.xlu1 %v5273_v63, %s13158_s4  ;;  %v12236_v13 = vpop.f32.mrb[13].mxu1 }
 0x4ea   :  { %v5351_v28 = vrot.slane %v5349_v22, 2 }
 0x4eb   :  { %v5423_v35 = vpop.f32.mrb[14].mxu1 }
 0x4ec   :  { %v5427_v52 = vpack.c.bf16 %v5423_v35, %v5423_v35  ;;  %5352 = vrot.lane.b32.xlu1 %v5351_v28, %s13159_s20  ;;  %v12243_v48 = vpop.f32.mrb[15].mxu1 }
 0x4ee   :  { %v5429_v21 = vrot.slane %v5427_v52, 2 }
 0x4ef   :  { %v5501_v25 = vpop.f32.mrb[16].mxu1 }
 0x4f0   :  { %v5505_v6 = vpack.c.bf16 %v5501_v25, %v5501_v25  ;;  %5430 = vrot.lane.b32.xlu0 %v5429_v21, %s13160_s21  ;;  %v12250_v47 = vpop.f32.mrb[17].mxu1 }
 0x4f2   :  { %5507 = vst.msk [vmem:[#allocation2 + $0x8] sm:$0x3] %vm5506_vm12, %v5505_v6 }
 0x4f3   :  { %v5574_v42 = vpop.f32.mrb[18].mxu1 }
 0x4f4   :  { %v5578_v0 = vpack.c.bf16 %v5574_v42, %v5574_v42  ;;  %v12257_v19 = vpop.f32.mrb[19].mxu1 }
 0x4f6   :  { %5580 = vrot.lane.b32.xlu0 %v5578_v0, %s13158_s4 }
 0x4f7   :  { %v5651_v41 = vpop.f32.mrb[20].mxu1 }
 0x4f8   :  { %v5655_v53 = vpack.c.bf16 %v5651_v41, %v5651_v41  ;;  %v12264_v56 = vpop.f32.mrb[21].mxu1 }
 0x4fa   :  { %5657 = vrot.lane.b32.xlu0 %v5655_v53, %s13159_s20 }
 0x4fb   :  { %v5728_v1 = vpop.f32.mrb[22].mxu1 }
 0x4fc   :  { %v5732_v17 = vpack.c.bf16 %v5728_v1, %v5728_v1  ;;  %v12271_v40 = vpop.f32.mrb[23].mxu1 }
 0x4fe   :  { %5734 = vrot.lane.b32.xlu1 %v5732_v17, %s13160_s21 }
 0x4ff   :  { %v5805_v46 = vpop.f32.mrb[24].mxu1 }
 0x500   :  { %v5809_v8 = vpack.c.bf16 %v5805_v46, %v5805_v46  ;;  %v12278_v36 = vpop.f32.mrb[25].mxu1  ;;  %v7273_v46 = vshra.s32 %v20205_v10, 2 }
 0x501   :  { %v20206_v36 = vld [vmem:[#allocation11_spill] sm:$0xff] }
 0x502   :  { %v5811_v34 = vrot.slane %v5809_v8, 6  ;;  %v17766_v51 = vand.u32 3, %v7273_v46 }
 0x503   :  { %v5881_v16 = vpop.f32.mrb[26].mxu1 }
 0x504   :  { %5814 = vst.msk [vmem:[#allocation2 + $0x8] sm:$0xc] %vm5813_vm14, %v5811_v34  ;;  %v5885_v50 = vpack.c.bf16 %v5881_v16, %v5881_v16  ;;  %v12285_v3 = vpop.f32.mrb[27].mxu1  ;;  %v7274_v34 = vshra.s32 %v20206_v36, 2 }
 0x506   :  { %v5887_v30 = vrot.slane %v5885_v50, 6 }
 0x507   :  { %v5959_v32 = vpop.f32.mrb[28].mxu1 }
 0x508   :  { %v5963_v37 = vpack.c.bf16 %v5959_v32, %v5959_v32  ;;  %5888 = vrot.lane.b32.xlu1 %v5887_v30, %s13158_s4  ;;  %v12292_v49 = vpop.f32.mrb[29].mxu1  ;;  %v17769_v30 = vand.u32 3, %v7274_v34 }
 0x509   :  { %v7269_v49 = vand.u32 3, %v20205_v10 }
 0x50a   :  { %v5965_v63 = vrot.slane %v5963_v37, 6 }
 0x50b   :  { %v6037_v4 = vpop.f32.mrb[30].mxu1 }
 0x50c   :  { %v6041_v22 = vpack.c.bf16 %v6037_v4, %v6037_v4  ;;  %5966 = vrot.lane.b32.xlu1 %v5965_v63, %s13159_s20  ;;  %v12299_v13 = vpop.f32.mrb[31].mxu1  ;;  %v8168_v63 = vadd.s32 1, %v17766_v51 }
 0x50d   :  { %v7270_v13 = vand.u32 3, %v20206_v36 }
 0x50e   :  { %v6043_v2 = vrot.slane %v6041_v22, 6  ;;  %vm8172_vm9 = vcmp.ge.s32.totalorder %v8168_v63, 0 }
 0x50f   :  { %v6115_v60 = vpop.f32.mrb[32].mxu1 }
 0x510   :  { %v6119_v9 = vpack.c.bf16 %v6115_v60, %v6115_v60  ;;  %6044 = vrot.lane.b32.xlu0 %v6043_v2, %s13160_s21  ;;  %v12306_v28 = vpop.f32.mrb[33].mxu1  ;;  %v8169_v2 = vadd.s32 1, %v17769_v30  ;;  %v13064_v60 = vld [vmem:[%s18976_s2 + $0x10] sm:$0xff]  }
 0x511   :  { %12412 = vmatprep.subr.bf16.mxu1 %v13064_v60 }
 0x512   :  { %v6121_v35 = vrot.slane %v6119_v9, 4  ;;  %v13065_v9 = vld [vmem:[%s18976_s2 + $0x18] sm:$0xff]   ;;  %vm8177_vm8 = vcmp.lt.s32.totalorder %v8169_v2, 4  ;;  %12413 = vmatpush3.bf16.msra.mxu1 %v13064_v60 }
 0x513   :  { %v6190_v52 = vpop.f32.mrb[34].mxu1  ;;  %12414 = vmatprep.subr.bf16.mxu1 %v13065_v9 }
 0x514   :  { %6123 = vst.msk [vmem:[#allocation2 + $0x8] sm:$0x30] %vm4880_vm4, %v6121_v35  ;;  %v6194_v48 = vpack.c.bf16 %v6190_v52, %v6190_v52  ;;  %v12313_v21 = vpop.f32.mrb[35].mxu1  ;;  %v17783_v35 = vadd.s32 1, %v7269_v49  ;;  %vm8176_vm4 = vcmp.lt.s32.totalorder %v8168_v63, 4 }
 0x515   :  { %v17785_v21 = vadd.s32 1, %v7270_v13  ;;  %vm17788_vm13 = vmand %vm8172_vm9, %vm8176_vm4 }
 0x516   :  { %v6196_v25 = vrot.slane %v6194_v48, 4  ;;  %vm8350_vm15 = vmpackc.low %vm17788_vm13, %vm17788_vm13  ;;  %12415 = vmatpush3.bf16.msra.mxu1 %v13065_v9 }
 0x517   :  { %v6267_v6 = vpop.f32.mrb[36].mxu1  ;;  %vm19196_vm3 = vcmp.lt.s32.totalorder %v17785_v21, 4 }
 0x518   :  { %v6271_v47 = vpack.c.bf16 %v6267_v6, %v6267_v6  ;;  %6197 = vrot.lane.b32.xlu0 %v6196_v25, %s13158_s4  ;;  %v12320_v62 = vpop.f32.mrb[37].mxu1 }
 0x51a   :  { %v6273_v54 = vrot.slane %v6271_v47, 4  ;;  %v17792_v47 = vadd.s32 4294967295, %v7269_v49 }
 0x51b   :  { %v6344_v20 = vpop.f32.mrb[38].mxu1 }
 0x51c   :  { %v6348_v38 = vpack.c.bf16 %v6344_v20, %v6344_v20  ;;  %6274 = vrot.lane.b32.xlu0 %v6273_v54, %s13159_s20  ;;  %v12327_v42 = vpop.f32.mrb[39].mxu1  ;;  %vm19212_vm4 = vcmp.ge.s32.totalorder %v17792_v47, 0 }
 0x51d   :  { %v8354_v42 = vsel %vm8350_vm15, 65537, %v19331_v11  ;;  %vm19195_vm15 = vcmask 1045504  }
 0x51e   :  { %v6350_v0 = vrot.slane %v6348_v38, 4  ;;  %v17799_v38 = vadd.s32 4294967295, %v7270_v13 }
 0x51f   :  { %v6421_v19 = vpop.f32.mrb[40].mxu1 }
 0x520   :  { %v6425_v41 = vpack.c.bf16 %v6421_v19, %v6421_v19  ;;  %6351 = vrot.lane.b32.xlu1 %v6350_v0, %s13160_s21  ;;  %v12334_v59 = vpop.f32.mrb[41].mxu1 }
 0x522   :  { %v6427_v53 = vrot.slane %v6425_v41, 2 }
 0x523   :  { %v6496_v56 = vpop.f32.mrb[42].mxu1 }
 0x524   :  { %6429 = vst.msk [vmem:[#allocation2 + $0x8] sm:$0xc0] %vm5199_vm1, %v6427_v53  ;;  %v6500_v61 = vpack.c.bf16 %v6496_v56, %v6496_v56  ;;  %v12341_v1 = vpop.f32.mrb[43].mxu1  ;;  %vm8173_vm1 = vcmp.ge.s32.totalorder %v8169_v2, 0  ;;  %v8483_v53 = vshrl.u32 %v17744_v45, 16 }
 0x525   :  { %vm17795_vm5 = vmand %vm8173_vm1, %vm8177_vm8  ;;  %vm19211_vm8 = vcmp.ge.s32.totalorder %v17799_v38, 0  ;;  %v8486_v1 = vshll.u32 %v17744_v45, 16 }
 0x526   :  { %v6502_v17 = vrot.slane %v6500_v61, 2  ;;  %vm8351_vm0 = vmpackc.low %vm17795_vm5, %vm17795_vm5  ;;  %v8485_v34 = vrot.slane %v8483_v53, 1 }
 0x527   :  { %v6573_v40 = vpop.f32.mrb[44].mxu1  ;;  %v8355_v0 = vsel %vm8351_vm0, 65537, %v19331_v11  ;;  %vm8459_vm1 = vmand %vm17795_vm5, %vm19196_vm3  ;;  %vm19204_vm3 = vcmask 255168  }
 0x528   :  { %v6577_v18 = vpack.c.bf16 %v6573_v40, %v6573_v40  ;;  %6503 = vrot.lane.b32.xlu1 %v6502_v17, %s13158_s4  ;;  %v12348_v8 = vpop.f32.mrb[45].mxu1  ;;  %v11517_v59 = vcombine.low %v8354_v42, %v8355_v0  ;;  %v17833_v17 = vrot.slane %v11516_v27, 2  ;;  %vm8471_vm11 = vmpackc.low %vm8459_vm1, %vm8459_vm1 }
 0x529   :  { %v8475_v46 = vsel %vm8471_vm11, 65537, %v19331_v11  ;;  %vm8187_vm11 = vmand %vm17795_vm5, %vm19211_vm8  ;;  %vm19194_vm5 = vsmask.f32 6400  ;;  %vm7763_vm8 = vcmp.ge.s32.totalorder %v17683_v55, 0 }
 0x52a   :  { %v6579_v39 = vrot.slane %v6577_v18, 2  ;;  %v17835_v40 = vrot.slane %v11517_v59, 2  ;;  %v17856_v18 = vld [vmem:[%s18976_s2] sm:$0xff]   ;;  %vm8199_vm1 = vmpackc.low %vm8187_vm11, %vm8187_vm11  ;;  %vm19203_vm11 = vcmask 259268  }
 0x52b   :  { %v6650_v16 = vpop.f32.mrb[46].mxu1  ;;  %12420 = vmatprep.subr.bf16.mxu1 %v17856_v18  ;;  %v8203_v63 = vsel %vm8199_vm1, 65537, %v19331_v11  ;;  %vm19198_vm1 = vcmask 195718  }
 0x52c   :  { %v6654_v50 = vpack.c.bf16 %v6650_v16, %v6650_v16  ;;  %6580 = vrot.lane.b32.xlu1 %v6579_v39, %s13159_s20  ;;  %v12355_v3 = vpop.f32.mrb[47].mxu1  ;;  %v17851_v14 = vsel %vm19195_vm15, %v17833_v17, %v17835_v40  ;;  %v8488_v39 = vrot.slane %v8486_v1, 2  ;;  %v8211_v16 = vshrl.u32 %v17753_v23, 16 }
 0x52d   :  { %vm19202_vm15 = vcmask 189568  }
 0x52e   :  { %v6656_v32 = vrot.slane %v6654_v50, 2 }
 0x52f   :  { %v6727_v37 = vpop.f32.mrb[48].mxu1 }
 0x530   :  { %v6731_v4 = vpack.c.bf16 %v6727_v37, %v6727_v37  ;;  %6657 = vrot.lane.b32.xlu0 %v6656_v32, %s13160_s21  ;;  %v12362_v22 = vpop.f32.mrb[49].mxu1  ;;  %v8214_v37 = vshll.u32 %v17753_v23, 16 }
 0x532   :  { %6732 = vst.msk [vmem:[#allocation2 + $0x10] sm:$0x3] %vm5506_vm12, %v6731_v4  ;;  %vm19201_vm12 = vcmp.lt.s32.totalorder %v17783_v35, 4  ;;  %v8216_v25 = vrot.slane %v8214_v37, 3  ;;  %v7279_v37 = vadd.s32 4294967295, %v17683_v55 }
 0x533   :  { %v6799_v28 = vpop.f32.mrb[50].mxu1  ;;  %vm17815_vm9 = vmand %vm17788_vm13, %vm19201_vm12  ;;  %vm19207_vm12 = vcmask 257218  }
 0x534   :  { %v6803_v52 = vpack.c.bf16 %v6799_v28, %v6799_v28  ;;  %v12369_v48 = vpop.f32.mrb[51].mxu1  ;;  %vm8470_vm0 = vmpackc.low %vm17815_vm9, %vm17815_vm9  ;;  %v17871_v28 = vor.u32 %v8488_v39, %v8485_v34 }
 0x535   :  { %v8474_v10 = vsel %vm8470_vm0, 65537, %v19331_v11  ;;  %vm17844_vm9 = vmand %vm17788_vm13, %vm19212_vm4  ;;  %vm19193_vm0 = vsmask.f32 5376 }
 0x536   :  { %6805 = vrot.lane.b32.xlu0 %v6803_v52, %s13158_s4  ;;  %v11527_v27 = vcombine.low %v8474_v10, %v8475_v46  ;;  %vm8198_vm13 = vmpackc.low %vm17844_vm9, %vm17844_vm9  ;;  %v8213_v52 = vrot.slane %v8211_v16, 2  ;;  %vm19209_vm9 = vcmask 193668  }
 0x537   :  { %v6875_v6 = vpop.f32.mrb[52].mxu1  ;;  %v8202_v32 = vsel %vm8198_vm13, 65537, %v19331_v11  ;;  %vm19197_vm13 = vcmask 130118  }
 0x538   :  { %v6879_v54 = vpack.c.bf16 %v6875_v6, %v6875_v6  ;;  %v12376_v20 = vpop.f32.mrb[53].mxu1  ;;  %v8491_v50 = vshrl.u32 %v11527_v27, 16  ;;  %v8494_v3 = vshll.u32 %v11527_v27, 16  ;;  %v11507_v2 = vcombine.low %v8202_v32, %v8203_v63 }
 0x539   :  { %v17881_v59 = vor.u32 %v8216_v25, %v8213_v52 }
 0x53a   :  { %6881 = vrot.lane.b32.xlu1 %v6879_v54, %s13159_s20  ;;  %v8493_v22 = vrot.slane %v8491_v50, 1  ;;  %v8496_v13 = vrot.slane %v8494_v3, 2  ;;  %v8219_v6 = vshrl.u32 %v11507_v2, 16  ;;  %v8222_v23 = vshll.u32 %v11507_v2, 16 }
 0x53b   :  { %v6951_v41 = vpop.f32.mrb[54].mxu1  ;;  %v7282_v2 = vadd.s32 4294967295, %v17769_v30 }
 0x53c   :  { %v6955_v56 = vpack.c.bf16 %v6951_v41, %v6951_v41  ;;  %v12383_v61 = vpop.f32.mrb[55].mxu1  ;;  %v17873_v48 = vor.u32 %v8496_v13, %v8493_v22  ;;  %v8221_v42 = vrot.slane %v8219_v6, 2  ;;  %v8224_v0 = vrot.slane %v8222_v23, 3 }
 0x53d   :  { %v7281_v22 = vadd.s32 4294967295, %v17766_v51  ;;  %v20215_v13 = vmov 0 }
 0x53e   :  { %6957 = vrot.lane.b32.xlu0 %v6955_v56, %s13160_s21  ;;  %v17878_v20 = vsel %vm19194_vm5, %v17871_v28, %v17873_v48  ;;  %v17883_v53 = vor.u32 %v8224_v0, %v8221_v42  ;;  %vm19199_vm5 = vcmask 123968  }
 0x53f   :  { %v7027_v15 = vpop.f32.mrb[56].mxu1 }
 0x540   :  { %v7031_v8 = vpack.c.bf16 %v7027_v15, %v7027_v15  ;;  %v12390_v36 = vpop.f32.mrb[57].mxu1  ;;  %v17889_v10 = vsel %vm19193_vm0, %v17881_v59, %v17883_v53  ;;  %vm19200_vm0 = vcmask 261318  }
 0x542   :  { %v7033_v49 = vrot.slane %v7031_v8, 6 }
 0x543   :  { %v7102_v4 = vpop.f32.mrb[58].mxu1 }
 0x544   :  { %7035 = vst.msk [vmem:[#allocation2 + $0x10] sm:$0xc] %vm5813_vm14, %v7033_v49  ;;  %v7106_v60 = vpack.c.bf16 %v7102_v4, %v7102_v4  ;;  %v12397_v9 = vpop.f32.mrb[59].mxu1  ;;  %vm4961_vm14 = vcmask 128068   ;;  %v7280_v49 = vadd.s32 4294967295, %v17685_v29 }
 0x546   :  { %v7108_v62 = vrot.slane %v7106_v60, 6 }
 0x547   :  { %v7179_v54 = vpop.f32.mrb[60].mxu1 }
 0x548   :  { %v7183_v19 = vpack.c.bf16 %v7179_v54, %v7179_v54  ;;  %v12404_v41 = vpop.f32.mrb[61].mxu1  ;;  %7109 = vrot.lane.b32.xlu1 %v7108_v62, %s13158_s4  ;;  %v20227_v62 = vmov 0 }
 0x54a   :  { %v7185_v56 = vrot.slane %v7183_v19, 6  ;;  %v4959_v61 = vpop.permute.xlu0 %4958 }
 0x54b   :  { %4962 = vst.msk [vmem:[#allocation2] sm:$0x30] %vm4961_vm14, %v4959_v61  ;;  %v7256_v1 = vpop.f32.mrb[62].mxu1 }
 0x54c   :  { %v7260_v46 = vpack.c.bf16 %v7256_v1, %v7256_v1  ;;  %v12411_v45 = vpop.f32.mrb[63].mxu1  ;;  %7186 = vrot.lane.b32.xlu0 %v7185_v56, %s13159_s20 }
 0x54e   :  { %v7262_v15 = vrot.slane %v7260_v46, 6  ;;  %v5040_v27 = vpop.permute.xlu0 %5039 }
 0x54f   :  { %5043 = vst.msk [vmem:[#allocation2] sm:$0x30] %vm19209_vm9, %v5040_v27 }
 0x550   :  { %7263 = vrot.lane.b32.xlu1 %v7262_v15, %s13160_s21 }
 0x552   :  { %v5121_v8 = vpop.permute.xlu1 %5120 }
 0x553   :  { %5124 = vst.msk [vmem:[#allocation2] sm:$0x30] %vm19203_vm11, %v5121_v8  ;;  %vm7288_vm11 = vcmp.lt.s32.totalorder %v7280_v49, 4 }
 0x55a   :  { %v5275_v36 = vpop.permute.xlu1 %5274 }
 0x55b   :  { %5278 = vst.msk [vmem:[#allocation2] sm:$0xc0] %vm19197_vm13, %v5275_v36  ;;  %vm19205_vm13 = vcmask 126018  }
 0x55e   :  { %v5353_v34 = vpop.permute.xlu1 %5352 }
 0x55f   :  { %5356 = vst.msk [vmem:[#allocation2] sm:$0xc0] %vm19198_vm1, %v5353_v34  ;;  %vm19206_vm1 = vcmask 191618  }
 0x562   :  { %v5431_v39 = vpop.permute.xlu0 %5430 }
 0x563   :  { %5434 = vst.msk [vmem:[#allocation2] sm:$0xc0] %vm19200_vm0, %v5431_v39  ;;  %vm7287_vm0 = vcmp.lt.s32.totalorder %v7279_v37, 4 }
 0x568   :  { %v5581_v16 = vpop.permute.xlu0 %5580 }
 0x569   :  { %5584 = vst.msk [vmem:[#allocation2 + $0x8] sm:$0x3] %vm19199_vm5, %v5581_v16  ;;  %vm7283_vm5 = vcmp.ge.s32.totalorder %v7279_v37, 0 }
 0x56c   :  { %v5658_v50 = vpop.permute.xlu0 %5657 }
 0x56d   :  { %5661 = vst.msk [vmem:[#allocation2 + $0x8] sm:$0x3] %vm19202_vm15, %v5658_v50  ;;  %vm7284_vm15 = vcmp.ge.s32.totalorder %v7280_v49, 0 }
 0x570   :  { %v5735_v3 = vpop.permute.xlu1 %5734 }
 0x571   :  { %5738 = vst.msk [vmem:[#allocation2 + $0x8] sm:$0x3] %vm19204_vm3, %v5735_v3  ;;  %vm17906_vm3 = vmand %vm7283_vm5, %vm7287_vm0  ;;  %vm7285_vm5 = vcmp.ge.s32.totalorder %v7281_v22, 0  ;;  %vm7289_vm0 = vcmp.lt.s32.totalorder %v7281_v22, 4 }
 0x572   :  { %v20216_v13 = vsel %vm17906_vm3, 4294967295, %v20215_v13  ;;  %vm17940_vm9 = vmand %vm7285_vm5, %vm7289_vm0  ;;  %vm20231_vm0 = vcmp.ge.s32.totalorder %v17792_v47, 0 }
 0x57a   :  { %v5889_v32 = vpop.permute.xlu1 %5888 }
 0x57b   :  { %5892 = vst.msk [vmem:[#allocation2 + $0x8] sm:$0xc] %vm19205_vm13, %v5889_v32  ;;  %vm17912_vm13 = vmand %vm7284_vm15, %vm7288_vm11  ;;  %vm7286_vm15 = vcmp.ge.s32.totalorder %v7282_v2, 0  ;;  %vm7290_vm11 = vcmp.lt.s32.totalorder %v7282_v2, 4 }
 0x57c   :  { %vm17950_vm4 = vmand %vm7286_vm15, %vm7290_vm11  ;;  %vm20234_vm15 = vcmp.ge.s32.totalorder %v17799_v38, 0 }
 0x57d   :  { %v20228_v62 = vsel %vm17950_vm4, 4294967295, %v20227_v62  ;;  %vm17959_vm5 = vmand %vm17912_vm13, %vm19214_vm10 }
 0x57e   :  { %v5967_v63 = vpop.permute.xlu1 %5966  ;;  %vm7395_vm10 = vmpackc.low %vm17940_vm9, %vm17940_vm9 }
 0x57f   :  { %5970 = vst.msk [vmem:[#allocation2 + $0x8] sm:$0xc] %vm19206_vm1, %v5967_v63  ;;  %vm17920_vm1 = vmand %vm17906_vm3, %vm19208_vm2  ;;  %v7399_v50 = vsel %vm7395_vm10, 65537, %v19331_v11  ;;  %vm20261_vm10 = vcmp.ge.s32.totalorder %v17709_v7, 0 }
 0x580   :  { %vm17936_vm2 = vmand %vm17906_vm3, %vm19213_vm6 }
 0x581   :  { %vm17967_vm6 = vmand %vm17940_vm9, %vm20231_vm0 }
 0x582   :  { %v6045_v4 = vpop.permute.xlu0 %6044  ;;  %vm7328_vm11 = vmpackc.low %vm17967_vm6, %vm17967_vm6 }
 0x583   :  { %6048 = vst.msk [vmem:[#allocation2 + $0x8] sm:$0xc] %vm19207_vm12, %v6045_v4  ;;  %vm17928_vm12 = vmand %vm17912_vm13, %vm19210_vm7  ;;  %vm7767_vm7 = vcmp.lt.s32.totalorder %v17683_v55, 4  ;;  %v7332_v61 = vsel %vm7328_vm11, 65537, %v19331_v11  ;;  %vm20247_vm11 = vnez %v20228_v62 }
 0x584   :  { %vm18000_vm3 = vmand %vm7763_vm8, %vm7767_vm7 }
 0x585   :  { %vm20244_vm7 = vmpackc.low %vm17920_vm1, %vm17920_vm1 }
 0x586   :  { %v7330_v46 = vsel %vm20244_vm7, 65537, %v19331_v11  ;;  %vm20245_vm8 = vmpackc.low %vm17928_vm12, %vm17928_vm12 }
 0x587   :  { %v7331_v45 = vsel %vm20245_vm8, 65537, %v19331_v11  ;;  %vm7396_vm1 = vmpackc.low %vm20247_vm11, %vm20247_vm11 }
 0x588   :  { %v11452_v8 = vcombine.low %v7330_v46, %v7331_v45  ;;  %vm20250_vm8 = vmpackc.low %vm17936_vm2, %vm17936_vm2  ;;  %v7400_v3 = vsel %vm7396_vm1, 65537, %v19331_v11  ;;  %vm7765_vm1 = vcmp.ge.s32.totalorder %v17766_v51, 0 }
 0x589   :  { %v7626_v36 = vsel %vm20250_vm8, 65537, %v19331_v11  ;;  %vm20256_vm2 = vmpackc.low %vm17912_vm13, %vm17912_vm13  ;;  %v11455_v52 = vcombine.low %v7399_v50, %v7400_v3  ;;  %vm7770_vm8 = vcmp.lt.s32.totalorder %v17769_v30, 4 }
 0x58a   :  { %v6198_v23 = vpop.permute.xlu0 %6197  ;;  %v7398_v16 = vsel %vm20256_vm2, 65537, %v19331_v11  ;;  %v7342_v2 = vshrl.u32 %v11452_v8, 16  ;;  %v7345_v60 = vshll.u32 %v11452_v8, 16 }
 0x58b   :  { %6200 = vst.msk [vmem:[#allocation2 + $0x8] sm:$0x30] %vm4961_vm14, %v6198_v23  ;;  %vm17975_vm14 = vmand %vm17950_vm4, %vm20234_vm15  ;;  %vm20237_vm4 = vcmask 193668   ;;  %vm20240_vm15 = vcmask 259268  }
 0x58c   :  { %vm7329_vm0 = vmpackc.low %vm17975_vm14, %vm17975_vm14  ;;  %vm20246_vm14 = vcmp.lt.s32.totalorder %v17785_v21, 4  ;;  %v7347_v42 = vrot.slane %v7345_v60, 7 }
 0x58d   :  { %v7333_v1 = vsel %vm7329_vm0, 65537, %v19331_v11  ;;  %vm7764_vm0 = vcmp.ge.s32.totalorder %v17685_v29, 0 }
 0x58e   :  { %v6275_v19 = vpop.permute.xlu0 %6274  ;;  %v11453_v27 = vcombine.low %v7332_v61, %v7333_v1 }
 0x58f   :  { %6277 = vst.msk [vmem:[#allocation2 + $0x8] sm:$0x30] %vm20237_vm4, %v6275_v19  ;;  %vm20241_vm4 = vcmp.lt.s32.totalorder %v17783_v35, 4 }
 0x590   :  { %vm18012_vm6 = vmand %vm17940_vm9, %vm20241_vm4  ;;  %vm7768_vm4 = vcmp.lt.s32.totalorder %v17685_v29, 4  ;;  %v7350_v63 = vshrl.u32 %v11453_v27, 16  ;;  %v7353_v4 = vshll.u32 %v11453_v27, 16 }
 0x591   :  { %vm7624_vm12 = vmpackc.low %vm18012_vm6, %vm18012_vm6 }
 0x592   :  { %v6352_v56 = vpop.permute.xlu1 %6351  ;;  %vm18061_vm6 = vmand %vm7764_vm0, %vm7768_vm4  ;;  %v7628_v37 = vsel %vm7624_vm12, 65537, %v19331_v11  ;;  %vm20260_vm0 = vcmask 130118   ;;  %vm7769_vm4 = vcmp.lt.s32.totalorder %v17766_v51, 4  ;;  %v7352_v23 = vrot.slane %v7350_v63, 6  ;;  %v8335_v63 = vld [vmem:[#allocation2] sm:$0xc0] }
 0x593   :  { %6354 = vst.msk [vmem:[#allocation2 + $0x8] sm:$0x30] %vm20240_vm15, %v6352_v56  ;;  %vm18034_vm15 = vmand %vm20247_vm11, %vm20246_vm14  ;;  %vm20254_vm11 = vnez %v20216_v13  ;;  %v7355_v7 = vrot.slane %v7353_v4, 7  ;;  %v7344_v51 = vrot.slane %v7342_v2, 6  ;;  %v18119_v56 = vrot.slane %v11455_v52, 6 }
 0x594   :  { %vm7625_vm7 = vmpackc.low %vm18034_vm15, %vm18034_vm15 }
 0x595   :  { %vm20251_vm14 = vmpackc.low %vm17959_vm5, %vm17959_vm5  ;;  %v7629_v49 = vsel %vm7625_vm7, 65537, %v19331_v11  ;;  %vm20257_vm5 = vcmp.ge.s32.totalorder %v17702_v57, 0  ;;  %vm7766_vm7 = vcmp.ge.s32.totalorder %v17769_v30, 0  ;;  %v18126_v15 = vor.u32 %v7355_v7, %v7352_v23 }
 0x596   :  { %v7627_v29 = vsel %vm20251_vm14, 65537, %v19331_v11  ;;  %vm20255_vm15 = vmpackc.low %vm20254_vm11, %vm20254_vm11  ;;  %v11469_v25 = vcombine.low %v7628_v37, %v7629_v49  ;;  %vm20264_vm11 = vcmask 195718   ;;  %v18150_v37 = vld [vmem:[#allocation2] sm:$0xfc] }
 0x597   :  { %v7397_v39 = vsel %vm20255_vm15, 65537, %v19331_v11  ;;  %vm18090_vm13 = vmand %vm18000_vm3, %vm20257_vm5  ;;  %v11468_v13 = vcombine.low %v7626_v36, %v7627_v29  ;;  %vm19220_vm5 = vcmask 1041408   ;;  %v7348_v36 = vor.u32 %v7347_v42, %v7344_v51  ;;  %v7295_v51 = vld [vmem:[#allocation2] sm:$0xfe] }
 0x598   :  { %vm18099_vm9 = vmand %vm18061_vm6, %vm20261_vm10  ;;  %v11454_v57 = vcombine.low %v7397_v39, %v7398_v16  ;;  %v7646_v55 = vshrl.u32 %v11469_v25, 16  ;;  %v7649_v30 = vshll.u32 %v11469_v25, 16  ;;  %vm20270_vm10 = vcmp.ge.s32.totalorder %v17792_v47, 0 }
 0x599   :  { %vm7789_vm12 = vmpackc.low %vm18090_vm13, %vm18090_vm13  ;;  %v7638_v62 = vshrl.u32 %v11468_v13, 16  ;;  %v7641_v54 = vshll.u32 %v11468_v13, 16  ;;  %vm20269_vm13 = vcmask 261318  }
 0x59a   :  { %v6504_v32 = vpop.permute.xlu1 %6503  ;;  %vm7790_vm14 = vmpackc.low %vm18099_vm9, %vm18099_vm9  ;;  %v7793_v19 = vsel %vm7789_vm12, 65537, %v19331_v11  ;;  %v7408_v45 = vrot.slane %v11454_v57, 6  ;;  %v7648_v47 = vrot.slane %v7646_v55, 5  ;;  %v7651_v3 = vrot.slane %v7649_v30, 6 }
 0x59b   :  { %6506 = vst.msk [vmem:[#allocation2 + $0x8] sm:$0xc0] %vm20260_vm0, %v6504_v32  ;;  %vm18114_vm15 = vmand %vm7765_vm1, %vm7769_vm4  ;;  %v7794_v1 = vsel %vm7790_vm14, 65537, %v19331_v11  ;;  %v7640_v27 = vrot.slane %v7638_v62, 5  ;;  %v7643_v8 = vrot.slane %v7641_v54, 6  ;;  %vm20273_vm1 = vcmp.ge.s32.totalorder %v17799_v38, 0 }
 0x59c   :  { %vm18121_vm2 = vmand %vm7766_vm7, %vm7770_vm8  ;;  %vm19219_vm0 = vsmask.f32 1280  ;;  %v18145_v16 = vcombine.low %v7793_v19, %v7794_v1  ;;  %v7410_v50 = vsel %vm19220_vm5, %v7408_v45, %v18119_v56  ;;  %v8182_v32 = vld [vmem:[#allocation2] sm:$0xe0]  ;;  %vm8227_vm12 = vcmp.ne.s16.totalorder %v17881_v59, 0 }
 0x59d   :  { %vm18133_vm9 = vmand %vm18114_vm15, %vm20270_vm10  ;;  %vm7411_vm7 = vcmp.ne.s16.totalorder %v7408_v45, 0  ;;  %v7357_v38 = vsel %vm19219_vm0, %v7348_v36, %v18126_v15  ;;  %v18157_v49 = vor.u32 %v7643_v8, %v7640_v27  ;;  %vm8499_vm10 = vcmp.ne.s16.totalorder %v17871_v28, 0 }
 0x59e   :  { %v6581_v6 = vpop.permute.xlu1 %6580  ;;  %vm18141_vm4 = vmand %vm18121_vm2, %vm20273_vm1  ;;  %vm7412_vm1 = vcmp.ne.s16.totalorder %v7410_v50, 0  ;;  %vm8500_vm0 = vcmp.ne.s16.totalorder %v17878_v20, 0  ;;  %v7804_v4 = vshrl.u32 %v18145_v16, 16  ;;  %v8230_v22 = vsel %vm8227_vm12, %v8182_v32, 0 }
 0x59f   :  { %6583 = vst.msk [vmem:[#allocation2 + $0x8] sm:$0xc0] %vm20264_vm11, %v6581_v6  ;;  %vm7791_vm8 = vmpackc.low %vm18133_vm9, %vm18133_vm9  ;;  %vm20276_vm5 = vcmask 123968   ;;  %v7414_v13 = vsel %vm7411_vm7, %v18150_v37, 0  ;;  %vm7359_vm14 = vcmp.ne.s16.totalorder %v7357_v38, 0  ;;  %v18168_v2 = vor.u32 %v7651_v3, %v7648_v47 }
 0x5a0   :  { %vm7792_vm11 = vmpackc.low %vm18141_vm4, %vm18141_vm4  ;;  %v7807_v60 = vshll.u32 %v18145_v16, 16  ;;  %v7795_v28 = vsel %vm7791_vm8, 65537, %v19331_v11  ;;  %v8502_v57 = vsel %vm8499_vm10, %v8335_v63, 0  ;;  %v8239_v6 = vshrl.u32 %v8230_v22, 16 }
 0x5a1   :  { %v7796_v20 = vsel %vm7792_vm11, 65537, %v19331_v11  ;;  %v8242_v23 = vshll.u32 %v8230_v22, 16  ;;  %v7426_v62 = vrot.slane %v7414_v13, 2  ;;  %vm7636_vm9 = vsmask.f32 2304 }
 0x5a2   :  { %v6658_v46 = vpop.permute.xlu0 %6657  ;;  %vm20277_vm12 = vcmask 189568   ;;  %vm8366_vm7 = vcmp.ne.s16.totalorder %v17851_v14, 0  ;;  %v11479_v19 = vcombine.low %v7795_v28, %v7796_v20  ;;  %v8511_v55 = vshrl.u32 %v8502_v57, 16 }
 0x5a3   :  { %6660 = vst.msk [vmem:[#allocation2 + $0x8] sm:$0xc0] %vm20269_vm13, %v6658_v46  ;;  %vm8228_vm13 = vcmp.ne.s16.totalorder %v17889_v10, 0  ;;  %vm7360_vm4 = vcmp.ne.s16.totalorder %v18126_v15, 0  ;;  %vm7413_vm8 = vcmp.ne.s16.totalorder %v18119_v56, 0  ;;  %v8514_v45 = vshll.u32 %v8502_v57, 16 }
 0x5a4   :  { %v7653_v10 = vsel %vm7636_vm9, %v18157_v49, %v18168_v2  ;;  %v8241_v8 = vrot.slane %v8239_v6, 5  ;;  %v8244_v29 = vrot.slane %v8242_v23, 6  ;;  %vm20279_vm11 = vcmp.ne.s16.totalorder %v7348_v36, 0  ;;  %v13067_v56 = vld [vmem:[%s18976_s2 + $0x8] sm:$0xff]  }
 0x5a5   :  { %v7361_v50 = vsel %vm20279_vm11, %v7295_v51, 0  ;;  %v7812_v28 = vshrl.u32 %v11479_v19, 16  ;;  %v7815_v20 = vshll.u32 %v11479_v19, 16  ;;  %v8513_v57 = vrot.slane %v8511_v55, 6 }
 0x5a6   :  { %v7501_v6 = vshrl.u32 %v7361_v50, 16  ;;  %v7504_v23 = vshll.u32 %v7361_v50, 16  ;;  %vm7655_vm10 = vcmp.ne.s16.totalorder %v7653_v10, 0  ;;  %vm20286_vm11 = vcmp.lt.s32.totalorder %v17695_v44, 4 }
 0x5a7   :  { %v7809_v44 = vrot.slane %v7807_v60, 5 }
 0x5a8   :  { %v6806_v59 = vpop.permute.xlu0 %6805  ;;  %v7506_v14 = vrot.slane %v7504_v23, 2 }
 0x5a9   :  { %6808 = vst.msk [vmem:[#allocation2 + $0x10] sm:$0x3] %vm20276_vm5, %v6806_v59  ;;  %vm7443_vm5 = vcmask 261120  }
 0x5aa   :  { %v18171_v9 = vld [vmem:[#allocation2 + $0x8] sm:$0xff] }
 0x5ab   :  { %v18187_v52 = vsel %vm7412_vm1, %v18171_v9, 0  ;;  %v8503_v25 = vsel %vm8500_vm0, %v18171_v9, 0  ;;  %v8231_v42 = vsel %vm8228_vm13, %v18171_v9, 0  ;;  %vm20278_vm0 = vcmask 1045504  }
 0x5ac   :  { %v6882_v7 = vpop.permute.xlu1 %6881  ;;  %v7427_v54 = vrot.slane %v18187_v52, 2  ;;  %v7362_v1 = vsel %vm7359_vm14, %v18171_v9, 0  ;;  %v8247_v46 = vshrl.u32 %v8231_v42, 16  ;;  %v8250_v27 = vshll.u32 %v8231_v42, 16 }
 0x5ad   :  { %6884 = vst.msk [vmem:[#allocation2 + $0x10] sm:$0x3] %vm20277_vm12, %v6882_v7  ;;  %v8519_v47 = vshrl.u32 %v8503_v25, 16  ;;  %v8522_v3 = vshll.u32 %v8503_v25, 16  ;;  %vm20280_vm13 = vcmp.ne.s16.totalorder %v17833_v17, 0  ;;  %vm20281_vm14 = vcmask 255168  }
 0x5ae   :  { %v7428_v30 = vsel %vm20278_vm0, %v7426_v62, %v7427_v54  ;;  %v8368_v32 = vsel %vm20280_vm13, %v8335_v63, 0  ;;  %v7509_v38 = vshrl.u32 %v7362_v1, 16  ;;  %v7512_v59 = vshll.u32 %v7362_v1, 16  ;;  %vm18245_vm13 = vmand %vm18061_vm6, %vm20286_vm11 }
 0x5af   :  { %12416 = vmatprep.mubr.msk.bf16.mxu1 %vm7443_vm5, %v7428_v30  ;;  %v8249_v22 = vrot.slane %v8247_v46, 5  ;;  %v8252_v13 = vrot.slane %v8250_v27, 6  ;;  %v8516_v7 = vrot.slane %v8514_v45, 7  ;;  %v8245_v62 = vor.u32 %v8244_v29, %v8241_v8 }
 0x5b0   :  { %v6958_v39 = vpop.permute.xlu0 %6957  ;;  %v18216_v17 = vsel %vm8366_vm7, %v18171_v9, 0  ;;  %v8379_v63 = vrot.slane %v8368_v32, 6  ;;  %v8521_v25 = vrot.slane %v8519_v47, 6  ;;  %v8524_v51 = vrot.slane %v8522_v3, 7 }
 0x5b1   :  { %6960 = vst.msk [vmem:[#allocation2 + $0x10] sm:$0x3] %vm20281_vm14, %v6958_v39  ;;  %v18211_v36 = vor.u32 %v8252_v13, %v8249_v22  ;;  %v7511_v42 = vrot.slane %v7509_v38, 1  ;;  %v7514_v30 = vrot.slane %v7512_v59, 2  ;;  %v8380_v55 = vrot.slane %v18216_v17, 6 }
 0x5b2   :  { %v7814_v1 = vrot.slane %v7812_v28, 4  ;;  %v8517_v46 = vor.u32 %v8516_v7, %v8513_v57  ;;  %v18223_v45 = vor.u32 %v8524_v51, %v8521_v25  ;;  %v7503_v27 = vrot.slane %v7501_v6, 1 }
 0x5b3   :  { %v18220_v19 = vsel %vm7636_vm9, %v8245_v62, %v18211_v36  ;;  %v7817_v8 = vrot.slane %v7815_v20, 5  ;;  %vm20282_vm1 = vcmp.lt.s32.totalorder %v17693_v24, 4  ;;  %vm20285_vm7 = vcmask 1041408  }
 0x5b4   :  { %vm18229_vm12 = vmand %vm18000_vm3, %vm20282_vm1  ;;  %v18236_v39 = vsel %vm20285_vm7, %v8379_v63, %v8380_v55  ;;  %vm7654_vm0 = vcmp.ne.s16.totalorder %v18157_v49, 0  ;;  %v7806_v47 = vrot.slane %v7804_v4, 4  ;;  %vm20289_vm3 = vsmask.f32 1280 }
 0x5b5   :  { %v18251_v41 = vsel %vm20289_vm3, %v8517_v46, %v18223_v45  ;;  %v7515_v38 = vor.u32 %v7514_v30, %v7511_v42  ;;  %v7658_v59 = vsel %vm7655_vm10, %v18171_v9, 0  ;;  %vm8027_vm6 = vmpackc.low %vm18229_vm12, %vm18229_vm12  ;;  %vm20290_vm14 = vcmask 126018  }
 0x5b6   :  { %v7507_v15 = vor.u32 %v7506_v14, %v7503_v27  ;;  %v18268_v22 = vor.u32 %v7817_v8, %v7814_v1  ;;  %v7657_v16 = vsel %vm7654_vm0, %v18150_v37, 0  ;;  %vm20292_vm10 = vcmp.lt.s32.totalorder %v17783_v35, 4  ;;  %v7775_v8 = vld [vmem:[#allocation2] sm:$0xf8] }
 0x5b7   :  { %vm18283_vm1 = vmand %vm18114_vm15, %vm20292_vm10  ;;  %vm20295_vm7 = vsmask.f32 6400  ;;  %v7675_v49 = vshrl.u32 %v7658_v59, 16  ;;  %v7678_v37 = vshll.u32 %v7658_v59, 16  ;;  %v7810_v57 = vor.u32 %v7809_v44, %v7806_v47 }
 0x5b8   :  { %v7297_v50 = vld [vmem:[#allocation2 + $0x10] sm:$0x3]  ;;  %v7516_v20 = vsel %vm20295_vm7, %v7507_v15, %v7515_v38  ;;  %vm20296_vm0 = vcmp.lt.s32.totalorder %v17785_v21, 4  ;;  %v8031_v0 = vsel %vm8027_vm6, 65537, %v19331_v11  ;;  %vm20299_vm15 = vcmask 191618   ;;  %vm8029_vm12 = vmpackc.low %vm18283_vm1, %vm18283_vm1 }
 0x5b9   :  { %v7363_v3 = vsel %vm7360_vm4, %v7297_v50, 0  ;;  %v7416_v32 = vsel %vm7413_vm8, %v7297_v50, 0  ;;  %vm8028_vm4 = vmpackc.low %vm18245_vm13, %vm18245_vm13  ;;  %vm20291_vm8 = vcmask 1045504   ;;  %v7667_v61 = vshrl.u32 %v7657_v16, 16 }
 0x5ba   :  { %v7110_v4 = vpop.permute.xlu1 %7109  ;;  %v7429_v34 = vrot.slane %v7416_v32, 2  ;;  %v7518_v10 = vshrl.u32 %v7363_v3, 16  ;;  %v7521_v13 = vshll.u32 %v7363_v3, 16  ;;  %vm18293_vm11 = vmand %vm18121_vm2, %vm20296_vm0  ;;  %v8032_v21 = vsel %vm8028_vm4, 65537, %v19331_v11  ;;  %v13069_v3 = vld [vmem:[%s18976_s2 + $0x28] sm:$0xff]  }
 0x5bb   :  { %7112 = vst.msk [vmem:[#allocation2 + $0x10] sm:$0xc] %vm20290_vm14, %v7110_v4  ;;  %vm20300_vm2 = vsmask.f32 3328  ;;  %vm8030_vm13 = vmpackc.low %vm18293_vm11, %vm18293_vm11  ;;  %v7677_v62 = vrot.slane %v7675_v49, 2  ;;  %v7680_v63 = vrot.slane %v7678_v37, 3  ;;  %v18323_v25 = vcombine.low %v8031_v0, %v8032_v21 }
 0x5bc   :  { %v7430_v60 = vsel %vm20291_vm8, %v7427_v54, %v7429_v34  ;;  %v7670_v54 = vshll.u32 %v7657_v16, 16  ;;  %v7819_v7 = vsel %vm20300_vm2, %v7810_v57, %v18268_v22  ;;  %v7520_v6 = vrot.slane %v7518_v10, 1  ;;  %vm20302_vm4 = vmmov %vm20295_vm7 }
 0x5bd   :  { %12417 = vmatmul.mubr.msk.bf16.vlgmr.msra.gmra.mrb[64].mxu1 %vm7443_vm5, %v7430_v60  ;;  %v7523_v23 = vrot.slane %v7521_v13, 2  ;;  %vm7821_vm3 = vcmp.ne.s16.totalorder %v7819_v7, 0  ;;  %vm20301_vm6 = vcmask 257218   ;;  %v7669_v42 = vrot.slane %v7667_v61, 2 }
 0x5be   :  { %12424 = vmatprep.mubr.msk.bf16.mxu1 %vm7443_vm5, %v7516_v20  ;;  %v7187_v35 = vpop.permute.xlu0 %7186  ;;  %12421 = vmatpush3.bf16.msra.mxu1 %v17856_v18  ;;  %v13068_v18 = vld [vmem:[%s18976_s2 + $0x20] sm:$0xff]   ;;  %v7672_v30 = vrot.slane %v7670_v54, 3  ;;  %v8033_v1 = vsel %vm8029_vm12, 65537, %v19331_v11  ;;  %v8034_v46 = vsel %vm8030_vm13, 65537, %v19331_v11  ;;  %v18328_v14 = vor.u32 %v7680_v63, %v7677_v62 }
 0x5bf   :  { %7189 = vst.msk [vmem:[#allocation2 + $0x10] sm:$0xc] %vm20299_vm15, %v7187_v35  ;;  %12422 = vmatprep.subr.bf16.mxu1 %v13067_v56  ;;  %v7524_v27 = vor.u32 %v7523_v23, %v7520_v6  ;;  %vm7820_vm14 = vcmp.ne.s16.totalorder %v7810_v57, 0  ;;  %v7824_v29 = vsel %vm7821_vm3, %v18171_v9, 0  ;;  %v8042_v50 = vshrl.u32 %v18323_v25, 16 }
 0x5c0   :  { %v11497_v47 = vcombine.low %v8033_v1, %v8034_v46  ;;  %v7673_v24 = vor.u32 %v7672_v30, %v7669_v42  ;;  %v8045_v32 = vshll.u32 %v18323_v25, 16  ;;  %vm7656_vm8 = vcmp.ne.s16.totalorder %v18168_v2, 0 }
 0x5c1   :  { %v7525_v44 = vsel %vm20302_vm4, %v7515_v38, %v7524_v27  ;;  %v7823_v4 = vsel %vm7820_vm14, %v7775_v8, 0  ;;  %v7840_v34 = vshrl.u32 %v7824_v29, 16  ;;  %vm8501_vm10 = vcmp.ne.s16.totalorder %v17873_v48, 0  ;;  %v13070_v38 = vld [vmem:[%s18976_s2 + $0x30] sm:$0xff]  }
 0x5c2   :  { %v7264_v51 = vpop.permute.xlu1 %7263  ;;  %12423 = vmatpush3.bf16.msra.mxu1 %v13067_v56  ;;  %vm20303_vm1 = vsmask.f32 5376  ;;  %v7843_v15 = vshll.u32 %v7824_v29, 16  ;;  %v8044_v56 = vrot.slane %v8042_v50, 3  ;;  %vm8229_vm7 = vcmp.ne.s16.totalorder %v17883_v53, 0 }
 0x5c3   :  { %7266 = vst.msk [vmem:[#allocation2 + $0x10] sm:$0xc] %vm20301_vm6, %v7264_v51  ;;  %12428 = vmatprep.subr.bf16.mxu1 %v13068_v18  ;;  %v7682_v59 = vsel %vm20303_vm1, %v7673_v24, %v18328_v14  ;;  %v8050_v60 = vshrl.u32 %v11497_v47, 16  ;;  %v8053_v10 = vshll.u32 %v11497_v47, 16  ;;  %v7832_v28 = vshrl.u32 %v7823_v4, 16  ;;  %vm20305_vm2 = vmmov %vm20303_vm1 }
 0x5c4   :  { %v7835_v20 = vshll.u32 %v7823_v4, 16  ;;  %vm7822_vm0 = vcmp.ne.s16.totalorder %v18268_v22, 0  ;;  %v7842_v52 = vrot.slane %v7840_v34, 3  ;;  %vm8367_vm11 = vcmp.ne.s16.totalorder %v17835_v40, 0  ;;  %v13071_v22 = vld [vmem:[%s18976_s2 + $0x38] sm:$0xff]  }
 0x5c5   :  { %v7845_v35 = vrot.slane %v7843_v15, 4  ;;  %v8055_v7 = vrot.slane %v8053_v10, 4  ;;  %v7834_v6 = vrot.slane %v7832_v28, 3  ;;  %v8047_v8 = vrot.slane %v8045_v32, 4 }
 0x5c6   :  { %v7837_v23 = vrot.slane %v7835_v20, 4  ;;  %vm20304_vm15 = vcmask 1041408   ;;  %vm20306_vm12 = vsmask.f32 4352  ;;  %vm20308_vm3 = vsmask.f32 1280 }
 0x5c7   :  { %v7846_v30 = vor.u32 %v7845_v35, %v7842_v52  ;;  %v8048_v17 = vor.u32 %v8047_v8, %v8044_v56  ;;  %vm20307_vm13 = vmmov %vm20306_vm12  ;;  %v7939_v56 = vrot.slane %v18171_v9, 4  ;;  %vm7937_vm14 = vcmask 1043456  }
 0x5c8   :  { %v7838_v24 = vor.u32 %v7837_v23, %v7834_v6  ;;  %vm20309_vm4 = vmmov %vm20306_vm12 }
 0x5c9   :  { %12425 = vmatmul.mubr.msk.bf16.vlgmr.msra.gmra.mrb[64].mxu1 %vm7443_vm5, %v7525_v44  ;;  %vm8058_vm6 = vcmp.ne.s16.totalorder %v8048_v17, 0 }
 0x5ca   :  { %12432 = vmatprep.mubr.msk.bf16.mxu1 %vm7443_vm5, %v7682_v59  ;;  %12429 = vmatpush3.bf16.msra.mxu1 %v13068_v18  ;;  %v7593_v16 = vld [vmem:[#allocation2 + $0x10] sm:$0x7]  ;;  %v8052_v18 = vrot.slane %v8050_v60, 3  ;;  %v7847_v59 = vsel %vm20306_vm12, %v7838_v24, %v7846_v30  ;;  %v13079_v24 = vld [vmem:[%s18976_s2 + $0x78] sm:$0xff]  }
 0x5cb   :  { %12430 = vmatprep.subr.bf16.mxu1 %v13069_v3  ;;  %v7659_v13 = vsel %vm7656_vm8, %v7593_v16, 0  ;;  %v8183_v49 = vld [vmem:[#allocation2 + $0x10] sm:$0x3f] }
 0x5cc   :  { %v7684_v37 = vshrl.u32 %v7659_v13, 16  ;;  %v7687_v57 = vshll.u32 %v7659_v13, 16  ;;  %v18351_v0 = vld [vmem:[#allocation2 + $0x10] sm:$0xf]  ;;  %v8232_v21 = vsel %vm8229_vm7, %v8183_v49, 0  ;;  %v8370_v53 = vsel %vm8367_vm11, %v8183_v49, 0 }
 0x5cd   :  { %v8455_v61 = vld [vmem:[#allocation2 + $0x10] sm:$0x7f]  ;;  %v8256_v62 = vshrl.u32 %v8232_v21, 16  ;;  %v8259_v63 = vshll.u32 %v8232_v21, 16  ;;  %v7825_v51 = vsel %vm7822_vm0, %v18351_v0, 0  ;;  %v8382_v27 = vrot.slane %v8370_v53, 6 }
 0x5ce   :  { %12431 = vmatpush3.bf16.msra.mxu1 %v13069_v3  ;;  %v7686_v2 = vrot.slane %v7684_v37, 2  ;;  %v7689_v54 = vrot.slane %v7687_v57, 3  ;;  %v8504_v42 = vsel %vm8501_vm10, %v8455_v61, 0  ;;  %v8056_v29 = vor.u32 %v8055_v7, %v8052_v18  ;;  %v13073_v49 = vld [vmem:[%s18976_s2 + $0x48] sm:$0xff]   ;;  %v13074_v61 = vld [vmem:[%s18976_s2 + $0x50] sm:$0xff]  }
 0x5cf   :  { %12436 = vmatprep.subr.bf16.mxu1 %v13070_v38  ;;  %v8258_v1 = vrot.slane %v8256_v62, 5  ;;  %v8261_v46 = vrot.slane %v8259_v63, 6  ;;  %v8528_v50 = vshrl.u32 %v8504_v42, 16  ;;  %v8531_v47 = vshll.u32 %v8504_v42, 16  ;;  %v8014_v18 = vld [vmem:[#allocation2 + $0x10] sm:$0x1f] }
 0x5d0   :  { %v7690_v25 = vor.u32 %v7689_v54, %v7686_v2  ;;  %v7849_v3 = vshrl.u32 %v7825_v51, 16  ;;  %v18368_v40 = vsel %vm20304_vm15, %v8380_v55, %v8382_v27  ;;  %v7852_v4 = vshll.u32 %v7825_v51, 16  ;;  %v13075_v51 = vld [vmem:[%s18976_s2 + $0x58] sm:$0xff]  }
 0x5d1   :  { %v8262_v44 = vor.u32 %v8261_v46, %v8258_v1  ;;  %v8530_v32 = vrot.slane %v8528_v50, 6  ;;  %v8533_v34 = vrot.slane %v8531_v47, 7  ;;  %v8057_v10 = vsel %vm20307_vm13, %v8048_v17, %v8056_v29  ;;  %v13078_v47 = vld [vmem:[%s18976_s2 + $0x70] sm:$0xff]  }
 0x5d2   :  { %v7691_v48 = vsel %vm20305_vm2, %v18328_v14, %v7690_v25  ;;  %v13072_v14 = vld [vmem:[%s18976_s2 + $0x40] sm:$0xff]   ;;  %v7851_v16 = vrot.slane %v7849_v3, 3  ;;  %v7854_v60 = vrot.slane %v7852_v4, 4  ;;  %vm8060_vm8 = vcmp.ne.s16.totalorder %v8056_v29, 0  ;;  %v13077_v29 = vld [vmem:[%s18976_s2 + $0x68] sm:$0xff]  }
 0x5d3   :  { %v18376_v15 = vsel %vm7636_vm9, %v18211_v36, %v8262_v44  ;;  %v8534_v55 = vor.u32 %v8533_v34, %v8530_v32  ;;  %vm8059_vm9 = vcmp.ne.s16.totalorder %v8057_v10, 0  ;;  %v7941_v23 = vrot.slane %v18351_v0, 4  ;;  %v13076_v0 = vld [vmem:[%s18976_s2 + $0x60] sm:$0xff]  }
 0x5d4   :  { %v7855_v36 = vor.u32 %v7854_v60, %v7851_v16  ;;  %v8062_v28 = vsel %vm8059_vm9, %v18171_v9, 0  ;;  %v8063_v63 = vsel %vm8060_vm8, %v8014_v18, 0  ;;  %vm20310_vm10 = vsmask.f32 3328 }
 0x5d5   :  { %12433 = vmatmul.mubr.msk.bf16.vlgmr.msra.gmra.mrb[64].mxu1 %vm7443_vm5, %v7691_v48  ;;  %v18385_v13 = vsel %vm20308_vm3, %v18223_v45, %v8534_v55  ;;  %v8078_v52 = vshrl.u32 %v8062_v28, 16  ;;  %v8081_v35 = vshll.u32 %v8062_v28, 16  ;;  %v7942_v53 = vsel %vm7937_vm14, %v7939_v56, %v7941_v23  ;;  %vm20311_vm1 = vmmov %vm20310_vm10  ;;  %v11536_v55 = vld [vmem:[%s18979_s5] ss:$0 sm:$0xff] }
 0x5d6   :  { %12440 = vmatprep.mubr.msk.bf16.mxu1 %vm7443_vm5, %v7847_v59  ;;  %12437 = vmatpush3.bf16.msra.mxu1 %v13070_v38  ;;  %v7928_v38 = vld [vmem:[#allocation2] sm:$0xf0]  ;;  %v7856_v37 = vsel %vm20309_vm4, %v7846_v30, %v7855_v36  ;;  %v8087_v42 = vshrl.u32 %v8063_v63, 16  ;;  %v8090_v30 = vshll.u32 %v8063_v63, 16  ;;  %vm20312_vm7 = vmmov 0  }
 0x5d7   :  { %12438 = vmatprep.subr.bf16.mxu1 %v13071_v22  ;;  %v7938_v20 = vrot.slane %v7928_v38, 4  ;;  %v8061_v45 = vsel %vm8058_vm6, %v7928_v38, 0  ;;  %v8080_v2 = vrot.slane %v8078_v52, 4  ;;  %v8083_v54 = vrot.slane %v8081_v35, 5 }
 0x5d8   :  { %v8070_v21 = vshrl.u32 %v8061_v45, 16  ;;  %v8073_v9 = vshll.u32 %v8061_v45, 16  ;;  %v8089_v46 = vrot.slane %v8087_v42, 4  ;;  %v8092_v27 = vrot.slane %v8090_v30, 5 }
 0x5d9   :  { %v7940_v57 = vsel %vm7937_vm14, %v7938_v20, %v7939_v56  ;;  %v8084_v62 = vor.u32 %v8083_v54, %v8080_v2  ;;  %vm20313_vm0 = vcmask 130048   ;;  %vm20321_vm6 = vcmask 64512  }
 0x5da   :  { %12439 = vmatpush3.bf16.msra.mxu1 %v13071_v22  ;;  %v8072_v7 = vrot.slane %v8070_v21, 4  ;;  %v8075_v6 = vrot.slane %v8073_v9, 5  ;;  %v8093_v8 = vor.u32 %v8092_v27, %v8089_v46  ;;  %v13081_v22 = vld [vmem:[%s18976_s2 + $0x88] sm:$0xff]   ;;  %vm20314_vm11 = vmmov %vm20313_vm0 }
 0x5db   :  { %12444 = vmatprep.subr.bf16.mxu1 %v13072_v14  ;;  %vm20315_vm15 = vmmov %vm20313_vm0 }
 0x5dc   :  { %v8076_v25 = vor.u32 %v8075_v6, %v8072_v7  ;;  %v8094_v50 = vsel %vm20311_vm1, %v8084_v62, %v8093_v8  ;;  %vm20316_vm2 = vmmov %vm20313_vm0 }
 0x5dd   :  { %vm20317_vm12 = vmmov %vm20313_vm0 }
 0x5de   :  { %v8085_v1 = vsel %vm20310_vm10, %v8076_v25, %v8084_v62  ;;  %vm20318_vm13 = vmmov %vm20313_vm0 }
 0x5df   :  { %vm20319_vm3 = vmmov %vm20313_vm0 }
 0x5e0   :  { %vm20320_vm9 = vmmov %vm20313_vm0 }
 0x5e1   :  { %12441 = vmatmul.mubr.msk.bf16.vlgmr.msra.gmra.mrb[64].mxu1 %vm7443_vm5, %v7856_v37  ;;  %vm20322_vm4 = vmmov %vm20321_vm6 }
 0x5e2   :  { %12448 = vmatprep.mubr.msk.bf16.mxu1 %vm7443_vm5, %v7940_v57  ;;  %12445 = vmatpush3.bf16.msra.mxu1 %v13072_v14  ;;  %vm20323_vm10 = vmmov %vm20322_vm4 }
 0x5e3   :  { %12446 = vmatprep.subr.bf16.mxu1 %v13073_v49  ;;  %vm20324_vm1 = vmmov %vm20322_vm4 }
 0x5e6   :  { %12447 = vmatpush3.bf16.msra.mxu1 %v13073_v49 }
 0x5e7   :  { %12452 = vmatprep.subr.bf16.mxu1 %v13074_v61 }
 0x5ed   :  { %12449 = vmatmul.mubr.msk.bf16.vlgmr.msra.gmra.mrb[64].mxu1 %vm7443_vm5, %v7942_v53 }
 0x5ee   :  { %12456 = vmatprep.mubr.msk.bf16.mxu1 %vm7443_vm5, %v8085_v1  ;;  %12453 = vmatpush3.bf16.msra.mxu1 %v13074_v61 }
 0x5ef   :  { %12454 = vmatprep.subr.bf16.mxu1 %v13075_v51 }
 0x5f2   :  { %12455 = vmatpush3.bf16.msra.mxu1 %v13075_v51 }
 0x5f3   :  { %12460 = vmatprep.subr.bf16.mxu1 %v13076_v0 }
 0x5f9   :  { %12457 = vmatmul.mubr.msk.bf16.vlgmr.msra.gmra.mrb[64].mxu1 %vm7443_vm5, %v8094_v50 }
 0x5fa   :  { %12464 = vmatprep.mubr.msk.bf16.mxu1 %vm7443_vm5, %v18220_v19  ;;  %12461 = vmatpush3.bf16.msra.mxu1 %v13076_v0  ;;  %v13080_v19 = vld [vmem:[%s18976_s2 + $0x80] sm:$0xff]   ;;  %s13161_s2 = smov 96  }
 0x5fb   :  { %12462 = vmatprep.subr.bf16.mxu1 %v13077_v29 }
 0x5fe   :  { %12463 = vmatpush3.bf16.msra.mxu1 %v13077_v29 }
 0x5ff   :  { %12468 = vmatprep.subr.bf16.mxu1 %v13078_v47 }
 0x605   :  { %12465 = vmatmul.mubr.msk.bf16.vlgmr.msra.gmra.mrb[64].mxu1 %vm7443_vm5, %v18376_v15 }
 0x606   :  { %12472 = vmatprep.mubr.msk.bf16.mxu1 %vm7443_vm5, %v18236_v39  ;;  %12469 = vmatpush3.bf16.msra.mxu1 %v13078_v47 }
 0x607   :  { %12470 = vmatprep.subr.bf16.mxu1 %v13079_v24 }
 0x60a   :  { %12471 = vmatpush3.bf16.msra.mxu1 %v13079_v24 }
 0x60b   :  { %12476 = vmatprep.subr.bf16.mxu1 %v13080_v19 }
 0x611   :  { %12473 = vmatmul.mubr.msk.bf16.vlgmr.msra.gmra.mrb[64].mxu1 %vm7443_vm5, %v18368_v40 }
 0x612   :  { %12480 = vmatprep.mubr.msk.bf16.mxu1 %vm7443_vm5, %v18251_v41  ;;  %12477 = vmatpush3.bf16.msra.mxu1 %v13080_v19 }
 0x613   :  { %12478 = vmatprep.subr.bf16.mxu1 %v13081_v22 }
 0x616   :  { %12479 = vmatpush3.bf16.msra.mxu1 %v13081_v22 }
 0x617   :  { %12484 = vmatprep.subr.mxu1 %v13157_v43 }
 0x61d   :  { %12481 = vmatmul.mubr.msk.bf16.vlgmr.msra.gmra.mrb[64].mxu1 %vm7443_vm5, %v18385_v13 }
 0x61e   :  { %12486 = vmatprep.mubr.msk.f32.mxu1 %vm20312_vm7, %v13157_v43 }
 0x6f0   :  { %v12482_v39 = vpop.f32.mrb[64].mxu1 }
 0x6f1   :  { %v8588_v3 = vpop.f32.mrb[65].mxu1 }
 0x6f2   :  { %8611 = vrot.lane.b32.xlu0 %v8588_v3, %s13154_s14  ;;  %v12483_v44 = vpop.f32.mrb[66].mxu1 }
 0x6f3   :  { %v8591_v40 = vpop.f32.mrb[67].mxu1 }
 0x6f4   :  { %8613 = vrot.lane.b32.xlu1 %v8591_v40, %s13154_s14 }
 0x6f6   :  { %8615 = vrot.lane.b32.xlu0 %v12482_v39, %s13154_s14 }
 0x6f8   :  { %8617 = vrot.lane.b32.xlu1 %v12483_v44, %s13154_s14 }
 0x764   :  { %v8612_v41 = vpop.permute.xlu0 %8611 }
 0x765   :  { %v8623_v48 = vmax.f32 %v8588_v3, %v8612_v41 }
 0x766   :  { %v8614_v4 = vpop.permute.xlu1 %8613 }
 0x767   :  { %v8624_v32 = vmax.f32 %v8591_v40, %v8614_v4  ;;  %8631 = vrot.lane.b32.xlu0 %v8623_v48, %s13161_s2  ;;  %v11538_v4 = vld [vmem:[%s18979_s5 + $0x1] ss:$0 sm:$0xff] }
 0x768   :  { %v8616_v34 = vpop.permute.xlu0 %8615 }
 0x769   :  { %v8625_v59 = vmax.f32 %v12482_v39, %v8616_v34  ;;  %8633 = vrot.lane.b32.xlu1 %v8624_v32, %s13161_s2  ;;  %v18482_v34 = vld [vmem:[%s18979_s5 + $0x2] ss:$0 sm:$0xff]  ;;  %s13162_s5 = smov 32  }
 0x76a   :  { %v8618_v15 = vpop.permute.xlu1 %8617 }
 0x76b   :  { %v8626_v17 = vmax.f32 %v12483_v44, %v8618_v15  ;;  %8635 = vrot.lane.b32.xlu0 %v8625_v59, %s13161_s2 }
 0x76d   :  { %8637 = vrot.lane.b32.xlu1 %v8626_v17, %s13161_s2 }
 0x7d9   :  { %v8632_v14 = vpop.permute.xlu0 %8631 }
 0x7da   :  { %v8643_v16 = vmax.f32 %v8623_v48, %v8632_v14 }
 0x7db   :  { %v8634_v60 = vpop.permute.xlu1 %8633 }
 0x7dc   :  { %v8654_v10 = vadd.f32 %v11536_v55, %v8643_v16  ;;  %v8644_v13 = vmax.f32 %v8624_v32, %v8634_v60  ;;  %v8734_v60 = vadd.s32 4, %v17348_v31 }
 0x7dd   :  { %v8636_v36 = vpop.permute.xlu0 %8635 }
 0x7de   :  { %v8672_v38 = vmul.f32 %v8654_v10, %v8654_v10  ;;  %v8655_v56 = vadd.f32 %v11536_v55, %v8644_v13  ;;  %v8645_v28 = vmax.f32 %v8625_v59, %v8636_v36  ;;  %v8658_v49 = vsel %vm20313_vm0, %v8654_v10, 0.0  ;;  %vm20325_vm0 = vmmov %vm20324_vm1 }
 0x7df   :  { %v8638_v20 = vpop.permute.xlu1 %8637  ;;  %vm8735_vm14 = vcmp.eq.s32.totalorder %v17351_v58, %v8734_v60  ;;  %v8738_v13 = vadd.s32 1, %v8734_v60 }
 0x7e0   :  { %v8659_v37 = vsel %vm20314_vm11, %v8655_v56, 0.0  ;;  %v8673_v45 = vmul.f32 %v8655_v56, %v8655_v56  ;;  %v18455_v57 = vadd.f32 %v11536_v55, %v8645_v28  ;;  %v8646_v35 = vmax.f32 %v8626_v17, %v8638_v20  ;;  %vm20326_vm11 = vmmov %vm20325_vm0 }
 0x7e1   :  { %v8660_v52 = vadd.f32 %v8659_v37, %v8658_v49  ;;  %v8676_v21 = vsel %vm20315_vm15, %v8672_v38, 0.0  ;;  %v18500_v31 = vsel %vm8735_vm14, 1.0, %v13157_v43  ;;  %vm8739_vm8 = vcmp.eq.s32.totalorder %v17351_v58, %v8738_v13  ;;  %vm20327_vm15 = vmmov %vm20325_vm0 }
 0x7e2   :  { %v8677_v9 = vsel %vm20316_vm2, %v8673_v45, 0.0  ;;  %v8661_v61 = vsel %vm20317_vm12, %v18455_v57, 0.0  ;;  %v8674_v2 = vmul.f32 %v18455_v57, %v18455_v57  ;;  %v18463_v7 = vadd.f32 %v11536_v55, %v8646_v35  ;;  %vm20328_vm2 = vmmov %vm20325_vm0 }
 0x7e3   :  { %v8678_v54 = vadd.f32 %v8677_v9, %v8676_v21  ;;  %v8662_v18 = vadd.f32 %v8661_v61, %v8660_v52  ;;  %vm20329_vm12 = vmmov %vm20325_vm0 }
 0x7e4   :  { %v8679_v6 = vsel %vm20318_vm13, %v8674_v2, 0.0  ;;  %v8663_v62 = vsel %vm20319_vm3, %v18463_v7, 0.0  ;;  %v8675_v63 = vmul.f32 %v18463_v7, %v18463_v7  ;;  %vm20330_vm13 = vmmov %vm20325_vm0 }
 0x7e5   :  { %v8680_v23 = vadd.f32 %v8679_v6, %v8678_v54  ;;  %v8664_v25 = vadd.f32 %v8663_v62, %v8662_v18  ;;  %vm20331_vm3 = vmmov %vm20325_vm0 }
 0x7e6   :  { %v8681_v51 = vsel %vm20320_vm9, %v8675_v63, 0.0  ;;  %vm20332_vm9 = vmmov %vm20325_vm0 }
 0x7e7   :  { %v8665_v53 = vrot.slane %v8664_v25, 4  ;;  %v8682_v42 = vadd.f32 %v8681_v51, %v8680_v23  ;;  %vm20334_vm14 = vmmov %vm20325_vm0 }
 0x7e9   :  { %v8666_v30 = vadd.f32 %v8665_v53, %v8664_v25  ;;  %v8683_v1 = vrot.slane %v8682_v42, 4 }
 0x7eb   :  { %v8667_v0 = vrot.slane %v8666_v30, 2  ;;  %v8684_v46 = vadd.f32 %v8683_v1, %v8682_v42 }
 0x7ed   :  { %v8668_v27 = vadd.f32 %v8667_v0, %v8666_v30  ;;  %v8685_v8 = vrot.slane %v8684_v46, 2 }
 0x7ef   :  { %v8669_v29 = vrot.slane %v8668_v27, 1  ;;  %v8686_v50 = vadd.f32 %v8685_v8, %v8684_v46 }
 0x7f1   :  { %v8670_v47 = vadd.f32 %v8669_v29, %v8668_v27  ;;  %v8687_v24 = vrot.slane %v8686_v50, 1 }
 0x7f3   :  { %v18471_v19 = vmul.f32 0.03125, %v8670_v47  ;;  %v8688_v22 = vadd.f32 %v8687_v24, %v8686_v50 }
 0x7f5   :  { %v8689_v39 = vmul.f32 0.03125, %v8688_v22  ;;  %v8690_v3 = vmul.f32 %v18471_v19, %v18471_v19  ;;  %v8692_v41 = vsub.f32 %v8654_v10, %v18471_v19  ;;  %v8693_v17 = vsub.f32 %v8655_v56, %v18471_v19 }
 0x7f6   :  { %v18509_v56 = vsel %vm8739_vm8, 1.0, %v13157_v43  ;;  %v8694_v28 = vsub.f32 %v18455_v57, %v18471_v19  ;;  %v8695_v57 = vsub.f32 %v18463_v7, %v18471_v19  ;;  %vm20336_vm8 = vmmov %vm20325_vm0 }
 0x7f7   :  { %v8691_v44 = vsub.f32 %v8689_v39, %v8690_v3 }
 0x7f9   :  { %v8696_v40 = vadd.f32 1e-05, %v8691_v44 }
 0x7fb   :  { %13120 = vrsqrt.f32 %v8696_v40 }
 0x805   :  { %v13121_v48 = vpop.eup %13120 }
 0x806   :  { %v8698_v32 = vmul.f32 %v13121_v48, %v8692_v41  ;;  %v8699_v14 = vmul.f32 %v13121_v48, %v8693_v17  ;;  %v8700_v49 = vmul.f32 %v13121_v48, %v8694_v28  ;;  %v8701_v52 = vmul.f32 %v13121_v48, %v8695_v57  ;;  %v13082_v41 = vld [vmem:[%s18977_s3 + $0x20] sm:$0xff]  }
 0x807   :  { %12565 = vmatpush3.bf16.msra.mxu0 %v13082_v41 }
 0x808   :  { %v8710_v59 = vmul.f32 %v11538_v4, %v8698_v32  ;;  %v8711_v10 = vmul.f32 %v11538_v4, %v8699_v14  ;;  %v8712_v58 = vmul.f32 %v11538_v4, %v8700_v49  ;;  %v8713_v21 = vmul.f32 %v11538_v4, %v8701_v52  ;;  %12566 = vmatprep.subr.bf16.mxu0 %v13157_v43 }
 0x80a   :  { %v8722_v15 = vadd.f32 %v18482_v34, %v8710_v59  ;;  %v8723_v36 = vadd.f32 %v18482_v34, %v8711_v10  ;;  %v8724_v37 = vadd.f32 %v18482_v34, %v8712_v58  ;;  %v8725_v9 = vadd.f32 %v18482_v34, %v8713_v21  ;;  %v13083_v59 = vld [vmem:[%s18977_s3 + $0x28] sm:$0xff]  }
 0x80b   :  { %12567 = vmatpush3.bf16.msra.mxu0 %v13083_v59  ;;  %v18665_v59 = vld [vmem:[#allocation3] sm:$0x8] }
 0x80c   :  { %v8726_v55 = vmul.f32 0.2, %v8722_v15  ;;  %v8727_v38 = vmul.f32 0.2, %v8723_v36  ;;  %v8728_v45 = vmul.f32 0.2, %v8724_v37  ;;  %12568 = vmatprep.subr.bf16.mxu0 %v13157_v43 }
 0x80d   :  { %v8729_v61 = vmul.f32 0.2, %v8725_v9 }
 0x80e   :  { %v8730_v16 = vmax.f32 %v8722_v15, %v8726_v55  ;;  %v8731_v20 = vmax.f32 %v8723_v36, %v8727_v38  ;;  %v8732_v35 = vmax.f32 %v8724_v37, %v8728_v45  ;;  %v13084_v55 = vld [vmem:[%s18977_s3 + $0x30] sm:$0xff]  }
 0x80f   :  { %v8733_v2 = vmax.f32 %v8725_v9, %v8729_v61  ;;  %12569 = vmatpush3.bf16.msra.mxu0 %v13084_v55 }
 0x810   :  { %12485 = vmatpush3.msra.mxu1 %v8730_v16  ;;  %12570 = vmatprep.subr.bf16.mxu0 %v13157_v43 }
 0x811   :  { %12487 = vmatmul.mubr.msk.f32.vlgmr.msra.gmra.mrb[68].mxu1 %vm20321_vm6, %v17358_v33  ;;  %12489 = vmatprep.subr.mxu1 %v13157_v43  ;;  %vm20333_vm6 = vmmov %vm20325_vm0 }
 0x812   :  { %12490 = vmatpush3.msra.mxu1 %v8730_v16  ;;  %12491 = vmatprep.mubr.msk.f32.mxu1 %vm20312_vm7, %v13157_v43 }
 0x813   :  { %12494 = vmatprep.subr.mxu1 %v13157_v43 }
 0x815   :  { %12492 = vmatmul.mubr.msk.f32.vlgmr.msra.gmra.mrb[70].mxu1 %vm20322_vm4, %v17368_v26  ;;  %vm20335_vm4 = vmmov %vm20325_vm0 }
 0x816   :  { %12495 = vmatpush3.msra.mxu1 %v8730_v16  ;;  %12496 = vmatprep.mubr.msk.f32.mxu1 %vm20312_vm7, %v13157_v43 }
 0x817   :  { %12499 = vmatprep.subr.mxu1 %v13157_v43 }
 0x819   :  { %12497 = vmatmul.mubr.msk.f32.vlgmr.msra.gmra.mrb[72].mxu1 %vm20323_vm10, %v18500_v31  ;;  %vm8815_vm10 = vcmask 122880  }
 0x81a   :  { %12500 = vmatpush3.msra.mxu1 %v8730_v16  ;;  %12501 = vmatprep.mubr.msk.f32.mxu1 %vm20312_vm7, %v13157_v43 }
 0x81b   :  { %12504 = vmatprep.subr.mxu1 %v13157_v43 }
 0x81d   :  { %12502 = vmatmul.mubr.msk.f32.vlgmr.msra.gmra.mrb[74].mxu1 %vm20324_vm1, %v18509_v56  ;;  %vm9138_vm1 = vcmask 123905  }
 0x81e   :  { %12505 = vmatpush3.msra.mxu1 %v8731_v20  ;;  %12506 = vmatprep.mubr.msk.f32.mxu1 %vm20312_vm7, %v13157_v43 }
 0x81f   :  { %12509 = vmatprep.subr.mxu1 %v13157_v43 }
 0x821   :  { %12507 = vmatmul.mubr.msk.f32.vlgmr.msra.gmra.mrb[76].mxu1 %vm20325_vm0, %v17358_v33  ;;  %vm9456_vm0 = vcmask 124930  }
 0x822   :  { %12510 = vmatpush3.msra.mxu1 %v8731_v20  ;;  %12511 = vmatprep.mubr.msk.f32.mxu1 %vm20312_vm7, %v13157_v43 }
 0x823   :  { %12514 = vmatprep.subr.mxu1 %v13157_v43 }
 0x825   :  { %12512 = vmatmul.mubr.msk.f32.vlgmr.msra.gmra.mrb[78].mxu1 %vm20326_vm11, %v17368_v26  ;;  %vm9774_vm11 = vcmask 125955  }
 0x826   :  { %12515 = vmatpush3.msra.mxu1 %v8731_v20  ;;  %12516 = vmatprep.mubr.msk.f32.mxu1 %vm20312_vm7, %v13157_v43 }
 0x827   :  { %12519 = vmatprep.subr.mxu1 %v13157_v43 }
 0x829   :  { %12517 = vmatmul.mubr.msk.f32.vlgmr.msra.gmra.mrb[80].mxu1 %vm20327_vm15, %v18500_v31  ;;  %vm8896_vm15 = vcmask 254080  }
 0x82a   :  { %12520 = vmatpush3.msra.mxu1 %v8731_v20  ;;  %12521 = vmatprep.mubr.msk.f32.mxu1 %vm20312_vm7, %v13157_v43 }
 0x82b   :  { %12524 = vmatprep.subr.mxu1 %v13157_v43 }
 0x82d   :  { %12522 = vmatmul.mubr.msk.f32.vlgmr.msra.gmra.mrb[82].mxu1 %vm20328_vm2, %v18509_v56  ;;  %vm8978_vm2 = vcmask 385280  }
 0x82e   :  { %12525 = vmatpush3.msra.mxu1 %v8732_v35  ;;  %12526 = vmatprep.mubr.msk.f32.mxu1 %vm20312_vm7, %v13157_v43 }
 0x82f   :  { %12529 = vmatprep.subr.mxu1 %v13157_v43 }
 0x831   :  { %12527 = vmatmul.mubr.msk.f32.vlgmr.msra.gmra.mrb[84].mxu1 %vm20329_vm12, %v17358_v33  ;;  %vm9060_vm12 = vcmask 516480  }
 0x832   :  { %12530 = vmatpush3.msra.mxu1 %v8732_v35  ;;  %12531 = vmatprep.mubr.msk.f32.mxu1 %vm20312_vm7, %v13157_v43 }
 0x833   :  { %12534 = vmatprep.subr.mxu1 %v13157_v43 }
 0x835   :  { %12532 = vmatmul.mubr.msk.f32.vlgmr.msra.gmra.mrb[86].mxu1 %vm20330_vm13, %v17368_v26  ;;  %vm9218_vm13 = vcmask 255105  }
 0x836   :  { %12535 = vmatpush3.msra.mxu1 %v8732_v35  ;;  %12536 = vmatprep.mubr.msk.f32.mxu1 %vm20312_vm7, %v13157_v43 }
 0x837   :  { %12539 = vmatprep.subr.mxu1 %v13157_v43 }
 0x839   :  { %12537 = vmatmul.mubr.msk.f32.vlgmr.msra.gmra.mrb[88].mxu1 %vm20331_vm3, %v18500_v31  ;;  %vm9298_vm3 = vcmask 386305  }
 0x83a   :  { %12540 = vmatpush3.msra.mxu1 %v8732_v35  ;;  %12541 = vmatprep.mubr.msk.f32.mxu1 %vm20312_vm7, %v13157_v43  ;;  %v13088_v35 = vld [vmem:[%s18977_s3 + $0x60] sm:$0xff]  }
 0x83b   :  { %12544 = vmatprep.subr.mxu1 %v13157_v43 }
 0x83d   :  { %12542 = vmatmul.mubr.msk.f32.vlgmr.msra.gmra.mrb[90].mxu1 %vm20332_vm9, %v18509_v56 }
 0x83e   :  { %12545 = vmatpush3.msra.mxu1 %v8733_v2  ;;  %12546 = vmatprep.mubr.msk.f32.mxu1 %vm20312_vm7, %v13157_v43 }
 0x83f   :  { %12549 = vmatprep.subr.mxu1 %v13157_v43 }
 0x841   :  { %12547 = vmatmul.mubr.msk.f32.vlgmr.msra.gmra.mrb[92].mxu1 %vm20333_vm6, %v17358_v33 }
 0x842   :  { %12550 = vmatpush3.msra.mxu1 %v8733_v2  ;;  %12551 = vmatprep.mubr.msk.f32.mxu1 %vm20312_vm7, %v13157_v43 }
 0x843   :  { %12554 = vmatprep.subr.mxu1 %v13157_v43 }
 0x845   :  { %12552 = vmatmul.mubr.msk.f32.vlgmr.msra.gmra.mrb[94].mxu1 %vm20334_vm14, %v17368_v26 }
 0x846   :  { %12555 = vmatpush3.msra.mxu1 %v8733_v2  ;;  %12556 = vmatprep.mubr.msk.f32.mxu1 %vm20312_vm7, %v13157_v43 }
 0x847   :  { %12559 = vmatprep.subr.mxu1 %v13157_v43 }
 0x849   :  { %12557 = vmatmul.mubr.msk.f32.vlgmr.msra.gmra.mrb[96].mxu1 %vm20335_vm4, %v18500_v31  ;;  %v13085_v31 = vld [vmem:[%s18977_s3 + $0x38] sm:$0xff]  }
 0x84a   :  { %12560 = vmatpush3.msra.mxu1 %v8733_v2  ;;  %12561 = vmatprep.mubr.msk.f32.mxu1 %vm20312_vm7, %v13157_v43 }
 0x84b   :  { %12600 = vmatprep.subr.bf16.mxu1 %v13157_v43  ;;  %12571 = vmatpush3.bf16.msra.mxu0 %v13085_v31 }
 0x84c   :  { %12576 = vmatprep.subr.bf16.mxu0 %v13157_v43 }
 0x84d   :  { %12562 = vmatmul.mubr.msk.f32.vlgmr.msra.gmra.mrb[98].mxu1 %vm20336_vm8, %v18509_v56  ;;  %vm9378_vm8 = vcmask 517505  }
 0x84e   :  { %12608 = vmatprep.mubr.msk.bf16.mxu1 %vm20312_vm7, %v13157_v43  ;;  %12601 = vmatpush3.bf16.msra.mxu1 %v13088_v35 }
 0x84f   :  { %12602 = vmatprep.subr.bf16.mxu1 %v13157_v43 }
 0x8e4   :  { %v8810_v33 = vpop.f32.mrb[68].mxu1 }
 0x8e5   :  { %v8814_v26 = vpack.c.bf16 %v8810_v33, %v8810_v33  ;;  %v12488_v54 = vpop.f32.mrb[69].mxu1  ;;  %v13090_v33 = vld [vmem:[%s18977_s3 + $0x68] sm:$0xff]  }
 0x8e6   :  { %12603 = vmatpush3.bf16.msra.mxu1 %v13090_v33 }
 0x8e7   :  { %8816 = vst.msk [vmem:[#allocation3 + $0x4] sm:$0x1] %vm8815_vm10, %v8814_v26  ;;  %12604 = vmatprep.subr.bf16.mxu1 %v13157_v43 }
 0x8e8   :  { %v8885_v18 = vpop.f32.mrb[70].mxu1 }
 0x8e9   :  { %v11699_v7 = vpack.c.bf16 %v8885_v18, %v8885_v18  ;;  %v12493_v6 = vpop.f32.mrb[71].mxu1 }
 0x8ea   :  { %v13092_v6 = vld [vmem:[%s18977_s3 + $0x70] sm:$0xff]  }
 0x8eb   :  { %8893 = vrot.lane.b32.xlu0 %v11699_v7, %s13159_s20  ;;  %12605 = vmatpush3.bf16.msra.mxu1 %v13092_v6 }
 0x8ec   :  { %v8967_v23 = vpop.f32.mrb[72].mxu1  ;;  %12606 = vmatprep.subr.bf16.mxu1 %v13157_v43 }
 0x8ed   :  { %v11700_v62 = vpack.c.bf16 %v8967_v23, %v8967_v23  ;;  %v12498_v63 = vpop.f32.mrb[73].mxu1 }
 0x8ef   :  { %8975 = vrot.lane.b32.xlu0 %v11700_v62, %s13162_s5  ;;  %v13094_v62 = vld [vmem:[%s18977_s3 + $0x78] sm:$0xff]  }
 0x8f0   :  { %v9049_v25 = vpop.f32.mrb[74].mxu1  ;;  %12607 = vmatpush3.bf16.msra.mxu1 %v13094_v62 }
 0x8f1   :  { %v11701_v51 = vpack.c.bf16 %v9049_v25, %v9049_v25  ;;  %v12503_v53 = vpop.f32.mrb[75].mxu1  ;;  %12612 = vmatprep.subr.bf16.mxu1 %v13157_v43 }
 0x8f2   :  { %v10017_v53 = vshra.s32 %v20168_v12, 1 }
 0x8f3   :  { %9057 = vrot.lane.b32.xlu0 %v11701_v51, %s13163_s23 }
 0x8f4   :  { %v9128_v42 = vpop.f32.mrb[76].mxu1 }
 0x8f5   :  { %v11702_v30 = vpack.c.bf16 %v9128_v42, %v9128_v42  ;;  %v12508_v1 = vpop.f32.mrb[77].mxu1  ;;  %v18627_v42 = vand.u32 1, %v10017_v53 }
 0x8f7   :  { %v9136_v0 = vrot.slane %v11702_v30, 7  ;;  %v10016_v30 = vand.u32 1, %v20168_v12  ;;  %v10019_v1 = vadd.s32 4294967295, %v18627_v42 }
 0x8f8   :  { %v9206_v46 = vpop.f32.mrb[78].mxu1 }
 0x8f9   :  { %9139 = vst.msk [vmem:[#allocation3 + $0x4] sm:$0x2] %vm9138_vm1, %v9136_v0  ;;  %v11703_v27 = vpack.c.bf16 %v9206_v46, %v9206_v46  ;;  %v12513_v8 = vpop.f32.mrb[79].mxu1  ;;  %v18631_v46 = vadd.s32 4294967295, %v10016_v30  ;;  %vm10020_vm9 = vcmp.ge.s32.totalorder %v10019_v1, 0  ;;  %vm10021_vm6 = vcmp.lt.s32.totalorder %v10019_v1, 2 }
 0x8fa   :  { %vm18633_vm14 = vmand %vm10020_vm9, %vm10021_vm6  ;;  %vm9696_vm9 = vcmask 518530   ;;  %v13093_v8 = vld [vmem:[%s18977_s3 + $0x40] sm:$0xff]  }
 0x8fb   :  { %v9214_v29 = vrot.slane %v11703_v27, 7  ;;  %vm10026_vm4 = vcmp.ge.s32.totalorder %v18631_v46, 0 }
 0x8fc   :  { %v9286_v50 = vpop.f32.mrb[80].mxu1  ;;  %vm10029_vm10 = vmand %vm18633_vm14, %vm10026_vm4 }
 0x8fd   :  { %v11704_v47 = vpack.c.bf16 %v9286_v50, %v9286_v50  ;;  %v12518_v24 = vpop.f32.mrb[81].mxu1  ;;  %9215 = vrot.lane.b32.xlu1 %v9214_v29, %s13159_s20  ;;  %vm10032_vm1 = vmpackc.low %vm10029_vm10, %vm10029_vm10 }
 0x8fe   :  { %v10033_v29 = vsel %vm10032_vm1, 65537, %v19331_v11 }
 0x8ff   :  { %v9294_v19 = vrot.slane %v11704_v47, 7  ;;  %v10035_v47 = vshrl.u32 %v10033_v29, 16  ;;  %v10038_v24 = vshll.u32 %v10033_v29, 16 }
 0x900   :  { %v9366_v22 = vpop.f32.mrb[82].mxu1 }
 0x901   :  { %v11705_v39 = vpack.c.bf16 %v9366_v22, %v9366_v22  ;;  %v12523_v3 = vpop.f32.mrb[83].mxu1  ;;  %9295 = vrot.lane.b32.xlu1 %v9294_v19, %s13162_s5  ;;  %v18652_v22 = vadd.s32 1, %v10016_v30 }
 0x903   :  { %v9374_v44 = vrot.slane %v11705_v39, 7  ;;  %vm10236_vm6 = vcmp.lt.s32.totalorder %v18652_v22, 2  ;;  %v13109_v22 = vld [vmem:[%s18977_s3 + $0xd8] sm:$0xff]  }
 0x904   :  { %v9446_v40 = vpop.f32.mrb[84].mxu1  ;;  %vm10238_vm10 = vmand %vm18633_vm14, %vm10236_vm6 }
 0x905   :  { %v11706_v48 = vpack.c.bf16 %v9446_v40, %v9446_v40  ;;  %v12528_v4 = vpop.f32.mrb[85].mxu1  ;;  %9375 = vrot.lane.b32.xlu1 %v9374_v44, %s13163_s23  ;;  %v10037_v44 = vrot.slane %v10035_v47, 5  ;;  %v10040_v40 = vrot.slane %v10038_v24, 6 }
 0x907   :  { %v9454_v32 = vrot.slane %v11706_v48, 6  ;;  %v10041_v4 = vor.u32 %v10040_v40, %v10037_v44  ;;  %v13096_v44 = vld [vmem:[%s18977_s3 + $0x80] sm:$0xff]  }
 0x908   :  { %v9524_v34 = vpop.f32.mrb[86].mxu1 }
 0x909   :  { %9457 = vst.msk [vmem:[#allocation3 + $0x4] sm:$0x4] %vm9456_vm0, %v9454_v32  ;;  %v11707_v15 = vpack.c.bf16 %v9524_v34, %v9524_v34  ;;  %v12533_v17 = vpop.f32.mrb[87].mxu1  ;;  %vm9536_vm0 = vcmask 256130  }
 0x90a   :  { %v10042_v17 = vrot.slane %v10041_v4, 4 }
 0x90b   :  { %v9532_v14 = vrot.slane %v11707_v15, 6 }
 0x90c   :  { %v9604_v16 = vpop.f32.mrb[88].mxu1 }
 0x90d   :  { %v11708_v60 = vpack.c.bf16 %v9604_v16, %v9604_v16  ;;  %9533 = vrot.lane.b32.xlu0 %v9532_v14, %s13159_s20  ;;  %v12538_v10 = vpop.f32.mrb[89].mxu1 }
 0x90f   :  { %v9612_v13 = vrot.slane %v11708_v60, 6 }
 0x910   :  { %v9684_v36 = vpop.f32.mrb[90].mxu1 }
 0x911   :  { %v11709_v38 = vpack.c.bf16 %v9684_v36, %v9684_v36  ;;  %9613 = vrot.lane.b32.xlu0 %v9612_v13, %s13162_s5  ;;  %v12543_v56 = vpop.f32.mrb[91].mxu1 }
 0x913   :  { %v9692_v28 = vrot.slane %v11709_v38, 6 }
 0x914   :  { %v9764_v20 = vpop.f32.mrb[92].mxu1 }
 0x915   :  { %9693 = vrot.lane.b32.xlu0 %v9692_v28, %s13163_s23  ;;  %v11710_v49 = vpack.c.bf16 %v9764_v20, %v9764_v20  ;;  %v12548_v58 = vpop.f32.mrb[93].mxu1  ;;  %v10023_v28 = vld [vmem:[#allocation3] sm:$0xc] }
 0x917   :  { %v9772_v37 = vrot.slane %v11710_v49, 5 }
 0x918   :  { %v9842_v45 = vpop.f32.mrb[94].mxu1 }
 0x919   :  { %9775 = vst.msk [vmem:[#allocation3 + $0x4] sm:$0x8] %vm9774_vm11, %v9772_v37  ;;  %v11711_v57 = vpack.c.bf16 %v9842_v45, %v9842_v45  ;;  %v12553_v52 = vpop.f32.mrb[95].mxu1  ;;  %vm10346_vm11 = vcmp.ge.s32.totalorder %v18627_v42, 0  ;;  %v13086_v37 = vld [vmem:[%s18977_s3] sm:$0xff]  }
 0x91b   :  { %v9850_v21 = vrot.slane %v11711_v57, 5 }
 0x91c   :  { %v9922_v9 = vpop.f32.mrb[96].mxu1 }
 0x91d   :  { %v11712_v61 = vpack.c.bf16 %v9922_v9, %v9922_v9  ;;  %9851 = vrot.lane.b32.xlu1 %v9850_v21, %s13159_s20  ;;  %v12558_v2 = vpop.f32.mrb[97].mxu1 }
 0x91e   :  { %v13087_v2 = vld [vmem:[%s18977_s3 + $0x8] sm:$0xff]  }
 0x91f   :  { %v9930_v26 = vrot.slane %v11712_v61, 5 }
 0x920   :  { %v10002_v54 = vpop.f32.mrb[98].mxu1 }
 0x921   :  { %v11713_v18 = vpack.c.bf16 %v10002_v54, %v10002_v54  ;;  %9931 = vrot.lane.b32.xlu1 %v9930_v26, %s13162_s5  ;;  %v12563_v7 = vpop.f32.mrb[99].mxu1 }
 0x922   :  { %v13089_v7 = vld [vmem:[%s18977_s3 + $0x10] sm:$0xff]  }
 0x923   :  { %v10010_v23 = vrot.slane %v11713_v18, 5 }
 0x925   :  { %10011 = vrot.lane.b32.xlu1 %v10010_v23, %s13163_s23 }
 0x95d   :  { %v8894_v63 = vpop.permute.xlu0 %8893 }
 0x95e   :  { %8897 = vst.msk [vmem:[#allocation3 + $0x4] sm:$0x1] %vm8896_vm15, %v8894_v63  ;;  %vm10347_vm15 = vcmp.lt.s32.totalorder %v18627_v42, 2  ;;  %v13091_v63 = vld [vmem:[%s18977_s3 + $0x18] sm:$0xff]  }
 0x961   :  { %v8976_v25 = vpop.permute.xlu0 %8975 }
 0x962   :  { %8979 = vst.msk [vmem:[#allocation3 + $0x4] sm:$0x1] %vm8978_vm2, %v8976_v25  ;;  %vm10062_vm2 = vmpackc.low %vm18633_vm14, %vm18633_vm14  ;;  %vm9934_vm14 = vcmask 388355  }
 0x963   :  { %v10063_v39 = vsel %vm10062_vm2, 65537, %v19331_v11  ;;  %vm10043_vm2 = vcmp.ne.s16.totalorder %v10041_v4, 0  ;;  %v10642_v4 = vadd.s32 1, %v18627_v42 }
 0x964   :  { %v10064_v41 = vrot.slane %v10063_v39, 5  ;;  %v10045_v52 = vsel %vm10043_vm2, %v10023_v28, 0 }
 0x965   :  { %v9058_v51 = vpop.permute.xlu0 %9057 }
 0x966   :  { %9061 = vst.msk [vmem:[#allocation3 + $0x4] sm:$0x1] %vm9060_vm12, %v9058_v51  ;;  %vm18648_vm12 = vmand %vm10346_vm11, %vm10347_vm15  ;;  %v10065_v32 = vrot.slane %v10064_v41, 4  ;;  %vm18667_vm1 = vcmp.ne.s16.totalorder %v10064_v41, 0  ;;  %vm9854_vm11 = vcmask 257155  }
 0x967   :  { %v10068_v16 = vsel %vm18667_vm1, %v18665_v59, 0  ;;  %vm18708_vm1 = vmand %vm18648_vm12, %vm10236_vm6 }
 0x968   :  { %vm10067_vm15 = vcmp.ne.s16.totalorder %v10065_v32, 0 }
 0x96f   :  { %v9216_v0 = vpop.permute.xlu1 %9215 }
 0x970   :  { %9219 = vst.msk [vmem:[#allocation3 + $0x4] sm:$0x2] %vm9218_vm13, %v9216_v0  ;;  %vm9616_vm13 = vcmask 387330  }
 0x973   :  { %v9296_v27 = vpop.permute.xlu1 %9295 }
 0x974   :  { %9299 = vst.msk [vmem:[#allocation3 + $0x4] sm:$0x2] %vm9298_vm3, %v9296_v27  ;;  %vm10349_vm3 = vmand %vm18648_vm12, %vm10026_vm4 }
 0x975   :  { %vm10539_vm12 = vmpackc.low %vm18708_vm1, %vm18708_vm1 }
 0x976   :  { %v10540_v40 = vsel %vm10539_vm12, 65537, %v19331_v11 }
 0x977   :  { %v9376_v12 = vpop.permute.xlu1 %9375  ;;  %v10542_v32 = vshrl.u32 %v10540_v40, 16 }
 0x978   :  { %9379 = vst.msk [vmem:[#allocation3 + $0x4] sm:$0x2] %vm9378_vm8, %v9376_v12  ;;  %vm10352_vm8 = vmpackc.low %vm10349_vm3, %vm10349_vm3  ;;  %vm10109_vm3 = vcmask 523264  }
 0x979   :  { %v10353_v34 = vsel %vm10352_vm8, 65537, %v19331_v11  ;;  %v10544_v42 = vrot.slane %v10542_v32, 7 }
 0x97a   :  { %v10355_v55 = vshll.u32 %v10353_v34, 16  ;;  %v10358_v14 = vshrl.u32 %v10353_v34, 16  ;;  %v13097_v34 = vld [vmem:[%s18977_s3 + $0x50] sm:$0xff]  }
 0x97c   :  { %v10357_v38 = vrot.slane %v10355_v55, 5  ;;  %v10360_v20 = vrot.slane %v10358_v14, 4  ;;  %v10545_v55 = vshll.u32 %v10540_v40, 16  ;;  %v13099_v14 = vld [vmem:[%s18977_s3 + $0x58] sm:$0xff]  }
 0x97e   :  { %v10361_v21 = vor.u32 %v10360_v20, %v10357_v38  ;;  %vm10363_vm8 = vcmp.ne.s16.totalorder %v10357_v38, 0  ;;  %v10547_v31 = vor.u32 %v10545_v55, %v10544_v42  ;;  %v10548_v38 = vrot.slane %v10544_v42, 4  ;;  %v18773_v20 = vld [vmem:[#allocation3 + $0x8] sm:$0x1] }
 0x97f   :  { %v9534_v50 = vpop.permute.xlu0 %9533  ;;  %v10365_v25 = vsel %vm10363_vm8, %v18665_v59, 0 }
 0x980   :  { %9537 = vst.msk [vmem:[#allocation3 + $0x4] sm:$0x4] %vm9536_vm0, %v9534_v50  ;;  %vm10241_vm0 = vmpackc.low %vm10238_vm10, %vm10238_vm10  ;;  %v10362_v54 = vrot.slane %v10361_v21, 4  ;;  %vm10550_vm8 = vcmp.ne.s16.totalorder %v10548_v38, 0 }
 0x981   :  { %v10242_v60 = vsel %vm10241_vm0, 65537, %v19331_v11 }
 0x982   :  { %v10244_v49 = vshll.u32 %v10242_v60, 16  ;;  %v10247_v58 = vshrl.u32 %v10242_v60, 16  ;;  %vm10364_vm10 = vcmp.ne.s16.totalorder %v10362_v54, 0  ;;  %v13105_v54 = vld [vmem:[%s18977_s3 + $0xb8] sm:$0xff]  }
 0x983   :  { %v9614_v3 = vpop.permute.xlu0 %9613 }
 0x984   :  { %9617 = vst.msk [vmem:[#allocation3 + $0x4] sm:$0x4] %vm9616_vm13, %v9614_v3  ;;  %vm18675_vm13 = vcmp.ne.s16.totalorder %v10042_v17, 0  ;;  %v10246_v9 = vrot.slane %v10244_v49, 5  ;;  %v10249_v61 = vrot.slane %v10247_v58, 4  ;;  %v13095_v3 = vld [vmem:[%s18977_s3 + $0x48] sm:$0xff]  }
 0x985   :  { %v13102_v49 = vld [vmem:[%s18977_s3 + $0xa0] sm:$0xff]  }
 0x986   :  { %v10250_v18 = vor.u32 %v10249_v61, %v10246_v9  ;;  %vm10252_vm0 = vcmp.ne.s16.totalorder %v10246_v9, 0  ;;  %v13104_v61 = vld [vmem:[%s18977_s3 + $0xb0] sm:$0xff]  }
 0x987   :  { %v9694_v48 = vpop.permute.xlu0 %9693  ;;  %v10254_v47 = vsel %vm10252_vm0, %v18665_v59, 0  ;;  %v13098_v59 = vld [vmem:[%s18977_s3 + $0x88] sm:$0xff]  }
 0x988   :  { %9697 = vst.msk [vmem:[#allocation3 + $0x4] sm:$0x4] %vm9696_vm9, %v9694_v48  ;;  %vm10014_vm9 = vcmask 519555   ;;  %v10251_v62 = vrot.slane %v10250_v18, 4 }
 0x98f   :  { %v9852_v10 = vpop.permute.xlu1 %9851  ;;  %v10024_v13 = vld [vmem:[#allocation3 + $0x4] sm:$0x7] }
 0x990   :  { %9855 = vst.msk [vmem:[#allocation3 + $0x4] sm:$0x8] %vm9854_vm11, %v9852_v10  ;;  %v10069_v36 = vsel %vm10067_vm15, %v10024_v13, 0  ;;  %v10046_v35 = vsel %vm18675_vm13, %v10024_v13, 0  ;;  %vm10253_vm11 = vcmp.ne.s16.totalorder %v10251_v62, 0  ;;  %vm10643_vm15 = vcmp.ge.s32.totalorder %v10642_v4, 0 }
 0x991   :  { %v11582_v56 = vcombine.low %v10068_v16, %v10069_v36  ;;  %v11588_v26 = vcombine.low %v10045_v52, %v10046_v35  ;;  %v13100_v16 = vld [vmem:[%s18977_s3 + $0x90] sm:$0xff]   ;;  %v13103_v52 = vld [vmem:[%s18977_s3 + $0xa8] sm:$0xff]  }
 0x993   :  { %v9932_v45 = vpop.permute.xlu1 %9931  ;;  %v10084_v57 = vrot.slane %v11582_v56, 3  ;;  %v10159_v6 = vshrl.u32 %v11588_v26, 16  ;;  %v10162_v23 = vshll.u32 %v11588_v26, 16  ;;  %v13101_v56 = vld [vmem:[%s18977_s3 + $0x98] sm:$0xff]  }
 0x994   :  { %9935 = vst.msk [vmem:[#allocation3 + $0x4] sm:$0x8] %vm9934_vm14, %v9932_v45  ;;  %vm10644_vm14 = vcmp.lt.s32.totalorder %v10642_v4, 2  ;;  %v10552_v45 = vsel %vm10550_vm8, %v18773_v20, 0  ;;  %vm11028_vm8 = vcmask 780802  }
 0x995   :  { %12573 = vmatmul.mubr.msk.bf16.vlgmr.msra.gmra.mrb[16].mxu0 %vm10109_vm3, %v10084_v57  ;;  %v10161_v51 = vrot.slane %v10159_v6, 2  ;;  %v10164_v53 = vrot.slane %v10162_v23, 3  ;;  %vm18752_vm2 = vmand %vm10643_vm15, %vm10644_vm14  ;;  %v13106_v6 = vld [vmem:[%s18977_s3 + $0xc0] sm:$0xff]  }
 0x996   :  { %12577 = vmatpush3.bf16.msra.mxu0 %v13086_v37  ;;  %12584 = vmatprep.mubr.msk.bf16.mxu0 %vm20312_vm7, %v13157_v43  ;;  %vm18760_vm13 = vmand %vm18752_vm2, %vm10026_vm4  ;;  %vm10549_vm4 = vcmp.ne.s16.totalorder %v10547_v31, 0  ;;  %v13117_v31 = vld [vmem:[%s18977_s3 + $0x118] sm:$0xff]  }
 0x997   :  { %v10012_v33 = vpop.permute.xlu1 %10011  ;;  %12578 = vmatprep.subr.bf16.mxu0 %v13157_v43  ;;  %v10165_v12 = vor.u32 %v10164_v53, %v10161_v51  ;;  %vm10848_vm0 = vmand %vm18752_vm2, %vm10236_vm6  ;;  %v13108_v53 = vld [vmem:[%s18977_s3 + $0xd0] sm:$0xff]  }
 0x998   :  { %10015 = vst.msk [vmem:[#allocation3 + $0x4] sm:$0x8] %vm10014_vm9, %v10012_v33  ;;  %vm10649_vm9 = vmpackc.low %vm18760_vm13, %vm18760_vm13  ;;  %vm11035_vm13 = vcmask 258052  }
 0x999   :  { %v10650_v58 = vsel %vm10649_vm9, 65537, %v19331_v11  ;;  %vm10851_vm12 = vmpackc.low %vm10848_vm0, %vm10848_vm0  ;;  %vm11023_vm9 = vcmask 517377   ;;  %vm11041_vm0 = vcmask 1048327  }
 0x99a   :  { %12579 = vmatpush3.bf16.msra.mxu0 %v13087_v2  ;;  %v10652_v57 = vshrl.u32 %v10650_v58, 16  ;;  %v10655_v9 = vshll.u32 %v10650_v58, 16  ;;  %v10852_v0 = vsel %vm10851_vm12, 65537, %v19331_v11 }
 0x99b   :  { %12580 = vmatprep.subr.bf16.mxu0 %v13157_v43 }
 0x99c   :  { %v10654_v21 = vrot.slane %v10652_v57, 7 }
 0x99e   :  { %12581 = vmatpush3.bf16.msra.mxu0 %v13089_v7  ;;  %v10657_v33 = vor.u32 %v10655_v9, %v10654_v21  ;;  %v10658_v26 = vrot.slane %v10654_v21, 4 }
 0x99f   :  { %12582 = vmatprep.subr.bf16.mxu0 %v13157_v43  ;;  %v18701_v30 = vld [vmem:[#allocation3 + $0x4] sm:$0xf] }
 0x9a0   :  { %v10366_v1 = vsel %vm10364_vm10, %v18701_v30, 0  ;;  %v10255_v24 = vsel %vm10253_vm11, %v18701_v30, 0  ;;  %v10534_v46 = vld [vmem:[#allocation3 + $0x4] sm:$0xf]  ;;  %vm10659_vm10 = vcmp.ne.s16.totalorder %v10657_v33, 0  ;;  %vm10660_vm1 = vcmp.ne.s16.totalorder %v10658_v26, 0  ;;  %vm10756_vm11 = vmpackc.low %vm18752_vm2, %vm18752_vm2 }
 0x9a1   :  { %v11616_v27 = vcombine.low %v10365_v25, %v10366_v1  ;;  %v11602_v48 = vcombine.low %v10254_v47, %v10255_v24  ;;  %v10551_v37 = vsel %vm10549_vm4, %v10534_v46, 0  ;;  %v10661_v62 = vsel %vm10659_vm10, %v10534_v46, 0  ;;  %v13107_v25 = vld [vmem:[%s18977_s3 + $0xc8] sm:$0xff]   ;;  %v13110_v47 = vld [vmem:[%s18977_s3 + $0xe0] sm:$0xff]   ;;  %v11046_v33 = vld [vmem:[%s18981_s7 + $0x10] sm:$0xff] }
 0x9a2   :  { %12583 = vmatpush3.bf16.msra.mxu0 %v13091_v63  ;;  %v11643_v35 = vcombine.low %v10551_v37, %v10552_v45  ;;  %v10662_v63 = vsel %vm10660_vm1, %v18773_v20, 0  ;;  %v10757_v1 = vsel %vm10756_vm11, 65537, %v19331_v11  ;;  %vm11037_vm4 = vcmask 521477  }
 0x9a3   :  { %12588 = vmatprep.subr.bf16.mxu0 %v13157_v43  ;;  %v10382_v29 = vshrl.u32 %v11616_v27, 16  ;;  %v10385_v50 = vshll.u32 %v11616_v27, 16  ;;  %v10271_v15 = vshrl.u32 %v11602_v48, 16  ;;  %v10274_v17 = vshll.u32 %v11602_v48, 16 }
 0x9a4   :  { %v10570_v2 = vshll.u32 %v11643_v35, 16  ;;  %v10568_v7 = vshrl.u32 %v11643_v35, 16  ;;  %v11657_v51 = vcombine.low %v10661_v62, %v10662_v63  ;;  %v11050_v62 = vld [vmem:[%s18981_s7 + $0x30] sm:$0xff]  ;;  %v11051_v63 = vld [vmem:[%s18981_s7 + $0x38] sm:$0xff]  ;;  %vm11039_vm10 = vcmask 784902  }
 0x9a5   :  { %12585 = vmatmul.mubr.msk.bf16.vlgmr.msra.gmra.mrb[16].mxu0 %vm10109_vm3, %v10165_v12  ;;  %v10384_v19 = vrot.slane %v10382_v29, 3  ;;  %v10387_v39 = vrot.slane %v10385_v50, 4  ;;  %v10273_v60 = vrot.slane %v10271_v15, 3  ;;  %v10276_v10 = vrot.slane %v10274_v17, 4  ;;  %v10847_v15 = vld [vmem:[#allocation3 + $0x8] sm:$0x3] }
 0x9a6   :  { %12589 = vmatpush3.bf16.msra.mxu0 %v13093_v8  ;;  %12596 = vmatprep.mubr.msk.bf16.mxu0 %vm20312_vm7, %v13157_v43  ;;  %v10572_v18 = vrot.slane %v10570_v2, 1  ;;  %v10678_v8 = vshrl.u32 %v11657_v51, 16  ;;  %v10758_v12 = vrot.slane %v10757_v1, 7  ;;  %v10854_v29 = vshrl.u32 %v10852_v0, 16  ;;  %v13114_v17 = vld [vmem:[%s18977_s3 + $0x100] sm:$0xff]   ;;  %v11045_v2 = vld [vmem:[%s18981_s7 + $0x8] sm:$0xff] }
 0x9a7   :  { %12590 = vmatprep.subr.bf16.mxu0 %v13157_v43  ;;  %v10388_v41 = vor.u32 %v10387_v39, %v10384_v19  ;;  %v10277_v28 = vor.u32 %v10276_v10, %v10273_v60  ;;  %v10857_v50 = vshll.u32 %v10852_v0, 16  ;;  %v13116_v10 = vld [vmem:[%s18977_s3 + $0x110] sm:$0xff]   ;;  %vm11033_vm1 = vcmask 1044227  }
 0x9a8   :  { %v10573_v23 = vor.u32 %v10572_v18, %v10568_v7  ;;  %v10759_v19 = vrot.slane %v10758_v12, 4  ;;  %v10856_v39 = vrot.slane %v10854_v29, 6  ;;  %vm10760_vm6 = vcmp.ne.s16.totalorder %v10758_v12, 0  ;;  %v11048_v7 = vld [vmem:[%s18981_s7 + $0x20] sm:$0xff] }
 0x9a9   :  { %12609 = vmatmul.mubr.msk.bf16.vlgmr.msra.gmra.mrb[100].mxu1 %vm10109_vm3, %v10388_v41  ;;  %v10859_v11 = vrot.slane %v10857_v50, 7  ;;  %v13112_v41 = vld [vmem:[%s18977_s3 + $0xf0] sm:$0xff]  }
 0x9aa   :  { %12591 = vmatpush3.bf16.msra.mxu0 %v13095_v3  ;;  %12613 = vmatpush3.bf16.msra.mxu1 %v13096_v44  ;;  %v13111_v3 = vld [vmem:[%s18977_s3 + $0xe8] sm:$0xff]   ;;  %v10752_v44 = vld [vmem:[#allocation3 + $0x4] sm:$0xe]  ;;  %vm10761_vm15 = vcmp.ne.s16.totalorder %v10759_v19, 0 }
 0x9ab   :  { %12592 = vmatprep.subr.bf16.mxu0 %v13157_v43  ;;  %12614 = vmatprep.subr.bf16.mxu1 %v13157_v43  ;;  %v10860_v40 = vor.u32 %v10859_v11, %v10856_v39  ;;  %v10762_v48 = vsel %vm10760_vm6, %v10752_v44, 0  ;;  %v10763_v4 = vsel %vm10761_vm15, %v18773_v20, 0 }
 0x9ac   :  { %12620 = vmatprep.mubr.msk.bf16.mxu1 %vm20312_vm7, %v13157_v43 }
 0x9ad   :  { %v10861_v32 = vrot.slane %v10860_v40, 4  ;;  %vm10862_vm14 = vcmp.ne.s16.totalorder %v10860_v40, 0 }
 0x9ae   :  { %12593 = vmatpush3.bf16.msra.mxu0 %v13097_v34  ;;  %12615 = vmatpush3.bf16.msra.mxu1 %v13098_v59  ;;  %v13113_v34 = vld [vmem:[%s18977_s3 + $0xf8] sm:$0xff]   ;;  %v11671_v59 = vcombine.low %v10762_v48, %v10763_v4  ;;  %v10864_v55 = vsel %vm10862_vm14, %v10752_v44, 0 }
 0x9af   :  { %12594 = vmatprep.subr.bf16.mxu0 %v13157_v43  ;;  %12616 = vmatprep.subr.bf16.mxu1 %v13157_v43  ;;  %vm10863_vm2 = vcmp.ne.s16.totalorder %v10861_v32, 0 }
 0x9b0   :  { %v10778_v42 = vrot.slane %v11671_v59, 1 }
 0x9b2   :  { %12595 = vmatpush3.bf16.msra.mxu0 %v13099_v14  ;;  %12617 = vmatpush3.bf16.msra.mxu1 %v13100_v16  ;;  %v10865_v14 = vsel %vm10863_vm2, %v10847_v15, 0  ;;  %v13115_v16 = vld [vmem:[%s18977_s3 + $0x108] sm:$0xff]   ;;  %s13164_s3 = smov 64  }
 0x9b3   :  { %12618 = vmatprep.subr.bf16.mxu1 %v13157_v43  ;;  %12814 = vmatprep.subr.bf16.mxu0 %v13155_v5  ;;  %v11685_v60 = vcombine.low %v10864_v55, %v10865_v14  ;;  %v11055_v55 = vld [vmem:[%s18981_s7 + $0x58] sm:$0xff] }
 0x9b5   :  { %12597 = vmatmul.mubr.msk.bf16.vlgmr.msra.gmra.mrb[16].mxu0 %vm10109_vm3, %v10277_v28  ;;  %v10881_v13 = vshrl.u32 %v11685_v60, 16  ;;  %v10884_v36 = vshll.u32 %v11685_v60, 16 }
 0x9b6   :  { %12619 = vmatpush3.bf16.msra.mxu1 %v13101_v56  ;;  %12704 = vmatprep.mubr.msk.f32.mxu0 %vm20312_vm7, %v13157_v43 }
 0x9b7   :  { %12624 = vmatprep.subr.bf16.mxu1 %v13157_v43  ;;  %v10883_v38 = vrot.slane %v10881_v13, 1  ;;  %v10886_v56 = vrot.slane %v10884_v36, 2  ;;  %v11695_v13 = vld [vmem:[%s18980_s6 + $0x2] ss:$0 sm:$0xff] }
 0x9b9   :  { %12621 = vmatmul.mubr.msk.bf16.vlgmr.msra.gmra.mrb[100].mxu1 %vm10109_vm3, %v18701_v30  ;;  %v10680_v30 = vshll.u32 %v11657_v51, 16  ;;  %v10887_v28 = vor.u32 %v10886_v56, %v10883_v38  ;;  %v11052_v51 = vld [vmem:[%s18981_s7 + $0x40] sm:$0xff]  ;;  %v11057_v38 = vld [vmem:[%s18981_s7 + $0x68] sm:$0xff]  ;;  %v11058_v56 = vld [vmem:[%s18981_s7 + $0x70] sm:$0xff] }
 0x9ba   :  { %12625 = vmatpush3.bf16.msra.mxu1 %v13102_v49  ;;  %12632 = vmatprep.mubr.msk.bf16.mxu1 %vm20312_vm7, %v13157_v43 }
 0x9bb   :  { %12626 = vmatprep.subr.bf16.mxu1 %v13157_v43  ;;  %v10682_v27 = vrot.slane %v10680_v30, 1 }
 0x9bd   :  { %v10683_v24 = vor.u32 %v10682_v27, %v10678_v8 }
 0x9be   :  { %12627 = vmatpush3.bf16.msra.mxu1 %v13103_v52 }
 0x9bf   :  { %12628 = vmatprep.subr.bf16.mxu1 %v13157_v43 }
 0x9c2   :  { %12629 = vmatpush3.bf16.msra.mxu1 %v13104_v61  ;;  %v11044_v61 = vld [vmem:[%s18981_s7] sm:$0xff] }
 0x9c3   :  { %12630 = vmatprep.subr.bf16.mxu1 %v13157_v43  ;;  %v12815_v26 = vpack.c.bf16 %v11045_v2, %v11044_v61 }
 0x9c5   :  { %12816 = vmatpush3.bf16.msra.mxu0 %v12815_v26  ;;  %v11140_v26 = vld [vmem:[%s18983_s9 + $0x18] sm:$0xff] }
 0x9c6   :  { %12631 = vmatpush3.bf16.msra.mxu1 %v13105_v54  ;;  %v11047_v54 = vld [vmem:[%s18981_s7 + $0x18] sm:$0xff]  ;;  %12817 = vmatprep.subr.bf16.mxu0 %v13155_v5 }
 0x9c7   :  { %12636 = vmatprep.subr.bf16.mxu1 %v13157_v43  ;;  %v12818_v18 = vpack.c.bf16 %v11047_v54, %v11046_v33  ;;  %v11139_v33 = vld [vmem:[%s18983_s9 + $0x10] sm:$0xff] }
 0x9c8   :  { %v12842_v54 = vpack.c.bf16 %v11140_v26, %v11139_v33 }
 0x9c9   :  { %12633 = vmatmul.mubr.msk.bf16.vlgmr.msra.gmra.mrb[100].mxu1 %vm10109_vm3, %v10573_v23  ;;  %12819 = vmatpush3.bf16.msra.mxu0 %v12818_v18  ;;  %v11696_v18 = vld [vmem:[%s18982_s8] ss:$0 sm:$0xff] }
 0x9ca   :  { %12637 = vmatpush3.bf16.msra.mxu1 %v13106_v6  ;;  %12644 = vmatprep.mubr.msk.bf16.mxu1 %vm20312_vm7, %v13157_v43  ;;  %v11049_v6 = vld [vmem:[%s18981_s7 + $0x28] sm:$0xff] }
 0x9cb   :  { %12638 = vmatprep.subr.bf16.mxu1 %v13157_v43  ;;  %v12821_v23 = vpack.c.bf16 %v11049_v6, %v11048_v7  ;;  %12820 = vmatprep.subr.bf16.mxu0 %v13155_v5 }
 0x9cd   :  { %12822 = vmatpush3.bf16.msra.mxu0 %v12821_v23 }
 0x9ce   :  { %12639 = vmatpush3.bf16.msra.mxu1 %v13107_v25  ;;  %v12824_v25 = vpack.c.bf16 %v11051_v63, %v11050_v62  ;;  %12823 = vmatprep.subr.bf16.mxu0 %v13155_v5 }
 0x9cf   :  { %12640 = vmatprep.subr.bf16.mxu1 %v13157_v43 }
 0x9d1   :  { %12825 = vmatpush3.bf16.msra.mxu0 %v12824_v25 }
 0x9d2   :  { %12641 = vmatpush3.bf16.msra.mxu1 %v13108_v53  ;;  %v11053_v53 = vld [vmem:[%s18981_s7 + $0x48] sm:$0xff]  ;;  %12826 = vmatprep.subr.bf16.mxu0 %v13155_v5 }
 0x9d3   :  { %12642 = vmatprep.subr.bf16.mxu1 %v13157_v43  ;;  %v12827_v30 = vpack.c.bf16 %v11053_v53, %v11052_v51 }
 0x9d5   :  { %12828 = vmatpush3.bf16.msra.mxu0 %v12827_v30 }
 0x9d6   :  { %12643 = vmatpush3.bf16.msra.mxu1 %v13109_v22  ;;  %12829 = vmatprep.subr.bf16.mxu0 %v13155_v5  ;;  %v11691_v22 = vld [vmem:[%s18980_s6] ss:$0 sm:$0xff] }
 0x9d7   :  { %12648 = vmatprep.subr.bf16.mxu1 %v13157_v43 }
 0x9d9   :  { %12645 = vmatmul.mubr.msk.bf16.vlgmr.msra.gmra.mrb[100].mxu1 %vm10109_vm3, %v10683_v24 }
 0x9da   :  { %12649 = vmatpush3.bf16.msra.mxu1 %v13110_v47  ;;  %12656 = vmatprep.mubr.msk.bf16.mxu1 %vm20312_vm7, %v13157_v43 }
 0x9db   :  { %12650 = vmatprep.subr.bf16.mxu1 %v13157_v43 }
 0x9de   :  { %12651 = vmatpush3.bf16.msra.mxu1 %v13111_v3 }
 0x9df   :  { %12652 = vmatprep.subr.bf16.mxu1 %v13157_v43 }
 0x9e2   :  { %12653 = vmatpush3.bf16.msra.mxu1 %v13112_v41 }
 0x9e3   :  { %12654 = vmatprep.subr.bf16.mxu1 %v13157_v43 }
 0x9e6   :  { %12655 = vmatpush3.bf16.msra.mxu1 %v13113_v34 }
 0x9e7   :  { %12660 = vmatprep.subr.bf16.mxu1 %v13157_v43 }
 0x9e9   :  { %12657 = vmatmul.mubr.msk.bf16.vlgmr.msra.gmra.mrb[100].mxu1 %vm10109_vm3, %v10778_v42  ;;  %v11054_v42 = vld [vmem:[%s18981_s7 + $0x50] sm:$0xff] }
 0x9ea   :  { %12661 = vmatpush3.bf16.msra.mxu1 %v13114_v17  ;;  %12668 = vmatprep.mubr.msk.bf16.mxu1 %vm20312_vm7, %v13157_v43 }
 0x9eb   :  { %12662 = vmatprep.subr.bf16.mxu1 %v13157_v43 }
 0x9ee   :  { %12663 = vmatpush3.bf16.msra.mxu1 %v13115_v16  ;;  %v12830_v16 = vpack.c.bf16 %v11055_v55, %v11054_v42 }
 0x9ef   :  { %12664 = vmatprep.subr.bf16.mxu1 %v13157_v43 }
 0x9f0   :  { %12831 = vmatpush3.bf16.msra.mxu0 %v12830_v16 }
 0x9f1   :  { %12832 = vmatprep.subr.bf16.mxu0 %v13155_v5 }
 0x9f2   :  { %12665 = vmatpush3.bf16.msra.mxu1 %v13116_v10  ;;  %v11693_v10 = vld [vmem:[%s18980_s6 + $0x1] ss:$0 sm:$0xff] }
 0x9f3   :  { %12666 = vmatprep.subr.bf16.mxu1 %v13157_v43 }
 0x9f6   :  { %12667 = vmatpush3.bf16.msra.mxu1 %v13117_v31  ;;  %v11056_v31 = vld [vmem:[%s18981_s7 + $0x60] sm:$0xff] }
 0x9f9   :  { %12669 = vmatmul.mubr.msk.bf16.vlgmr.msra.gmra.mrb[100].mxu1 %vm10109_vm3, %v10887_v28  ;;  %vm11017_vm3 = vcmask 253952  }
 0xa88   :  { %v10339_v46 = vpop.f32.mrb[16].mxu0 }
 0xa89   :  { %v12598_v20 = vpop.f32.mrb[17].mxu0 }
 0xa8a   :  { %v10342_v49 = vpop.f32.mrb[18].mxu0  ;;  %v11059_v20 = vld [vmem:[%s18981_s7 + $0x78] sm:$0xff] }
 0xa8b   :  { %v12599_v58 = vpop.f32.mrb[19].mxu0 }
 0xa8c   :  { %v12836_v58 = vpack.c.bf16 %v11059_v20, %v11058_v56 }
 0xacc   :  { %v10949_v37 = vpop.f32.mrb[100].mxu1 }
 0xacd   :  { %v12844_v45 = vadd.f32 %v10949_v37, %v10339_v46  ;;  %v12670_v57 = vpop.f32.mrb[101].mxu1  ;;  %v12833_v46 = vpack.c.bf16 %v11057_v38, %v11056_v31 }
 0xace   :  { %v10952_v52 = vpop.f32.mrb[102].mxu1 }
 0xacf   :  { %10957 = vrot.lane.b32.xlu0 %v12844_v45, %s13161_s2  ;;  %v12671_v35 = vpop.f32.mrb[103].mxu1  ;;  %12834 = vmatpush3.bf16.msra.mxu0 %v12833_v46 }
 0xad0   :  { %12835 = vmatprep.subr.bf16.mxu0 %v13155_v5 }
 0xad3   :  { %12837 = vmatpush3.bf16.msra.mxu0 %v12836_v58 }
 0xad4   :  { %12838 = vmatprep.subr.bf16.mxu0 %v13155_v5 }
 0xb41   :  { %v10958_v21 = vpop.permute.xlu0 %10957 }
 0xb42   :  { %v10960_v9 = vmax.f32 %v12844_v45, %v10958_v21  ;;  %v11137_v21 = vld [vmem:[%s18983_s9] sm:$0xff] }
 0xb44   :  { %10962 = vrot.lane.b32.xlu1 %v10960_v9, %s13164_s3 }
 0xbb6   :  { %v10963_v1 = vpop.permute.xlu1 %10962 }
 0xbb7   :  { %v10965_v0 = vmax.f32 %v10960_v9, %v10963_v1  ;;  %v11138_v9 = vld [vmem:[%s18983_s9 + $0x8] sm:$0xff]  ;;  %s13128_s9 = scalar_lea.vmem %s11229_s13, 32 }
 0xbb8   :  { %v12839_v61 = vpack.c.bf16 %v11138_v9, %v11137_v21  ;;  %p13129_p0 = scmp.ne.s32.totalorder %s11229_s13, %s13128_s9  ;;  %p13134_p2 = scmp.lt.s32.totalorder %s13128_s9, %s13128_s9 }
 0xbb9   :  { %v10973_v27 = vadd.f32 %v11691_v22, %v10965_v0 }
 0xbba   :  { %p13135_p3 = por %p13134_p2, %p13133_p1 }
 0xbbb   :  { %v10974_v8 = vsel %vm7443_vm5, %v10973_v27, 0.0  ;;  %v10982_v12 = vmul.f32 %v10973_v27, %v10973_v27 }
 0xbbc   :  { %v10975_v29 = vrot.slane %v10974_v8, 4  ;;  %p13136_p4 = pnand %p13135_p3, %p13129_p0 }
 0xbbd   :  { %v10983_v50 = vsel %vm7443_vm5, %v10982_v12, 0.0 }
 0xbbe   :  { %v10976_v47 = vadd.f32 %v10975_v29, %v10974_v8  ;;  %v10984_v24 = vrot.slane %v10983_v50, 4 }
 0xbc0   :  { %v10977_v19 = vrot.slane %v10976_v47, 2  ;;  %v10985_v39 = vadd.f32 %v10984_v24, %v10983_v50 }
 0xbc2   :  { %v10978_v11 = vadd.f32 %v10977_v19, %v10976_v47  ;;  %v10986_v3 = vrot.slane %v10985_v39, 2 }
 0xbc4   :  { %v10979_v44 = vrot.slane %v10978_v11, 1  ;;  %v10987_v40 = vadd.f32 %v10986_v3, %v10985_v39 }
 0xbc6   :  { %v10980_v41 = vadd.f32 %v10979_v44, %v10978_v11  ;;  %v10988_v48 = vrot.slane %v10987_v40, 1 }
 0xbc8   :  { %v10981_v4 = vmul.f32 0.125, %v10980_v41  ;;  %v10989_v32 = vadd.f32 %v10988_v48, %v10987_v40 }
 0xbca   :  { %v10990_v34 = vmul.f32 0.125, %v10989_v32  ;;  %v10991_v59 = vmul.f32 %v10981_v4, %v10981_v4  ;;  %v10993_v14 = vsub.f32 %v10973_v27, %v10981_v4 }
 0xbcc   :  { %v10992_v15 = vsub.f32 %v10990_v34, %v10991_v59 }
 0xbce   :  { %v10994_v17 = vadd.f32 1e-05, %v10992_v15 }
 0xbd0   :  { %13122 = vrsqrt.f32 %v10994_v17 }
 0xbda   :  { %v13123_v60 = vpop.eup %13122 }
 0xbdb   :  { %v10996_v36 = vmul.f32 %v13123_v60, %v10993_v14 }
 0xbdd   :  { %v11005_v28 = vmul.f32 %v11693_v10, %v10996_v36 }
 0xbdf   :  { %v11014_v49 = vadd.f32 %v11695_v13, %v11005_v28 }
 0xbe1   :  { %v11015_v37 = vmul.f32 0.2, %v11014_v49 }
 0xbe3   :  { %v11016_v45 = vmax.f32 %v11014_v49, %v11015_v37 }
 0xbe5   :  { %11025 = vrot.lane.b32.xlu1 %v11016_v45, %s13164_s3  ;;  %11020 = vrot.lane.b32.xlu0 %v11016_v45, %s13162_s5  ;;  %11018 = vst.msk [vmem:[#allocation4] sm:$0x1] %vm11017_vm3, %v11016_v45 }
 0xbe6   :  { %11036 = vst.msk [vmem:[#allocation4 - $0x3] sm:$0x10] %vm11035_vm13, %v11016_v45 }
 0xbe9   :  { %11030 = vrot.lane.b32.xlu0 %v11016_v45, %s13161_s2 }
 0xc57   :  { %v11026_v57 = vpop.permute.xlu1 %11025  ;;  %v11021_v52 = vpop.permute.xlu0 %11020 }
 0xc58   :  { %11024 = vst.msk [vmem:[#allocation4 - $0x1] sm:$0x2] %vm11023_vm9, %v11021_v52 }
 0xc59   :  { %11038 = vst.msk [vmem:[#allocation4 - $0x4] sm:$0x20] %vm11037_vm4, %v11021_v52 }
 0xc5a   :  { %11029 = vst.msk [vmem:[#allocation4 - $0x2] sm:$0x4] %vm11028_vm8, %v11026_v57 }
 0xc5b   :  { %11040 = vst.msk [vmem:[#allocation4 - $0x5] sm:$0x40] %vm11039_vm10, %v11026_v57  ;;  %v11031_v35 = vpop.permute.xlu0 %11030 }
 0xc5c   :  { %11034 = vst.msk [vmem:[#allocation4 - $0x3] sm:$0x8] %vm11033_vm1, %v11031_v35 }
 0xc5d   :  { %11042 = vst.msk [vmem:[#allocation4 - $0x6] sm:$0x80] %vm11041_vm0, %v11031_v35 }
 0xc64   :  { %v11043_v2 = vld [vmem:[#allocation4] sm:$0x3] }
 0xc65   :  { %12705 = vmatmul.mubr.f32.vlgmr.msra.gmra.mrb[20].mxu0 %v11043_v2 }
 0xc66   :  { %12840 = vmatpush3.bf16.msra.mxu0 %v12839_v61  ;;  %12715 = vmatprep.mubr.msk.f32.mxu0 %vm20312_vm7, %v13157_v43 }
 0xc67   :  { %12841 = vmatprep.subr.bf16.mxu0 %v13155_v5  ;;  %v11697_v5 = vld [vmem:[%s18984_s10] ss:$0 sm:$0xff] }
 0xc6a   :  { %12843 = vmatpush3.bf16.msra.mxu0 %v12842_v54 }
 0xd38   :  { %v11133_v7 = vpop.f32.mrb[20].mxu0 }
 0xd39   :  { %v11134_v6 = vadd.f32 %v11696_v18, %v11133_v7  ;;  %v12706_v23 = vpop.f32.mrb[21].mxu0 }
 0xd3b   :  { %12716 = vmatmul.mubr.msk.f32.vlgmr.msra.gmra.mrb[22].mxu0 %vm7443_vm5, %v11134_v6 }
 0xe0e   :  { %v11217_v43 = vpop.f32.mrb[22].mxu0 }
 0xe0f   :  { %v11218_v62 = vadd.f32 %v11697_v5, %v11217_v43  ;;  %v12717_v63 = vpop.f32.mrb[23].mxu0 }
 0xe11   :  { %11221 = vst [vmem:[#allocation5] sm:$0x3] %v11218_v62 }
 0xe12   :  { %13139 = shalt.err (!%p13136_p4)
}
 0xe13   :  { %s13140_s15 = scalar_lea.hbm %s18985_s11, 32 }
 0xe14   :  { %p13141_p5 = scmp.ne.s32.totalorder %s18985_s11, %s13140_s15  ;;  %p13144_p6 = scmp.lt.u32.totalorder %s13140_s15, %s18985_s11 }
 0xe16   :  { %p13146_p7 = pnand %p13144_p6, %p13141_p5 }
 0xe18   :  { %13149 = shalt.err (!%p13146_p7)
}
 0xe19   :  { %11231 = dma.vmem_to_hbm [thread:$0]  %s11229_s13, 32, %s18985_s11, [#allocation6]  }
 0xe1a   :  { %13150 = dma.done.wait [#allocation6], 32  }
 0xe1b   :  { %13151 = vsyncadd [#allocation6], 4294967264 }
 0xe1c   :  { %11235 = vsyncpa [#allocation6], 1 }

</bundles_post_ra>
